<compile_context>
chip_gen: v7x
topology: tpu7x:2x2x1
jax: 0.10.0
libtpu: 0.0.40
codegen_flags: <defaults>
</compile_context>

<pallas_src>
import functools

import jax
import jax.numpy as jnp
from jax.experimental import pallas as pl
from jax.experimental.pallas import tpu as pltpu


# ----------------------------------------------------------------------------
# tiling helpers
# ----------------------------------------------------------------------------
def _pick_tile(dim, max_tile, quantum):
    """Largest tile <= max_tile that divides `dim` (quantum-aligned)."""
    if dim <= max_tile:
        return dim
    t = (max_tile // quantum) * quantum
    while t >= quantum:
        if dim % t == 0:
            return t
        t -= quantum
    raise ValueError(
        f"no {quantum}-aligned tile <= {max_tile} divides {dim}; pad the dim")


_B_RESIDENT_LIMIT = 4 << 20   # bf16 B tile bytes we allow to be fully K-resident


# ----------------------------------------------------------------------------
# fused matmul kernel:
#   optional A prologue (BN-affine + LeakyReLU), bias, optional activation,
#   optional BN batch-statistics (sum / sum-sq) epilogue.
# ----------------------------------------------------------------------------
def _matmul_kernel(*refs, act, compute_stats, prologue):
    if prologue:
        a_ref, scale_a_ref, shift_a_ref, b_ref, bias_ref = refs[:5]
        rest = refs[5:]
    else:
        a_ref, b_ref, bias_ref = refs[:3]
        rest = refs[3:]
    if compute_stats:
        y_ref, stats_ref, acc_ref = rest
    else:
        y_ref, acc_ref = rest

    k = pl.program_id(2)

    @pl.when(k == 0)
    def _():
        acc_ref[...] = jnp.zeros_like(acc_ref)

    a = a_ref[...]
    if prologue:
        a = a.astype(jnp.float32) * scale_a_ref[...] + shift_a_ref[...]
        a = jnp.where(a >= 0, a, 0.2 * a)                 # LeakyReLU(0.2)
    acc_ref[...] += jnp.dot(a.astype(jnp.bfloat16), b_ref[...],
                            preferred_element_type=jnp.float32)

    @pl.when(k == pl.num_programs(2) - 1)
    def _():
        y = acc_ref[...] + bias_ref[...]
        if act == "leaky":
            y = jnp.where(y >= 0, y, 0.2 * y)             # LeakyReLU(0.2)
        elif act == "sigmoid":
            y = pl.reciprocal(1.0 + jnp.exp(-y), approx=True)
        y_ref[...] = y.astype(y_ref.dtype)
        if compute_stats:                                 # pre-activation stats
            s = jnp.sum(y, axis=0, keepdims=True)         # (1, tn)
            sq = jnp.sum(y * y, axis=0, keepdims=True)    # (1, tn)
            stats_ref[...] = jnp.concatenate([s, sq], axis=0)[None]


def matmul_bias_act(a, b, bias, *, act="none", compute_stats=False,
                    prologue=None, out_dtype=jnp.float32,
                    tm_max=256, tn_max=512, tk_max=512):
    """y = act(leaky(a*scale+shift) @ b + bias); optional per-m-tile (sum,sumsq)."""
    M, K = a.shape
    Kb, N = b.shape
    assert K == Kb
    tm = _pick_tile(M, tm_max, 16)          # bf16 sublane quantum
    tn = _pick_tile(N, tn_max, 128)
    # Resident B along K when cheap -> the reduction grid axis degenerates to
    # one step and B is DMA'd once per (m, n) tile.  Fits default scoped VMEM
    # at these sizes on all generations (v5e 16 MiB .. v7x 32 MiB).
    tk = K if K * tn * 2 <= _B_RESIDENT_LIMIT else _pick_tile(K, tk_max, 128)
    # Give multi-TC chips (v7x) at least 2 parallel grid tiles when possible.
    if (M // tm) * (N // tn) < 2 and tm == M and M >= 32 and (M // 2) % 16 == 0:
        tm = M // 2
    m_tiles, n_tiles, k_tiles = M // tm, N // tn, K // tk

    a16 = a if a.dtype == jnp.bfloat16 else a.astype(jnp.bfloat16)
    b16 = b if b.dtype == jnp.bfloat16 else b.astype(jnp.bfloat16)

    in_specs = [pl.BlockSpec((tm, tk), lambda m, n, k: (m, k))]
    inputs = [a16]
    if prologue is not None:
        scale_a, shift_a = prologue
        in_specs += [pl.BlockSpec((1, tk), lambda m, n, k: (0, k)),
                     pl.BlockSpec((1, tk), lambda m, n, k: (0, k))]
        inputs += [scale_a.astype(jnp.float32), shift_a.astype(jnp.float32)]
    in_specs += [pl.BlockSpec((tk, tn), lambda m, n, k: (k, n)),
                 pl.BlockSpec((1, tn), lambda m, n, k: (0, n))]
    inputs += [b16, bias.astype(jnp.float32)]

    out_shapes = [jax.ShapeDtypeStruct((M, N), out_dtype)]
    out_specs = [pl.BlockSpec((tm, tn), lambda m, n, k: (m, n))]
    if compute_stats:
        out_shapes.append(jax.ShapeDtypeStruct((m_tiles, 2, N), jnp.float32))
        out_specs.append(pl.BlockSpec((1, 2, tn), lambda m, n, k: (m, 0, n)))

    outs = pl.pallas_call(
        functools.partial(_matmul_kernel, act=act, compute_stats=compute_stats,
                          prologue=prologue is not None),
        out_shape=tuple(out_shapes),
        grid_spec=pltpu.PrefetchScalarGridSpec(
            num_scalar_prefetch=0,
            grid=(m_tiles, n_tiles, k_tiles),
            in_specs=in_specs,
            out_specs=tuple(out_specs),
            scratch_shapes=[pltpu.VMEM((tm, tn), jnp.float32)],
        ),
        compiler_params=pltpu.CompilerParams(
            dimension_semantics=("parallel", "parallel", "arbitrary")),
    )(*inputs)

    if compute_stats:
        return outs[0], outs[1]
    return outs[0]


# ----------------------------------------------------------------------------
# fused final layers: BN1d-affine + LeakyReLU + fc2 + Sigmoid in one kernel
# ----------------------------------------------------------------------------
def _affine_fc_sigmoid_kernel(z_ref, scale_ref, shift_ref, w_ref, b_ref, o_ref,
                              *, n_out):
    a = z_ref[...] * scale_ref[...] + shift_ref[...]
    a = jnp.where(a >= 0, a, 0.2 * a)                     # LeakyReLU(0.2)
    if n_out == 1:
        # Degenerate single-column output: VPU multiply + lane reduction,
        # avoids a 1-lane MXU dot.  w_ref is (1, K).
        t = jnp.sum(a * w_ref[...], axis=-1, keepdims=True)
    else:
        t = jax.lax.dot_general(a.astype(jnp.bfloat16),
                                w_ref[...].astype(jnp.bfloat16),
                                (((1,), (1,)), ((), ())),
                                preferred_element_type=jnp.float32)
    t = t + b_ref[...]
    o_ref[...] = pl.reciprocal(1.0 + jnp.exp(-t), approx=True)   # sigmoid


def affine_leaky_fc_sigmoid(z, scale, shift, w_row, b, tm_max=256):
    """sigmoid(leaky(z*scale+shift) @ w_row.T + b); w_row is (out_dim, K)."""
    M, K = z.shape
    n_out, Kw = w_row.shape
    assert K == Kw
    tm = _pick_tile(M, tm_max, 8)
    return pl.pallas_call(
        functools.partial(_affine_fc_sigmoid_kernel, n_out=n_out),
        out_shape=jax.ShapeDtypeStruct((M, n_out), jnp.float32),
        grid_spec=pltpu.PrefetchScalarGridSpec(
            num_scalar_prefetch=0,
            grid=(M // tm,),
            in_specs=[pl.BlockSpec((tm, K), lambda m: (m, 0)),
                      pl.BlockSpec((1, K), lambda m: (0, 0)),
                      pl.BlockSpec((1, K), lambda m: (0, 0)),
                      pl.BlockSpec((n_out, K), lambda m: (0, 0)),
                      pl.BlockSpec((1, n_out), lambda m: (0, 0))],
            out_specs=pl.BlockSpec((tm, n_out), lambda m: (m, 0)),
        ),
        compiler_params=pltpu.CompilerParams(
            dimension_semantics=("parallel",)),
    )(z, scale, shift, w_row.astype(jnp.float32), b.astype(jnp.float32))


# ----------------------------------------------------------------------------
# glue: NHWC im2col for Conv2d(k=4, s=2, p=1); BN finish from fused stats
# ----------------------------------------------------------------------------
def im2col_nhwc(x, kh=4, kw=4, stride=2, pad=1):
    """x: (N, H, W, C) -> (N*OH*OW, kh*kw*C), columns ordered (i, j, c)."""
    N, H, W, C = x.shape
    OH = (H + 2 * pad - kh) // stride + 1
    OW = (W + 2 * pad - kw) // stride + 1
    xp = jnp.pad(x, ((0, 0), (pad, pad), (pad, pad), (0, 0)))
    taps = []
    for i in range(kh):
        for j in range(kw):
            taps.append(xp[:, i:i + stride * OH:stride,
                              j:j + stride * OW:stride, :])
    patches = jnp.stack(taps, axis=3)              # (N, OH, OW, kh*kw, C)
    return patches.reshape(N * OH * OW, kh * kw * C), OH, OW


def _bn_from_stats(stats, m_rows, gamma, beta, eps=1e-5):
    """stats: (m_tiles, 2, N) per-row-tile (sum, sum_sq) -> training-mode BN."""
    total = jnp.sum(stats, axis=0)                 # (2, N)
    mean = total[0] / m_rows
    # E[x^2] - E[x]^2 in f32, clamped; fine at these activation scales.
    var = jnp.maximum(total[1] / m_rows - mean * mean, 0.0)
    inv = gamma / jnp.sqrt(var + eps)
    return inv[None, :], (beta - mean * inv)[None, :]


# ----------------------------------------------------------------------------
# one-time weight reformat (layout permutes + bf16 casts), outside jit
# ----------------------------------------------------------------------------
def prepare_params(params):
    cin = params["conv1_w"].shape[1]
    fdim = params["fc1_w"].shape[1]
    s4 = int(round((fdim // 128) ** 0.5))          # = input_size // 4
    w1 = params["conv1_w"].transpose(2, 3, 1, 0).reshape(16 * cin, 64)
    w2 = params["conv2_w"].transpose(2, 3, 1, 0).reshape(16 * 64, 128)
    w_fc1 = params["fc1_w"].reshape(1024, 128, s4, s4)     # (o, c, h, w)
    w_fc1 = jnp.transpose(w_fc1, (2, 3, 1, 0)).reshape(s4 * s4 * 128, 1024)
    return {
        "w1": w1.astype(jnp.bfloat16),
        "b1": params["conv1_b"][None, :].astype(jnp.float32),
        "w2": w2.astype(jnp.bfloat16),
        "b2": params["conv2_b"][None, :].astype(jnp.float32),
        "bn2_gamma": params["bn2_gamma"].astype(jnp.float32),
        "bn2_beta": params["bn2_beta"].astype(jnp.float32),
        "w_fc1": w_fc1.astype(jnp.bfloat16),
        "b_fc1": params["fc1_b"][None, :].astype(jnp.float32),
        "bn1d_gamma": params["bn1d_gamma"].astype(jnp.float32),
        "bn1d_beta": params["bn1d_beta"].astype(jnp.float32),
        "w_fc2": params["fc2_w"].astype(jnp.float32),       # (out_dim, 1024)
        "b_fc2": params["fc2_b"][None, :].astype(jnp.float32),
    }


# ----------------------------------------------------------------------------
# forward pass (semantics of the PyTorch module, training-mode BatchNorm)
# ----------------------------------------------------------------------------
def discriminator_forward(p, x_nchw):
    N = x_nchw.shape[0]
    x = jnp.transpose(x_nchw, (0, 2, 3, 1)).astype(jnp.bfloat16)  # NCHW->NHWC once

    # --- conv1: Conv2d(in, 64, 4, 2, 1) + LeakyReLU(0.2), bf16 out ---
    p1, OH1, OW1 = im2col_nhwc(x)
    h1 = matmul_bias_act(p1, p["w1"], p["b1"], act="leaky",
                         out_dtype=jnp.bfloat16)
    h1 = h1.reshape(N, OH1, OW1, 64)               # stays NHWC, bf16

    # --- conv2: Conv2d(64, 128, 4, 2, 1) + fused BN2d batch-stat sums ---
    p2, OH2, OW2 = im2col_nhwc(h1)
    y2, stats2 = matmul_bias_act(p2, p["w2"], p["b2"], act="none",
                                 compute_stats=True, out_dtype=jnp.bfloat16)
    scale2, shift2 = _bn_from_stats(stats2, y2.shape[0],
                                    p["bn2_gamma"], p["bn2_beta"])

    # --- fc1: Linear(fdim, 1024); BN2d-affine + LeakyReLU fused into the A
    #     prologue (per-channel scale/shift broadcast to per-column vectors;
    #     NHWC flatten repeats the 128 channels OH2*OW2 times). ---
    flat = y2.reshape(N, OH2 * OW2 * 128)
    scale_k = jnp.tile(scale2, (1, OH2 * OW2))     # (1, fdim)
    shift_k = jnp.tile(shift2, (1, OH2 * OW2))
    z1, stats1 = matmul_bias_act(flat, p["w_fc1"], p["b_fc1"], act="none",
                                 compute_stats=True,
                                 prologue=(scale_k, shift_k),
                                 out_dtype=jnp.float32)
    scale1, shift1 = _bn_from_stats(stats1, N, p["bn1d_gamma"], p["bn1d_beta"])

    # --- BN1d-affine + LeakyReLU + fc2 (Linear 1024->out) + Sigmoid, fused ---
    return affine_leaky_fc_sigmoid(z1, scale1, shift1, p["w_fc2"], p["b_fc2"])


# ----------------------------------------------------------------------------
# pure-JAX reference (f32, NCHW) for correctness check
# ----------------------------------------------------------------------------
def reference_forward(params, x, eps=1e-5):
    def conv(h, w, b):
        y = jax.lax.conv_general_dilated(
            h, w, window_strides=(2, 2), padding=((1, 1), (1, 1)),
            dimension_numbers=("NCHW", "OIHW", "NCHW"))
        return y + b[None, :, None, None]

    h1 = conv(x, params["conv1_w"], params["conv1_b"])
    h1 = jnp.where(h1 >= 0, h1, 0.2 * h1)
    h2 = conv(h1, params["conv2_w"], params["conv2_b"])
    m = h2.mean(axis=(0, 2, 3), keepdims=True)
    v = ((h2 - m) ** 2).mean(axis=(0, 2, 3), keepdims=True)
    h2 = ((h2 - m) / jnp.sqrt(v + eps) * params["bn2_gamma"][None, :, None, None]
          + params["bn2_beta"][None, :, None, None])
    h2 = jnp.where(h2 >= 0, h2, 0.2 * h2)
    flat = h2.reshape(x.shape[0], -1)
    z = flat @ params["fc1_w"].T + params["fc1_b"]
    m = z.mean(axis=0)
    v = ((z - m) ** 2).mean(axis=0)
    z = (z - m) / jnp.sqrt(v + eps) * params["bn1d_gamma"] + params["bn1d_beta"]
    z = jnp.where(z >= 0, z, 0.2 * z)
    return jax.nn.sigmoid(z @ params["fc2_w"].T + params["fc2_b"])


# ----------------------------------------------------------------------------
# deterministic param init (utils.initialize_weights: N(0, 0.02), bias 0,
# BN gamma 1 / beta 0)
# ----------------------------------------------------------------------------
def init_params(key, input_dim=1, output_dim=1, input_size=16):
    fdim = 128 * (input_size // 4) * (input_size // 4)
    ks = jax.random.split(key, 4)
    std = 0.02
    return {
        "conv1_w": std * jax.random.normal(ks[0], (64, input_dim, 4, 4), jnp.float32),
        "conv1_b": jnp.zeros((64,), jnp.float32),
        "conv2_w": std * jax.random.normal(ks[1], (128, 64, 4, 4), jnp.float32),
        "conv2_b": jnp.zeros((128,), jnp.float32),
        "bn2_gamma": jnp.ones((128,), jnp.float32),
        "bn2_beta": jnp.zeros((128,), jnp.float32),
        "fc1_w": std * jax.random.normal(ks[2], (1024, fdim), jnp.float32),
        "fc1_b": jnp.zeros((1024,), jnp.float32),
        "bn1d_gamma": jnp.ones((1024,), jnp.float32),
        "bn1d_beta": jnp.zeros((1024,), jnp.float32),
        "fc2_w": std * jax.random.normal(ks[3], (output_dim, 1024), jnp.float32),
        "fc2_b": jnp.zeros((output_dim,), jnp.float32),
    }


if __name__ == "__main__":
    key = jax.random.PRNGKey(0)
    kp, kx = jax.random.split(key)

    batch, input_dim, input_size, output_dim = 8, 1, 16, 1
    params = init_params(kp, input_dim=input_dim, output_dim=output_dim,
                         input_size=input_size)
    x = jax.random.normal(kx, (batch, input_dim, input_size, input_size),
                          jnp.float32)

    prepped = prepare_params(params)          # one-time weight reformat
    fwd = jax.jit(discriminator_forward)
    out = jax.block_until_ready(fwd(prepped, x))

    assert out.shape == (batch, output_dim), out.shape
    assert bool(jnp.all(jnp.isfinite(out)))
    assert bool(jnp.all((out >= -1e-3) & (out <= 1.0 + 1e-3)))

    ref = reference_forward(params, x)
    assert bool(jnp.all(jnp.abs(out - ref) < 4e-2)), \
        float(jnp.max(jnp.abs(out - ref)))   # bf16 MXU/intermediates + approx sigmoid

    print("KERNEL_OK")
</pallas_src>

<mosaic_0001>
module attributes {stable_mosaic.version = 11 : i64} {
  func.func @_matmul_kernel(%arg0: i32, %arg1: i32, %arg2: i32, %arg3: memref<256x16xbf16, #tpu.memory_space<vmem>>, %arg4: memref<16x64xbf16, #tpu.memory_space<vmem>>, %arg5: memref<1x64xf32, #tpu.memory_space<vmem>>, %arg6: memref<256x64xbf16, #tpu.memory_space<vmem>>, %arg7: memref<256x64xf32, #tpu.memory_space<vmem>>) attributes {dimension_semantics = [#tpu.dimension_semantics<parallel>, #tpu.dimension_semantics<parallel>, #tpu.dimension_semantics<arbitrary>], iteration_bounds = array<i64: 2, 1, 1>, scalar_prefetch = 0 : i64, scratch_operands = 1 : i64, tpu.core_type = #tpu.core_type<tc>, window_params = [{transform_indices = @transform_0, window_bounds = array<i64: 256, 16>}, {transform_indices = @transform_1, window_bounds = array<i64: 16, 64>}, {transform_indices = @transform_2, window_bounds = array<i64: 1, 64>}, {transform_indices = @transform_3, window_bounds = array<i64: 256, 64>}]} {
    %c0_i32 = arith.constant 0 : i32
    %0 = arith.cmpi eq, %arg2, %c0_i32 : i32
    %1 = arith.extui %0 : i1 to i32
    %c0_i32_0 = arith.constant 0 : i32
    %2 = arith.cmpi ne, %1, %c0_i32_0 : i32
    scf.if %2 {
      %cst_10 = arith.constant 0.000000e+00 : f32
      %12 = vector.broadcast %cst_10 : f32 to vector<256x64xf32>
      %c0_11 = arith.constant 0 : index
      %c0_12 = arith.constant 0 : index
      %13 = vector.load %arg7[%c0_11, %c0_12] : memref<256x64xf32, #tpu.memory_space<vmem>>, vector<256x64xf32>
      tpu.vector_store %arg7[%c0_11, %c0_12], %12 {strides = array<i32>} : memref<256x64xf32, #tpu.memory_space<vmem>>, vector<256x64xf32>,
    } else {
    }
    %c0 = arith.constant 0 : index
    %c0_1 = arith.constant 0 : index
    %3 = vector.load %arg3[%c0, %c0_1] : memref<256x16xbf16, #tpu.memory_space<vmem>>, vector<256x16xbf16>
    %c0_2 = arith.constant 0 : index
    %c0_3 = arith.constant 0 : index
    %4 = vector.load %arg7[%c0_2, %c0_3] : memref<256x64xf32, #tpu.memory_space<vmem>>, vector<256x64xf32>
    %c0_4 = arith.constant 0 : index
    %c0_5 = arith.constant 0 : index
    %5 = vector.load %arg4[%c0_4, %c0_5] : memref<16x64xbf16, #tpu.memory_space<vmem>>, vector<16x64xbf16>
    %cst = arith.constant dense<0.000000e+00> : vector<256x64xf32>
    %6 = tpu.matmul %3, %5, %cst {dimension_numbers = #tpu.dot_dimension_numbers<[1], [0], [0], [1], [0, 0, 1, 1], [], []>} : vector<256x16xbf16>, vector<16x64xbf16>, vector<256x64xf32> -> vector<256x64xf32>
    %7 = arith.addf %4, %6 : vector<256x64xf32>
    %c0_6 = arith.constant 0 : index
    %c0_7 = arith.constant 0 : index
    %8 = vector.load %arg7[%c0_6, %c0_7] : memref<256x64xf32, #tpu.memory_space<vmem>>, vector<256x64xf32>
    tpu.vector_store %arg7[%c0_6, %c0_7], %7 {strides = array<i32>} : memref<256x64xf32, #tpu.memory_space<vmem>>, vector<256x64xf32>,
    %c0_i32_8 = arith.constant 0 : i32
    %9 = arith.cmpi eq, %arg2, %c0_i32_8 : i32
    %10 = arith.extui %9 : i1 to i32
    %c0_i32_9 = arith.constant 0 : i32
    %11 = arith.cmpi ne, %10, %c0_i32_9 : i32
    scf.if %11 {
      %c0_10 = arith.constant 0 : index
      %c0_11 = arith.constant 0 : index
      %12 = vector.load %arg7[%c0_10, %c0_11] : memref<256x64xf32, #tpu.memory_space<vmem>>, vector<256x64xf32>
      %c0_12 = arith.constant 0 : index
      %c0_13 = arith.constant 0 : index
      %13 = vector.load %arg5[%c0_12, %c0_13] : memref<1x64xf32, #tpu.memory_space<vmem>>, vector<1x64xf32>
      %14 = vector.broadcast %13 : vector<1x64xf32> to vector<256x64xf32>
      %15 = arith.addf %12, %14 : vector<256x64xf32>
      %cst_14 = arith.constant 0.000000e+00 : f32
      %16 = vector.broadcast %cst_14 : f32 to vector<256x64xf32>
      %17 = arith.cmpf oge, %15, %16 : vector<256x64xf32>
      %cst_15 = arith.constant 2.000000e-01 : f32
      %18 = vector.broadcast %cst_15 : f32 to vector<256x64xf32>
      %19 = arith.mulf %18, %15 : vector<256x64xf32>
      %20 = arith.select %17, %15, %19 : vector<256x64xi1>, vector<256x64xf32>
      %21 = arith.truncf %20 : vector<256x64xf32> to vector<256x64xbf16>
      %c0_16 = arith.constant 0 : index
      %c0_17 = arith.constant 0 : index
      %22 = vector.load %arg6[%c0_16, %c0_17] : memref<256x64xbf16, #tpu.memory_space<vmem>>, vector<256x64xbf16>
      tpu.vector_store %arg6[%c0_16, %c0_17], %21 {strides = array<i32>} : memref<256x64xbf16, #tpu.memory_space<vmem>>, vector<256x64xbf16>,
    } else {
    }
    return
  }
  func.func @transform_0(%arg0: i32, %arg1: i32, %arg2: i32) -> (i32, i32) {
    %c0_i32 = arith.constant 0 : i32
    return %arg0, %arg2 : i32, i32
  }
  func.func @transform_1(%arg0: i32, %arg1: i32, %arg2: i32) -> (i32, i32) {
    %c0_i32 = arith.constant 0 : i32
    return %arg2, %arg1 : i32, i32
  }
  func.func @transform_2(%arg0: i32, %arg1: i32, %arg2: i32) -> (i32, i32) {
    %c0_i32 = arith.constant 0 : i32
    %c0_i32_0 = arith.constant 0 : i32
    return %c0_i32, %arg1 : i32, i32
  }
  func.func @transform_3(%arg0: i32, %arg1: i32, %arg2: i32) -> (i32, i32) {
    %c0_i32 = arith.constant 0 : i32
    return %arg0, %arg1 : i32, i32
  }
}

module attributes {stable_mosaic.version = 11 : i64} {
  func.func @_matmul_kernel(%arg0: i32, %arg1: i32, %arg2: i32, %arg3: memref<64x1024xbf16, #tpu.memory_space<vmem>>, %arg4: memref<1024x128xbf16, #tpu.memory_space<vmem>>, %arg5: memref<1x128xf32, #tpu.memory_space<vmem>>, %arg6: memref<64x128xbf16, #tpu.memory_space<vmem>>, %arg7: memref<1x2x128xf32, #tpu.memory_space<vmem>>, %arg8: memref<64x128xf32, #tpu.memory_space<vmem>>) attributes {dimension_semantics = [#tpu.dimension_semantics<parallel>, #tpu.dimension_semantics<parallel>, #tpu.dimension_semantics<arbitrary>], iteration_bounds = array<i64: 2, 1, 1>, scalar_prefetch = 0 : i64, scratch_operands = 1 : i64, tpu.core_type = #tpu.core_type<tc>, window_params = [{transform_indices = @transform_0, window_bounds = array<i64: 64, 1024>}, {transform_indices = @transform_1, window_bounds = array<i64: 1024, 128>}, {transform_indices = @transform_2, window_bounds = array<i64: 1, 128>}, {transform_indices = @transform_3, window_bounds = array<i64: 64, 128>}, {transform_indices = @transform_4, window_bounds = array<i64: 1, 2, 128>}]} {
    %c0_i32 = arith.constant 0 : i32
    %0 = arith.cmpi eq, %arg2, %c0_i32 : i32
    %1 = arith.extui %0 : i1 to i32
    %c0_i32_0 = arith.constant 0 : i32
    %2 = arith.cmpi ne, %1, %c0_i32_0 : i32
    scf.if %2 {
      %cst_10 = arith.constant 0.000000e+00 : f32
      %12 = vector.broadcast %cst_10 : f32 to vector<64x128xf32>
      %c0_11 = arith.constant 0 : index
      %c0_12 = arith.constant 0 : index
      %13 = vector.load %arg8[%c0_11, %c0_12] : memref<64x128xf32, #tpu.memory_space<vmem>>, vector<64x128xf32>
      tpu.vector_store %arg8[%c0_11, %c0_12], %12 {strides = array<i32>} : memref<64x128xf32, #tpu.memory_space<vmem>>, vector<64x128xf32>,
    } else {
    }
    %c0 = arith.constant 0 : index
    %c0_1 = arith.constant 0 : index
    %3 = vector.load %arg3[%c0, %c0_1] : memref<64x1024xbf16, #tpu.memory_space<vmem>>, vector<64x1024xbf16>
    %c0_2 = arith.constant 0 : index
    %c0_3 = arith.constant 0 : index
    %4 = vector.load %arg8[%c0_2, %c0_3] : memref<64x128xf32, #tpu.memory_space<vmem>>, vector<64x128xf32>
    %c0_4 = arith.constant 0 : index
    %c0_5 = arith.constant 0 : index
    %5 = vector.load %arg4[%c0_4, %c0_5] : memref<1024x128xbf16, #tpu.memory_space<vmem>>, vector<1024x128xbf16>
    %cst = arith.constant dense<0.000000e+00> : vector<64x128xf32>
    %6 = tpu.matmul %3, %5, %cst {dimension_numbers = #tpu.dot_dimension_numbers<[1], [0], [0], [1], [0, 0, 1, 1], [], []>} : vector<64x1024xbf16>, vector<1024x128xbf16>, vector<64x128xf32> -> vector<64x128xf32>
    %7 = arith.addf %4, %6 : vector<64x128xf32>
    %c0_6 = arith.constant 0 : index
    %c0_7 = arith.constant 0 : index
    %8 = vector.load %arg8[%c0_6, %c0_7] : memref<64x128xf32, #tpu.memory_space<vmem>>, vector<64x128xf32>
    tpu.vector_store %arg8[%c0_6, %c0_7], %7 {strides = array<i32>} : memref<64x128xf32, #tpu.memory_space<vmem>>, vector<64x128xf32>,
    %c0_i32_8 = arith.constant 0 : i32
    %9 = arith.cmpi eq, %arg2, %c0_i32_8 : i32
    %10 = arith.extui %9 : i1 to i32
    %c0_i32_9 = arith.constant 0 : i32
    %11 = arith.cmpi ne, %10, %c0_i32_9 : i32
    scf.if %11 {
      %c0_10 = arith.constant 0 : index
      %c0_11 = arith.constant 0 : index
      %12 = vector.load %arg8[%c0_10, %c0_11] : memref<64x128xf32, #tpu.memory_space<vmem>>, vector<64x128xf32>
      %c0_12 = arith.constant 0 : index
      %c0_13 = arith.constant 0 : index
      %13 = vector.load %arg5[%c0_12, %c0_13] : memref<1x128xf32, #tpu.memory_space<vmem>>, vector<1x128xf32>
      %14 = vector.broadcast %13 : vector<1x128xf32> to vector<64x128xf32>
      %15 = arith.addf %12, %14 : vector<64x128xf32>
      %16 = arith.truncf %15 : vector<64x128xf32> to vector<64x128xbf16>
      %c0_14 = arith.constant 0 : index
      %c0_15 = arith.constant 0 : index
      %17 = vector.load %arg6[%c0_14, %c0_15] : memref<64x128xbf16, #tpu.memory_space<vmem>>, vector<64x128xbf16>
      tpu.vector_store %arg6[%c0_14, %c0_15], %16 {strides = array<i32>} : memref<64x128xbf16, #tpu.memory_space<vmem>>, vector<64x128xbf16>,
      %cst_16 = arith.constant dense<0.000000e+00> : vector<128xf32>
      %18 = vector.multi_reduction <add>, %15, %cst_16 [0] : vector<64x128xf32> to vector<128xf32>
      %19 = vector.shape_cast %18 : vector<128xf32> to vector<1x128xf32>
      %20 = arith.mulf %15, %15 : vector<64x128xf32>
      %cst_17 = arith.constant dense<0.000000e+00> : vector<128xf32>
      %21 = vector.multi_reduction <add>, %20, %cst_17 [0] : vector<64x128xf32> to vector<128xf32>
      %22 = vector.shape_cast %21 : vector<128xf32> to vector<1x128xf32>
      %23 = tpu.concatenate %19, %22 in 0 : vector<1x128xf32>, vector<1x128xf32> -> vector<2x128xf32>
      %24 = vector.shape_cast %23 : vector<2x128xf32> to vector<1x2x128xf32>
      %c0_18 = arith.constant 0 : index
      %c0_19 = arith.constant 0 : index
      %c0_20 = arith.constant 0 : index
      %25 = vector.load %arg7[%c0_18, %c0_19, %c0_20] : memref<1x2x128xf32, #tpu.memory_space<vmem>>, vector<1x2x128xf32>
      tpu.vector_store %arg7[%c0_18, %c0_19, %c0_20], %24 {strides = array<i32>} : memref<1x2x128xf32, #tpu.memory_space<vmem>>, vector<1x2x128xf32>,
    } else {
    }
    return
  }
  func.func @transform_0(%arg0: i32, %arg1: i32, %arg2: i32) -> (i32, i32) {
    %c0_i32 = arith.constant 0 : i32
    return %arg0, %arg2 : i32, i32
  }
  func.func @transform_1(%arg0: i32, %arg1: i32, %arg2: i32) -> (i32, i32) {
    %c0_i32 = arith.constant 0 : i32
    return %arg2, %arg1 : i32, i32
  }
  func.func @transform_2(%arg0: i32, %arg1: i32, %arg2: i32) -> (i32, i32) {
    %c0_i32 = arith.constant 0 : i32
    %c0_i32_0 = arith.constant 0 : i32
    return %c0_i32, %arg1 : i32, i32
  }
  func.func @transform_3(%arg0: i32, %arg1: i32, %arg2: i32) -> (i32, i32) {
    %c0_i32 = arith.constant 0 : i32
    return %arg0, %arg1 : i32, i32
  }
  func.func @transform_4(%arg0: i32, %arg1: i32, %arg2: i32) -> (i32, i32, i32) {
    %c0_i32 = arith.constant 0 : i32
    %c0_i32_0 = arith.constant 0 : i32
    return %arg0, %c0_i32, %arg1 : i32, i32, i32
  }
}

module attributes {stable_mosaic.version = 11 : i64} {
  func.func @_matmul_kernel(%arg0: i32, %arg1: i32, %arg2: i32, %arg3: memref<8x2048xbf16, #tpu.memory_space<vmem>>, %arg4: memref<1x2048xf32, #tpu.memory_space<vmem>>, %arg5: memref<1x2048xf32, #tpu.memory_space<vmem>>, %arg6: memref<2048x512xbf16, #tpu.memory_space<vmem>>, %arg7: memref<1x512xf32, #tpu.memory_space<vmem>>, %arg8: memref<8x512xf32, #tpu.memory_space<vmem>>, %arg9: memref<1x2x512xf32, #tpu.memory_space<vmem>>, %arg10: memref<8x512xf32, #tpu.memory_space<vmem>>) attributes {dimension_semantics = [#tpu.dimension_semantics<parallel>, #tpu.dimension_semantics<parallel>, #tpu.dimension_semantics<arbitrary>], iteration_bounds = array<i64: 1, 2, 1>, scalar_prefetch = 0 : i64, scratch_operands = 1 : i64, tpu.core_type = #tpu.core_type<tc>, window_params = [{transform_indices = @transform_0, window_bounds = array<i64: 8, 2048>}, {transform_indices = @transform_1, window_bounds = array<i64: 1, 2048>}, {transform_indices = @transform_2, window_bounds = array<i64: 1, 2048>}, {transform_indices = @transform_3, window_bounds = array<i64: 2048, 512>}, {transform_indices = @transform_4, window_bounds = array<i64: 1, 512>}, {transform_indices = @transform_5, window_bounds = array<i64: 8, 512>}, {transform_indices = @transform_6, window_bounds = array<i64: 1, 2, 512>}]} {
    %c0_i32 = arith.constant 0 : i32
    %0 = arith.cmpi eq, %arg2, %c0_i32 : i32
    %1 = arith.extui %0 : i1 to i32
    %c0_i32_0 = arith.constant 0 : i32
    %2 = arith.cmpi ne, %1, %c0_i32_0 : i32
    scf.if %2 {
      %cst_16 = arith.constant 0.000000e+00 : f32
      %25 = vector.broadcast %cst_16 : f32 to vector<8x512xf32>
      %c0_17 = arith.constant 0 : index
      %c0_18 = arith.constant 0 : index
      %26 = vector.load %arg10[%c0_17, %c0_18] : memref<8x512xf32, #tpu.memory_space<vmem>>, vector<8x512xf32>
      tpu.vector_store %arg10[%c0_17, %c0_18], %25 {strides = array<i32>} : memref<8x512xf32, #tpu.memory_space<vmem>>, vector<8x512xf32>,
    } else {
    }
    %c0 = arith.constant 0 : index
    %c0_1 = arith.constant 0 : index
    %3 = vector.load %arg3[%c0, %c0_1] : memref<8x2048xbf16, #tpu.memory_space<vmem>>, vector<8x2048xbf16>
    %4 = arith.extf %3 : vector<8x2048xbf16> to vector<8x2048xf32>
    %c0_2 = arith.constant 0 : index
    %c0_3 = arith.constant 0 : index
    %5 = vector.load %arg4[%c0_2, %c0_3] : memref<1x2048xf32, #tpu.memory_space<vmem>>, vector<1x2048xf32>
    %6 = vector.broadcast %5 : vector<1x2048xf32> to vector<8x2048xf32>
    %7 = arith.mulf %4, %6 : vector<8x2048xf32>
    %c0_4 = arith.constant 0 : index
    %c0_5 = arith.constant 0 : index
    %8 = vector.load %arg5[%c0_4, %c0_5] : memref<1x2048xf32, #tpu.memory_space<vmem>>, vector<1x2048xf32>
    %9 = vector.broadcast %8 : vector<1x2048xf32> to vector<8x2048xf32>
    %10 = arith.addf %7, %9 : vector<8x2048xf32>
    %cst = arith.constant 0.000000e+00 : f32
    %11 = vector.broadcast %cst : f32 to vector<8x2048xf32>
    %12 = arith.cmpf oge, %10, %11 : vector<8x2048xf32>
    %cst_6 = arith.constant 2.000000e-01 : f32
    %13 = vector.broadcast %cst_6 : f32 to vector<8x2048xf32>
    %14 = arith.mulf %13, %10 : vector<8x2048xf32>
    %15 = arith.select %12, %10, %14 : vector<8x2048xi1>, vector<8x2048xf32>
    %c0_7 = arith.constant 0 : index
    %c0_8 = arith.constant 0 : index
    %16 = vector.load %arg10[%c0_7, %c0_8] : memref<8x512xf32, #tpu.memory_space<vmem>>, vector<8x512xf32>
    %17 = arith.truncf %15 : vector<8x2048xf32> to vector<8x2048xbf16>
    %c0_9 = arith.constant 0 : index
    %c0_10 = arith.constant 0 : index
    %18 = vector.load %arg6[%c0_9, %c0_10] : memref<2048x512xbf16, #tpu.memory_space<vmem>>, vector<2048x512xbf16>
    %cst_11 = arith.constant dense<0.000000e+00> : vector<8x512xf32>
    %19 = tpu.matmul %17, %18, %cst_11 {dimension_numbers = #tpu.dot_dimension_numbers<[1], [0], [0], [1], [0, 0, 1, 1], [], []>} : vector<8x2048xbf16>, vector<2048x512xbf16>, vector<8x512xf32> -> vector<8x512xf32>
    %20 = arith.addf %16, %19 : vector<8x512xf32>
    %c0_12 = arith.constant 0 : index
    %c0_13 = arith.constant 0 : index
    %21 = vector.load %arg10[%c0_12, %c0_13] : memref<8x512xf32, #tpu.memory_space<vmem>>, vector<8x512xf32>
    tpu.vector_store %arg10[%c0_12, %c0_13], %20 {strides = array<i32>} : memref<8x512xf32, #tpu.memory_space<vmem>>, vector<8x512xf32>,
    %c0_i32_14 = arith.constant 0 : i32
    %22 = arith.cmpi eq, %arg2, %c0_i32_14 : i32
    %23 = arith.extui %22 : i1 to i32
    %c0_i32_15 = arith.constant 0 : i32
    %24 = arith.cmpi ne, %23, %c0_i32_15 : i32
    scf.if %24 {
      %c0_16 = arith.constant 0 : index
      %c0_17 = arith.constant 0 : index
      %25 = vector.load %arg10[%c0_16, %c0_17] : memref<8x512xf32, #tpu.memory_space<vmem>>, vector<8x512xf32>
      %c0_18 = arith.constant 0 : index
      %c0_19 = arith.constant 0 : index
      %26 = vector.load %arg7[%c0_18, %c0_19] : memref<1x512xf32, #tpu.memory_space<vmem>>, vector<1x512xf32>
      %27 = vector.broadcast %26 : vector<1x512xf32> to vector<8x512xf32>
      %28 = arith.addf %25, %27 : vector<8x512xf32>
      %c0_20 = arith.constant 0 : index
      %c0_21 = arith.constant 0 : index
      %29 = vector.load %arg8[%c0_20, %c0_21] : memref<8x512xf32, #tpu.memory_space<vmem>>, vector<8x512xf32>
      tpu.vector_store %arg8[%c0_20, %c0_21], %28 {strides = array<i32>} : memref<8x512xf32, #tpu.memory_space<vmem>>, vector<8x512xf32>,
      %cst_22 = arith.constant dense<0.000000e+00> : vector<512xf32>
      %30 = vector.multi_reduction <add>, %28, %cst_22 [0] : vector<8x512xf32> to vector<512xf32>
      %31 = vector.shape_cast %30 : vector<512xf32> to vector<1x512xf32>
      %32 = arith.mulf %28, %28 : vector<8x512xf32>
      %cst_23 = arith.constant dense<0.000000e+00> : vector<512xf32>
      %33 = vector.multi_reduction <add>, %32, %cst_23 [0] : vector<8x512xf32> to vector<512xf32>
      %34 = vector.shape_cast %33 : vector<512xf32> to vector<1x512xf32>
      %35 = tpu.concatenate %31, %34 in 0 : vector<1x512xf32>, vector<1x512xf32> -> vector<2x512xf32>
      %36 = vector.shape_cast %35 : vector<2x512xf32> to vector<1x2x512xf32>
      %c0_24 = arith.constant 0 : index
      %c0_25 = arith.constant 0 : index
      %c0_26 = arith.constant 0 : index
      %37 = vector.load %arg9[%c0_24, %c0_25, %c0_26] : memref<1x2x512xf32, #tpu.memory_space<vmem>>, vector<1x2x512xf32>
      tpu.vector_store %arg9[%c0_24, %c0_25, %c0_26], %36 {strides = array<i32>} : memref<1x2x512xf32, #tpu.memory_space<vmem>>, vector<1x2x512xf32>,
    } else {
    }
    return
  }
  func.func @transform_0(%arg0: i32, %arg1: i32, %arg2: i32) -> (i32, i32) {
    %c0_i32 = arith.constant 0 : i32
    return %arg0, %arg2 : i32, i32
  }
  func.func @transform_1(%arg0: i32, %arg1: i32, %arg2: i32) -> (i32, i32) {
    %c0_i32 = arith.constant 0 : i32
    %c0_i32_0 = arith.constant 0 : i32
    return %c0_i32, %arg2 : i32, i32
  }
  func.func @transform_2(%arg0: i32, %arg1: i32, %arg2: i32) -> (i32, i32) {
    %c0_i32 = arith.constant 0 : i32
    %c0_i32_0 = arith.constant 0 : i32
    return %c0_i32, %arg2 : i32, i32
  }
  func.func @transform_3(%arg0: i32, %arg1: i32, %arg2: i32) -> (i32, i32) {
    %c0_i32 = arith.constant 0 : i32
    return %arg2, %arg1 : i32, i32
  }
  func.func @transform_4(%arg0: i32, %arg1: i32, %arg2: i32) -> (i32, i32) {
    %c0_i32 = arith.constant 0 : i32
    %c0_i32_0 = arith.constant 0 : i32
    return %c0_i32, %arg1 : i32, i32
  }
  func.func @transform_5(%arg0: i32, %arg1: i32, %arg2: i32) -> (i32, i32) {
    %c0_i32 = arith.constant 0 : i32
    return %arg0, %arg1 : i32, i32
  }
  func.func @transform_6(%arg0: i32, %arg1: i32, %arg2: i32) -> (i32, i32, i32) {
    %c0_i32 = arith.constant 0 : i32
    %c0_i32_0 = arith.constant 0 : i32
    return %arg0, %c0_i32, %arg1 : i32, i32, i32
  }
}

module attributes {stable_mosaic.version = 11 : i64} {
  func.func @_affine_fc_sigmoid_kernel(%arg0: i32, %arg1: memref<8x1024xf32, #tpu.memory_space<vmem>>, %arg2: memref<1x1024xf32, #tpu.memory_space<vmem>>, %arg3: memref<1x1024xf32, #tpu.memory_space<vmem>>, %arg4: memref<1x1024xf32, #tpu.memory_space<vmem>>, %arg5: memref<1x1xf32, #tpu.memory_space<vmem>>, %arg6: memref<8x1xf32, #tpu.memory_space<vmem>>) attributes {dimension_semantics = [#tpu.dimension_semantics<parallel>], iteration_bounds = array<i64: 1>, scalar_prefetch = 0 : i64, scratch_operands = 0 : i64, tpu.core_type = #tpu.core_type<tc>, window_params = [{transform_indices = @transform_0, window_bounds = array<i64: 8, 1024>}, {pipeline_mode = #tpu.pipeline_mode<synchronous>, transform_indices = @transform_1, window_bounds = array<i64: 1, 1024>}, {pipeline_mode = #tpu.pipeline_mode<synchronous>, transform_indices = @transform_2, window_bounds = array<i64: 1, 1024>}, {pipeline_mode = #tpu.pipeline_mode<synchronous>, transform_indices = @transform_3, window_bounds = array<i64: 1, 1024>}, {pipeline_mode = #tpu.pipeline_mode<synchronous>, transform_indices = @transform_4, window_bounds = array<i64: 1, 1>}, {transform_indices = @transform_5, window_bounds = array<i64: 8, 1>}]} {
    %c0 = arith.constant 0 : index
    %c0_0 = arith.constant 0 : index
    %0 = vector.load %arg1[%c0, %c0_0] : memref<8x1024xf32, #tpu.memory_space<vmem>>, vector<8x1024xf32>
    %c0_1 = arith.constant 0 : index
    %c0_2 = arith.constant 0 : index
    %1 = vector.load %arg2[%c0_1, %c0_2] : memref<1x1024xf32, #tpu.memory_space<vmem>>, vector<1x1024xf32>
    %2 = vector.broadcast %1 : vector<1x1024xf32> to vector<8x1024xf32>
    %3 = arith.mulf %0, %2 : vector<8x1024xf32>
    %c0_3 = arith.constant 0 : index
    %c0_4 = arith.constant 0 : index
    %4 = vector.load %arg3[%c0_3, %c0_4] : memref<1x1024xf32, #tpu.memory_space<vmem>>, vector<1x1024xf32>
    %5 = vector.broadcast %4 : vector<1x1024xf32> to vector<8x1024xf32>
    %6 = arith.addf %3, %5 : vector<8x1024xf32>
    %cst = arith.constant 0.000000e+00 : f32
    %7 = vector.broadcast %cst : f32 to vector<8x1024xf32>
    %8 = arith.cmpf oge, %6, %7 : vector<8x1024xf32>
    %cst_5 = arith.constant 2.000000e-01 : f32
    %9 = vector.broadcast %cst_5 : f32 to vector<8x1024xf32>
    %10 = arith.mulf %9, %6 : vector<8x1024xf32>
    %11 = arith.select %8, %6, %10 : vector<8x1024xi1>, vector<8x1024xf32>
    %c0_6 = arith.constant 0 : index
    %c0_7 = arith.constant 0 : index
    %12 = vector.load %arg4[%c0_6, %c0_7] : memref<1x1024xf32, #tpu.memory_space<vmem>>, vector<1x1024xf32>
    %13 = vector.broadcast %12 : vector<1x1024xf32> to vector<8x1024xf32>
    %14 = arith.mulf %11, %13 : vector<8x1024xf32>
    %cst_8 = arith.constant dense<0.000000e+00> : vector<8xf32>
    %15 = vector.multi_reduction <add>, %14, %cst_8 [1] : vector<8x1024xf32> to vector<8xf32>
    %16 = vector.shape_cast %15 : vector<8xf32> to vector<8x1xf32>
    %c0_9 = arith.constant 0 : index
    %c0_10 = arith.constant 0 : index
    %17 = vector.load %arg5[%c0_9, %c0_10] : memref<1x1xf32, #tpu.memory_space<vmem>>, vector<1x1xf32>
    %18 = vector.broadcast %17 : vector<1x1xf32> to vector<8x1xf32>
    %19 = arith.addf %16, %18 : vector<8x1xf32>
    %cst_11 = arith.constant 0.000000e+00 : f32
    %20 = vector.broadcast %cst_11 : f32 to vector<8x1xf32>
    %21 = arith.subf %20, %19 : vector<8x1xf32>
    %22 = math.exp %21 : vector<8x1xf32>
    %cst_12 = arith.constant 1.000000e+00 : f32
    %23 = vector.broadcast %cst_12 : f32 to vector<8x1xf32>
    %24 = arith.addf %23, %22 : vector<8x1xf32>
    %25 = tpu.reciprocal %24 {approx = true} : vector<8x1xf32> -> vector<8x1xf32>
    %c0_13 = arith.constant 0 : index
    %c0_14 = arith.constant 0 : index
    %26 = vector.load %arg6[%c0_13, %c0_14] : memref<8x1xf32, #tpu.memory_space<vmem>>, vector<8x1xf32>
    tpu.vector_store %arg6[%c0_13, %c0_14], %25 {strides = array<i32>} : memref<8x1xf32, #tpu.memory_space<vmem>>, vector<8x1xf32>,
    return
  }
  func.func @transform_0(%arg0: i32) -> (i32, i32) {
    %c0_i32 = arith.constant 0 : i32
    %c0_i32_0 = arith.constant 0 : i32
    return %arg0, %c0_i32 : i32, i32
  }
  func.func @transform_1(%arg0: i32) -> (i32, i32) {
    %c0_i32 = arith.constant 0 : i32
    %c0_i32_0 = arith.constant 0 : i32
    %c0_i32_1 = arith.constant 0 : i32
    return %c0_i32, %c0_i32_0 : i32, i32
  }
  func.func @transform_2(%arg0: i32) -> (i32, i32) {
    %c0_i32 = arith.constant 0 : i32
    %c0_i32_0 = arith.constant 0 : i32
    %c0_i32_1 = arith.constant 0 : i32
    return %c0_i32, %c0_i32_0 : i32, i32
  }
  func.func @transform_3(%arg0: i32) -> (i32, i32) {
    %c0_i32 = arith.constant 0 : i32
    %c0_i32_0 = arith.constant 0 : i32
    %c0_i32_1 = arith.constant 0 : i32
    return %c0_i32, %c0_i32_0 : i32, i32
  }
  func.func @transform_4(%arg0: i32) -> (i32, i32) {
    %c0_i32 = arith.constant 0 : i32
    %c0_i32_0 = arith.constant 0 : i32
    %c0_i32_1 = arith.constant 0 : i32
    return %c0_i32, %c0_i32_0 : i32, i32
  }
  func.func @transform_5(%arg0: i32) -> (i32, i32) {
    %c0_i32 = arith.constant 0 : i32
    %c0_i32_0 = arith.constant 0 : i32
    return %arg0, %c0_i32 : i32, i32
  }
}

</mosaic_0001>

<bundles_post_ra>
// kernel: discriminator_forward.4
= control target key start
LH: loop header
LB: loop body
LE: loop exit
PB: predicated region body
PF: predicated region fallthrough
CT: control target
= control target key end

     0   :  { %8 = vsyncpa [#allocation4], 0  ;;  %s1880_s0 = inlined_call_operand.vmem [shape: bf16[512,16], index: 0, kind: input, shape index: {}]   ;;  %s1881_s1 = inlined_call_operand.hbm [shape: bf16[16,64], index: 1, kind: input, shape index: {}]   ;;  %s1882_s2 = inlined_call_operand.hbm [shape: f32[1,64], index: 2, kind: input, shape index: {}]   ;;  %s1883_s3 = inlined_call_operand.vmem [shape: bf16[512,64], index: 3, kind: output, shape index: {}]  }
   0x1   :  { %9 = vsyncpa [#allocation6], 0  ;;  %s1508_s12 = smov 0   ;;  %s1510_s13 = smov 0  }
   0x2   :  { %s1512_s14 = smov 0  }
   0x3 LB: > { %s1164_s15 = sadd.s32 4294967295, %s1481_s14   ;;  %s34_s16 = sadd.s32 1, %s1477_s13  ;;  %s1481_s14 = sphi %s1512_s14, %s15_s14   ;;  %s1477_s13 = sphi %s1510_s13, %s1894_s13   ;;  %s1473_s12 = sphi %s1508_s12, %s1893_s12  }
   0x4   : > { %p36_p0 = scmp.ge.s32.totalorder %s34_s16, 2  ;;  %p1166_p1 = scmp.ge.s32.totalorder %s1481_s14, 1 }
   0x5   : > { %p149_p2 = scmp.lt.s32.totalorder %s1481_s14, 3  ;;  %p1533_p4 = scmp.eq.s32.totalorder %s1164_s15, 0 }
   0x6   : > { %s1896_s16 = smov (%p36_p0, %s34_s16), 0  ;;  %s1483_s19 = smov [#allocation3]  }
   0x7   : > { %p1529_p3 = pnand %p1166_p1, %p149_p2  ;;  %s165_s20 = sshll.u32 %s1483_s19, 4  ;;  %s166_s20 = int_to_ptr.vmem [resolvable:$true] %s165_s20 }
   0x8   : > { %s1888_s18 = scalar_select %p1533_p4, 1, 0 }
   0x9   : > { %s1887_s17 = scalar_select %p1529_p3, 1, 0 }
   0xa   : > { %p1338_p5 = pneg %p1529_p3  ;;  %s1484_s22 = smov [#allocation5]  }
   0xb   : > { %s181_s23 = sshll.u32 %s1484_s22, 4  ;;  %s1395_s26 = scalar_lea.hbm %s1881_s1, 128  ;;  %s1545_s23 = int_to_ptr.vmem [resolvable:$true] %s181_s23 }
   0xc   : > { %p1541_p6 = pnand %p1533_p4, %p1338_p5  ;;  %p1396_p7 = scmp.ne.s32.totalorder %s1881_s1, %s1395_s26 }
   0xd   : > { %p1402_p11 = scmp.lt.u32.totalorder %s1395_s26, %s1881_s1 }
   0xe   : > { %p1397_p8 = pneg %p1541_p6 }
  0x10   : > { %p1398_p9 = pnand %p1397_p8, %p1396_p7 }
  0x12   : > { %p1399_p10 = pneg %p1398_p9 }
  0x14   : > { %p1404_p12 = pnand %p1402_p11, %p1399_p10 }
  0x16   : > { %1407 = shalt.err (!%p1404_p12)
}
  0x17   : > { %s1408_s4 = scalar_lea.vmem %s166_s20, 128  ;;  %p1416_p2 = scmp.lt.s32.totalorder %s166_s20, %s166_s20 }
  0x18   : > { %p1409_p13 = scmp.ne.s32.totalorder %s166_s20, %s1408_s4  ;;  %p1417_p5 = scmp.lt.s32.totalorder %s1408_s4, %s1408_s4 }
  0x1a   : > { %p1411_p0 = pnand %p1409_p13, %p1397_p8  ;;  %p1418_p4 = por %p1417_p5, %p1416_p2 }
  0x1c   : > { %p1412_p1 = pneg %p1411_p0 }
  0x1e   : > { %p1419_p3 = pnand %p1418_p4, %p1412_p1 }
  0x20   : > { %1422 = shalt.err (!%p1419_p3)
}
  0x21   : > { %s1485_s5 = smov 64   ;;  %s1486_s6 = smov 4  }
  0x22   : > { %1341 = dma.hbm_to_vmem [thread:$0]  (!%p1541_p6), %s1881_s1, 128, %s166_s20, [#allocation4], %s1485_s5, %s1485_s5, %s1486_s6  }
  0x23   : > { %s1423_s11 = scalar_lea.hbm %s1882_s2, 16 }
  0x24   : > { %p1424_p7 = scmp.ne.s32.totalorder %s1882_s2, %s1423_s11  ;;  %p1430_p9 = scmp.lt.u32.totalorder %s1423_s11, %s1882_s2 }
  0x26   : > { %p1426_p3 = pnand %p1424_p7, %p1397_p8 }
  0x28   : > { %p1427_p4 = pneg %p1426_p3 }
  0x2a   : > { %p1432_p10 = pnand %p1430_p9, %p1427_p4 }
  0x2c   : > { %1435 = shalt.err (!%p1432_p10)
}
  0x2d   : > { %s1436_s20 = scalar_lea.vmem %s1545_s23, 16  ;;  %s1443_s25 = scalar_lea.vmem %s1545_s23, 32 }
  0x2e   : > { %p1437_p11 = scmp.ne.s32.totalorder %s1545_s23, %s1436_s20  ;;  %p1444_p0 = scmp.lt.s32.totalorder %s1545_s23, %s1545_s23 }
  0x2f   : > { %p1445_p1 = scmp.lt.s32.totalorder %s1443_s25, %s1436_s20 }
  0x30   : > { %p1439_p12 = pnand %p1437_p11, %p1397_p8 }
  0x31   : > { %p1446_p2 = por %p1445_p1, %p1444_p0 }
  0x32   : > { %p1440_p13 = pneg %p1439_p12 }
  0x34   : > { %p1447_p5 = pnand %p1446_p2, %p1440_p13 }
  0x36   : > { %1450 = shalt.err (!%p1447_p5)
}
  0x37   : > { %1344 = dma.hbm_to_vmem [thread:$0]  (!%p1541_p6), %s1882_s2, 16, %s1545_s23, [#allocation6]  }
  0x38   : > { %p1890_p7 = scmp.ne.s32.totalorder %s1887_s17, 0 }
  0x39   : > { %p1891_p8 = scmp.ne.s32.totalorder (!%p1890_p7), %s1888_s18, 0 }
  0x3a   : > { %206 = sbr.rel (%p1890_p7) target bundleno = 353 (0x161), region = 32 }
  0x41   : > { %1464 = dma.done.wait (%p1891_p8), [#allocation4], 128  }
  0x42   : > { %1466 = vsyncadd (%p1891_p8), [#allocation4], 4294967168 }
  0x43   : > { %1468 = dma.done.wait (%p1891_p8), [#allocation6], 16  }
  0x44   : > { %1470 = vsyncadd (%p1891_p8), [#allocation6], 4294967280  ;;  %s1173_s21 = sshll.u32 %s1473_s12, 5  ;;  %vm264_vm0 = vcmask 523264   ;;  %v1487_v0 = vmov 0.0   ;;  %v1378_v1 = vld [vmem:[#allocation3] sm:$0xff]  }
  0x45   : > { %p1608_p6 = scmp.lt.s32.totalorder %s1173_s21, 63  ;;  %267 = vst.msk [vmem:[#allocation2 + $0x10] sm:$0xff] %vm264_vm0, %v1487_v0  ;;  %265 = vst.msk [vmem:[#allocation2] sm:$0xff] %vm264_vm0, %v1487_v0  ;;  %vm449_vm1 = vcmask 130048   ;;  %1294 = vmatprep.subr.bf16.mxu0 %v1378_v1  ;;  %1328 = vmatprep.subr.bf16.mxu1 %v1378_v1  ;;  %v1698_v46 = vld [vmem:[#allocation5] ss:$0 sm:$0xff] }
  0x46   : > { %266 = vst.msk [vmem:[#allocation2 + $0x8] sm:$0xff] %vm264_vm0, %v1487_v0  ;;  %268 = vst.msk [vmem:[#allocation2 + $0x18] sm:$0xff] %vm264_vm0, %v1487_v0  ;;  %1295 = vmatpush3.bf16.msra.mxu0 %v1378_v1  ;;  %1329 = vmatpush3.bf16.msra.mxu1 %v1378_v1  ;;  %vm1022_vm2 = vcmask 519168  }
  0x47   : > { %269 = vst.msk [vmem:[#allocation2 + $0x20] sm:$0xff] %vm264_vm0, %v1487_v0  ;;  %270 = vst.msk [vmem:[#allocation2 + $0x28] sm:$0xff] %vm264_vm0, %v1487_v0  ;;  %s1898_s21 = smov (!%p1608_p6, %s1173_s21), 63 }
  0x48   : > { %271 = vst.msk [vmem:[#allocation2 + $0x30] sm:$0xff] %vm264_vm0, %v1487_v0  ;;  %272 = vst.msk [vmem:[#allocation2 + $0x38] sm:$0xff] %vm264_vm0, %v1487_v0  ;;  %s1174_s18 = sshll.u32 %s1898_s21, 2 }
  0x49   : > { %273 = vst.msk [vmem:[#allocation2 + $0x40] sm:$0xff] %vm264_vm0, %v1487_v0  ;;  %274 = vst.msk [vmem:[#allocation2 + $0x48] sm:$0xff] %vm264_vm0, %v1487_v0  ;;  %s1656_s29 = scalar_lea.vmem %s1880_s0, %s1174_s18  ;;  %s1717_s4 = scalar_lea.vmem %s1883_s3, %s1174_s18 }
  0x4a   : > { %275 = vst.msk [vmem:[#allocation2 + $0x50] sm:$0xff] %vm264_vm0, %v1487_v0  ;;  %276 = vst.msk [vmem:[#allocation2 + $0x58] sm:$0xff] %vm264_vm0, %v1487_v0  ;;  %v1379_v2 = vld [vmem:[%s1656_s29] sm:$0xff]   ;;  %v1381_v4 = vld [vmem:[%s1656_s29 + $0x8] sm:$0xff]  }
  0x4b   : > { %277 = vst.msk [vmem:[#allocation2 + $0x60] sm:$0xff] %vm264_vm0, %v1487_v0  ;;  %278 = vst.msk [vmem:[#allocation2 + $0x68] sm:$0xff] %vm264_vm0, %v1487_v0  ;;  %v1380_v3 = vld [vmem:[%s1656_s29 + $0x40] sm:$0xff]   ;;  %1296 = vmatprep.mubr.msk.bf16.mxu0 %vm449_vm1, %v1379_v2  ;;  %v1382_v5 = vld [vmem:[%s1656_s29 + $0x48] sm:$0xff]  }
  0x4c   : > { %279 = vst.msk [vmem:[#allocation2 + $0x70] sm:$0xff] %vm264_vm0, %v1487_v0  ;;  %280 = vst.msk [vmem:[#allocation2 + $0x78] sm:$0xff] %vm264_vm0, %v1487_v0  ;;  %1312 = vmatprep.mubr.msk.bf16.mxu1 %vm449_vm1, %v1380_v3  ;;  %v1383_v6 = vld [vmem:[%s1656_s29 + $0x10] sm:$0xff]   ;;  %1297 = vmatmul.mubr.msk.bf16.vlgmr.msra.gmra.mrb[0].mxu0 %vm449_vm1, %v1381_v4  ;;  %v1385_v8 = vld [vmem:[%s1656_s29 + $0x18] sm:$0xff]  }
  0x4d   : > { %281 = vst.msk [vmem:[#allocation2 + $0x80] sm:$0xff] %vm264_vm0, %v1487_v0  ;;  %282 = vst.msk [vmem:[#allocation2 + $0x88] sm:$0xff] %vm264_vm0, %v1487_v0  ;;  %1313 = vmatmul.mubr.msk.bf16.vlgmr.msra.gmra.mrb[0].mxu1 %vm449_vm1, %v1382_v5  ;;  %v1384_v7 = vld [vmem:[%s1656_s29 + $0x50] sm:$0xff]   ;;  %1300 = vmatprep.mubr.msk.bf16.mxu0 %vm449_vm1, %v1383_v6  ;;  %v1386_v9 = vld [vmem:[%s1656_s29 + $0x58] sm:$0xff]  }
  0x4e   : > { %283 = vst.msk [vmem:[#allocation2 + $0x90] sm:$0xff] %vm264_vm0, %v1487_v0  ;;  %284 = vst.msk [vmem:[#allocation2 + $0x98] sm:$0xff] %vm264_vm0, %v1487_v0  ;;  %1316 = vmatprep.mubr.msk.bf16.mxu1 %vm449_vm1, %v1384_v7  ;;  %v1387_v10 = vld [vmem:[%s1656_s29 + $0x20] sm:$0xff]   ;;  %v1389_v12 = vld [vmem:[%s1656_s29 + $0x28] sm:$0xff]  }
  0x4f   : > { %285 = vst.msk [vmem:[#allocation2 + $0xa0] sm:$0xff] %vm264_vm0, %v1487_v0  ;;  %286 = vst.msk [vmem:[#allocation2 + $0xa8] sm:$0xff] %vm264_vm0, %v1487_v0  ;;  %v1388_v11 = vld [vmem:[%s1656_s29 + $0x60] sm:$0xff]   ;;  %v1390_v13 = vld [vmem:[%s1656_s29 + $0x68] sm:$0xff]  }
  0x50   : > { %287 = vst.msk [vmem:[#allocation2 + $0xb0] sm:$0xff] %vm264_vm0, %v1487_v0  ;;  %288 = vst.msk [vmem:[#allocation2 + $0xb8] sm:$0xff] %vm264_vm0, %v1487_v0  ;;  %v1391_v14 = vld [vmem:[%s1656_s29 + $0x30] sm:$0xff]   ;;  %v1393_v16 = vld [vmem:[%s1656_s29 + $0x38] sm:$0xff]  }
  0x51   : > { %289 = vst.msk [vmem:[#allocation2 + $0xc0] sm:$0xff] %vm264_vm0, %v1487_v0  ;;  %290 = vst.msk [vmem:[#allocation2 + $0xc8] sm:$0xff] %vm264_vm0, %v1487_v0  ;;  %v1392_v15 = vld [vmem:[%s1656_s29 + $0x70] sm:$0xff]   ;;  %v1394_v17 = vld [vmem:[%s1656_s29 + $0x78] sm:$0xff]  }
  0x52   : > { %291 = vst.msk [vmem:[#allocation2 + $0xd0] sm:$0xff] %vm264_vm0, %v1487_v0  ;;  %292 = vst.msk [vmem:[#allocation2 + $0xd8] sm:$0xff] %vm264_vm0, %v1487_v0  ;;  %v331_v18 = vld [vmem:[#allocation2 + $0x10] sm:$0xff]  ;;  %v329_v20 = vld [vmem:[#allocation2] sm:$0xff] }
  0x53   : > { %293 = vst.msk [vmem:[#allocation2 + $0xe0] sm:$0xff] %vm264_vm0, %v1487_v0  ;;  %294 = vst.msk [vmem:[#allocation2 + $0xe8] sm:$0xff] %vm264_vm0, %v1487_v0  ;;  %v332_v24 = vld [vmem:[#allocation2 + $0x18] sm:$0xff]  ;;  %v330_v30 = vld [vmem:[#allocation2 + $0x8] sm:$0xff] }
  0x54   : > { %295 = vst.msk [vmem:[#allocation2 + $0xf0] sm:$0xff] %vm264_vm0, %v1487_v0  ;;  %296 = vst.msk [vmem:[#allocation2 + $0xf8] sm:$0xff] %vm264_vm0, %v1487_v0  ;;  %1301 = vmatmul.mubr.msk.bf16.gmra.mrb[4].mxu0 %vm449_vm1, %v1385_v8  ;;  %v345_v21 = vld [vmem:[#allocation2 + $0x80] sm:$0xff]  ;;  %v346_v31 = vld [vmem:[#allocation2 + $0x88] sm:$0xff] }
  0x55   : > { %1317 = vmatmul.mubr.msk.bf16.gmra.mrb[4].mxu1 %vm449_vm1, %v1386_v9  ;;  %1304 = vmatprep.mubr.msk.bf16.mxu0 %vm449_vm1, %v1387_v10  ;;  %v347_v19 = vld [vmem:[#allocation2 + $0x90] sm:$0xff]  ;;  %v348_v25 = vld [vmem:[#allocation2 + $0x98] sm:$0xff]  ;;  %v333_v44 = vld [vmem:[#allocation2 + $0x20] sm:$0xff] }
  0x56   : > { %1320 = vmatprep.mubr.msk.bf16.mxu1 %vm449_vm1, %v1388_v11  ;;  %v335_v42 = vld [vmem:[#allocation2 + $0x30] sm:$0xff]  ;;  %v349_v45 = vld [vmem:[#allocation2 + $0xa0] sm:$0xff]  ;;  %v336_v49 = vld [vmem:[#allocation2 + $0x38] sm:$0xff] }
  0x57   : > { %v351_v43 = vld [vmem:[#allocation2 + $0xb0] sm:$0xff]  ;;  %v352_v50 = vld [vmem:[#allocation2 + $0xb8] sm:$0xff]  ;;  %v334_v55 = vld [vmem:[#allocation2 + $0x28] sm:$0xff] }
  0x58   : > { %v350_v56 = vld [vmem:[#allocation2 + $0xa8] sm:$0xff] }
  0x5c   : > { %1305 = vmatmul.mubr.msk.bf16.gmra.mrb[8].mxu0 %vm449_vm1, %v1389_v12 }
  0x5d   : > { %1321 = vmatmul.mubr.msk.bf16.gmra.mrb[8].mxu1 %vm449_vm1, %v1390_v13  ;;  %1308 = vmatprep.mubr.msk.bf16.mxu0 %vm449_vm1, %v1391_v14 }
  0x5e   : > { %1324 = vmatprep.mubr.msk.bf16.mxu1 %vm449_vm1, %v1392_v15 }
  0x64   : > { %1309 = vmatmul.mubr.msk.bf16.gmra.mrb[12].mxu0 %vm449_vm1, %v1393_v16 }
  0x65   : > { %1325 = vmatmul.mubr.msk.bf16.gmra.mrb[12].mxu1 %vm449_vm1, %v1394_v17 }
 0x11f   : > { %v1298_v22 = vpop.f32.mrb[0].mxu0 }
 0x120   : > { %v1314_v23 = vpop.f32.mrb[0].mxu1  ;;  %v661_v26 = vadd.f32 %v1298_v22, %v331_v18  ;;  %v532_v28 = vpop.f32.mrb[1].mxu0 }
 0x121   : > { %v677_v27 = vadd.f32 %v1314_v23, %v347_v19  ;;  %v596_v29 = vpop.f32.mrb[1].mxu1  ;;  %v659_v32 = vadd.f32 %v532_v28, %v329_v20  ;;  %v1299_v34 = vpop.f32.mrb[2].mxu0 }
 0x122   : > { %v675_v33 = vadd.f32 %v596_v29, %v345_v21  ;;  %v1315_v35 = vpop.f32.mrb[2].mxu1  ;;  %694 = vst.msk [vmem:[#allocation2 + $0x10] sm:$0xff] %vm264_vm0, %v661_v26  ;;  %v662_v36 = vadd.f32 %v1299_v34, %v332_v24  ;;  %v535_v38 = vpop.f32.mrb[3].mxu0 }
 0x123   : > { %710 = vst.msk [vmem:[#allocation2 + $0x90] sm:$0xff] %vm264_vm0, %v677_v27  ;;  %v678_v37 = vadd.f32 %v1315_v35, %v348_v25  ;;  %v599_v39 = vpop.f32.mrb[3].mxu1  ;;  %692 = vst.msk [vmem:[#allocation2] sm:$0xff] %vm264_vm0, %v659_v32  ;;  %v660_v40 = vadd.f32 %v535_v38, %v330_v30  ;;  %v339_v27 = vld [vmem:[#allocation2 + $0x50] sm:$0xff] }
 0x124   : > { %708 = vst.msk [vmem:[#allocation2 + $0x80] sm:$0xff] %vm264_vm0, %v675_v33  ;;  %v676_v41 = vadd.f32 %v599_v39, %v346_v31  ;;  %695 = vst.msk [vmem:[#allocation2 + $0x18] sm:$0xff] %vm264_vm0, %v662_v36 }
 0x125   : > { %711 = vst.msk [vmem:[#allocation2 + $0x98] sm:$0xff] %vm264_vm0, %v678_v37  ;;  %693 = vst.msk [vmem:[#allocation2 + $0x8] sm:$0xff] %vm264_vm0, %v660_v40 }
 0x126   : > { %709 = vst.msk [vmem:[#allocation2 + $0x88] sm:$0xff] %vm264_vm0, %v676_v41 }
 0x127   : > { %v1302_v47 = vpop.f32.mrb[4].mxu0 }
 0x128   : > { %v1318_v48 = vpop.f32.mrb[4].mxu1  ;;  %v665_v51 = vadd.f32 %v1302_v47, %v335_v42  ;;  %v548_v53 = vpop.f32.mrb[5].mxu0 }
 0x129   : > { %v681_v52 = vadd.f32 %v1318_v48, %v351_v43  ;;  %v612_v54 = vpop.f32.mrb[5].mxu1  ;;  %v729_v57 = vld [vmem:[#allocation2 + $0x10] sm:$0xff]  ;;  %v663_v59 = vadd.f32 %v548_v53, %v333_v44  ;;  %v1303_v61 = vpop.f32.mrb[6].mxu0 }
 0x12a   : > { %v745_v58 = vld [vmem:[#allocation2 + $0x90] sm:$0xff]  ;;  %v679_v60 = vadd.f32 %v612_v54, %v349_v45  ;;  %v1319_v62 = vpop.f32.mrb[6].mxu1  ;;  %v768_v63 = vadd.f32 %v1698_v46, %v729_v57  ;;  %v727_v1 = vld [vmem:[#allocation2] sm:$0xff]  ;;  %698 = vst.msk [vmem:[#allocation2 + $0x30] sm:$0xff] %vm264_vm0, %v665_v51  ;;  %v666_v3 = vadd.f32 %v1303_v61, %v336_v49  ;;  %v551_v5 = vpop.f32.mrb[7].mxu0 }
 0x12b   : > { %v784_v0 = vadd.f32 %v1698_v46, %v745_v58  ;;  %v743_v2 = vld [vmem:[#allocation2 + $0x80] sm:$0xff]  ;;  %714 = vst.msk [vmem:[#allocation2 + $0xb0] sm:$0xff] %vm264_vm0, %v681_v52  ;;  %v682_v4 = vadd.f32 %v1319_v62, %v352_v50  ;;  %v615_v6 = vpop.f32.mrb[7].mxu1  ;;  %v766_v7 = vadd.f32 %v1698_v46, %v727_v1  ;;  %v730_v9 = vld [vmem:[#allocation2 + $0x18] sm:$0xff]  ;;  %696 = vst.msk [vmem:[#allocation2 + $0x20] sm:$0xff] %vm264_vm0, %v663_v59 }
 0x12c   : > { %v782_v8 = vadd.f32 %v1698_v46, %v743_v2  ;;  %v746_v10 = vld [vmem:[#allocation2 + $0x98] sm:$0xff]  ;;  %712 = vst.msk [vmem:[#allocation2 + $0xa0] sm:$0xff] %vm264_vm0, %v679_v60  ;;  %v664_v11 = vadd.f32 %v551_v5, %v334_v55  ;;  %v680_v12 = vadd.f32 %v615_v6, %v350_v56  ;;  %vm800_vm3 = vcmp.ge.f32.partialorder %v768_v63, 0.0  ;;  %699 = vst.msk [vmem:[#allocation2 + $0x38] sm:$0xff] %vm264_vm0, %v666_v3  ;;  %v728_v21 = vld [vmem:[#allocation2 + $0x8] sm:$0xff] }
 0x12d   : > { %v832_v13 = vmul.f32 0.2, %v768_v63  ;;  %vm816_vm4 = vcmp.ge.f32.partialorder %v784_v0, 0.0  ;;  %v848_v14 = vmul.f32 0.2, %v784_v0  ;;  %715 = vst.msk [vmem:[#allocation2 + $0xb8] sm:$0xff] %vm264_vm0, %v682_v4  ;;  %v769_v19 = vadd.f32 %v1698_v46, %v730_v9 }
 0x12e   : > { %vm798_vm5 = vcmp.ge.f32.partialorder %v766_v7, 0.0  ;;  %v830_v15 = vmul.f32 0.2, %v766_v7  ;;  %vm814_vm6 = vcmp.ge.f32.partialorder %v782_v8, 0.0  ;;  %v846_v16 = vmul.f32 0.2, %v782_v8 }
 0x12f   : > { %697 = vst.msk [vmem:[#allocation2 + $0x28] sm:$0xff] %vm264_vm0, %v664_v11  ;;  %713 = vst.msk [vmem:[#allocation2 + $0xa8] sm:$0xff] %vm264_vm0, %v680_v12  ;;  %v864_v17 = vsel %vm800_vm3, %v768_v63, %v832_v13  ;;  %v880_v18 = vsel %vm816_vm4, %v784_v0, %v848_v14  ;;  %v785_v20 = vadd.f32 %v1698_v46, %v746_v10  ;;  %v744_v22 = vld [vmem:[#allocation2 + $0x88] sm:$0xff]  ;;  %v1306_v28 = vpop.f32.mrb[8].mxu0  ;;  %vm801_vm7 = vcmp.ge.f32.partialorder %v769_v19, 0.0  ;;  %v355_v12 = vld [vmem:[#allocation2 + $0xd0] sm:$0xff] }
 0x130   : > { %v1247_v23 = vpack.c.bf16 %v864_v17, %v864_v17  ;;  %v1263_v24 = vpack.c.bf16 %v880_v18, %v880_v18  ;;  %v862_v25 = vsel %vm798_vm5, %v766_v7, %v830_v15  ;;  %v878_v26 = vsel %vm814_vm6, %v782_v8, %v846_v16  ;;  %v1721_v29 = vpop.f32.mrb[8].mxu1  ;;  %v1723_v33 = vpop.f32.mrb[9].mxu0 }
 0x131   : > { %v1245_v30 = vpack.c.bf16 %v862_v25, %v862_v25  ;;  %v1261_v31 = vpack.c.bf16 %v878_v26, %v878_v26  ;;  %v833_v32 = vmul.f32 0.2, %v769_v19  ;;  %v1725_v34 = vpop.f32.mrb[9].mxu1  ;;  %vm817_vm8 = vcmp.ge.f32.partialorder %v785_v20, 0.0  ;;  %v733_v38 = vld [vmem:[#allocation2 + $0x30] sm:$0xff]  ;;  %v1733_v40 = vpop.f32.mrb[10].mxu0 }
 0x132   : > { %1025 = vst.msk [vmem:[%s1717_s4 + $0x8] sm:$0xf] %vm1022_vm2, %v1247_v23  ;;  %1041 = vst.msk [vmem:[%s1717_s4 + $0x48] sm:$0xf] %vm1022_vm2, %v1263_v24  ;;  %v849_v35 = vmul.f32 0.2, %v785_v20  ;;  %v767_v36 = vadd.f32 %v1698_v46, %v728_v21  ;;  %v783_v37 = vadd.f32 %v1698_v46, %v744_v22  ;;  %v772_v42 = vadd.f32 %v1698_v46, %v733_v38 }
 0x133   : > { %v749_v39 = vld [vmem:[#allocation2 + $0xb0] sm:$0xff]  ;;  %1023 = vst.msk [vmem:[%s1717_s4] sm:$0xf] %vm1022_vm2, %v1245_v30  ;;  %1039 = vst.msk [vmem:[%s1717_s4 + $0x40] sm:$0xf] %vm1022_vm2, %v1261_v31  ;;  %v865_v41 = vsel %vm801_vm7, %v769_v19, %v833_v32  ;;  %v669_v44 = vadd.f32 %v1306_v28, %v339_v27  ;;  %v1741_v45 = vpop.f32.mrb[10].mxu1  ;;  %v685_v27 = vadd.f32 %v1721_v29, %v355_v12 }
 0x134   : > { %v788_v43 = vadd.f32 %v1698_v46, %v749_v39  ;;  %v1743_v47 = vpop.f32.mrb[11].mxu0  ;;  %v1248_v48 = vpack.c.bf16 %v865_v41, %v865_v41  ;;  %v881_v49 = vsel %vm817_vm8, %v785_v20, %v849_v35  ;;  %vm799_vm9 = vcmp.ge.f32.partialorder %v767_v36, 0.0  ;;  %v731_v51 = vld [vmem:[#allocation2 + $0x20] sm:$0xff]  ;;  %v1746_v53 = vpop.f32.mrb[11].mxu1  ;;  %v734_v56 = vld [vmem:[#allocation2 + $0x38] sm:$0xff] }
 0x135   : > { %v831_v50 = vmul.f32 0.2, %v767_v36  ;;  %v747_v52 = vld [vmem:[#allocation2 + $0xa0] sm:$0xff]  ;;  %v1264_v54 = vpack.c.bf16 %v881_v49, %v881_v49  ;;  %vm815_vm10 = vcmp.ge.f32.partialorder %v783_v37, 0.0  ;;  %v847_v55 = vmul.f32 0.2, %v783_v37 }
 0x136   : > { %vm804_vm11 = vcmp.ge.f32.partialorder %v772_v42, 0.0  ;;  %702 = vst.msk [vmem:[#allocation2 + $0x50] sm:$0xff] %vm264_vm0, %v669_v44  ;;  %v836_v58 = vmul.f32 0.2, %v772_v42  ;;  %vm820_vm12 = vcmp.ge.f32.partialorder %v788_v43, 0.0  ;;  %v770_v62 = vadd.f32 %v1698_v46, %v731_v51  ;;  %v750_v4 = vld [vmem:[#allocation2 + $0xb8] sm:$0xff] }
 0x137   : > { %1026 = vst.msk [vmem:[%s1717_s4 + $0xc] sm:$0xf] %vm1022_vm2, %v1248_v48  ;;  %v863_v57 = vsel %vm799_vm9, %v767_v36, %v831_v50  ;;  %v852_v59 = vmul.f32 0.2, %v788_v43  ;;  %1042 = vst.msk [vmem:[%s1717_s4 + $0x4c] sm:$0xf] %vm1022_vm2, %v1264_v54  ;;  %v879_v61 = vsel %vm815_vm10, %v783_v37, %v847_v55  ;;  %v786_v63 = vadd.f32 %v1698_v46, %v747_v52 }
 0x138   : > { %v1246_v60 = vpack.c.bf16 %v863_v57, %v863_v57  ;;  %v1262_v0 = vpack.c.bf16 %v879_v61, %v879_v61  ;;  %v868_v1 = vsel %vm804_vm11, %v772_v42, %v836_v58  ;;  %v773_v3 = vadd.f32 %v1698_v46, %v734_v56  ;;  %v732_v5 = vld [vmem:[#allocation2 + $0x28] sm:$0xff]  ;;  %v1756_v7 = vpop.f32.mrb[12].mxu0  ;;  %v1758_v8 = vpop.f32.mrb[12].mxu1  ;;  %v337_v28 = vld [vmem:[#allocation2 + $0x40] sm:$0xff]  ;;  %v340_v38 = vld [vmem:[#allocation2 + $0x58] sm:$0xff]  ;;  %718 = vst.msk [vmem:[#allocation2 + $0xd0] sm:$0xff] %vm264_vm0, %v685_v27 }
 0x139   : > { %v884_v2 = vsel %vm820_vm12, %v788_v43, %v852_v59  ;;  %v748_v6 = vld [vmem:[#allocation2 + $0xa8] sm:$0xff]  ;;  %v1251_v9 = vpack.c.bf16 %v868_v1, %v868_v1  ;;  %vm802_vm13 = vcmp.ge.f32.partialorder %v770_v62, 0.0  ;;  %v834_v11 = vmul.f32 0.2, %v770_v62  ;;  %v1762_v13 = vpop.f32.mrb[13].mxu0  ;;  %v1764_v14 = vpop.f32.mrb[13].mxu1 }
 0x13a   : > { %1024 = vst.msk [vmem:[%s1717_s4 + $0x4] sm:$0xf] %vm1022_vm2, %v1246_v60  ;;  %v1267_v10 = vpack.c.bf16 %v884_v2, %v884_v2  ;;  %1040 = vst.msk [vmem:[%s1717_s4 + $0x44] sm:$0xf] %vm1022_vm2, %v1262_v0  ;;  %vm818_vm14 = vcmp.ge.f32.partialorder %v786_v63, 0.0  ;;  %vm805_vm15 = vcmp.ge.f32.partialorder %v773_v3, 0.0  ;;  %v789_v18 = vadd.f32 %v1698_v46, %v750_v4 }
 0x13b   : > { %v850_v15 = vmul.f32 0.2, %v786_v63  ;;  %v837_v16 = vmul.f32 0.2, %v773_v3  ;;  %1029 = vst.msk [vmem:[%s1717_s4 + $0x18] sm:$0xf] %vm1022_vm2, %v1251_v9  ;;  %v866_v17 = vsel %vm802_vm13, %v770_v62, %v834_v11  ;;  %v771_v19 = vadd.f32 %v1698_v46, %v732_v5 }
 0x13c   : > { %1045 = vst.msk [vmem:[%s1717_s4 + $0x58] sm:$0xf] %vm1022_vm2, %v1267_v10  ;;  %v787_v20 = vadd.f32 %v1698_v46, %v748_v6  ;;  %v1775_v21 = vpop.f32.mrb[14].mxu0  ;;  %v1777_v22 = vpop.f32.mrb[14].mxu1  ;;  %v1249_v23 = vpack.c.bf16 %v866_v17, %v866_v17  ;;  %v353_v30 = vld [vmem:[#allocation2 + $0xc0] sm:$0xff]  ;;  %vm821_vm1 = vcmp.ge.f32.partialorder %v789_v18, 0.0  ;;  %v667_v44 = vadd.f32 %v1723_v33, %v337_v28 }
 0x13d   : > { %v882_v24 = vsel %vm818_vm14, %v786_v63, %v850_v15  ;;  %v869_v25 = vsel %vm805_vm15, %v773_v3, %v837_v16  ;;  %v737_v26 = vld [vmem:[#allocation2 + $0x50] sm:$0xff]  ;;  %v583_v31 = vpop.f32.mrb[15].mxu0  ;;  %v1780_v32 = vpop.f32.mrb[15].mxu1  ;;  %v853_v37 = vmul.f32 0.2, %v789_v18  ;;  %v356_v39 = vld [vmem:[#allocation2 + $0xd8] sm:$0xff]  ;;  %v683_v48 = vadd.f32 %v1725_v34, %v353_v30 }
 0x13e   : > { %v1265_v35 = vpack.c.bf16 %v882_v24, %v882_v24  ;;  %v1252_v36 = vpack.c.bf16 %v869_v25, %v869_v25  ;;  %1027 = vst.msk [vmem:[%s1717_s4 + $0x10] sm:$0xf] %vm1022_vm2, %v1249_v23  ;;  %vm803_vm3 = vcmp.ge.f32.partialorder %v771_v19, 0.0  ;;  %v835_v41 = vmul.f32 0.2, %v771_v19  ;;  %v338_v49 = vld [vmem:[#allocation2 + $0x48] sm:$0xff] }
 0x13f   : > { %vm819_vm4 = vcmp.ge.f32.partialorder %v787_v20, 0.0  ;;  %v851_v42 = vmul.f32 0.2, %v787_v20  ;;  %v885_v29 = vsel %vm821_vm1, %v789_v18, %v853_v37  ;;  %v776_v43 = vadd.f32 %v1698_v46, %v737_v26  ;;  %v354_v50 = vld [vmem:[#allocation2 + $0xc8] sm:$0xff]  ;;  %v343_v51 = vld [vmem:[#allocation2 + $0x70] sm:$0xff]  ;;  %v341_v58 = vld [vmem:[#allocation2 + $0x60] sm:$0xff] }
 0x140   : > { %1043 = vst.msk [vmem:[%s1717_s4 + $0x50] sm:$0xf] %vm1022_vm2, %v1265_v35  ;;  %1030 = vst.msk [vmem:[%s1717_s4 + $0x1c] sm:$0xf] %vm1022_vm2, %v1252_v36  ;;  %v1268_v52 = vpack.c.bf16 %v885_v29, %v885_v29  ;;  %v867_v54 = vsel %vm803_vm3, %v771_v19, %v835_v41  ;;  %v670_v56 = vadd.f32 %v1733_v40, %v340_v38  ;;  %v359_v57 = vld [vmem:[#allocation2 + $0xf0] sm:$0xff]  ;;  %v357_v59 = vld [vmem:[#allocation2 + $0xe0] sm:$0xff] }
 0x141   : > { %v883_v55 = vsel %vm819_vm4, %v787_v20, %v851_v42  ;;  %v1250_v60 = vpack.c.bf16 %v867_v54, %v867_v54  ;;  %vm808_vm5 = vcmp.ge.f32.partialorder %v776_v43, 0.0  ;;  %v840_v33 = vmul.f32 0.2, %v776_v43  ;;  %700 = vst.msk [vmem:[#allocation2 + $0x40] sm:$0xff] %vm264_vm0, %v667_v44  ;;  %716 = vst.msk [vmem:[#allocation2 + $0xc0] sm:$0xff] %vm264_vm0, %v683_v48  ;;  %v344_v34 = vld [vmem:[#allocation2 + $0x78] sm:$0xff] }
 0x142   : > { %v1266_v61 = vpack.c.bf16 %v883_v55, %v883_v55  ;;  %v360_v62 = vld [vmem:[#allocation2 + $0xf8] sm:$0xff]  ;;  %v342_v63 = vld [vmem:[#allocation2 + $0x68] sm:$0xff]  ;;  %1046 = vst.msk [vmem:[%s1717_s4 + $0x5c] sm:$0xf] %vm1022_vm2, %v1268_v52  ;;  %v686_v40 = vadd.f32 %v1741_v45, %v356_v39  ;;  %v668_v0 = vadd.f32 %v1743_v47, %v338_v49  ;;  %v684_v1 = vadd.f32 %v1746_v53, %v354_v50 }
 0x143   : > { %703 = vst.msk [vmem:[#allocation2 + $0x58] sm:$0xff] %vm264_vm0, %v670_v56  ;;  %v673_v2 = vadd.f32 %v1756_v7, %v343_v51  ;;  %v358_v3 = vld [vmem:[#allocation2 + $0xe8] sm:$0xff]  ;;  %v872_v4 = vsel %vm808_vm5, %v776_v43, %v840_v33  ;;  %v689_v5 = vadd.f32 %v1758_v8, %v359_v57  ;;  %v671_v6 = vadd.f32 %v1762_v13, %v341_v58  ;;  %v753_v8 = vld [vmem:[#allocation2 + $0xd0] sm:$0xff] }
 0x144   : > { %1028 = vst.msk [vmem:[%s1717_s4 + $0x14] sm:$0xf] %vm1022_vm2, %v1250_v60  ;;  %1044 = vst.msk [vmem:[%s1717_s4 + $0x54] sm:$0xf] %vm1022_vm2, %v1266_v61  ;;  %v687_v45 = vadd.f32 %v1764_v14, %v357_v59  ;;  %v1255_v9 = vpack.c.bf16 %v872_v4, %v872_v4  ;;  %v674_v47 = vadd.f32 %v1775_v21, %v344_v34 }
 0x145   : > { %719 = vst.msk [vmem:[#allocation2 + $0xd8] sm:$0xff] %vm264_vm0, %v686_v40  ;;  %701 = vst.msk [vmem:[#allocation2 + $0x48] sm:$0xff] %vm264_vm0, %v668_v0  ;;  %v690_v53 = vadd.f32 %v1777_v22, %v360_v62  ;;  %v672_v7 = vadd.f32 %v583_v31, %v342_v63  ;;  %v688_v10 = vadd.f32 %v1780_v32, %v358_v3 }
 0x146   : > { %717 = vst.msk [vmem:[#allocation2 + $0xc8] sm:$0xff] %vm264_vm0, %v684_v1  ;;  %706 = vst.msk [vmem:[#allocation2 + $0x70] sm:$0xff] %vm264_vm0, %v673_v2  ;;  %v792_v11 = vadd.f32 %v1698_v46, %v753_v8 }
 0x147   : > { %722 = vst.msk [vmem:[#allocation2 + $0xf0] sm:$0xff] %vm264_vm0, %v689_v5  ;;  %704 = vst.msk [vmem:[#allocation2 + $0x60] sm:$0xff] %vm264_vm0, %v671_v6 }
 0x148   : > { %720 = vst.msk [vmem:[#allocation2 + $0xe0] sm:$0xff] %vm264_vm0, %v687_v45  ;;  %707 = vst.msk [vmem:[#allocation2 + $0x78] sm:$0xff] %vm264_vm0, %v674_v47  ;;  %vm824_vm6 = vcmp.ge.f32.partialorder %v792_v11, 0.0  ;;  %v856_v12 = vmul.f32 0.2, %v792_v11  ;;  %v735_v13 = vld [vmem:[#allocation2 + $0x40] sm:$0xff] }
 0x149   : > { %1033 = vst.msk [vmem:[%s1717_s4 + $0x28] sm:$0xf] %vm1022_vm2, %v1255_v9  ;;  %v751_v14 = vld [vmem:[#allocation2 + $0xc0] sm:$0xff]  ;;  %v774_v15 = vadd.f32 %v1698_v46, %v735_v13 }
 0x14a   : > { %723 = vst.msk [vmem:[#allocation2 + $0xf8] sm:$0xff] %vm264_vm0, %v690_v53  ;;  %705 = vst.msk [vmem:[#allocation2 + $0x68] sm:$0xff] %vm264_vm0, %v672_v7  ;;  %v790_v16 = vadd.f32 %v1698_v46, %v751_v14  ;;  %v738_v17 = vld [vmem:[#allocation2 + $0x58] sm:$0xff]  ;;  %v888_v18 = vsel %vm824_vm6, %v792_v11, %v856_v12 }
 0x14b   : > { %721 = vst.msk [vmem:[#allocation2 + $0xe8] sm:$0xff] %vm264_vm0, %v688_v10  ;;  %v777_v19 = vadd.f32 %v1698_v46, %v738_v17  ;;  %v1271_v20 = vpack.c.bf16 %v888_v18, %v888_v18  ;;  %vm806_vm7 = vcmp.ge.f32.partialorder %v774_v15, 0.0  ;;  %v838_v21 = vmul.f32 0.2, %v774_v15 }
 0x14c   : > { %vm822_vm8 = vcmp.ge.f32.partialorder %v790_v16, 0.0  ;;  %v754_v22 = vld [vmem:[#allocation2 + $0xd8] sm:$0xff]  ;;  %v736_v23 = vld [vmem:[#allocation2 + $0x48] sm:$0xff]  ;;  %v854_v24 = vmul.f32 0.2, %v790_v16 }
 0x14d   : > { %vm809_vm0 = vcmp.ge.f32.partialorder %v777_v19, 0.0  ;;  %v841_v25 = vmul.f32 0.2, %v777_v19  ;;  %v793_v26 = vadd.f32 %v1698_v46, %v754_v22  ;;  %v752_v27 = vld [vmem:[#allocation2 + $0xc8] sm:$0xff]  ;;  %1049 = vst.msk [vmem:[%s1717_s4 + $0x68] sm:$0xf] %vm1022_vm2, %v1271_v20  ;;  %v870_v28 = vsel %vm806_vm7, %v774_v15, %v838_v21 }
 0x14e   : > { %v775_v30 = vadd.f32 %v1698_v46, %v736_v23  ;;  %v791_v31 = vadd.f32 %v1698_v46, %v752_v27  ;;  %v741_v32 = vld [vmem:[#allocation2 + $0x70] sm:$0xff]  ;;  %v1253_v35 = vpack.c.bf16 %v870_v28, %v870_v28  ;;  %v886_v36 = vsel %vm822_vm8, %v790_v16, %v854_v24  ;;  %v739_v39 = vld [vmem:[#allocation2 + $0x60] sm:$0xff] }
 0x14f   : > { %v873_v37 = vsel %vm809_vm0, %v777_v19, %v841_v25  ;;  %vm825_vm9 = vcmp.ge.f32.partialorder %v793_v26, 0.0  ;;  %v757_v38 = vld [vmem:[#allocation2 + $0xf0] sm:$0xff]  ;;  %v755_v41 = vld [vmem:[#allocation2 + $0xe0] sm:$0xff]  ;;  %v1269_v42 = vpack.c.bf16 %v886_v36, %v886_v36  ;;  %v857_v43 = vmul.f32 0.2, %v793_v26  ;;  %v742_v58 = vld [vmem:[#allocation2 + $0x78] sm:$0xff] }
 0x150   : > { %v1256_v29 = vpack.c.bf16 %v873_v37, %v873_v37  ;;  %vm807_vm10 = vcmp.ge.f32.partialorder %v775_v30, 0.0  ;;  %1031 = vst.msk [vmem:[%s1717_s4 + $0x20] sm:$0xf] %vm1022_vm2, %v1253_v35  ;;  %v839_v44 = vmul.f32 0.2, %v775_v30  ;;  %vm823_vm11 = vcmp.ge.f32.partialorder %v791_v31, 0.0 }
 0x151   : > { %v855_v48 = vmul.f32 0.2, %v791_v31  ;;  %v780_v49 = vadd.f32 %v1698_v46, %v741_v32  ;;  %1047 = vst.msk [vmem:[%s1717_s4 + $0x60] sm:$0xf] %vm1022_vm2, %v1269_v42  ;;  %v889_v50 = vsel %vm825_vm9, %v793_v26, %v857_v43  ;;  %v796_v51 = vadd.f32 %v1698_v46, %v757_v38  ;;  %v758_v59 = vld [vmem:[#allocation2 + $0xf8] sm:$0xff]  ;;  %v740_v34 = vld [vmem:[#allocation2 + $0x68] sm:$0xff] }
 0x152   : > { %1034 = vst.msk [vmem:[%s1717_s4 + $0x2c] sm:$0xf] %vm1022_vm2, %v1256_v29  ;;  %v778_v52 = vadd.f32 %v1698_v46, %v739_v39  ;;  %v794_v54 = vadd.f32 %v1698_v46, %v755_v41  ;;  %v1272_v55 = vpack.c.bf16 %v889_v50, %v889_v50  ;;  %v871_v56 = vsel %vm807_vm10, %v775_v30, %v839_v44  ;;  %v756_v45 = vld [vmem:[#allocation2 + $0xe8] sm:$0xff] }
 0x153   : > { %v887_v57 = vsel %vm823_vm11, %v791_v31, %v855_v48  ;;  %vm812_vm12 = vcmp.ge.f32.partialorder %v780_v49, 0.0  ;;  %v1254_v60 = vpack.c.bf16 %v871_v56, %v871_v56  ;;  %v844_v33 = vmul.f32 0.2, %v780_v49 }
 0x154   : > { %v1270_v61 = vpack.c.bf16 %v887_v57, %v887_v57  ;;  %vm828_vm13 = vcmp.ge.f32.partialorder %v796_v51, 0.0  ;;  %1050 = vst.msk [vmem:[%s1717_s4 + $0x6c] sm:$0xf] %vm1022_vm2, %v1272_v55  ;;  %v860_v62 = vmul.f32 0.2, %v796_v51  ;;  %vm810_vm14 = vcmp.ge.f32.partialorder %v778_v52, 0.0 }
 0x155   : > { %v842_v63 = vmul.f32 0.2, %v778_v52  ;;  %vm826_vm15 = vcmp.ge.f32.partialorder %v794_v54, 0.0  ;;  %1032 = vst.msk [vmem:[%s1717_s4 + $0x24] sm:$0xf] %vm1022_vm2, %v1254_v60  ;;  %v876_v40 = vsel %vm812_vm12, %v780_v49, %v844_v33  ;;  %v781_v1 = vadd.f32 %v1698_v46, %v742_v58 }
 0x156   : > { %1048 = vst.msk [vmem:[%s1717_s4 + $0x64] sm:$0xf] %vm1022_vm2, %v1270_v61  ;;  %v858_v0 = vmul.f32 0.2, %v794_v54  ;;  %v797_v2 = vadd.f32 %v1698_v46, %v758_v59  ;;  %v1259_v3 = vpack.c.bf16 %v876_v40, %v876_v40  ;;  %v892_v4 = vsel %vm828_vm13, %v796_v51, %v860_v62 }
 0x157   : > { %v874_v5 = vsel %vm810_vm14, %v778_v52, %v842_v63  ;;  %v779_v6 = vadd.f32 %v1698_v46, %v740_v34  ;;  %v1275_v9 = vpack.c.bf16 %v892_v4, %v892_v4  ;;  %vm813_vm1 = vcmp.ge.f32.partialorder %v781_v1, 0.0 }
 0x158   : > { %v1257_v47 = vpack.c.bf16 %v874_v5, %v874_v5  ;;  %v890_v53 = vsel %vm826_vm15, %v794_v54, %v858_v0  ;;  %1037 = vst.msk [vmem:[%s1717_s4 + $0x38] sm:$0xf] %vm1022_vm2, %v1259_v3  ;;  %v845_v8 = vmul.f32 0.2, %v781_v1  ;;  %vm829_vm3 = vcmp.ge.f32.partialorder %v797_v2, 0.0 }
 0x159   : > { %v1273_v7 = vpack.c.bf16 %v890_v53, %v890_v53  ;;  %v861_v10 = vmul.f32 0.2, %v797_v2  ;;  %1053 = vst.msk [vmem:[%s1717_s4 + $0x78] sm:$0xf] %vm1022_vm2, %v1275_v9  ;;  %vm811_vm4 = vcmp.ge.f32.partialorder %v779_v6, 0.0  ;;  %v795_v12 = vadd.f32 %v1698_v46, %v756_v45 }
 0x15a   : > { %1035 = vst.msk [vmem:[%s1717_s4 + $0x30] sm:$0xf] %vm1022_vm2, %v1257_v47  ;;  %v843_v11 = vmul.f32 0.2, %v779_v6  ;;  %v877_v13 = vsel %vm813_vm1, %v781_v1, %v845_v8 }
 0x15b   : > { %1051 = vst.msk [vmem:[%s1717_s4 + $0x70] sm:$0xf] %vm1022_vm2, %v1273_v7  ;;  %v893_v14 = vsel %vm829_vm3, %v797_v2, %v861_v10  ;;  %v1260_v15 = vpack.c.bf16 %v877_v13, %v877_v13  ;;  %vm827_vm5 = vcmp.ge.f32.partialorder %v795_v12, 0.0  ;;  %v859_v19 = vmul.f32 0.2, %v795_v12 }
 0x15c   : > { %v1276_v16 = vpack.c.bf16 %v893_v14, %v893_v14  ;;  %v875_v17 = vsel %vm811_vm4, %v779_v6, %v843_v11 }
 0x15d   : > { %v1258_v18 = vpack.c.bf16 %v875_v17, %v875_v17  ;;  %1038 = vst.msk [vmem:[%s1717_s4 + $0x3c] sm:$0xf] %vm1022_vm2, %v1260_v15  ;;  %v891_v20 = vsel %vm827_vm5, %v795_v12, %v859_v19 }
 0x15e   : > { %1054 = vst.msk [vmem:[%s1717_s4 + $0x7c] sm:$0xf] %vm1022_vm2, %v1276_v16  ;;  %v1274_v21 = vpack.c.bf16 %v891_v20, %v891_v20 }
 0x15f   : > { %1036 = vst.msk [vmem:[%s1717_s4 + $0x34] sm:$0xf] %vm1022_vm2, %v1258_v18 }
 0x160   : > { %1052 = vst.msk [vmem:[%s1717_s4 + $0x74] sm:$0xf] %vm1022_vm2, %v1274_v21 }
 0x161 PF: > { %s15_s14 = sadd.s32 1, %s1481_s14   ;;  %s1893_s12 = smov %s1477_s13 }
 0x162   : > { %p12_p3 = scmp.ge.s32.totalorder %s15_s14, 4   ;;  %s1894_s13 = smov %s1896_s16 }
 0x164   :  { %14 = sbr.rel (!%p12_p3) target bundleno = 3 (0x3), region = 81 }
 0x16b   :  { %1083 = vsyncpa [#allocation4], 1 }
 0x16c   :  { %1085 = vsyncpa [#allocation4 + $0x1], 1 }
 0x16d   :  { %1086 = vsyncpa [#allocation6], 1 }

// kernel: discriminator_forward.5
= control target key start
LH: loop header
LB: loop body
LE: loop exit
PB: predicated region body
PF: predicated region fallthrough
CT: control target
= control target key end

     0   :  { %s2021_s15 = smov 0   ;;  %s2023_s16 = smov 0   ;;  %s2329_s0 = inlined_call_operand.vmem [shape: bf16[128,1024], index: 0, kind: input, shape index: {}]   ;;  %s2330_s1 = inlined_call_operand.vmem [shape: bf16[1024,128], index: 1, kind: input, shape index: {}]   ;;  %s2331_s2 = inlined_call_operand.vmem [shape: f32[1,128], index: 2, kind: input, shape index: {}]   ;;  %s2332_s3 = inlined_call_operand.vmem [shape: bf16[128,128], index: 3, kind: output, shape index: {0}]   ;;  %s2333_s4 = inlined_call_operand.vmem [shape: f32[2,2,128], index: 4, kind: output, shape index: {1}]  }
   0x1   :  { %s2025_s17 = smov 0  }
   0x2 LB: > { %s34_s18 = sadd.s32 1, %s1990_s16  ;;  %p1578_p0 = scmp.ge.s32.totalorder %s1994_s17, 1  ;;  %s1994_s17 = sphi %s2025_s17, %s15_s17   ;;  %s1990_s16 = sphi %s2023_s16, %s2335_s16   ;;  %s1986_s15 = sphi %s2021_s15, %s2334_s15  }
   0x3   : > { %p36_p1 = scmp.ge.s32.totalorder %s34_s18, 2  ;;  %p221_p2 = scmp.lt.s32.totalorder %s1994_s17, 3 }
   0x5   : > { %s2337_s18 = smov (%p36_p1, %s34_s18), 0  ;;  %p222_p3 = pnand %p1578_p0, %p221_p2 }
   0x6   : > { %v1908_v0 = vld [vmem:[%s2330_s1 + $0x40] sm:$0xff] (!%p222_p3)   ;;  %v1912_v4 = vld [vmem:[%s2330_s1 + $0x48] sm:$0xff] (!%p222_p3)   ;;  %v1916_v8 = vld [vmem:[%s2330_s1 + $0x50] sm:$0xff] (!%p222_p3)   ;;  %s1579_s29 = sshll.u32 (!%p222_p3), %s1986_s15, 3  ;;  %p306_p5 = scmp.lt.s32.totalorder (!%p222_p3), %s1986_s15, 1  ;;  %vm1414_vm0 = vcmask (!%p222_p3), 1040384  }
   0x7   : > { %225 = sbr.rel (%p222_p3) target bundleno = 338 (0x152), region = 32  ;;  %v1909_v1 = vld [vmem:[%s2330_s1 + $0xc0] sm:$0xff] (!%p222_p3)   ;;  %1724 = vmatprep.subr.bf16.mxu0 (!%p222_p3), %v1908_v0  ;;  %v1913_v5 = vld [vmem:[%s2330_s1 + $0xc8] sm:$0xff] (!%p222_p3)   ;;  %v1917_v9 = vld [vmem:[%s2330_s1 + $0xd0] sm:$0xff] (!%p222_p3)   ;;  %p275_p4 = scmp.lt.s32.totalorder (!%p222_p3), %s1579_s29, 15 }
   0x8   : > { %v1910_v2 = vld [vmem:[%s2330_s1] sm:$0xff] (!%p222_p3)   ;;  %1764 = vmatprep.subr.bf16.mxu1 (!%p222_p3), %v1909_v1  ;;  %v1914_v6 = vld [vmem:[%s2330_s1 + $0x8] sm:$0xff] (!%p222_p3)   ;;  %v1918_v10 = vld [vmem:[%s2330_s1 + $0x10] sm:$0xff] (!%p222_p3)  }
   0x9   : > { %v1911_v3 = vld [vmem:[%s2330_s1 + $0x80] sm:$0xff] (!%p222_p3)   ;;  %1725 = vmatpush3.bf16.msra.mxu0 (!%p222_p3), %v1910_v2  ;;  %v1915_v7 = vld [vmem:[%s2330_s1 + $0x88] sm:$0xff] (!%p222_p3)   ;;  %v1919_v11 = vld [vmem:[%s2330_s1 + $0x90] sm:$0xff] (!%p222_p3)  }
   0xa   : > { %1765 = vmatpush3.bf16.msra.mxu1 (!%p222_p3), %v1911_v3  ;;  %1726 = vmatprep.subr.bf16.mxu0 (!%p222_p3), %v1912_v4  ;;  %v1920_v12 = vld [vmem:[%s2330_s1 + $0x58] sm:$0xff] (!%p222_p3)   ;;  %v1924_v16 = vld [vmem:[%s2330_s1 + $0x60] sm:$0xff] (!%p222_p3)   ;;  %v1928_v20 = vld [vmem:[%s2330_s1 + $0x68] sm:$0xff] (!%p222_p3)  }
   0xb   : > { %1766 = vmatprep.subr.bf16.mxu1 (!%p222_p3), %v1913_v5  ;;  %v1921_v13 = vld [vmem:[%s2330_s1 + $0xd8] sm:$0xff] (!%p222_p3)   ;;  %v1925_v17 = vld [vmem:[%s2330_s1 + $0xe0] sm:$0xff] (!%p222_p3)   ;;  %v1929_v21 = vld [vmem:[%s2330_s1 + $0xe8] sm:$0xff] (!%p222_p3)  }
   0xc   : > { %v1922_v14 = vld [vmem:[%s2330_s1 + $0x18] sm:$0xff] (!%p222_p3)   ;;  %v1926_v18 = vld [vmem:[%s2330_s1 + $0x20] sm:$0xff] (!%p222_p3)   ;;  %v1930_v22 = vld [vmem:[%s2330_s1 + $0x28] sm:$0xff] (!%p222_p3)  }
   0xd   : > { %1727 = vmatpush3.bf16.msra.mxu0 (!%p222_p3), %v1914_v6  ;;  %v1923_v15 = vld [vmem:[%s2330_s1 + $0x98] sm:$0xff] (!%p222_p3)   ;;  %v1927_v19 = vld [vmem:[%s2330_s1 + $0xa0] sm:$0xff] (!%p222_p3)   ;;  %v1931_v23 = vld [vmem:[%s2330_s1 + $0xa8] sm:$0xff] (!%p222_p3)  }
   0xe   : > { %1767 = vmatpush3.bf16.msra.mxu1 %v1915_v7  ;;  %1728 = vmatprep.subr.bf16.mxu0 %v1916_v8  ;;  %s2339_s29 = smov (!%p275_p4, %s1579_s29), 15  ;;  %v1932_v24 = vld [vmem:[%s2330_s1 + $0x70] sm:$0xff]   ;;  %v1936_v28 = vld [vmem:[%s2330_s1 + $0x78] sm:$0xff]   ;;  %v1940_v40 = vld [vmem:[%s2330_s1 + $0x140] sm:$0xff]   ;;  %s2341_s15 = smov (!%p306_p5, %s1986_s15), 1 }
   0xf   : > { %1768 = vmatprep.subr.bf16.mxu1 %v1917_v9  ;;  %v1933_v25 = vld [vmem:[%s2330_s1 + $0xf0] sm:$0xff]   ;;  %s1692_s5 = sshll.u32 %s2339_s29, 5  ;;  %v1937_v29 = vld [vmem:[%s2330_s1 + $0xf8] sm:$0xff]   ;;  %v1941_v41 = vld [vmem:[%s2330_s1 + $0x1c0] sm:$0xff]   ;;  %s1583_s28 = sshll.u32 %s2339_s29, 2 }
  0x10   : > { %v1934_v26 = vld [vmem:[%s2330_s1 + $0x30] sm:$0xff]   ;;  %s2138_s14 = scalar_lea.vmem %s2329_s0, %s1692_s5  ;;  %v1938_v30 = vld [vmem:[%s2330_s1 + $0x38] sm:$0xff]   ;;  %v1942_v42 = vld [vmem:[%s2330_s1 + $0x100] sm:$0xff]   ;;  %s2297_s6 = scalar_lea.vmem %s2332_s3, %s1583_s28 }
  0x11   : > { %1729 = vmatpush3.bf16.msra.mxu0 %v1918_v10  ;;  %v1935_v27 = vld [vmem:[%s2330_s1 + $0xb0] sm:$0xff]   ;;  %v1939_v31 = vld [vmem:[%s2330_s1 + $0xb8] sm:$0xff]   ;;  %v326_v32 = vld [vmem:[%s2138_s14] sm:$0xff]  ;;  %s1584_s29 = sshll.u32 %s2341_s15, 1 }
  0x12   : > { %1769 = vmatpush3.bf16.msra.mxu1 %v1919_v11  ;;  %1730 = vmatprep.subr.bf16.mxu0 %v1920_v12  ;;  %v330_v33 = vld [vmem:[%s2138_s14 + $0x20] sm:$0xff]  ;;  %v327_v34 = vld [vmem:[%s2138_s14 + $0x8] sm:$0xff]  ;;  %v1948_v56 = vld [vmem:[%s2330_s1 + $0x150] sm:$0xff]   ;;  %s312_s9 = scalar_lea.vmem %s2333_s4, %s1584_s29 }
  0x13   : > { %1770 = vmatprep.subr.bf16.mxu1 %v1921_v13  ;;  %v1585_v35 = vcombine.low %v326_v32, %v330_v33  ;;  %v1586_v36 = vcombine.high %v326_v32, %v330_v33  ;;  %v331_v37 = vld [vmem:[%s2138_s14 + $0x28] sm:$0xff]  ;;  %v1943_v43 = vld [vmem:[%s2330_s1 + $0x180] sm:$0xff]   ;;  %v1949_v57 = vld [vmem:[%s2330_s1 + $0x1d0] sm:$0xff]  }
  0x14   : > { %v1587_v38 = vcombine.low %v327_v34, %v331_v37  ;;  %v1588_v39 = vcombine.high %v327_v34, %v331_v37  ;;  %v1944_v44 = vld [vmem:[%s2330_s1 + $0x148] sm:$0xff]   ;;  %v334_v48 = vld [vmem:[%s2138_s14 + $0x40] sm:$0xff]  ;;  %v1950_v58 = vld [vmem:[%s2330_s1 + $0x110] sm:$0xff]  }
  0x15   : > { %1731 = vmatpush3.bf16.msra.mxu0 %v1922_v14  ;;  %1070 = vmatprep.mubr.bf16.mxu0 %v1586_v36  ;;  %v1945_v45 = vld [vmem:[%s2330_s1 + $0x1c8] sm:$0xff]   ;;  %v338_v49 = vld [vmem:[%s2138_s14 + $0x60] sm:$0xff]  ;;  %v1951_v59 = vld [vmem:[%s2330_s1 + $0x190] sm:$0xff]  }
  0x16   : > { %1771 = vmatpush3.bf16.msra.mxu1 %v1923_v15  ;;  %1732 = vmatprep.subr.bf16.mxu0 %v1924_v16  ;;  %v1946_v46 = vld [vmem:[%s2330_s1 + $0x108] sm:$0xff]   ;;  %v1594_v50 = vcombine.high %v334_v48, %v338_v49  ;;  %v1593_v53 = vcombine.low %v334_v48, %v338_v49  ;;  %v1952_v60 = vld [vmem:[%s2330_s1 + $0x158] sm:$0xff]   ;;  %v342_v0 = vld [vmem:[%s2138_s14 + $0x80] sm:$0xff] }
  0x17   : > { %1772 = vmatprep.subr.bf16.mxu1 %v1925_v17  ;;  %1135 = vmatprep.mubr.bf16.mxu1 %v1588_v39  ;;  %v1947_v47 = vld [vmem:[%s2330_s1 + $0x188] sm:$0xff]   ;;  %v1953_v61 = vld [vmem:[%s2330_s1 + $0x1d8] sm:$0xff]   ;;  %v346_v1 = vld [vmem:[%s2138_s14 + $0xa0] sm:$0xff] }
  0x18   : > { %v335_v51 = vld [vmem:[%s2138_s14 + $0x48] sm:$0xff]  ;;  %v1954_v62 = vld [vmem:[%s2330_s1 + $0x118] sm:$0xff]   ;;  %v1602_v4 = vcombine.high %v342_v0, %v346_v1  ;;  %v1601_v6 = vcombine.low %v342_v0, %v346_v1  ;;  %v1956_v8 = vld [vmem:[%s2330_s1 + $0x160] sm:$0xff]  }
  0x19   : > { %1733 = vmatpush3.bf16.msra.mxu0 %v1926_v18  ;;  %v339_v52 = vld [vmem:[%s2138_s14 + $0x68] sm:$0xff]  ;;  %v1955_v63 = vld [vmem:[%s2330_s1 + $0x198] sm:$0xff]   ;;  %v1957_v9 = vld [vmem:[%s2330_s1 + $0x1e0] sm:$0xff]  }
  0x1a   : > { %1773 = vmatpush3.bf16.msra.mxu1 %v1927_v19  ;;  %1734 = vmatprep.subr.bf16.mxu0 %v1928_v20  ;;  %v1596_v54 = vcombine.high %v335_v51, %v339_v52  ;;  %v1595_v55 = vcombine.low %v335_v51, %v339_v52  ;;  %v343_v2 = vld [vmem:[%s2138_s14 + $0x88] sm:$0xff]  ;;  %v1958_v10 = vld [vmem:[%s2330_s1 + $0x120] sm:$0xff]   ;;  %v328_v32 = vld [vmem:[%s2138_s14 + $0x10] sm:$0xff] }
  0x1b   : > { %1774 = vmatprep.subr.bf16.mxu1 %v1929_v21  ;;  %v347_v3 = vld [vmem:[%s2138_s14 + $0xa8] sm:$0xff]  ;;  %v1959_v11 = vld [vmem:[%s2330_s1 + $0x1a0] sm:$0xff]   ;;  %v332_v33 = vld [vmem:[%s2138_s14 + $0x30] sm:$0xff] }
  0x1c   : > { %v1604_v5 = vcombine.high %v343_v2, %v347_v3  ;;  %v1603_v7 = vcombine.low %v343_v2, %v347_v3  ;;  %v1960_v12 = vld [vmem:[%s2330_s1 + $0x168] sm:$0xff]   ;;  %v350_v16 = vld [vmem:[%s2138_s14 + $0xc0] sm:$0xff]  ;;  %v1589_v34 = vcombine.low %v328_v32, %v332_v33  ;;  %v329_v36 = vld [vmem:[%s2138_s14 + $0x18] sm:$0xff] }
  0x1d   : > { %1735 = vmatpush3.bf16.msra.mxu0 %v1930_v22  ;;  %v1961_v13 = vld [vmem:[%s2330_s1 + $0x1e8] sm:$0xff]   ;;  %v354_v17 = vld [vmem:[%s2138_s14 + $0xe0] sm:$0xff]  ;;  %v333_v37 = vld [vmem:[%s2138_s14 + $0x38] sm:$0xff] }
  0x1e   : > { %1775 = vmatpush3.bf16.msra.mxu1 %v1931_v23  ;;  %1736 = vmatprep.subr.bf16.mxu0 %v1932_v24  ;;  %v1962_v14 = vld [vmem:[%s2330_s1 + $0x128] sm:$0xff]   ;;  %v1610_v19 = vcombine.high %v350_v16, %v354_v17  ;;  %v1609_v21 = vcombine.low %v350_v16, %v354_v17  ;;  %v1964_v24 = vld [vmem:[%s2330_s1 + $0x170] sm:$0xff]   ;;  %v1591_v39 = vcombine.low %v329_v36, %v333_v37  ;;  %v345_v48 = vld [vmem:[%s2138_s14 + $0x98] sm:$0xff] }
  0x1f   : > { %1776 = vmatprep.subr.bf16.mxu1 %v1933_v25  ;;  %v1963_v15 = vld [vmem:[%s2330_s1 + $0x1a8] sm:$0xff]   ;;  %v1965_v25 = vld [vmem:[%s2330_s1 + $0x1f0] sm:$0xff]   ;;  %v349_v49 = vld [vmem:[%s2138_s14 + $0xb8] sm:$0xff] }
  0x20   : > { %v351_v18 = vld [vmem:[%s2138_s14 + $0xc8] sm:$0xff] }
  0x21   : > { %1737 = vmatpush3.bf16.msra.mxu0 %v1934_v26  ;;  %v355_v20 = vld [vmem:[%s2138_s14 + $0xe8] sm:$0xff]  ;;  %v1966_v26 = vld [vmem:[%s2330_s1 + $0x130] sm:$0xff]  }
  0x22   : > { %1777 = vmatpush3.bf16.msra.mxu1 %v1935_v27  ;;  %1738 = vmatprep.subr.bf16.mxu0 %v1936_v28  ;;  %v1612_v22 = vcombine.high %v351_v18, %v355_v20  ;;  %v1611_v23 = vcombine.low %v351_v18, %v355_v20  ;;  %v1967_v27 = vld [vmem:[%s2330_s1 + $0x1b0] sm:$0xff]   ;;  %v1968_v28 = vld [vmem:[%s2330_s1 + $0x178] sm:$0xff]  }
  0x23   : > { %1778 = vmatprep.subr.bf16.mxu1 %v1937_v29  ;;  %v1969_v29 = vld [vmem:[%s2330_s1 + $0x1f8] sm:$0xff]  }
  0x25   : > { %1739 = vmatpush3.bf16.msra.mxu0 %v1938_v30  ;;  %v1970_v30 = vld [vmem:[%s2330_s1 + $0x138] sm:$0xff]  }
  0x26   : > { %1779 = vmatpush3.bf16.msra.mxu1 %v1939_v31  ;;  %1804 = vmatprep.subr.bf16.mxu0 %v1940_v40  ;;  %v1971_v31 = vld [vmem:[%s2330_s1 + $0x1b8] sm:$0xff]   ;;  %v1592_v40 = vcombine.high %v329_v36, %v333_v37 }
  0x27   : > { %1844 = vmatprep.subr.bf16.mxu1 %v1941_v41  ;;  %v340_v41 = vld [vmem:[%s2138_s14 + $0x70] sm:$0xff] }
  0x28   : > { %1071 = vmatmul.mubr.bf16.vlgmr.msra.gmra.mrb[0].mxu0 %v1585_v35  ;;  %v1590_v35 = vcombine.high %v328_v32, %v332_v33 }
  0x29   : > { %1136 = vmatmul.mubr.bf16.vlgmr.msra.gmra.mrb[0].mxu1 %v1587_v38  ;;  %1805 = vmatpush3.bf16.msra.mxu0 %v1942_v42  ;;  %v336_v38 = vld [vmem:[%s2138_s14 + $0x50] sm:$0xff]  ;;  %v337_v42 = vld [vmem:[%s2138_s14 + $0x58] sm:$0xff] }
  0x2a   : > { %1845 = vmatpush3.bf16.msra.mxu1 %v1943_v43  ;;  %1806 = vmatprep.subr.bf16.mxu0 %v1944_v44  ;;  %v341_v43 = vld [vmem:[%s2138_s14 + $0x78] sm:$0xff]  ;;  %v1598_v44 = vcombine.high %v336_v38, %v340_v41 }
  0x2b   : > { %1846 = vmatprep.subr.bf16.mxu1 %v1945_v45  ;;  %1078 = vmatprep.mubr.bf16.mxu0 %v1594_v50  ;;  %v1600_v45 = vcombine.high %v337_v42, %v341_v43  ;;  %v1597_v50 = vcombine.low %v336_v38, %v340_v41  ;;  %v1599_v51 = vcombine.low %v337_v42, %v341_v43 }
  0x2c   : > { %1143 = vmatprep.mubr.bf16.mxu1 %v1596_v54  ;;  %v352_v54 = vld [vmem:[%s2138_s14 + $0xd0] sm:$0xff] }
  0x2d   : > { %1807 = vmatpush3.bf16.msra.mxu0 %v1946_v46  ;;  %v344_v46 = vld [vmem:[%s2138_s14 + $0x90] sm:$0xff] }
  0x2e   : > { %1847 = vmatpush3.bf16.msra.mxu1 %v1947_v47  ;;  %1808 = vmatprep.subr.bf16.mxu0 %v1948_v56  ;;  %v348_v47 = vld [vmem:[%s2138_s14 + $0xb0] sm:$0xff]  ;;  %v353_v56 = vld [vmem:[%s2138_s14 + $0xd8] sm:$0xff] }
  0x2f   : > { %1848 = vmatprep.subr.bf16.mxu1 %v1949_v57  ;;  %v1606_v52 = vcombine.high %v344_v46, %v348_v47  ;;  %v357_v57 = vld [vmem:[%s2138_s14 + $0xf8] sm:$0xff] }
  0x30   : > { %1079 = vmatmul.mubr.bf16.gmra.mrb[4].mxu0 %v1593_v53  ;;  %v1608_v53 = vcombine.high %v345_v48, %v349_v49 }
  0x31   : > { %1144 = vmatmul.mubr.bf16.gmra.mrb[4].mxu1 %v1595_v55  ;;  %1809 = vmatpush3.bf16.msra.mxu0 %v1950_v58  ;;  %v356_v55 = vld [vmem:[%s2138_s14 + $0xf0] sm:$0xff]  ;;  %v1605_v58 = vcombine.low %v344_v46, %v348_v47 }
  0x32   : > { %1849 = vmatpush3.bf16.msra.mxu1 %v1951_v59  ;;  %1810 = vmatprep.subr.bf16.mxu0 %v1952_v60  ;;  %v1607_v59 = vcombine.low %v345_v48, %v349_v49  ;;  %v1614_v60 = vcombine.high %v352_v54, %v356_v55 }
  0x33   : > { %1850 = vmatprep.subr.bf16.mxu1 %v1953_v61  ;;  %1086 = vmatprep.mubr.bf16.mxu0 %v1602_v4  ;;  %v1616_v61 = vcombine.high %v353_v56, %v357_v57 }
  0x34   : > { %1151 = vmatprep.mubr.bf16.mxu1 %v1604_v5 }
  0x35   : > { %1811 = vmatpush3.bf16.msra.mxu0 %v1954_v62  ;;  %v1613_v62 = vcombine.low %v352_v54, %v356_v55 }
  0x36   : > { %1851 = vmatpush3.bf16.msra.mxu1 %v1955_v63  ;;  %1812 = vmatprep.subr.bf16.mxu0 %v1956_v8  ;;  %v1615_v63 = vcombine.low %v353_v56, %v357_v57 }
  0x37   : > { %1852 = vmatprep.subr.bf16.mxu1 %v1957_v9 }
  0x38   : > { %1087 = vmatmul.mubr.bf16.gmra.mrb[8].mxu0 %v1601_v6 }
  0x39   : > { %1152 = vmatmul.mubr.bf16.gmra.mrb[8].mxu1 %v1603_v7  ;;  %1813 = vmatpush3.bf16.msra.mxu0 %v1958_v10 }
  0x3a   : > { %1853 = vmatpush3.bf16.msra.mxu1 %v1959_v11  ;;  %1814 = vmatprep.subr.bf16.mxu0 %v1960_v12 }
  0x3b   : > { %1854 = vmatprep.subr.bf16.mxu1 %v1961_v13  ;;  %1094 = vmatprep.mubr.bf16.mxu0 %v1610_v19 }
  0x3c   : > { %1159 = vmatprep.mubr.bf16.mxu1 %v1612_v22 }
  0x3d   : > { %1815 = vmatpush3.bf16.msra.mxu0 %v1962_v14 }
  0x3e   : > { %1855 = vmatpush3.bf16.msra.mxu1 %v1963_v15  ;;  %1816 = vmatprep.subr.bf16.mxu0 %v1964_v24 }
  0x3f   : > { %1856 = vmatprep.subr.bf16.mxu1 %v1965_v25 }
  0x40   : > { %1095 = vmatmul.mubr.bf16.gmra.mrb[12].mxu0 %v1609_v21 }
  0x41   : > { %1160 = vmatmul.mubr.bf16.gmra.mrb[12].mxu1 %v1611_v23  ;;  %1817 = vmatpush3.bf16.msra.mxu0 %v1966_v26 }
  0x42   : > { %1857 = vmatpush3.bf16.msra.mxu1 %v1967_v27  ;;  %1818 = vmatprep.subr.bf16.mxu0 %v1968_v28 }
  0x43   : > { %1858 = vmatprep.subr.bf16.mxu1 %v1969_v29  ;;  %1200 = vmatprep.mubr.bf16.mxu0 %v1590_v35 }
  0x44   : > { %1265 = vmatprep.mubr.bf16.mxu1 %v1592_v40 }
  0x45   : > { %1819 = vmatpush3.bf16.msra.mxu0 %v1970_v30 }
  0x46   : > { %1859 = vmatpush3.bf16.msra.mxu1 %v1971_v31 }
  0x48   : > { %1201 = vmatmul.mubr.bf16.vlgmr.msra.gmra.mrb[16].mxu0 %v1589_v34 }
  0x49   : > { %1266 = vmatmul.mubr.bf16.vlgmr.msra.gmra.mrb[16].mxu1 %v1591_v39  ;;  %1208 = vmatprep.mubr.bf16.mxu0 %v1598_v44 }
  0x4a   : > { %1273 = vmatprep.mubr.bf16.mxu1 %v1600_v45 }
  0x50   : > { %1209 = vmatmul.mubr.bf16.gmra.mrb[20].mxu0 %v1597_v50 }
  0x51   : > { %1274 = vmatmul.mubr.bf16.gmra.mrb[20].mxu1 %v1599_v51  ;;  %1216 = vmatprep.mubr.bf16.mxu0 %v1606_v52 }
  0x52   : > { %1281 = vmatprep.mubr.bf16.mxu1 %v1608_v53 }
  0x58   : > { %1217 = vmatmul.mubr.bf16.gmra.mrb[24].mxu0 %v1605_v58 }
  0x59   : > { %1282 = vmatmul.mubr.bf16.gmra.mrb[24].mxu1 %v1607_v59  ;;  %1224 = vmatprep.mubr.bf16.mxu0 %v1614_v60 }
  0x5a   : > { %1289 = vmatprep.mubr.bf16.mxu1 %v1616_v61 }
  0x60   : > { %1225 = vmatmul.mubr.bf16.gmra.mrb[28].mxu0 %v1613_v62 }
  0x61   : > { %1290 = vmatmul.mubr.bf16.gmra.mrb[28].mxu1 %v1615_v63 }
  0xfb   : > { %v1740_v0 = vpop.f32.mrb[0].mxu0 }
  0xfc   : > { %v1780_v1 = vpop.f32.mrb[0].mxu1  ;;  %v1741_v2 = vpop.f32.mrb[1].mxu0 }
  0xfd   : > { %v1742_v3 = vadd.f32 %v1741_v2, %v1740_v0  ;;  %v1781_v4 = vpop.f32.mrb[1].mxu1  ;;  %v1743_v5 = vpop.f32.mrb[2].mxu0 }
  0xfe   : > { %v1782_v6 = vadd.f32 %v1781_v4, %v1780_v1  ;;  %v1783_v7 = vpop.f32.mrb[2].mxu1  ;;  %v1744_v8 = vpop.f32.mrb[3].mxu0  ;;  %v2289_v4 = vld [vmem:[%s2331_s2] ss:$0 sm:$0xff] }
  0xff   : > { %v1745_v9 = vadd.f32 %v1744_v8, %v1743_v5  ;;  %v1784_v10 = vpop.f32.mrb[3].mxu1 }
 0x100   : > { %v1138_v11 = vadd.f32 %v1782_v6, %v1742_v3  ;;  %v1785_v12 = vadd.f32 %v1784_v10, %v1783_v7 }
 0x102   : > { %v1141_v13 = vadd.f32 %v1785_v12, %v1745_v9 }
 0x103   : > { %v1746_v14 = vpop.f32.mrb[4].mxu0 }
 0x104   : > { %v1786_v15 = vpop.f32.mrb[4].mxu1  ;;  %v1747_v16 = vpop.f32.mrb[5].mxu0 }
 0x105   : > { %v1748_v17 = vadd.f32 %v1747_v16, %v1746_v14  ;;  %v1787_v18 = vpop.f32.mrb[5].mxu1  ;;  %v1749_v19 = vpop.f32.mrb[6].mxu0 }
 0x106   : > { %v1788_v20 = vadd.f32 %v1787_v18, %v1786_v15  ;;  %v1789_v21 = vpop.f32.mrb[6].mxu1  ;;  %v1750_v22 = vpop.f32.mrb[7].mxu0 }
 0x107   : > { %v1751_v23 = vadd.f32 %v1750_v22, %v1749_v19  ;;  %v1790_v24 = vpop.f32.mrb[7].mxu1 }
 0x108   : > { %v2274_v25 = vadd.f32 %v1788_v20, %v1748_v17  ;;  %v1791_v26 = vadd.f32 %v1790_v24, %v1789_v21 }
 0x10a   : > { %v2276_v27 = vadd.f32 %v1791_v26, %v1751_v23 }
 0x10b   : > { %v1752_v28 = vpop.f32.mrb[8].mxu0 }
 0x10c   : > { %v1792_v29 = vpop.f32.mrb[8].mxu1  ;;  %v1753_v30 = vpop.f32.mrb[9].mxu0 }
 0x10d   : > { %v1793_v31 = vpop.f32.mrb[9].mxu1  ;;  %v1754_v32 = vadd.f32 %v1753_v30, %v1752_v28  ;;  %v1755_v34 = vpop.f32.mrb[10].mxu0 }
 0x10e   : > { %v1794_v33 = vadd.f32 %v1793_v31, %v1792_v29  ;;  %v1795_v35 = vpop.f32.mrb[10].mxu1  ;;  %v1756_v36 = vpop.f32.mrb[11].mxu0 }
 0x10f   : > { %v1796_v37 = vpop.f32.mrb[11].mxu1  ;;  %v1757_v39 = vadd.f32 %v1756_v36, %v1755_v34 }
 0x110   : > { %v2278_v38 = vadd.f32 %v1794_v33, %v1754_v32  ;;  %v1797_v40 = vadd.f32 %v1796_v37, %v1795_v35 }
 0x112   : > { %v2280_v41 = vadd.f32 %v1797_v40, %v1757_v39 }
 0x113   : > { %v1758_v42 = vpop.f32.mrb[12].mxu0 }
 0x114   : > { %v1798_v43 = vpop.f32.mrb[12].mxu1  ;;  %v1759_v44 = vpop.f32.mrb[13].mxu0 }
 0x115   : > { %v1760_v45 = vadd.f32 %v1759_v44, %v1758_v42  ;;  %v1799_v46 = vpop.f32.mrb[13].mxu1  ;;  %v1761_v47 = vpop.f32.mrb[14].mxu0 }
 0x116   : > { %v1800_v48 = vadd.f32 %v1799_v46, %v1798_v43  ;;  %v1801_v49 = vpop.f32.mrb[14].mxu1  ;;  %v1762_v50 = vpop.f32.mrb[15].mxu0 }
 0x117   : > { %v1763_v51 = vadd.f32 %v1762_v50, %v1761_v47  ;;  %v1802_v52 = vpop.f32.mrb[15].mxu1 }
 0x118   : > { %v2282_v53 = vadd.f32 %v1800_v48, %v1760_v45  ;;  %v1803_v54 = vadd.f32 %v1802_v52, %v1801_v49 }
 0x11a   : > { %v2284_v55 = vadd.f32 %v1803_v54, %v1763_v51 }
 0x11b   : > { %v1820_v56 = vpop.f32.mrb[16].mxu0 }
 0x11c   : > { %v1860_v57 = vpop.f32.mrb[16].mxu1  ;;  %v1821_v58 = vpop.f32.mrb[17].mxu0 }
 0x11d   : > { %v1822_v59 = vadd.f32 %v1821_v58, %v1820_v56  ;;  %v1861_v60 = vpop.f32.mrb[17].mxu1  ;;  %v1823_v61 = vpop.f32.mrb[18].mxu0 }
 0x11e   : > { %v1862_v62 = vadd.f32 %v1861_v60, %v1860_v57  ;;  %v1863_v63 = vpop.f32.mrb[18].mxu1  ;;  %v1824_v0 = vpop.f32.mrb[19].mxu0 }
 0x11f   : > { %v1203_v1 = vadd.f32 %v1822_v59, %v1138_v11  ;;  %v1825_v2 = vadd.f32 %v1824_v0, %v1823_v61  ;;  %v1864_v3 = vpop.f32.mrb[19].mxu1 }
 0x120   : > { %v1865_v5 = vadd.f32 %v1864_v3, %v1863_v63 }
 0x121   : > { %v1268_v6 = vadd.f32 %v1862_v62, %v1203_v1  ;;  %v1206_v7 = vadd.f32 %v1825_v2, %v1141_v13 }
 0x123   : > { %v1332_v8 = vadd.f32 %v2289_v4, %v1268_v6  ;;  %v1271_v9 = vadd.f32 %v1865_v5, %v1206_v7  ;;  %v1826_v10 = vpop.f32.mrb[20].mxu0 }
 0x124   : > { %v1866_v12 = vpop.f32.mrb[20].mxu1  ;;  %v1827_v14 = vpop.f32.mrb[21].mxu0 }
 0x125   : > { %v1333_v15 = vadd.f32 %v2289_v4, %v1271_v9  ;;  %v1828_v11 = vadd.f32 %v1827_v14, %v1826_v10  ;;  %v1867_v16 = vpop.f32.mrb[21].mxu1  ;;  %v1829_v17 = vpop.f32.mrb[22].mxu0  ;;  %v1393_v18 = vmul.f32 %v1332_v8, %v1332_v8 }
 0x126   : > { %v1868_v13 = vadd.f32 %v1867_v16, %v1866_v12  ;;  %v1869_v19 = vpop.f32.mrb[22].mxu1  ;;  %v1830_v20 = vpop.f32.mrb[23].mxu0 }
 0x127   : > { %v1704_v21 = vpack.c.bf16 %v1333_v15, %v1332_v8  ;;  %v1380_v22 = vadd.f32 %v1333_v15, %v1332_v8  ;;  %v1394_v23 = vmul.f32 %v1333_v15, %v1333_v15  ;;  %v1211_v24 = vadd.f32 %v1828_v11, %v2274_v25  ;;  %v1870_v26 = vpop.f32.mrb[23].mxu1 }
 0x128   : > { %v1831_v28 = vadd.f32 %v1830_v20, %v1829_v17  ;;  %v1871_v29 = vadd.f32 %v1870_v26, %v1869_v19 }
 0x129   : > { %1705 = vst [vmem:[%s2297_s6] sm:$0xff] %v1704_v21   ;;  %v1401_v30 = vadd.f32 %v1394_v23, %v1393_v18  ;;  %v1276_v31 = vadd.f32 %v1868_v13, %v1211_v24 }
 0x12a   : > { %v1214_v32 = vadd.f32 %v1831_v28, %v2276_v27 }
 0x12b   : > { %v1334_v33 = vadd.f32 %v2289_v4, %v1276_v31  ;;  %v1832_v34 = vpop.f32.mrb[24].mxu0 }
 0x12c   : > { %v1279_v35 = vadd.f32 %v1871_v29, %v1214_v32  ;;  %v1872_v36 = vpop.f32.mrb[24].mxu1  ;;  %v1833_v37 = vpop.f32.mrb[25].mxu0 }
 0x12d   : > { %v1381_v39 = vadd.f32 %v1380_v22, %v1334_v33  ;;  %v1395_v40 = vmul.f32 %v1334_v33, %v1334_v33  ;;  %v1834_v42 = vadd.f32 %v1833_v37, %v1832_v34  ;;  %v1873_v43 = vpop.f32.mrb[25].mxu1  ;;  %v1835_v25 = vpop.f32.mrb[26].mxu0 }
 0x12e   : > { %v1335_v44 = vadd.f32 %v2289_v4, %v1279_v35  ;;  %v1874_v45 = vadd.f32 %v1873_v43, %v1872_v36  ;;  %v1875_v46 = vpop.f32.mrb[26].mxu1  ;;  %v1836_v47 = vpop.f32.mrb[27].mxu0 }
 0x12f   : > { %v1402_v48 = vadd.f32 %v1401_v30, %v1395_v40  ;;  %v1219_v27 = vadd.f32 %v1834_v42, %v2278_v38  ;;  %v1837_v49 = vadd.f32 %v1836_v47, %v1835_v25  ;;  %v1876_v50 = vpop.f32.mrb[27].mxu1 }
 0x130   : > { %v1709_v51 = vpack.c.bf16 %v1335_v44, %v1334_v33  ;;  %v1382_v52 = vadd.f32 %v1381_v39, %v1335_v44  ;;  %v1396_v54 = vmul.f32 %v1335_v44, %v1335_v44  ;;  %v1877_v56 = vadd.f32 %v1876_v50, %v1875_v46 }
 0x131   : > { %v1284_v57 = vadd.f32 %v1874_v45, %v1219_v27  ;;  %v1222_v58 = vadd.f32 %v1837_v49, %v2280_v41 }
 0x132   : > { %1721 = vst [vmem:[%s2297_s6 + $0x8] sm:$0xff] %v1709_v51   ;;  %v1403_v59 = vadd.f32 %v1402_v48, %v1396_v54 }
 0x133   : > { %v1336_v60 = vadd.f32 %v2289_v4, %v1284_v57  ;;  %v1287_v61 = vadd.f32 %v1877_v56, %v1222_v58  ;;  %v1838_v62 = vpop.f32.mrb[28].mxu0 }
 0x134   : > { %v1878_v63 = vpop.f32.mrb[28].mxu1  ;;  %v1839_v0 = vpop.f32.mrb[29].mxu0 }
 0x135   : > { %v1383_v1 = vadd.f32 %v1382_v52, %v1336_v60  ;;  %v1397_v2 = vmul.f32 %v1336_v60, %v1336_v60  ;;  %v1337_v38 = vadd.f32 %v2289_v4, %v1287_v61  ;;  %v1840_v3 = vadd.f32 %v1839_v0, %v1838_v62  ;;  %v1879_v5 = vpop.f32.mrb[29].mxu1  ;;  %v1841_v6 = vpop.f32.mrb[30].mxu0 }
 0x136   : > { %v1880_v7 = vadd.f32 %v1879_v5, %v1878_v63  ;;  %v1881_v8 = vpop.f32.mrb[30].mxu1  ;;  %v1842_v9 = vpop.f32.mrb[31].mxu0 }
 0x137   : > { %v1404_v41 = vadd.f32 %v1403_v59, %v1397_v2  ;;  %v1714_v10 = vpack.c.bf16 %v1337_v38, %v1336_v60  ;;  %v1384_v12 = vadd.f32 %v1383_v1, %v1337_v38  ;;  %v1398_v14 = vmul.f32 %v1337_v38, %v1337_v38  ;;  %v1882_v15 = vpop.f32.mrb[31].mxu1 }
 0x138   : > { %v1227_v11 = vadd.f32 %v1840_v3, %v2282_v53  ;;  %v1843_v16 = vadd.f32 %v1842_v9, %v1841_v6  ;;  %v1883_v17 = vadd.f32 %v1882_v15, %v1881_v8 }
 0x139   : > { %1722 = vst [vmem:[%s2297_s6 + $0x10] sm:$0xff] %v1714_v10   ;;  %v1405_v18 = vadd.f32 %v1404_v41, %v1398_v14 }
 0x13a   : > { %v1292_v13 = vadd.f32 %v1880_v7, %v1227_v11  ;;  %v1230_v19 = vadd.f32 %v1843_v16, %v2284_v55 }
 0x13c   : > { %v1338_v20 = vadd.f32 %v2289_v4, %v1292_v13  ;;  %v1295_v21 = vadd.f32 %v1883_v17, %v1230_v19 }
 0x13e   : > { %v1385_v22 = vadd.f32 %v1384_v12, %v1338_v20  ;;  %v1399_v23 = vmul.f32 %v1338_v20, %v1338_v20  ;;  %v1339_v24 = vadd.f32 %v2289_v4, %v1295_v21 }
 0x140   : > { %v1406_v26 = vadd.f32 %v1405_v18, %v1399_v23  ;;  %v1719_v28 = vpack.c.bf16 %v1339_v24, %v1338_v20  ;;  %v1386_v53 = vadd.f32 %v1385_v22, %v1339_v24  ;;  %v1400_v29 = vmul.f32 %v1339_v24, %v1339_v24 }
 0x142   : > { %1723 = vst [vmem:[%s2297_s6 + $0x18] sm:$0xff] %v1719_v28   ;;  %v1387_v30 = vrot.slane %v1386_v53, 4  ;;  %v1407_v31 = vadd.f32 %v1406_v26, %v1400_v29 }
 0x144   : > { %v1388_v32 = vadd.f32 %v1387_v30, %v1386_v53  ;;  %v1408_v33 = vrot.slane %v1407_v31, 4 }
 0x146   : > { %v1389_v34 = vrot.slane %v1388_v32, 2  ;;  %v1409_v55 = vadd.f32 %v1408_v33, %v1407_v31 }
 0x148   : > { %v1390_v35 = vadd.f32 %v1389_v34, %v1388_v32  ;;  %v1410_v36 = vrot.slane %v1409_v55, 2 }
 0x14a   : > { %v1391_v37 = vrot.slane %v1390_v35, 1  ;;  %v1411_v39 = vadd.f32 %v1410_v36, %v1409_v55 }
 0x14c   : > { %v1412_v40 = vrot.slane %v1411_v39, 1  ;;  %v1392_v4 = vadd.f32 %v1391_v37, %v1390_v35 }
 0x14e   : > { %v1413_v42 = vadd.f32 %v1412_v40, %v1411_v39 }
 0x150   : > { %v1415_v43 = vsel %vm1414_vm0, %v1392_v4, %v1413_v42 }
 0x151   : > { %1416 = vst [vmem:[%s312_s9] sm:$0x3] %v1415_v43 }
 0x152 PF: > { %s15_s17 = sadd.s32 1, %s1994_s17   ;;  %s2334_s15 = smov %s1990_s16 }
 0x153   : > { %p12_p6 = scmp.ge.s32.totalorder %s15_s17, 4   ;;  %s2335_s16 = smov %s2337_s18 }
 0x155   :  { %14 = sbr.rel (!%p12_p6) target bundleno = 2 (0x2), region = 88 }

// kernel: discriminator_forward.7
= control target key start
LH: loop header
LB: loop body
LE: loop exit
PB: predicated region body
PF: predicated region fallthrough
CT: control target
= control target key end

     0   :  { %v32_v0 = vlaneseq  ;;  %vm226_vm8 = vcmask 7168   ;;  %s349_s1 = inlined_call_operand.vmem [shape: f32[1,1024], index: 1, kind: input, shape index: {}]   ;;  %s350_s4 = inlined_call_operand.<no memory space> [shape: f32[1,1], index: 4, kind: input, shape index: {}]   ;;  %s351_s0 = inlined_call_operand.vmem [shape: f32[8,1024], index: 0, kind: input, shape index: {}]   ;;  %s352_s2 = inlined_call_operand.vmem [shape: f32[1,1024], index: 2, kind: input, shape index: {}]   ;;  %s353_s3 = inlined_call_operand.vmem [shape: f32[1,1024], index: 3, kind: input, shape index: {}]   ;;  %s354_s5 = inlined_call_operand.vmem [shape: f32[8,1], index: 5, kind: output, shape index: {}]  }
   0x1   :  { %v10_v1 = vstv %s350_s4  ;;  %v30_v3 = vld [vmem:[%s349_s1] sm:$0xff]  ;;  %v23_v9 = vld [vmem:[%s351_s0 + $0x8] sm:$0xff]  ;;  %v24_v10 = vld [vmem:[%s351_s0 + $0x10] sm:$0xff] }
   0x2   :  { %v33_v2 = vshrl.u32 %v32_v0, 7  ;;  %11 = vst [vmem:[#allocation2] sm:$0x1] %v10_v1  ;;  %v22_v8 = vld [vmem:[%s351_s0] sm:$0xff]  ;;  %v25_v14 = vld [vmem:[%s351_s0 + $0x18] sm:$0xff]  ;;  %v27_v29 = vld [vmem:[%s351_s0 + $0x28] sm:$0xff] }
   0x3   :  { %v80_v20 = vld [vmem:[%s352_s2] sm:$0xff]  ;;  %v28_v34 = vld [vmem:[%s351_s0 + $0x30] sm:$0xff]  ;;  %v29_v44 = vld [vmem:[%s351_s0 + $0x38] sm:$0xff] }
   0x4   :  { %v273_v4 = vsub.s32 0, %v33_v2  ;;  %v275_v5 = vsub.s32 1, %v33_v2  ;;  %v277_v6 = vsub.s32 2, %v33_v2  ;;  %v279_v7 = vsub.s32 3, %v33_v2  ;;  %v26_v21 = vld [vmem:[%s351_s0 + $0x20] sm:$0xff] }
   0x5   :  { %v290_v11 = vsub.s32 4, %v33_v2  ;;  %v292_v12 = vsub.s32 5, %v33_v2  ;;  %v294_v13 = vsub.s32 6, %v33_v2  ;;  %v312_v27 = vsub.s32 7, %v33_v2  ;;  %v154_v48 = vld [vmem:[%s353_s3] sm:$0xff] }
   0x6   :  { %v35_v15 = vrot.slane %v30_v3, %v273_v4  ;;  %v39_v16 = vrot.slane %v30_v3, %v275_v5  ;;  %v43_v17 = vrot.slane %v30_v3, %v277_v6  ;;  %v47_v18 = vrot.slane %v30_v3, %v279_v7 }
   0x7   :  { %v51_v19 = vrot.slane %v30_v3, %v290_v11  ;;  %v55_v25 = vrot.slane %v30_v3, %v292_v12  ;;  %v59_v26 = vrot.slane %v30_v3, %v294_v13  ;;  %v85_v30 = vrot.slane %v80_v20, %v273_v4 }
   0x8   :  { %v72_v22 = vmul.f32 %v35_v15, %v22_v8  ;;  %v73_v23 = vmul.f32 %v39_v16, %v23_v9  ;;  %v74_v24 = vmul.f32 %v43_v17, %v24_v10  ;;  %v75_v28 = vmul.f32 %v47_v18, %v25_v14 }
   0x9   :  { %v89_v31 = vrot.slane %v80_v20, %v275_v5  ;;  %v93_v32 = vrot.slane %v80_v20, %v277_v6  ;;  %v97_v33 = vrot.slane %v80_v20, %v279_v7  ;;  %v76_v35 = vmul.f32 %v51_v19, %v26_v21 }
   0xa   :  { %v101_v36 = vrot.slane %v80_v20, %v290_v11  ;;  %v122_v37 = vadd.f32 %v85_v30, %v72_v22  ;;  %v63_v40 = vrot.slane %v30_v3, %v312_v27  ;;  %v77_v41 = vmul.f32 %v55_v25, %v27_v29 }
   0xb   :  { %v123_v38 = vadd.f32 %v89_v31, %v73_v23  ;;  %v124_v39 = vadd.f32 %v93_v32, %v74_v24  ;;  %v105_v42 = vrot.slane %v80_v20, %v292_v12  ;;  %v125_v43 = vadd.f32 %v97_v33, %v75_v28  ;;  %v232_v31 = vld [vmem:[#allocation2] ss:$0 sm:$0xff] }
   0xc   :  { %v78_v45 = vmul.f32 %v59_v26, %v28_v34  ;;  %v109_v46 = vrot.slane %v80_v20, %v294_v13  ;;  %v126_v47 = vadd.f32 %v101_v36, %v76_v35  ;;  %vm130_vm0 = vcmp.ge.f32.partialorder %v122_v37, 0.0 }
   0xd   :  { %vm131_vm1 = vcmp.ge.f32.partialorder %v123_v38, 0.0  ;;  %vm132_vm2 = vcmp.ge.f32.partialorder %v124_v39, 0.0  ;;  %v138_v49 = vmul.f32 0.2, %v122_v37  ;;  %v139_v50 = vmul.f32 0.2, %v123_v38 }
   0xe   :  { %v140_v51 = vmul.f32 0.2, %v124_v39  ;;  %v79_v52 = vmul.f32 %v63_v40, %v29_v44  ;;  %v113_v53 = vrot.slane %v80_v20, %v312_v27  ;;  %v127_v54 = vadd.f32 %v105_v42, %v77_v41 }
   0xf   :  { %v141_v55 = vmul.f32 0.2, %v125_v43  ;;  %v128_v56 = vadd.f32 %v109_v46, %v78_v45  ;;  %vm133_vm3 = vcmp.ge.f32.partialorder %v125_v43, 0.0  ;;  %v159_v57 = vrot.slane %v154_v48, %v273_v4 }
  0x10   :  { %v163_v58 = vrot.slane %v154_v48, %v275_v5  ;;  %v142_v59 = vmul.f32 0.2, %v126_v47  ;;  %v146_v60 = vsel %vm130_vm0, %v122_v37, %v138_v49  ;;  %v147_v61 = vsel %vm131_vm1, %v123_v38, %v139_v50 }
  0x11   :  { %v148_v62 = vsel %vm132_vm2, %v124_v39, %v140_v51  ;;  %vm134_vm4 = vcmp.ge.f32.partialorder %v126_v47, 0.0  ;;  %v167_v63 = vrot.slane %v154_v48, %v277_v6  ;;  %v171_v0 = vrot.slane %v154_v48, %v279_v7 }
  0x12   :  { %v129_v1 = vadd.f32 %v113_v53, %v79_v52  ;;  %vm135_vm5 = vcmp.ge.f32.partialorder %v127_v54, 0.0  ;;  %v143_v2 = vmul.f32 0.2, %v127_v54  ;;  %v149_v3 = vsel %vm133_vm3, %v125_v43, %v141_v55 }
  0x13   :  { %v175_v4 = vrot.slane %v154_v48, %v290_v11  ;;  %v196_v8 = vmul.f32 %v159_v57, %v146_v60  ;;  %v197_v5 = vmul.f32 %v163_v58, %v147_v61  ;;  %v198_v9 = vmul.f32 %v167_v63, %v148_v62 }
  0x14   :  { %v144_v10 = vmul.f32 0.2, %v128_v56  ;;  %v150_v14 = vsel %vm134_vm4, %v126_v47, %v142_v59  ;;  %vm136_vm6 = vcmp.ge.f32.partialorder %v128_v56, 0.0  ;;  %v179_v15 = vrot.slane %v154_v48, %v292_v12 }
  0x15   :  { %v199_v16 = vmul.f32 %v171_v0, %v149_v3  ;;  %v204_v17 = vadd.f32 %v197_v5, %v196_v8  ;;  %v145_v18 = vmul.f32 0.2, %v129_v1  ;;  %v151_v6 = vsel %vm135_vm5, %v127_v54, %v143_v2 }
  0x16   :  { %vm137_vm7 = vcmp.ge.f32.partialorder %v129_v1, 0.0  ;;  %v183_v7 = vrot.slane %v154_v48, %v294_v13  ;;  %v200_v19 = vmul.f32 %v175_v4, %v150_v14  ;;  %v152_v21 = vsel %vm136_vm6, %v128_v56, %v144_v10 }
  0x17   :  { %v205_v20 = vadd.f32 %v204_v17, %v198_v9  ;;  %v187_v11 = vrot.slane %v154_v48, %v312_v27  ;;  %v201_v22 = vmul.f32 %v179_v15, %v151_v6  ;;  %v153_v24 = vsel %vm137_vm7, %v129_v1, %v145_v18 }
  0x18   :  { %v202_v25 = vmul.f32 %v183_v7, %v152_v21 }
  0x19   :  { %v206_v23 = vadd.f32 %v205_v20, %v199_v16  ;;  %v203_v28 = vmul.f32 %v187_v11, %v153_v24 }
  0x1b   :  { %v207_v26 = vadd.f32 %v206_v23, %v200_v19 }
  0x1d   :  { %v208_v29 = vadd.f32 %v207_v26, %v201_v22 }
  0x1f   :  { %v209_v12 = vadd.f32 %v208_v29, %v202_v25 }
  0x21   :  { %v210_v30 = vadd.f32 %v209_v12, %v203_v28 }
  0x23   :  { %211 = vadd.xlane.f32.xlu0 %v210_v30 }
  0xb0   :  { %v212_v32 = vpop.xlane.xlu0 %211 }
  0xb1   :  { %v220_v33 = vadd.f32 %v232_v31, %v212_v32 }
  0xb3   :  { %v221_v34 = vsub.f32 0.0, %v220_v33 }
  0xb5   :  { %v222_v13 = vmul.f32 1.442695, %v221_v34 }
  0xb7   :  { %233 = vpow2.f32 %v222_v13 }
  0xc1   :  { %v234_v35 = vpop.eup %233 }
  0xc2   :  { %v224_v36 = vadd.f32 1.0, %v234_v35 }
  0xc4   :  { %235 = vrcp.f32 %v224_v36 }
  0xce   :  { %v236_v27 = vpop.eup %235 }
  0xcf   :  { %227 = vst.msk [vmem:[%s354_s5] sm:$0xff] %vm226_vm8, %v236_v27 }

// kernel: discriminator_forward.6
= control target key start
LH: loop header
LB: loop body
LE: loop exit
PB: predicated region body
PF: predicated region fallthrough
CT: control target
= control target key end

     0   :  { %s7215_s21 = smov 0   ;;  %s7217_s22 = smov 0   ;;  %s9124_s0 = inlined_call_operand.vmem [shape: bf16[8,2048], index: 0, kind: input, shape index: {}]   ;;  %s9125_s1 = inlined_call_operand.vmem [shape: f32[1,2048], index: 1, kind: input, shape index: {}]   ;;  %s9126_s2 = inlined_call_operand.vmem [shape: f32[1,2048], index: 2, kind: input, shape index: {}]   ;;  %s9127_s3 = inlined_call_operand.vmem [shape: bf16[2048,1024], index: 3, kind: input, shape index: {}]   ;;  %s9128_s4 = inlined_call_operand.vmem [shape: f32[1,1024], index: 4, kind: input, shape index: {}]   ;;  %s9129_s5 = inlined_call_operand.vmem [shape: f32[8,1024], index: 5, kind: output, shape index: {0}]   ;;  %s9130_s6 = inlined_call_operand.vmem [shape: f32[1,2,1024], index: 6, kind: output, shape index: {1}]  }
   0x1   :  { %s7219_s23 = smov 0   ;;  %s7221_s24 = smov 0  }
   0x2   :  { %s7223_s25 = smov 0  }
   0x3 LB: > { %s32_s26 = sadd.s32 1, %s7173_s24  ;;  %p132_p1 = scmp.ne.s32.totalorder %s7165_s22, %s7161_s21  ;;  %s7177_s25 = sphi %s7223_s25, %s17_s25   ;;  %s7173_s24 = sphi %s7221_s24, %s9134_s24   ;;  %s7169_s23 = sphi %s7219_s23, %s9133_s23   ;;  %s7165_s22 = sphi %s7217_s22, %s9132_s22   ;;  %s7161_s21 = sphi %s7215_s21, %s9131_s21  }
   0x4   : > { %p34_p0 = scmp.ge.s32.totalorder %s32_s26, 2  ;;  %p133_p2 = scmp.eq.s32.totalorder %s7177_s25, 0 }
   0x5   : > { %s125_s28 = sadd.s32 1, %s7165_s22  ;;  %p5804_p5 = scmp.ge.s32.totalorder %s7177_s25, 2 }
   0x6   : > { %s9136_s26 = smov (%p34_p0, %s32_s26), 0  ;;  %p134_p3 = por %p133_p2, %p132_p1 }
   0x7   : > { %s121_s27 = ssub.s32 %s7173_s24, %s9136_s26  ;;  %269 = sbr.rel (%p5804_p5) target bundleno = 274 (0x112), region = 28 }
   0x8   : > { %p123_p4 = scmp.eq.s32.totalorder %s121_s27, 0 }
   0xa   : > { %s7250_s29 = scalar_select %p123_p4, %s7165_s22, %s125_s28  }
   0xe   : > { %272 = sbr.rel (!%p134_p3) target bundleno = 274 (0x112), region = 32  ;;  %s274_s30 = sand.u32 (%p134_p3), 1, %s7165_s22  }
   0xf   : > { %s6329_s7 = sshll.u32 (%p134_p3), %s7173_s24, 4  ;;  %s5805_s8 = sshll.u32 (%p134_p3), %s274_s30, 12 }
  0x10   : > { %s7258_s11 = scalar_lea.vmem (%p134_p3), %s9127_s3, %s6329_s7  ;;  %s7263_s12 = scalar_lea.vmem (%p134_p3), [#allocation3], %s5805_s8 }
  0x11   : > { %v295_v0 = vld [vmem:[%s7258_s11] sm:$0xff] (%p134_p3)  ;;  %v297_v1 = vld [vmem:[%s7258_s11 + $0x8] sm:$0xff] (%p134_p3) }
  0x12   : > { %v299_v2 = vld [vmem:[%s7258_s11 + $0x20] sm:$0xff] (%p134_p3)  ;;  %296 = vst [vmem:[%s7263_s12] sm:$0xff] (%p134_p3), %v295_v0  ;;  %298 = vst [vmem:[%s7263_s12 + $0x8] sm:$0xff] (%p134_p3), %v297_v1  ;;  %v301_v3 = vld [vmem:[%s7258_s11 + $0x28] sm:$0xff] (%p134_p3) }
  0x13   : > { %300 = vst [vmem:[%s7263_s12 + $0x10] sm:$0xff] (%p134_p3), %v299_v2  ;;  %v303_v4 = vld [vmem:[%s7258_s11 + $0x40] sm:$0xff] (%p134_p3)  ;;  %v305_v5 = vld [vmem:[%s7258_s11 + $0x48] sm:$0xff] (%p134_p3)  ;;  %302 = vst [vmem:[%s7263_s12 + $0x18] sm:$0xff] (%p134_p3), %v301_v3 }
  0x14   : > { %304 = vst [vmem:[%s7263_s12 + $0x20] sm:$0xff] (%p134_p3), %v303_v4  ;;  %306 = vst [vmem:[%s7263_s12 + $0x28] sm:$0xff] (%p134_p3), %v305_v5  ;;  %v307_v6 = vld [vmem:[%s7258_s11 + $0x60] sm:$0xff] (%p134_p3)  ;;  %v309_v7 = vld [vmem:[%s7258_s11 + $0x68] sm:$0xff] (%p134_p3) }
  0x15   : > { %v311_v8 = vld [vmem:[%s7258_s11 + $0x80] sm:$0xff]  ;;  %308 = vst [vmem:[%s7263_s12 + $0x30] sm:$0xff] %v307_v6  ;;  %310 = vst [vmem:[%s7263_s12 + $0x38] sm:$0xff] %v309_v7  ;;  %v313_v9 = vld [vmem:[%s7258_s11 + $0x88] sm:$0xff] }
  0x16   : > { %312 = vst [vmem:[%s7263_s12 + $0x40] sm:$0xff] %v311_v8  ;;  %v315_v10 = vld [vmem:[%s7258_s11 + $0xa0] sm:$0xff]  ;;  %v317_v11 = vld [vmem:[%s7258_s11 + $0xa8] sm:$0xff]  ;;  %314 = vst [vmem:[%s7263_s12 + $0x48] sm:$0xff] %v313_v9 }
  0x17   : > { %316 = vst [vmem:[%s7263_s12 + $0x50] sm:$0xff] %v315_v10  ;;  %318 = vst [vmem:[%s7263_s12 + $0x58] sm:$0xff] %v317_v11  ;;  %v319_v12 = vld [vmem:[%s7258_s11 + $0xc0] sm:$0xff]  ;;  %v321_v13 = vld [vmem:[%s7258_s11 + $0xc8] sm:$0xff] }
  0x18   : > { %v323_v14 = vld [vmem:[%s7258_s11 + $0xe0] sm:$0xff]  ;;  %320 = vst [vmem:[%s7263_s12 + $0x60] sm:$0xff] %v319_v12  ;;  %322 = vst [vmem:[%s7263_s12 + $0x68] sm:$0xff] %v321_v13  ;;  %v325_v15 = vld [vmem:[%s7258_s11 + $0xe8] sm:$0xff] }
  0x19   : > { %324 = vst [vmem:[%s7263_s12 + $0x70] sm:$0xff] %v323_v14  ;;  %v327_v16 = vld [vmem:[%s7258_s11 + $0x100] sm:$0xff]  ;;  %v329_v17 = vld [vmem:[%s7258_s11 + $0x108] sm:$0xff]  ;;  %326 = vst [vmem:[%s7263_s12 + $0x78] sm:$0xff] %v325_v15 }
  0x1a   : > { %328 = vst [vmem:[%s7263_s12 + $0x80] sm:$0xff] %v327_v16  ;;  %330 = vst [vmem:[%s7263_s12 + $0x88] sm:$0xff] %v329_v17  ;;  %v331_v18 = vld [vmem:[%s7258_s11 + $0x120] sm:$0xff]  ;;  %v333_v19 = vld [vmem:[%s7258_s11 + $0x128] sm:$0xff] }
  0x1b   : > { %v335_v20 = vld [vmem:[%s7258_s11 + $0x140] sm:$0xff]  ;;  %332 = vst [vmem:[%s7263_s12 + $0x90] sm:$0xff] %v331_v18  ;;  %334 = vst [vmem:[%s7263_s12 + $0x98] sm:$0xff] %v333_v19  ;;  %v337_v21 = vld [vmem:[%s7258_s11 + $0x148] sm:$0xff] }
  0x1c   : > { %336 = vst [vmem:[%s7263_s12 + $0xa0] sm:$0xff] %v335_v20  ;;  %v339_v22 = vld [vmem:[%s7258_s11 + $0x160] sm:$0xff]  ;;  %v341_v23 = vld [vmem:[%s7258_s11 + $0x168] sm:$0xff]  ;;  %338 = vst [vmem:[%s7263_s12 + $0xa8] sm:$0xff] %v337_v21 }
  0x1d   : > { %340 = vst [vmem:[%s7263_s12 + $0xb0] sm:$0xff] %v339_v22  ;;  %342 = vst [vmem:[%s7263_s12 + $0xb8] sm:$0xff] %v341_v23  ;;  %v343_v24 = vld [vmem:[%s7258_s11 + $0x180] sm:$0xff]  ;;  %v345_v25 = vld [vmem:[%s7258_s11 + $0x188] sm:$0xff] }
  0x1e   : > { %v347_v26 = vld [vmem:[%s7258_s11 + $0x1a0] sm:$0xff]  ;;  %344 = vst [vmem:[%s7263_s12 + $0xc0] sm:$0xff] %v343_v24  ;;  %346 = vst [vmem:[%s7263_s12 + $0xc8] sm:$0xff] %v345_v25  ;;  %v349_v27 = vld [vmem:[%s7258_s11 + $0x1a8] sm:$0xff] }
  0x1f   : > { %348 = vst [vmem:[%s7263_s12 + $0xd0] sm:$0xff] %v347_v26  ;;  %v351_v28 = vld [vmem:[%s7258_s11 + $0x1c0] sm:$0xff]  ;;  %v353_v29 = vld [vmem:[%s7258_s11 + $0x1c8] sm:$0xff]  ;;  %350 = vst [vmem:[%s7263_s12 + $0xd8] sm:$0xff] %v349_v27 }
  0x20   : > { %352 = vst [vmem:[%s7263_s12 + $0xe0] sm:$0xff] %v351_v28  ;;  %354 = vst [vmem:[%s7263_s12 + $0xe8] sm:$0xff] %v353_v29  ;;  %v355_v30 = vld [vmem:[%s7258_s11 + $0x1e0] sm:$0xff]  ;;  %v357_v31 = vld [vmem:[%s7258_s11 + $0x1e8] sm:$0xff] }
  0x21   : > { %v359_v32 = vld [vmem:[%s7258_s11 + $0x200] sm:$0xff]  ;;  %356 = vst [vmem:[%s7263_s12 + $0xf0] sm:$0xff] %v355_v30  ;;  %358 = vst [vmem:[%s7263_s12 + $0xf8] sm:$0xff] %v357_v31  ;;  %v361_v33 = vld [vmem:[%s7258_s11 + $0x208] sm:$0xff] }
  0x22   : > { %360 = vst [vmem:[%s7263_s12 + $0x100] sm:$0xff] %v359_v32  ;;  %v363_v34 = vld [vmem:[%s7258_s11 + $0x220] sm:$0xff]  ;;  %v365_v35 = vld [vmem:[%s7258_s11 + $0x228] sm:$0xff]  ;;  %362 = vst [vmem:[%s7263_s12 + $0x108] sm:$0xff] %v361_v33 }
  0x23   : > { %364 = vst [vmem:[%s7263_s12 + $0x110] sm:$0xff] %v363_v34  ;;  %366 = vst [vmem:[%s7263_s12 + $0x118] sm:$0xff] %v365_v35  ;;  %v367_v36 = vld [vmem:[%s7258_s11 + $0x240] sm:$0xff]  ;;  %v369_v37 = vld [vmem:[%s7258_s11 + $0x248] sm:$0xff] }
  0x24   : > { %v371_v38 = vld [vmem:[%s7258_s11 + $0x260] sm:$0xff]  ;;  %368 = vst [vmem:[%s7263_s12 + $0x120] sm:$0xff] %v367_v36  ;;  %370 = vst [vmem:[%s7263_s12 + $0x128] sm:$0xff] %v369_v37  ;;  %v373_v39 = vld [vmem:[%s7258_s11 + $0x268] sm:$0xff] }
  0x25   : > { %372 = vst [vmem:[%s7263_s12 + $0x130] sm:$0xff] %v371_v38  ;;  %v375_v40 = vld [vmem:[%s7258_s11 + $0x280] sm:$0xff]  ;;  %v377_v41 = vld [vmem:[%s7258_s11 + $0x288] sm:$0xff]  ;;  %374 = vst [vmem:[%s7263_s12 + $0x138] sm:$0xff] %v373_v39 }
  0x26   : > { %376 = vst [vmem:[%s7263_s12 + $0x140] sm:$0xff] %v375_v40  ;;  %378 = vst [vmem:[%s7263_s12 + $0x148] sm:$0xff] %v377_v41  ;;  %v379_v42 = vld [vmem:[%s7258_s11 + $0x2a0] sm:$0xff]  ;;  %v381_v43 = vld [vmem:[%s7258_s11 + $0x2a8] sm:$0xff] }
  0x27   : > { %v383_v44 = vld [vmem:[%s7258_s11 + $0x2c0] sm:$0xff]  ;;  %380 = vst [vmem:[%s7263_s12 + $0x150] sm:$0xff] %v379_v42  ;;  %382 = vst [vmem:[%s7263_s12 + $0x158] sm:$0xff] %v381_v43  ;;  %v385_v45 = vld [vmem:[%s7258_s11 + $0x2c8] sm:$0xff] }
  0x28   : > { %384 = vst [vmem:[%s7263_s12 + $0x160] sm:$0xff] %v383_v44  ;;  %v387_v46 = vld [vmem:[%s7258_s11 + $0x2e0] sm:$0xff]  ;;  %v389_v47 = vld [vmem:[%s7258_s11 + $0x2e8] sm:$0xff]  ;;  %386 = vst [vmem:[%s7263_s12 + $0x168] sm:$0xff] %v385_v45 }
  0x29   : > { %388 = vst [vmem:[%s7263_s12 + $0x170] sm:$0xff] %v387_v46  ;;  %390 = vst [vmem:[%s7263_s12 + $0x178] sm:$0xff] %v389_v47  ;;  %v391_v48 = vld [vmem:[%s7258_s11 + $0x300] sm:$0xff]  ;;  %v393_v49 = vld [vmem:[%s7258_s11 + $0x308] sm:$0xff] }
  0x2a   : > { %v395_v50 = vld [vmem:[%s7258_s11 + $0x320] sm:$0xff]  ;;  %392 = vst [vmem:[%s7263_s12 + $0x180] sm:$0xff] %v391_v48  ;;  %394 = vst [vmem:[%s7263_s12 + $0x188] sm:$0xff] %v393_v49  ;;  %v397_v51 = vld [vmem:[%s7258_s11 + $0x328] sm:$0xff] }
  0x2b   : > { %396 = vst [vmem:[%s7263_s12 + $0x190] sm:$0xff] %v395_v50  ;;  %v399_v52 = vld [vmem:[%s7258_s11 + $0x340] sm:$0xff]  ;;  %v401_v53 = vld [vmem:[%s7258_s11 + $0x348] sm:$0xff]  ;;  %398 = vst [vmem:[%s7263_s12 + $0x198] sm:$0xff] %v397_v51 }
  0x2c   : > { %400 = vst [vmem:[%s7263_s12 + $0x1a0] sm:$0xff] %v399_v52  ;;  %402 = vst [vmem:[%s7263_s12 + $0x1a8] sm:$0xff] %v401_v53  ;;  %v403_v54 = vld [vmem:[%s7258_s11 + $0x360] sm:$0xff]  ;;  %v405_v55 = vld [vmem:[%s7258_s11 + $0x368] sm:$0xff] }
  0x2d   : > { %v407_v56 = vld [vmem:[%s7258_s11 + $0x380] sm:$0xff]  ;;  %404 = vst [vmem:[%s7263_s12 + $0x1b0] sm:$0xff] %v403_v54  ;;  %406 = vst [vmem:[%s7263_s12 + $0x1b8] sm:$0xff] %v405_v55  ;;  %v409_v57 = vld [vmem:[%s7258_s11 + $0x388] sm:$0xff] }
  0x2e   : > { %408 = vst [vmem:[%s7263_s12 + $0x1c0] sm:$0xff] %v407_v56  ;;  %v411_v58 = vld [vmem:[%s7258_s11 + $0x3a0] sm:$0xff]  ;;  %v413_v59 = vld [vmem:[%s7258_s11 + $0x3a8] sm:$0xff]  ;;  %410 = vst [vmem:[%s7263_s12 + $0x1c8] sm:$0xff] %v409_v57 }
  0x2f   : > { %412 = vst [vmem:[%s7263_s12 + $0x1d0] sm:$0xff] %v411_v58  ;;  %414 = vst [vmem:[%s7263_s12 + $0x1d8] sm:$0xff] %v413_v59  ;;  %v415_v60 = vld [vmem:[%s7258_s11 + $0x3c0] sm:$0xff]  ;;  %v417_v61 = vld [vmem:[%s7258_s11 + $0x3c8] sm:$0xff] }
  0x30   : > { %v419_v62 = vld [vmem:[%s7258_s11 + $0x3e0] sm:$0xff]  ;;  %416 = vst [vmem:[%s7263_s12 + $0x1e0] sm:$0xff] %v415_v60  ;;  %418 = vst [vmem:[%s7263_s12 + $0x1e8] sm:$0xff] %v417_v61  ;;  %v421_v63 = vld [vmem:[%s7258_s11 + $0x3e8] sm:$0xff] }
  0x31   : > { %420 = vst [vmem:[%s7263_s12 + $0x1f0] sm:$0xff] %v419_v62  ;;  %v423_v0 = vld [vmem:[%s7258_s11 + $0x400] sm:$0xff]  ;;  %v425_v1 = vld [vmem:[%s7258_s11 + $0x408] sm:$0xff]  ;;  %422 = vst [vmem:[%s7263_s12 + $0x1f8] sm:$0xff] %v421_v63 }
  0x32   : > { %424 = vst [vmem:[%s7263_s12 + $0x200] sm:$0xff] %v423_v0  ;;  %426 = vst [vmem:[%s7263_s12 + $0x208] sm:$0xff] %v425_v1  ;;  %v427_v2 = vld [vmem:[%s7258_s11 + $0x420] sm:$0xff]  ;;  %v429_v3 = vld [vmem:[%s7258_s11 + $0x428] sm:$0xff] }
  0x33   : > { %v431_v4 = vld [vmem:[%s7258_s11 + $0x440] sm:$0xff]  ;;  %428 = vst [vmem:[%s7263_s12 + $0x210] sm:$0xff] %v427_v2  ;;  %430 = vst [vmem:[%s7263_s12 + $0x218] sm:$0xff] %v429_v3  ;;  %v433_v5 = vld [vmem:[%s7258_s11 + $0x448] sm:$0xff] }
  0x34   : > { %432 = vst [vmem:[%s7263_s12 + $0x220] sm:$0xff] %v431_v4  ;;  %v435_v6 = vld [vmem:[%s7258_s11 + $0x460] sm:$0xff]  ;;  %v437_v7 = vld [vmem:[%s7258_s11 + $0x468] sm:$0xff]  ;;  %434 = vst [vmem:[%s7263_s12 + $0x228] sm:$0xff] %v433_v5 }
  0x35   : > { %436 = vst [vmem:[%s7263_s12 + $0x230] sm:$0xff] %v435_v6  ;;  %438 = vst [vmem:[%s7263_s12 + $0x238] sm:$0xff] %v437_v7  ;;  %v439_v8 = vld [vmem:[%s7258_s11 + $0x480] sm:$0xff]  ;;  %v441_v9 = vld [vmem:[%s7258_s11 + $0x488] sm:$0xff] }
  0x36   : > { %v443_v10 = vld [vmem:[%s7258_s11 + $0x4a0] sm:$0xff]  ;;  %440 = vst [vmem:[%s7263_s12 + $0x240] sm:$0xff] %v439_v8  ;;  %442 = vst [vmem:[%s7263_s12 + $0x248] sm:$0xff] %v441_v9  ;;  %v445_v11 = vld [vmem:[%s7258_s11 + $0x4a8] sm:$0xff] }
  0x37   : > { %444 = vst [vmem:[%s7263_s12 + $0x250] sm:$0xff] %v443_v10  ;;  %v447_v12 = vld [vmem:[%s7258_s11 + $0x4c0] sm:$0xff]  ;;  %v449_v13 = vld [vmem:[%s7258_s11 + $0x4c8] sm:$0xff]  ;;  %446 = vst [vmem:[%s7263_s12 + $0x258] sm:$0xff] %v445_v11 }
  0x38   : > { %448 = vst [vmem:[%s7263_s12 + $0x260] sm:$0xff] %v447_v12  ;;  %450 = vst [vmem:[%s7263_s12 + $0x268] sm:$0xff] %v449_v13  ;;  %v451_v14 = vld [vmem:[%s7258_s11 + $0x4e0] sm:$0xff]  ;;  %v453_v15 = vld [vmem:[%s7258_s11 + $0x4e8] sm:$0xff] }
  0x39   : > { %v455_v16 = vld [vmem:[%s7258_s11 + $0x500] sm:$0xff]  ;;  %452 = vst [vmem:[%s7263_s12 + $0x270] sm:$0xff] %v451_v14  ;;  %454 = vst [vmem:[%s7263_s12 + $0x278] sm:$0xff] %v453_v15  ;;  %v457_v17 = vld [vmem:[%s7258_s11 + $0x508] sm:$0xff] }
  0x3a   : > { %456 = vst [vmem:[%s7263_s12 + $0x280] sm:$0xff] %v455_v16  ;;  %v459_v18 = vld [vmem:[%s7258_s11 + $0x520] sm:$0xff]  ;;  %v461_v19 = vld [vmem:[%s7258_s11 + $0x528] sm:$0xff]  ;;  %458 = vst [vmem:[%s7263_s12 + $0x288] sm:$0xff] %v457_v17 }
  0x3b   : > { %460 = vst [vmem:[%s7263_s12 + $0x290] sm:$0xff] %v459_v18  ;;  %462 = vst [vmem:[%s7263_s12 + $0x298] sm:$0xff] %v461_v19  ;;  %v463_v20 = vld [vmem:[%s7258_s11 + $0x540] sm:$0xff]  ;;  %v465_v21 = vld [vmem:[%s7258_s11 + $0x548] sm:$0xff] }
  0x3c   : > { %v467_v22 = vld [vmem:[%s7258_s11 + $0x560] sm:$0xff]  ;;  %464 = vst [vmem:[%s7263_s12 + $0x2a0] sm:$0xff] %v463_v20  ;;  %466 = vst [vmem:[%s7263_s12 + $0x2a8] sm:$0xff] %v465_v21  ;;  %v469_v23 = vld [vmem:[%s7258_s11 + $0x568] sm:$0xff] }
  0x3d   : > { %468 = vst [vmem:[%s7263_s12 + $0x2b0] sm:$0xff] %v467_v22  ;;  %v471_v24 = vld [vmem:[%s7258_s11 + $0x580] sm:$0xff]  ;;  %v473_v25 = vld [vmem:[%s7258_s11 + $0x588] sm:$0xff]  ;;  %470 = vst [vmem:[%s7263_s12 + $0x2b8] sm:$0xff] %v469_v23 }
  0x3e   : > { %472 = vst [vmem:[%s7263_s12 + $0x2c0] sm:$0xff] %v471_v24  ;;  %474 = vst [vmem:[%s7263_s12 + $0x2c8] sm:$0xff] %v473_v25  ;;  %v475_v26 = vld [vmem:[%s7258_s11 + $0x5a0] sm:$0xff]  ;;  %v477_v27 = vld [vmem:[%s7258_s11 + $0x5a8] sm:$0xff] }
  0x3f   : > { %v479_v28 = vld [vmem:[%s7258_s11 + $0x5c0] sm:$0xff]  ;;  %476 = vst [vmem:[%s7263_s12 + $0x2d0] sm:$0xff] %v475_v26  ;;  %478 = vst [vmem:[%s7263_s12 + $0x2d8] sm:$0xff] %v477_v27  ;;  %v481_v29 = vld [vmem:[%s7258_s11 + $0x5c8] sm:$0xff] }
  0x40   : > { %480 = vst [vmem:[%s7263_s12 + $0x2e0] sm:$0xff] %v479_v28  ;;  %v483_v30 = vld [vmem:[%s7258_s11 + $0x5e0] sm:$0xff]  ;;  %v485_v31 = vld [vmem:[%s7258_s11 + $0x5e8] sm:$0xff]  ;;  %482 = vst [vmem:[%s7263_s12 + $0x2e8] sm:$0xff] %v481_v29 }
  0x41   : > { %484 = vst [vmem:[%s7263_s12 + $0x2f0] sm:$0xff] %v483_v30  ;;  %486 = vst [vmem:[%s7263_s12 + $0x2f8] sm:$0xff] %v485_v31  ;;  %v487_v32 = vld [vmem:[%s7258_s11 + $0x600] sm:$0xff]  ;;  %v489_v33 = vld [vmem:[%s7258_s11 + $0x608] sm:$0xff] }
  0x42   : > { %v491_v34 = vld [vmem:[%s7258_s11 + $0x620] sm:$0xff]  ;;  %488 = vst [vmem:[%s7263_s12 + $0x300] sm:$0xff] %v487_v32  ;;  %490 = vst [vmem:[%s7263_s12 + $0x308] sm:$0xff] %v489_v33  ;;  %v493_v35 = vld [vmem:[%s7258_s11 + $0x628] sm:$0xff] }
  0x43   : > { %492 = vst [vmem:[%s7263_s12 + $0x310] sm:$0xff] %v491_v34  ;;  %v495_v36 = vld [vmem:[%s7258_s11 + $0x640] sm:$0xff]  ;;  %v497_v37 = vld [vmem:[%s7258_s11 + $0x648] sm:$0xff]  ;;  %494 = vst [vmem:[%s7263_s12 + $0x318] sm:$0xff] %v493_v35 }
  0x44   : > { %496 = vst [vmem:[%s7263_s12 + $0x320] sm:$0xff] %v495_v36  ;;  %498 = vst [vmem:[%s7263_s12 + $0x328] sm:$0xff] %v497_v37  ;;  %v499_v38 = vld [vmem:[%s7258_s11 + $0x660] sm:$0xff]  ;;  %v501_v39 = vld [vmem:[%s7258_s11 + $0x668] sm:$0xff] }
  0x45   : > { %v503_v40 = vld [vmem:[%s7258_s11 + $0x680] sm:$0xff]  ;;  %500 = vst [vmem:[%s7263_s12 + $0x330] sm:$0xff] %v499_v38  ;;  %502 = vst [vmem:[%s7263_s12 + $0x338] sm:$0xff] %v501_v39  ;;  %v505_v41 = vld [vmem:[%s7258_s11 + $0x688] sm:$0xff] }
  0x46   : > { %504 = vst [vmem:[%s7263_s12 + $0x340] sm:$0xff] %v503_v40  ;;  %v507_v42 = vld [vmem:[%s7258_s11 + $0x6a0] sm:$0xff]  ;;  %v509_v43 = vld [vmem:[%s7258_s11 + $0x6a8] sm:$0xff]  ;;  %506 = vst [vmem:[%s7263_s12 + $0x348] sm:$0xff] %v505_v41 }
  0x47   : > { %508 = vst [vmem:[%s7263_s12 + $0x350] sm:$0xff] %v507_v42  ;;  %510 = vst [vmem:[%s7263_s12 + $0x358] sm:$0xff] %v509_v43  ;;  %v511_v44 = vld [vmem:[%s7258_s11 + $0x6c0] sm:$0xff]  ;;  %v513_v45 = vld [vmem:[%s7258_s11 + $0x6c8] sm:$0xff] }
  0x48   : > { %v515_v46 = vld [vmem:[%s7258_s11 + $0x6e0] sm:$0xff]  ;;  %512 = vst [vmem:[%s7263_s12 + $0x360] sm:$0xff] %v511_v44  ;;  %514 = vst [vmem:[%s7263_s12 + $0x368] sm:$0xff] %v513_v45  ;;  %v517_v47 = vld [vmem:[%s7258_s11 + $0x6e8] sm:$0xff] }
  0x49   : > { %516 = vst [vmem:[%s7263_s12 + $0x370] sm:$0xff] %v515_v46  ;;  %v519_v48 = vld [vmem:[%s7258_s11 + $0x700] sm:$0xff]  ;;  %v521_v49 = vld [vmem:[%s7258_s11 + $0x708] sm:$0xff]  ;;  %518 = vst [vmem:[%s7263_s12 + $0x378] sm:$0xff] %v517_v47 }
  0x4a   : > { %520 = vst [vmem:[%s7263_s12 + $0x380] sm:$0xff] %v519_v48  ;;  %522 = vst [vmem:[%s7263_s12 + $0x388] sm:$0xff] %v521_v49  ;;  %v523_v50 = vld [vmem:[%s7258_s11 + $0x720] sm:$0xff]  ;;  %v525_v51 = vld [vmem:[%s7258_s11 + $0x728] sm:$0xff] }
  0x4b   : > { %v527_v52 = vld [vmem:[%s7258_s11 + $0x740] sm:$0xff]  ;;  %524 = vst [vmem:[%s7263_s12 + $0x390] sm:$0xff] %v523_v50  ;;  %526 = vst [vmem:[%s7263_s12 + $0x398] sm:$0xff] %v525_v51  ;;  %v529_v53 = vld [vmem:[%s7258_s11 + $0x748] sm:$0xff] }
  0x4c   : > { %528 = vst [vmem:[%s7263_s12 + $0x3a0] sm:$0xff] %v527_v52  ;;  %v531_v54 = vld [vmem:[%s7258_s11 + $0x760] sm:$0xff]  ;;  %v533_v55 = vld [vmem:[%s7258_s11 + $0x768] sm:$0xff]  ;;  %530 = vst [vmem:[%s7263_s12 + $0x3a8] sm:$0xff] %v529_v53 }
  0x4d   : > { %532 = vst [vmem:[%s7263_s12 + $0x3b0] sm:$0xff] %v531_v54  ;;  %534 = vst [vmem:[%s7263_s12 + $0x3b8] sm:$0xff] %v533_v55  ;;  %v535_v56 = vld [vmem:[%s7258_s11 + $0x780] sm:$0xff]  ;;  %v537_v57 = vld [vmem:[%s7258_s11 + $0x788] sm:$0xff] }
  0x4e   : > { %v539_v58 = vld [vmem:[%s7258_s11 + $0x7a0] sm:$0xff]  ;;  %536 = vst [vmem:[%s7263_s12 + $0x3c0] sm:$0xff] %v535_v56  ;;  %538 = vst [vmem:[%s7263_s12 + $0x3c8] sm:$0xff] %v537_v57  ;;  %v541_v59 = vld [vmem:[%s7258_s11 + $0x7a8] sm:$0xff] }
  0x4f   : > { %540 = vst [vmem:[%s7263_s12 + $0x3d0] sm:$0xff] %v539_v58  ;;  %v543_v60 = vld [vmem:[%s7258_s11 + $0x7c0] sm:$0xff]  ;;  %v545_v61 = vld [vmem:[%s7258_s11 + $0x7c8] sm:$0xff]  ;;  %542 = vst [vmem:[%s7263_s12 + $0x3d8] sm:$0xff] %v541_v59 }
  0x50   : > { %544 = vst [vmem:[%s7263_s12 + $0x3e0] sm:$0xff] %v543_v60  ;;  %546 = vst [vmem:[%s7263_s12 + $0x3e8] sm:$0xff] %v545_v61  ;;  %v547_v62 = vld [vmem:[%s7258_s11 + $0x7e0] sm:$0xff]  ;;  %v549_v63 = vld [vmem:[%s7258_s11 + $0x7e8] sm:$0xff] }
  0x51   : > { %v551_v0 = vld [vmem:[%s7258_s11 + $0x800] sm:$0xff]  ;;  %548 = vst [vmem:[%s7263_s12 + $0x3f0] sm:$0xff] %v547_v62  ;;  %550 = vst [vmem:[%s7263_s12 + $0x3f8] sm:$0xff] %v549_v63  ;;  %v553_v1 = vld [vmem:[%s7258_s11 + $0x808] sm:$0xff] }
  0x52   : > { %552 = vst [vmem:[%s7263_s12 + $0x400] sm:$0xff] %v551_v0  ;;  %v555_v2 = vld [vmem:[%s7258_s11 + $0x820] sm:$0xff]  ;;  %v557_v3 = vld [vmem:[%s7258_s11 + $0x828] sm:$0xff]  ;;  %554 = vst [vmem:[%s7263_s12 + $0x408] sm:$0xff] %v553_v1 }
  0x53   : > { %556 = vst [vmem:[%s7263_s12 + $0x410] sm:$0xff] %v555_v2  ;;  %558 = vst [vmem:[%s7263_s12 + $0x418] sm:$0xff] %v557_v3  ;;  %v559_v4 = vld [vmem:[%s7258_s11 + $0x840] sm:$0xff]  ;;  %v561_v5 = vld [vmem:[%s7258_s11 + $0x848] sm:$0xff] }
  0x54   : > { %v563_v6 = vld [vmem:[%s7258_s11 + $0x860] sm:$0xff]  ;;  %560 = vst [vmem:[%s7263_s12 + $0x420] sm:$0xff] %v559_v4  ;;  %562 = vst [vmem:[%s7263_s12 + $0x428] sm:$0xff] %v561_v5  ;;  %v565_v7 = vld [vmem:[%s7258_s11 + $0x868] sm:$0xff] }
  0x55   : > { %564 = vst [vmem:[%s7263_s12 + $0x430] sm:$0xff] %v563_v6  ;;  %v567_v8 = vld [vmem:[%s7258_s11 + $0x880] sm:$0xff]  ;;  %v569_v9 = vld [vmem:[%s7258_s11 + $0x888] sm:$0xff]  ;;  %566 = vst [vmem:[%s7263_s12 + $0x438] sm:$0xff] %v565_v7 }
  0x56   : > { %568 = vst [vmem:[%s7263_s12 + $0x440] sm:$0xff] %v567_v8  ;;  %570 = vst [vmem:[%s7263_s12 + $0x448] sm:$0xff] %v569_v9  ;;  %v571_v10 = vld [vmem:[%s7258_s11 + $0x8a0] sm:$0xff]  ;;  %v573_v11 = vld [vmem:[%s7258_s11 + $0x8a8] sm:$0xff] }
  0x57   : > { %v575_v12 = vld [vmem:[%s7258_s11 + $0x8c0] sm:$0xff]  ;;  %572 = vst [vmem:[%s7263_s12 + $0x450] sm:$0xff] %v571_v10  ;;  %574 = vst [vmem:[%s7263_s12 + $0x458] sm:$0xff] %v573_v11  ;;  %v577_v13 = vld [vmem:[%s7258_s11 + $0x8c8] sm:$0xff] }
  0x58   : > { %576 = vst [vmem:[%s7263_s12 + $0x460] sm:$0xff] %v575_v12  ;;  %v579_v14 = vld [vmem:[%s7258_s11 + $0x8e0] sm:$0xff]  ;;  %v581_v15 = vld [vmem:[%s7258_s11 + $0x8e8] sm:$0xff]  ;;  %578 = vst [vmem:[%s7263_s12 + $0x468] sm:$0xff] %v577_v13 }
  0x59   : > { %580 = vst [vmem:[%s7263_s12 + $0x470] sm:$0xff] %v579_v14  ;;  %582 = vst [vmem:[%s7263_s12 + $0x478] sm:$0xff] %v581_v15  ;;  %v583_v16 = vld [vmem:[%s7258_s11 + $0x900] sm:$0xff]  ;;  %v585_v17 = vld [vmem:[%s7258_s11 + $0x908] sm:$0xff] }
  0x5a   : > { %v587_v18 = vld [vmem:[%s7258_s11 + $0x920] sm:$0xff]  ;;  %584 = vst [vmem:[%s7263_s12 + $0x480] sm:$0xff] %v583_v16  ;;  %586 = vst [vmem:[%s7263_s12 + $0x488] sm:$0xff] %v585_v17  ;;  %v589_v19 = vld [vmem:[%s7258_s11 + $0x928] sm:$0xff] }
  0x5b   : > { %588 = vst [vmem:[%s7263_s12 + $0x490] sm:$0xff] %v587_v18  ;;  %v591_v20 = vld [vmem:[%s7258_s11 + $0x940] sm:$0xff]  ;;  %v593_v21 = vld [vmem:[%s7258_s11 + $0x948] sm:$0xff]  ;;  %590 = vst [vmem:[%s7263_s12 + $0x498] sm:$0xff] %v589_v19 }
  0x5c   : > { %592 = vst [vmem:[%s7263_s12 + $0x4a0] sm:$0xff] %v591_v20  ;;  %594 = vst [vmem:[%s7263_s12 + $0x4a8] sm:$0xff] %v593_v21  ;;  %v595_v22 = vld [vmem:[%s7258_s11 + $0x960] sm:$0xff]  ;;  %v597_v23 = vld [vmem:[%s7258_s11 + $0x968] sm:$0xff] }
  0x5d   : > { %v599_v24 = vld [vmem:[%s7258_s11 + $0x980] sm:$0xff]  ;;  %596 = vst [vmem:[%s7263_s12 + $0x4b0] sm:$0xff] %v595_v22  ;;  %598 = vst [vmem:[%s7263_s12 + $0x4b8] sm:$0xff] %v597_v23  ;;  %v601_v25 = vld [vmem:[%s7258_s11 + $0x988] sm:$0xff] }
  0x5e   : > { %600 = vst [vmem:[%s7263_s12 + $0x4c0] sm:$0xff] %v599_v24  ;;  %v603_v26 = vld [vmem:[%s7258_s11 + $0x9a0] sm:$0xff]  ;;  %v605_v27 = vld [vmem:[%s7258_s11 + $0x9a8] sm:$0xff]  ;;  %602 = vst [vmem:[%s7263_s12 + $0x4c8] sm:$0xff] %v601_v25 }
  0x5f   : > { %604 = vst [vmem:[%s7263_s12 + $0x4d0] sm:$0xff] %v603_v26  ;;  %606 = vst [vmem:[%s7263_s12 + $0x4d8] sm:$0xff] %v605_v27  ;;  %v607_v28 = vld [vmem:[%s7258_s11 + $0x9c0] sm:$0xff]  ;;  %v609_v29 = vld [vmem:[%s7258_s11 + $0x9c8] sm:$0xff] }
  0x60   : > { %v611_v30 = vld [vmem:[%s7258_s11 + $0x9e0] sm:$0xff]  ;;  %608 = vst [vmem:[%s7263_s12 + $0x4e0] sm:$0xff] %v607_v28  ;;  %610 = vst [vmem:[%s7263_s12 + $0x4e8] sm:$0xff] %v609_v29  ;;  %v613_v31 = vld [vmem:[%s7258_s11 + $0x9e8] sm:$0xff] }
  0x61   : > { %612 = vst [vmem:[%s7263_s12 + $0x4f0] sm:$0xff] %v611_v30  ;;  %v615_v32 = vld [vmem:[%s7258_s11 + $0xa00] sm:$0xff]  ;;  %v617_v33 = vld [vmem:[%s7258_s11 + $0xa08] sm:$0xff]  ;;  %614 = vst [vmem:[%s7263_s12 + $0x4f8] sm:$0xff] %v613_v31 }
  0x62   : > { %616 = vst [vmem:[%s7263_s12 + $0x500] sm:$0xff] %v615_v32  ;;  %618 = vst [vmem:[%s7263_s12 + $0x508] sm:$0xff] %v617_v33  ;;  %v619_v34 = vld [vmem:[%s7258_s11 + $0xa20] sm:$0xff]  ;;  %v621_v35 = vld [vmem:[%s7258_s11 + $0xa28] sm:$0xff] }
  0x63   : > { %v623_v36 = vld [vmem:[%s7258_s11 + $0xa40] sm:$0xff]  ;;  %620 = vst [vmem:[%s7263_s12 + $0x510] sm:$0xff] %v619_v34  ;;  %622 = vst [vmem:[%s7263_s12 + $0x518] sm:$0xff] %v621_v35  ;;  %v625_v37 = vld [vmem:[%s7258_s11 + $0xa48] sm:$0xff] }
  0x64   : > { %624 = vst [vmem:[%s7263_s12 + $0x520] sm:$0xff] %v623_v36  ;;  %v627_v38 = vld [vmem:[%s7258_s11 + $0xa60] sm:$0xff]  ;;  %v629_v39 = vld [vmem:[%s7258_s11 + $0xa68] sm:$0xff]  ;;  %626 = vst [vmem:[%s7263_s12 + $0x528] sm:$0xff] %v625_v37 }
  0x65   : > { %628 = vst [vmem:[%s7263_s12 + $0x530] sm:$0xff] %v627_v38  ;;  %630 = vst [vmem:[%s7263_s12 + $0x538] sm:$0xff] %v629_v39  ;;  %v631_v40 = vld [vmem:[%s7258_s11 + $0xa80] sm:$0xff]  ;;  %v633_v41 = vld [vmem:[%s7258_s11 + $0xa88] sm:$0xff] }
  0x66   : > { %v635_v42 = vld [vmem:[%s7258_s11 + $0xaa0] sm:$0xff]  ;;  %632 = vst [vmem:[%s7263_s12 + $0x540] sm:$0xff] %v631_v40  ;;  %634 = vst [vmem:[%s7263_s12 + $0x548] sm:$0xff] %v633_v41  ;;  %v637_v43 = vld [vmem:[%s7258_s11 + $0xaa8] sm:$0xff] }
  0x67   : > { %636 = vst [vmem:[%s7263_s12 + $0x550] sm:$0xff] %v635_v42  ;;  %v639_v44 = vld [vmem:[%s7258_s11 + $0xac0] sm:$0xff]  ;;  %v641_v45 = vld [vmem:[%s7258_s11 + $0xac8] sm:$0xff]  ;;  %638 = vst [vmem:[%s7263_s12 + $0x558] sm:$0xff] %v637_v43 }
  0x68   : > { %640 = vst [vmem:[%s7263_s12 + $0x560] sm:$0xff] %v639_v44  ;;  %642 = vst [vmem:[%s7263_s12 + $0x568] sm:$0xff] %v641_v45  ;;  %v643_v46 = vld [vmem:[%s7258_s11 + $0xae0] sm:$0xff]  ;;  %v645_v47 = vld [vmem:[%s7258_s11 + $0xae8] sm:$0xff] }
  0x69   : > { %v647_v48 = vld [vmem:[%s7258_s11 + $0xb00] sm:$0xff]  ;;  %644 = vst [vmem:[%s7263_s12 + $0x570] sm:$0xff] %v643_v46  ;;  %646 = vst [vmem:[%s7263_s12 + $0x578] sm:$0xff] %v645_v47  ;;  %v649_v49 = vld [vmem:[%s7258_s11 + $0xb08] sm:$0xff] }
  0x6a   : > { %648 = vst [vmem:[%s7263_s12 + $0x580] sm:$0xff] %v647_v48  ;;  %v651_v50 = vld [vmem:[%s7258_s11 + $0xb20] sm:$0xff]  ;;  %v653_v51 = vld [vmem:[%s7258_s11 + $0xb28] sm:$0xff]  ;;  %650 = vst [vmem:[%s7263_s12 + $0x588] sm:$0xff] %v649_v49 }
  0x6b   : > { %652 = vst [vmem:[%s7263_s12 + $0x590] sm:$0xff] %v651_v50  ;;  %654 = vst [vmem:[%s7263_s12 + $0x598] sm:$0xff] %v653_v51  ;;  %v655_v52 = vld [vmem:[%s7258_s11 + $0xb40] sm:$0xff]  ;;  %v657_v53 = vld [vmem:[%s7258_s11 + $0xb48] sm:$0xff] }
  0x6c   : > { %v659_v54 = vld [vmem:[%s7258_s11 + $0xb60] sm:$0xff]  ;;  %656 = vst [vmem:[%s7263_s12 + $0x5a0] sm:$0xff] %v655_v52  ;;  %658 = vst [vmem:[%s7263_s12 + $0x5a8] sm:$0xff] %v657_v53  ;;  %v661_v55 = vld [vmem:[%s7258_s11 + $0xb68] sm:$0xff] }
  0x6d   : > { %660 = vst [vmem:[%s7263_s12 + $0x5b0] sm:$0xff] %v659_v54  ;;  %v663_v56 = vld [vmem:[%s7258_s11 + $0xb80] sm:$0xff]  ;;  %v665_v57 = vld [vmem:[%s7258_s11 + $0xb88] sm:$0xff]  ;;  %662 = vst [vmem:[%s7263_s12 + $0x5b8] sm:$0xff] %v661_v55 }
  0x6e   : > { %664 = vst [vmem:[%s7263_s12 + $0x5c0] sm:$0xff] %v663_v56  ;;  %666 = vst [vmem:[%s7263_s12 + $0x5c8] sm:$0xff] %v665_v57  ;;  %v667_v58 = vld [vmem:[%s7258_s11 + $0xba0] sm:$0xff]  ;;  %v669_v59 = vld [vmem:[%s7258_s11 + $0xba8] sm:$0xff] }
  0x6f   : > { %v671_v60 = vld [vmem:[%s7258_s11 + $0xbc0] sm:$0xff]  ;;  %668 = vst [vmem:[%s7263_s12 + $0x5d0] sm:$0xff] %v667_v58  ;;  %670 = vst [vmem:[%s7263_s12 + $0x5d8] sm:$0xff] %v669_v59  ;;  %v673_v61 = vld [vmem:[%s7258_s11 + $0xbc8] sm:$0xff] }
  0x70   : > { %672 = vst [vmem:[%s7263_s12 + $0x5e0] sm:$0xff] %v671_v60  ;;  %v675_v62 = vld [vmem:[%s7258_s11 + $0xbe0] sm:$0xff]  ;;  %v677_v63 = vld [vmem:[%s7258_s11 + $0xbe8] sm:$0xff]  ;;  %674 = vst [vmem:[%s7263_s12 + $0x5e8] sm:$0xff] %v673_v61 }
  0x71   : > { %676 = vst [vmem:[%s7263_s12 + $0x5f0] sm:$0xff] %v675_v62  ;;  %678 = vst [vmem:[%s7263_s12 + $0x5f8] sm:$0xff] %v677_v63  ;;  %v679_v0 = vld [vmem:[%s7258_s11 + $0xc00] sm:$0xff]  ;;  %v681_v1 = vld [vmem:[%s7258_s11 + $0xc08] sm:$0xff] }
  0x72   : > { %v683_v2 = vld [vmem:[%s7258_s11 + $0xc20] sm:$0xff]  ;;  %680 = vst [vmem:[%s7263_s12 + $0x600] sm:$0xff] %v679_v0  ;;  %682 = vst [vmem:[%s7263_s12 + $0x608] sm:$0xff] %v681_v1  ;;  %v685_v3 = vld [vmem:[%s7258_s11 + $0xc28] sm:$0xff] }
  0x73   : > { %684 = vst [vmem:[%s7263_s12 + $0x610] sm:$0xff] %v683_v2  ;;  %v687_v4 = vld [vmem:[%s7258_s11 + $0xc40] sm:$0xff]  ;;  %v689_v5 = vld [vmem:[%s7258_s11 + $0xc48] sm:$0xff]  ;;  %686 = vst [vmem:[%s7263_s12 + $0x618] sm:$0xff] %v685_v3 }
  0x74   : > { %688 = vst [vmem:[%s7263_s12 + $0x620] sm:$0xff] %v687_v4  ;;  %690 = vst [vmem:[%s7263_s12 + $0x628] sm:$0xff] %v689_v5  ;;  %v691_v6 = vld [vmem:[%s7258_s11 + $0xc60] sm:$0xff]  ;;  %v693_v7 = vld [vmem:[%s7258_s11 + $0xc68] sm:$0xff] }
  0x75   : > { %v695_v8 = vld [vmem:[%s7258_s11 + $0xc80] sm:$0xff]  ;;  %692 = vst [vmem:[%s7263_s12 + $0x630] sm:$0xff] %v691_v6  ;;  %694 = vst [vmem:[%s7263_s12 + $0x638] sm:$0xff] %v693_v7  ;;  %v697_v9 = vld [vmem:[%s7258_s11 + $0xc88] sm:$0xff] }
  0x76   : > { %696 = vst [vmem:[%s7263_s12 + $0x640] sm:$0xff] %v695_v8  ;;  %v699_v10 = vld [vmem:[%s7258_s11 + $0xca0] sm:$0xff]  ;;  %v701_v11 = vld [vmem:[%s7258_s11 + $0xca8] sm:$0xff]  ;;  %698 = vst [vmem:[%s7263_s12 + $0x648] sm:$0xff] %v697_v9 }
  0x77   : > { %700 = vst [vmem:[%s7263_s12 + $0x650] sm:$0xff] %v699_v10  ;;  %702 = vst [vmem:[%s7263_s12 + $0x658] sm:$0xff] %v701_v11  ;;  %v703_v12 = vld [vmem:[%s7258_s11 + $0xcc0] sm:$0xff]  ;;  %v705_v13 = vld [vmem:[%s7258_s11 + $0xcc8] sm:$0xff] }
  0x78   : > { %v707_v14 = vld [vmem:[%s7258_s11 + $0xce0] sm:$0xff]  ;;  %704 = vst [vmem:[%s7263_s12 + $0x660] sm:$0xff] %v703_v12  ;;  %706 = vst [vmem:[%s7263_s12 + $0x668] sm:$0xff] %v705_v13  ;;  %v709_v15 = vld [vmem:[%s7258_s11 + $0xce8] sm:$0xff] }
  0x79   : > { %708 = vst [vmem:[%s7263_s12 + $0x670] sm:$0xff] %v707_v14  ;;  %v711_v16 = vld [vmem:[%s7258_s11 + $0xd00] sm:$0xff]  ;;  %v713_v17 = vld [vmem:[%s7258_s11 + $0xd08] sm:$0xff]  ;;  %710 = vst [vmem:[%s7263_s12 + $0x678] sm:$0xff] %v709_v15 }
  0x7a   : > { %712 = vst [vmem:[%s7263_s12 + $0x680] sm:$0xff] %v711_v16  ;;  %714 = vst [vmem:[%s7263_s12 + $0x688] sm:$0xff] %v713_v17  ;;  %v715_v18 = vld [vmem:[%s7258_s11 + $0xd20] sm:$0xff]  ;;  %v717_v19 = vld [vmem:[%s7258_s11 + $0xd28] sm:$0xff] }
  0x7b   : > { %v719_v20 = vld [vmem:[%s7258_s11 + $0xd40] sm:$0xff]  ;;  %716 = vst [vmem:[%s7263_s12 + $0x690] sm:$0xff] %v715_v18  ;;  %718 = vst [vmem:[%s7263_s12 + $0x698] sm:$0xff] %v717_v19  ;;  %v721_v21 = vld [vmem:[%s7258_s11 + $0xd48] sm:$0xff] }
  0x7c   : > { %720 = vst [vmem:[%s7263_s12 + $0x6a0] sm:$0xff] %v719_v20  ;;  %v723_v22 = vld [vmem:[%s7258_s11 + $0xd60] sm:$0xff]  ;;  %v725_v23 = vld [vmem:[%s7258_s11 + $0xd68] sm:$0xff]  ;;  %722 = vst [vmem:[%s7263_s12 + $0x6a8] sm:$0xff] %v721_v21 }
  0x7d   : > { %724 = vst [vmem:[%s7263_s12 + $0x6b0] sm:$0xff] %v723_v22  ;;  %726 = vst [vmem:[%s7263_s12 + $0x6b8] sm:$0xff] %v725_v23  ;;  %v727_v24 = vld [vmem:[%s7258_s11 + $0xd80] sm:$0xff]  ;;  %v729_v25 = vld [vmem:[%s7258_s11 + $0xd88] sm:$0xff] }
  0x7e   : > { %v731_v26 = vld [vmem:[%s7258_s11 + $0xda0] sm:$0xff]  ;;  %728 = vst [vmem:[%s7263_s12 + $0x6c0] sm:$0xff] %v727_v24  ;;  %730 = vst [vmem:[%s7263_s12 + $0x6c8] sm:$0xff] %v729_v25  ;;  %v733_v27 = vld [vmem:[%s7258_s11 + $0xda8] sm:$0xff] }
  0x7f   : > { %732 = vst [vmem:[%s7263_s12 + $0x6d0] sm:$0xff] %v731_v26  ;;  %v735_v28 = vld [vmem:[%s7258_s11 + $0xdc0] sm:$0xff]  ;;  %v737_v29 = vld [vmem:[%s7258_s11 + $0xdc8] sm:$0xff]  ;;  %734 = vst [vmem:[%s7263_s12 + $0x6d8] sm:$0xff] %v733_v27 }
  0x80   : > { %736 = vst [vmem:[%s7263_s12 + $0x6e0] sm:$0xff] %v735_v28  ;;  %738 = vst [vmem:[%s7263_s12 + $0x6e8] sm:$0xff] %v737_v29  ;;  %v739_v30 = vld [vmem:[%s7258_s11 + $0xde0] sm:$0xff]  ;;  %v741_v31 = vld [vmem:[%s7258_s11 + $0xde8] sm:$0xff] }
  0x81   : > { %v743_v32 = vld [vmem:[%s7258_s11 + $0xe00] sm:$0xff]  ;;  %740 = vst [vmem:[%s7263_s12 + $0x6f0] sm:$0xff] %v739_v30  ;;  %742 = vst [vmem:[%s7263_s12 + $0x6f8] sm:$0xff] %v741_v31  ;;  %v745_v33 = vld [vmem:[%s7258_s11 + $0xe08] sm:$0xff] }
  0x82   : > { %744 = vst [vmem:[%s7263_s12 + $0x700] sm:$0xff] %v743_v32  ;;  %v747_v34 = vld [vmem:[%s7258_s11 + $0xe20] sm:$0xff]  ;;  %v749_v35 = vld [vmem:[%s7258_s11 + $0xe28] sm:$0xff]  ;;  %746 = vst [vmem:[%s7263_s12 + $0x708] sm:$0xff] %v745_v33 }
  0x83   : > { %748 = vst [vmem:[%s7263_s12 + $0x710] sm:$0xff] %v747_v34  ;;  %750 = vst [vmem:[%s7263_s12 + $0x718] sm:$0xff] %v749_v35  ;;  %v751_v36 = vld [vmem:[%s7258_s11 + $0xe40] sm:$0xff]  ;;  %v753_v37 = vld [vmem:[%s7258_s11 + $0xe48] sm:$0xff] }
  0x84   : > { %v755_v38 = vld [vmem:[%s7258_s11 + $0xe60] sm:$0xff]  ;;  %752 = vst [vmem:[%s7263_s12 + $0x720] sm:$0xff] %v751_v36  ;;  %754 = vst [vmem:[%s7263_s12 + $0x728] sm:$0xff] %v753_v37  ;;  %v757_v39 = vld [vmem:[%s7258_s11 + $0xe68] sm:$0xff] }
  0x85   : > { %756 = vst [vmem:[%s7263_s12 + $0x730] sm:$0xff] %v755_v38  ;;  %v759_v40 = vld [vmem:[%s7258_s11 + $0xe80] sm:$0xff]  ;;  %v761_v41 = vld [vmem:[%s7258_s11 + $0xe88] sm:$0xff]  ;;  %758 = vst [vmem:[%s7263_s12 + $0x738] sm:$0xff] %v757_v39 }
  0x86   : > { %760 = vst [vmem:[%s7263_s12 + $0x740] sm:$0xff] %v759_v40  ;;  %762 = vst [vmem:[%s7263_s12 + $0x748] sm:$0xff] %v761_v41  ;;  %v763_v42 = vld [vmem:[%s7258_s11 + $0xea0] sm:$0xff]  ;;  %v765_v43 = vld [vmem:[%s7258_s11 + $0xea8] sm:$0xff] }
  0x87   : > { %v767_v44 = vld [vmem:[%s7258_s11 + $0xec0] sm:$0xff]  ;;  %764 = vst [vmem:[%s7263_s12 + $0x750] sm:$0xff] %v763_v42  ;;  %766 = vst [vmem:[%s7263_s12 + $0x758] sm:$0xff] %v765_v43  ;;  %v769_v45 = vld [vmem:[%s7258_s11 + $0xec8] sm:$0xff] }
  0x88   : > { %768 = vst [vmem:[%s7263_s12 + $0x760] sm:$0xff] %v767_v44  ;;  %v771_v46 = vld [vmem:[%s7258_s11 + $0xee0] sm:$0xff]  ;;  %v773_v47 = vld [vmem:[%s7258_s11 + $0xee8] sm:$0xff]  ;;  %770 = vst [vmem:[%s7263_s12 + $0x768] sm:$0xff] %v769_v45 }
  0x89   : > { %772 = vst [vmem:[%s7263_s12 + $0x770] sm:$0xff] %v771_v46  ;;  %774 = vst [vmem:[%s7263_s12 + $0x778] sm:$0xff] %v773_v47  ;;  %v775_v48 = vld [vmem:[%s7258_s11 + $0xf00] sm:$0xff]  ;;  %v777_v49 = vld [vmem:[%s7258_s11 + $0xf08] sm:$0xff] }
  0x8a   : > { %v779_v50 = vld [vmem:[%s7258_s11 + $0xf20] sm:$0xff]  ;;  %776 = vst [vmem:[%s7263_s12 + $0x780] sm:$0xff] %v775_v48  ;;  %778 = vst [vmem:[%s7263_s12 + $0x788] sm:$0xff] %v777_v49  ;;  %v781_v51 = vld [vmem:[%s7258_s11 + $0xf28] sm:$0xff] }
  0x8b   : > { %780 = vst [vmem:[%s7263_s12 + $0x790] sm:$0xff] %v779_v50  ;;  %v783_v52 = vld [vmem:[%s7258_s11 + $0xf40] sm:$0xff]  ;;  %v785_v53 = vld [vmem:[%s7258_s11 + $0xf48] sm:$0xff]  ;;  %782 = vst [vmem:[%s7263_s12 + $0x798] sm:$0xff] %v781_v51 }
  0x8c   : > { %784 = vst [vmem:[%s7263_s12 + $0x7a0] sm:$0xff] %v783_v52  ;;  %786 = vst [vmem:[%s7263_s12 + $0x7a8] sm:$0xff] %v785_v53  ;;  %v787_v54 = vld [vmem:[%s7258_s11 + $0xf60] sm:$0xff]  ;;  %v789_v55 = vld [vmem:[%s7258_s11 + $0xf68] sm:$0xff] }
  0x8d   : > { %v791_v56 = vld [vmem:[%s7258_s11 + $0xf80] sm:$0xff]  ;;  %788 = vst [vmem:[%s7263_s12 + $0x7b0] sm:$0xff] %v787_v54  ;;  %790 = vst [vmem:[%s7263_s12 + $0x7b8] sm:$0xff] %v789_v55  ;;  %v793_v57 = vld [vmem:[%s7258_s11 + $0xf88] sm:$0xff] }
  0x8e   : > { %792 = vst [vmem:[%s7263_s12 + $0x7c0] sm:$0xff] %v791_v56  ;;  %v795_v58 = vld [vmem:[%s7258_s11 + $0xfa0] sm:$0xff]  ;;  %v797_v59 = vld [vmem:[%s7258_s11 + $0xfa8] sm:$0xff]  ;;  %794 = vst [vmem:[%s7263_s12 + $0x7c8] sm:$0xff] %v793_v57 }
  0x8f   : > { %796 = vst [vmem:[%s7263_s12 + $0x7d0] sm:$0xff] %v795_v58  ;;  %798 = vst [vmem:[%s7263_s12 + $0x7d8] sm:$0xff] %v797_v59  ;;  %v799_v60 = vld [vmem:[%s7258_s11 + $0xfc0] sm:$0xff]  ;;  %v801_v61 = vld [vmem:[%s7258_s11 + $0xfc8] sm:$0xff] }
  0x90   : > { %v803_v62 = vld [vmem:[%s7258_s11 + $0xfe0] sm:$0xff]  ;;  %800 = vst [vmem:[%s7263_s12 + $0x7e0] sm:$0xff] %v799_v60  ;;  %802 = vst [vmem:[%s7263_s12 + $0x7e8] sm:$0xff] %v801_v61  ;;  %v805_v63 = vld [vmem:[%s7258_s11 + $0xfe8] sm:$0xff] }
  0x91   : > { %804 = vst [vmem:[%s7263_s12 + $0x7f0] sm:$0xff] %v803_v62  ;;  %v807_v0 = vld [vmem:[%s7258_s11 + $0x1000] sm:$0xff]  ;;  %v809_v1 = vld [vmem:[%s7258_s11 + $0x1008] sm:$0xff]  ;;  %806 = vst [vmem:[%s7263_s12 + $0x7f8] sm:$0xff] %v805_v63 }
  0x92   : > { %808 = vst [vmem:[%s7263_s12 + $0x800] sm:$0xff] %v807_v0  ;;  %810 = vst [vmem:[%s7263_s12 + $0x808] sm:$0xff] %v809_v1  ;;  %v811_v2 = vld [vmem:[%s7258_s11 + $0x1020] sm:$0xff]  ;;  %v813_v3 = vld [vmem:[%s7258_s11 + $0x1028] sm:$0xff] }
  0x93   : > { %v815_v4 = vld [vmem:[%s7258_s11 + $0x1040] sm:$0xff]  ;;  %812 = vst [vmem:[%s7263_s12 + $0x810] sm:$0xff] %v811_v2  ;;  %814 = vst [vmem:[%s7263_s12 + $0x818] sm:$0xff] %v813_v3  ;;  %v817_v5 = vld [vmem:[%s7258_s11 + $0x1048] sm:$0xff] }
  0x94   : > { %816 = vst [vmem:[%s7263_s12 + $0x820] sm:$0xff] %v815_v4  ;;  %v819_v6 = vld [vmem:[%s7258_s11 + $0x1060] sm:$0xff]  ;;  %v821_v7 = vld [vmem:[%s7258_s11 + $0x1068] sm:$0xff]  ;;  %818 = vst [vmem:[%s7263_s12 + $0x828] sm:$0xff] %v817_v5 }
  0x95   : > { %820 = vst [vmem:[%s7263_s12 + $0x830] sm:$0xff] %v819_v6  ;;  %822 = vst [vmem:[%s7263_s12 + $0x838] sm:$0xff] %v821_v7  ;;  %v823_v8 = vld [vmem:[%s7258_s11 + $0x1080] sm:$0xff]  ;;  %v825_v9 = vld [vmem:[%s7258_s11 + $0x1088] sm:$0xff] }
  0x96   : > { %v827_v10 = vld [vmem:[%s7258_s11 + $0x10a0] sm:$0xff]  ;;  %824 = vst [vmem:[%s7263_s12 + $0x840] sm:$0xff] %v823_v8  ;;  %826 = vst [vmem:[%s7263_s12 + $0x848] sm:$0xff] %v825_v9  ;;  %v829_v11 = vld [vmem:[%s7258_s11 + $0x10a8] sm:$0xff] }
  0x97   : > { %828 = vst [vmem:[%s7263_s12 + $0x850] sm:$0xff] %v827_v10  ;;  %v831_v12 = vld [vmem:[%s7258_s11 + $0x10c0] sm:$0xff]  ;;  %v833_v13 = vld [vmem:[%s7258_s11 + $0x10c8] sm:$0xff]  ;;  %830 = vst [vmem:[%s7263_s12 + $0x858] sm:$0xff] %v829_v11 }
  0x98   : > { %832 = vst [vmem:[%s7263_s12 + $0x860] sm:$0xff] %v831_v12  ;;  %834 = vst [vmem:[%s7263_s12 + $0x868] sm:$0xff] %v833_v13  ;;  %v835_v14 = vld [vmem:[%s7258_s11 + $0x10e0] sm:$0xff]  ;;  %v837_v15 = vld [vmem:[%s7258_s11 + $0x10e8] sm:$0xff] }
  0x99   : > { %v839_v16 = vld [vmem:[%s7258_s11 + $0x1100] sm:$0xff]  ;;  %836 = vst [vmem:[%s7263_s12 + $0x870] sm:$0xff] %v835_v14  ;;  %838 = vst [vmem:[%s7263_s12 + $0x878] sm:$0xff] %v837_v15  ;;  %v841_v17 = vld [vmem:[%s7258_s11 + $0x1108] sm:$0xff] }
  0x9a   : > { %840 = vst [vmem:[%s7263_s12 + $0x880] sm:$0xff] %v839_v16  ;;  %v843_v18 = vld [vmem:[%s7258_s11 + $0x1120] sm:$0xff]  ;;  %v845_v19 = vld [vmem:[%s7258_s11 + $0x1128] sm:$0xff]  ;;  %842 = vst [vmem:[%s7263_s12 + $0x888] sm:$0xff] %v841_v17 }
  0x9b   : > { %844 = vst [vmem:[%s7263_s12 + $0x890] sm:$0xff] %v843_v18  ;;  %846 = vst [vmem:[%s7263_s12 + $0x898] sm:$0xff] %v845_v19  ;;  %v847_v20 = vld [vmem:[%s7258_s11 + $0x1140] sm:$0xff]  ;;  %v849_v21 = vld [vmem:[%s7258_s11 + $0x1148] sm:$0xff] }
  0x9c   : > { %v851_v22 = vld [vmem:[%s7258_s11 + $0x1160] sm:$0xff]  ;;  %848 = vst [vmem:[%s7263_s12 + $0x8a0] sm:$0xff] %v847_v20  ;;  %850 = vst [vmem:[%s7263_s12 + $0x8a8] sm:$0xff] %v849_v21  ;;  %v853_v23 = vld [vmem:[%s7258_s11 + $0x1168] sm:$0xff] }
  0x9d   : > { %852 = vst [vmem:[%s7263_s12 + $0x8b0] sm:$0xff] %v851_v22  ;;  %v855_v24 = vld [vmem:[%s7258_s11 + $0x1180] sm:$0xff]  ;;  %v857_v25 = vld [vmem:[%s7258_s11 + $0x1188] sm:$0xff]  ;;  %854 = vst [vmem:[%s7263_s12 + $0x8b8] sm:$0xff] %v853_v23 }
  0x9e   : > { %856 = vst [vmem:[%s7263_s12 + $0x8c0] sm:$0xff] %v855_v24  ;;  %858 = vst [vmem:[%s7263_s12 + $0x8c8] sm:$0xff] %v857_v25  ;;  %v859_v26 = vld [vmem:[%s7258_s11 + $0x11a0] sm:$0xff]  ;;  %v861_v27 = vld [vmem:[%s7258_s11 + $0x11a8] sm:$0xff] }
  0x9f   : > { %v863_v28 = vld [vmem:[%s7258_s11 + $0x11c0] sm:$0xff]  ;;  %860 = vst [vmem:[%s7263_s12 + $0x8d0] sm:$0xff] %v859_v26  ;;  %862 = vst [vmem:[%s7263_s12 + $0x8d8] sm:$0xff] %v861_v27  ;;  %v865_v29 = vld [vmem:[%s7258_s11 + $0x11c8] sm:$0xff] }
  0xa0   : > { %864 = vst [vmem:[%s7263_s12 + $0x8e0] sm:$0xff] %v863_v28  ;;  %v867_v30 = vld [vmem:[%s7258_s11 + $0x11e0] sm:$0xff]  ;;  %v869_v31 = vld [vmem:[%s7258_s11 + $0x11e8] sm:$0xff]  ;;  %866 = vst [vmem:[%s7263_s12 + $0x8e8] sm:$0xff] %v865_v29 }
  0xa1   : > { %868 = vst [vmem:[%s7263_s12 + $0x8f0] sm:$0xff] %v867_v30  ;;  %870 = vst [vmem:[%s7263_s12 + $0x8f8] sm:$0xff] %v869_v31  ;;  %v871_v32 = vld [vmem:[%s7258_s11 + $0x1200] sm:$0xff]  ;;  %v873_v33 = vld [vmem:[%s7258_s11 + $0x1208] sm:$0xff] }
  0xa2   : > { %v875_v34 = vld [vmem:[%s7258_s11 + $0x1220] sm:$0xff]  ;;  %872 = vst [vmem:[%s7263_s12 + $0x900] sm:$0xff] %v871_v32  ;;  %874 = vst [vmem:[%s7263_s12 + $0x908] sm:$0xff] %v873_v33  ;;  %v877_v35 = vld [vmem:[%s7258_s11 + $0x1228] sm:$0xff] }
  0xa3   : > { %876 = vst [vmem:[%s7263_s12 + $0x910] sm:$0xff] %v875_v34  ;;  %v879_v36 = vld [vmem:[%s7258_s11 + $0x1240] sm:$0xff]  ;;  %v881_v37 = vld [vmem:[%s7258_s11 + $0x1248] sm:$0xff]  ;;  %878 = vst [vmem:[%s7263_s12 + $0x918] sm:$0xff] %v877_v35 }
  0xa4   : > { %880 = vst [vmem:[%s7263_s12 + $0x920] sm:$0xff] %v879_v36  ;;  %882 = vst [vmem:[%s7263_s12 + $0x928] sm:$0xff] %v881_v37  ;;  %v883_v38 = vld [vmem:[%s7258_s11 + $0x1260] sm:$0xff]  ;;  %v885_v39 = vld [vmem:[%s7258_s11 + $0x1268] sm:$0xff] }
  0xa5   : > { %v887_v40 = vld [vmem:[%s7258_s11 + $0x1280] sm:$0xff]  ;;  %884 = vst [vmem:[%s7263_s12 + $0x930] sm:$0xff] %v883_v38  ;;  %886 = vst [vmem:[%s7263_s12 + $0x938] sm:$0xff] %v885_v39  ;;  %v889_v41 = vld [vmem:[%s7258_s11 + $0x1288] sm:$0xff] }
  0xa6   : > { %888 = vst [vmem:[%s7263_s12 + $0x940] sm:$0xff] %v887_v40  ;;  %v891_v42 = vld [vmem:[%s7258_s11 + $0x12a0] sm:$0xff]  ;;  %v893_v43 = vld [vmem:[%s7258_s11 + $0x12a8] sm:$0xff]  ;;  %890 = vst [vmem:[%s7263_s12 + $0x948] sm:$0xff] %v889_v41 }
  0xa7   : > { %892 = vst [vmem:[%s7263_s12 + $0x950] sm:$0xff] %v891_v42  ;;  %894 = vst [vmem:[%s7263_s12 + $0x958] sm:$0xff] %v893_v43  ;;  %v895_v44 = vld [vmem:[%s7258_s11 + $0x12c0] sm:$0xff]  ;;  %v897_v45 = vld [vmem:[%s7258_s11 + $0x12c8] sm:$0xff] }
  0xa8   : > { %v899_v46 = vld [vmem:[%s7258_s11 + $0x12e0] sm:$0xff]  ;;  %896 = vst [vmem:[%s7263_s12 + $0x960] sm:$0xff] %v895_v44  ;;  %898 = vst [vmem:[%s7263_s12 + $0x968] sm:$0xff] %v897_v45  ;;  %v901_v47 = vld [vmem:[%s7258_s11 + $0x12e8] sm:$0xff] }
  0xa9   : > { %900 = vst [vmem:[%s7263_s12 + $0x970] sm:$0xff] %v899_v46  ;;  %v903_v48 = vld [vmem:[%s7258_s11 + $0x1300] sm:$0xff]  ;;  %v905_v49 = vld [vmem:[%s7258_s11 + $0x1308] sm:$0xff]  ;;  %902 = vst [vmem:[%s7263_s12 + $0x978] sm:$0xff] %v901_v47 }
  0xaa   : > { %904 = vst [vmem:[%s7263_s12 + $0x980] sm:$0xff] %v903_v48  ;;  %906 = vst [vmem:[%s7263_s12 + $0x988] sm:$0xff] %v905_v49  ;;  %v907_v50 = vld [vmem:[%s7258_s11 + $0x1320] sm:$0xff]  ;;  %v909_v51 = vld [vmem:[%s7258_s11 + $0x1328] sm:$0xff] }
  0xab   : > { %v911_v52 = vld [vmem:[%s7258_s11 + $0x1340] sm:$0xff]  ;;  %908 = vst [vmem:[%s7263_s12 + $0x990] sm:$0xff] %v907_v50  ;;  %910 = vst [vmem:[%s7263_s12 + $0x998] sm:$0xff] %v909_v51  ;;  %v913_v53 = vld [vmem:[%s7258_s11 + $0x1348] sm:$0xff] }
  0xac   : > { %912 = vst [vmem:[%s7263_s12 + $0x9a0] sm:$0xff] %v911_v52  ;;  %v915_v54 = vld [vmem:[%s7258_s11 + $0x1360] sm:$0xff]  ;;  %v917_v55 = vld [vmem:[%s7258_s11 + $0x1368] sm:$0xff]  ;;  %914 = vst [vmem:[%s7263_s12 + $0x9a8] sm:$0xff] %v913_v53 }
  0xad   : > { %916 = vst [vmem:[%s7263_s12 + $0x9b0] sm:$0xff] %v915_v54  ;;  %918 = vst [vmem:[%s7263_s12 + $0x9b8] sm:$0xff] %v917_v55  ;;  %v919_v56 = vld [vmem:[%s7258_s11 + $0x1380] sm:$0xff]  ;;  %v921_v57 = vld [vmem:[%s7258_s11 + $0x1388] sm:$0xff] }
  0xae   : > { %v923_v58 = vld [vmem:[%s7258_s11 + $0x13a0] sm:$0xff]  ;;  %920 = vst [vmem:[%s7263_s12 + $0x9c0] sm:$0xff] %v919_v56  ;;  %922 = vst [vmem:[%s7263_s12 + $0x9c8] sm:$0xff] %v921_v57  ;;  %v925_v59 = vld [vmem:[%s7258_s11 + $0x13a8] sm:$0xff] }
  0xaf   : > { %924 = vst [vmem:[%s7263_s12 + $0x9d0] sm:$0xff] %v923_v58  ;;  %v927_v60 = vld [vmem:[%s7258_s11 + $0x13c0] sm:$0xff]  ;;  %v929_v61 = vld [vmem:[%s7258_s11 + $0x13c8] sm:$0xff]  ;;  %926 = vst [vmem:[%s7263_s12 + $0x9d8] sm:$0xff] %v925_v59 }
  0xb0   : > { %928 = vst [vmem:[%s7263_s12 + $0x9e0] sm:$0xff] %v927_v60  ;;  %930 = vst [vmem:[%s7263_s12 + $0x9e8] sm:$0xff] %v929_v61  ;;  %v931_v62 = vld [vmem:[%s7258_s11 + $0x13e0] sm:$0xff]  ;;  %v933_v63 = vld [vmem:[%s7258_s11 + $0x13e8] sm:$0xff] }
  0xb1   : > { %v935_v0 = vld [vmem:[%s7258_s11 + $0x1400] sm:$0xff]  ;;  %932 = vst [vmem:[%s7263_s12 + $0x9f0] sm:$0xff] %v931_v62  ;;  %934 = vst [vmem:[%s7263_s12 + $0x9f8] sm:$0xff] %v933_v63  ;;  %v937_v1 = vld [vmem:[%s7258_s11 + $0x1408] sm:$0xff] }
  0xb2   : > { %936 = vst [vmem:[%s7263_s12 + $0xa00] sm:$0xff] %v935_v0  ;;  %v939_v2 = vld [vmem:[%s7258_s11 + $0x1420] sm:$0xff]  ;;  %v941_v3 = vld [vmem:[%s7258_s11 + $0x1428] sm:$0xff]  ;;  %938 = vst [vmem:[%s7263_s12 + $0xa08] sm:$0xff] %v937_v1 }
  0xb3   : > { %940 = vst [vmem:[%s7263_s12 + $0xa10] sm:$0xff] %v939_v2  ;;  %942 = vst [vmem:[%s7263_s12 + $0xa18] sm:$0xff] %v941_v3  ;;  %v943_v4 = vld [vmem:[%s7258_s11 + $0x1440] sm:$0xff]  ;;  %v945_v5 = vld [vmem:[%s7258_s11 + $0x1448] sm:$0xff] }
  0xb4   : > { %v947_v6 = vld [vmem:[%s7258_s11 + $0x1460] sm:$0xff]  ;;  %944 = vst [vmem:[%s7263_s12 + $0xa20] sm:$0xff] %v943_v4  ;;  %946 = vst [vmem:[%s7263_s12 + $0xa28] sm:$0xff] %v945_v5  ;;  %v949_v7 = vld [vmem:[%s7258_s11 + $0x1468] sm:$0xff] }
  0xb5   : > { %948 = vst [vmem:[%s7263_s12 + $0xa30] sm:$0xff] %v947_v6  ;;  %v951_v8 = vld [vmem:[%s7258_s11 + $0x1480] sm:$0xff]  ;;  %v953_v9 = vld [vmem:[%s7258_s11 + $0x1488] sm:$0xff]  ;;  %950 = vst [vmem:[%s7263_s12 + $0xa38] sm:$0xff] %v949_v7 }
  0xb6   : > { %952 = vst [vmem:[%s7263_s12 + $0xa40] sm:$0xff] %v951_v8  ;;  %954 = vst [vmem:[%s7263_s12 + $0xa48] sm:$0xff] %v953_v9  ;;  %v955_v10 = vld [vmem:[%s7258_s11 + $0x14a0] sm:$0xff]  ;;  %v957_v11 = vld [vmem:[%s7258_s11 + $0x14a8] sm:$0xff] }
  0xb7   : > { %v959_v12 = vld [vmem:[%s7258_s11 + $0x14c0] sm:$0xff]  ;;  %956 = vst [vmem:[%s7263_s12 + $0xa50] sm:$0xff] %v955_v10  ;;  %958 = vst [vmem:[%s7263_s12 + $0xa58] sm:$0xff] %v957_v11  ;;  %v961_v13 = vld [vmem:[%s7258_s11 + $0x14c8] sm:$0xff] }
  0xb8   : > { %960 = vst [vmem:[%s7263_s12 + $0xa60] sm:$0xff] %v959_v12  ;;  %v963_v14 = vld [vmem:[%s7258_s11 + $0x14e0] sm:$0xff]  ;;  %v965_v15 = vld [vmem:[%s7258_s11 + $0x14e8] sm:$0xff]  ;;  %962 = vst [vmem:[%s7263_s12 + $0xa68] sm:$0xff] %v961_v13 }
  0xb9   : > { %964 = vst [vmem:[%s7263_s12 + $0xa70] sm:$0xff] %v963_v14  ;;  %966 = vst [vmem:[%s7263_s12 + $0xa78] sm:$0xff] %v965_v15  ;;  %v967_v16 = vld [vmem:[%s7258_s11 + $0x1500] sm:$0xff]  ;;  %v969_v17 = vld [vmem:[%s7258_s11 + $0x1508] sm:$0xff] }
  0xba   : > { %v971_v18 = vld [vmem:[%s7258_s11 + $0x1520] sm:$0xff]  ;;  %968 = vst [vmem:[%s7263_s12 + $0xa80] sm:$0xff] %v967_v16  ;;  %970 = vst [vmem:[%s7263_s12 + $0xa88] sm:$0xff] %v969_v17  ;;  %v973_v19 = vld [vmem:[%s7258_s11 + $0x1528] sm:$0xff] }
  0xbb   : > { %972 = vst [vmem:[%s7263_s12 + $0xa90] sm:$0xff] %v971_v18  ;;  %v975_v20 = vld [vmem:[%s7258_s11 + $0x1540] sm:$0xff]  ;;  %v977_v21 = vld [vmem:[%s7258_s11 + $0x1548] sm:$0xff]  ;;  %974 = vst [vmem:[%s7263_s12 + $0xa98] sm:$0xff] %v973_v19 }
  0xbc   : > { %976 = vst [vmem:[%s7263_s12 + $0xaa0] sm:$0xff] %v975_v20  ;;  %978 = vst [vmem:[%s7263_s12 + $0xaa8] sm:$0xff] %v977_v21  ;;  %v979_v22 = vld [vmem:[%s7258_s11 + $0x1560] sm:$0xff]  ;;  %v981_v23 = vld [vmem:[%s7258_s11 + $0x1568] sm:$0xff] }
  0xbd   : > { %v983_v24 = vld [vmem:[%s7258_s11 + $0x1580] sm:$0xff]  ;;  %980 = vst [vmem:[%s7263_s12 + $0xab0] sm:$0xff] %v979_v22  ;;  %982 = vst [vmem:[%s7263_s12 + $0xab8] sm:$0xff] %v981_v23  ;;  %v985_v25 = vld [vmem:[%s7258_s11 + $0x1588] sm:$0xff] }
  0xbe   : > { %984 = vst [vmem:[%s7263_s12 + $0xac0] sm:$0xff] %v983_v24  ;;  %v987_v26 = vld [vmem:[%s7258_s11 + $0x15a0] sm:$0xff]  ;;  %v989_v27 = vld [vmem:[%s7258_s11 + $0x15a8] sm:$0xff]  ;;  %986 = vst [vmem:[%s7263_s12 + $0xac8] sm:$0xff] %v985_v25 }
  0xbf   : > { %988 = vst [vmem:[%s7263_s12 + $0xad0] sm:$0xff] %v987_v26  ;;  %990 = vst [vmem:[%s7263_s12 + $0xad8] sm:$0xff] %v989_v27  ;;  %v991_v28 = vld [vmem:[%s7258_s11 + $0x15c0] sm:$0xff]  ;;  %v993_v29 = vld [vmem:[%s7258_s11 + $0x15c8] sm:$0xff] }
  0xc0   : > { %v995_v30 = vld [vmem:[%s7258_s11 + $0x15e0] sm:$0xff]  ;;  %992 = vst [vmem:[%s7263_s12 + $0xae0] sm:$0xff] %v991_v28  ;;  %994 = vst [vmem:[%s7263_s12 + $0xae8] sm:$0xff] %v993_v29  ;;  %v997_v31 = vld [vmem:[%s7258_s11 + $0x15e8] sm:$0xff] }
  0xc1   : > { %996 = vst [vmem:[%s7263_s12 + $0xaf0] sm:$0xff] %v995_v30  ;;  %v999_v32 = vld [vmem:[%s7258_s11 + $0x1600] sm:$0xff]  ;;  %v1001_v33 = vld [vmem:[%s7258_s11 + $0x1608] sm:$0xff]  ;;  %998 = vst [vmem:[%s7263_s12 + $0xaf8] sm:$0xff] %v997_v31 }
  0xc2   : > { %1000 = vst [vmem:[%s7263_s12 + $0xb00] sm:$0xff] %v999_v32  ;;  %1002 = vst [vmem:[%s7263_s12 + $0xb08] sm:$0xff] %v1001_v33  ;;  %v1003_v34 = vld [vmem:[%s7258_s11 + $0x1620] sm:$0xff]  ;;  %v1005_v35 = vld [vmem:[%s7258_s11 + $0x1628] sm:$0xff] }
  0xc3   : > { %v1007_v36 = vld [vmem:[%s7258_s11 + $0x1640] sm:$0xff]  ;;  %1004 = vst [vmem:[%s7263_s12 + $0xb10] sm:$0xff] %v1003_v34  ;;  %1006 = vst [vmem:[%s7263_s12 + $0xb18] sm:$0xff] %v1005_v35  ;;  %v1009_v37 = vld [vmem:[%s7258_s11 + $0x1648] sm:$0xff] }
  0xc4   : > { %1008 = vst [vmem:[%s7263_s12 + $0xb20] sm:$0xff] %v1007_v36  ;;  %v1011_v38 = vld [vmem:[%s7258_s11 + $0x1660] sm:$0xff]  ;;  %v1013_v39 = vld [vmem:[%s7258_s11 + $0x1668] sm:$0xff]  ;;  %1010 = vst [vmem:[%s7263_s12 + $0xb28] sm:$0xff] %v1009_v37 }
  0xc5   : > { %1012 = vst [vmem:[%s7263_s12 + $0xb30] sm:$0xff] %v1011_v38  ;;  %1014 = vst [vmem:[%s7263_s12 + $0xb38] sm:$0xff] %v1013_v39  ;;  %v1015_v40 = vld [vmem:[%s7258_s11 + $0x1680] sm:$0xff]  ;;  %v1017_v41 = vld [vmem:[%s7258_s11 + $0x1688] sm:$0xff] }
  0xc6   : > { %v1019_v42 = vld [vmem:[%s7258_s11 + $0x16a0] sm:$0xff]  ;;  %1016 = vst [vmem:[%s7263_s12 + $0xb40] sm:$0xff] %v1015_v40  ;;  %1018 = vst [vmem:[%s7263_s12 + $0xb48] sm:$0xff] %v1017_v41  ;;  %v1021_v43 = vld [vmem:[%s7258_s11 + $0x16a8] sm:$0xff] }
  0xc7   : > { %1020 = vst [vmem:[%s7263_s12 + $0xb50] sm:$0xff] %v1019_v42  ;;  %v1023_v44 = vld [vmem:[%s7258_s11 + $0x16c0] sm:$0xff]  ;;  %v1025_v45 = vld [vmem:[%s7258_s11 + $0x16c8] sm:$0xff]  ;;  %1022 = vst [vmem:[%s7263_s12 + $0xb58] sm:$0xff] %v1021_v43 }
  0xc8   : > { %1024 = vst [vmem:[%s7263_s12 + $0xb60] sm:$0xff] %v1023_v44  ;;  %1026 = vst [vmem:[%s7263_s12 + $0xb68] sm:$0xff] %v1025_v45  ;;  %v1027_v46 = vld [vmem:[%s7258_s11 + $0x16e0] sm:$0xff]  ;;  %v1029_v47 = vld [vmem:[%s7258_s11 + $0x16e8] sm:$0xff] }
  0xc9   : > { %v1031_v48 = vld [vmem:[%s7258_s11 + $0x1700] sm:$0xff]  ;;  %1028 = vst [vmem:[%s7263_s12 + $0xb70] sm:$0xff] %v1027_v46  ;;  %1030 = vst [vmem:[%s7263_s12 + $0xb78] sm:$0xff] %v1029_v47  ;;  %v1033_v49 = vld [vmem:[%s7258_s11 + $0x1708] sm:$0xff] }
  0xca   : > { %1032 = vst [vmem:[%s7263_s12 + $0xb80] sm:$0xff] %v1031_v48  ;;  %v1035_v50 = vld [vmem:[%s7258_s11 + $0x1720] sm:$0xff]  ;;  %v1037_v51 = vld [vmem:[%s7258_s11 + $0x1728] sm:$0xff]  ;;  %1034 = vst [vmem:[%s7263_s12 + $0xb88] sm:$0xff] %v1033_v49 }
  0xcb   : > { %1036 = vst [vmem:[%s7263_s12 + $0xb90] sm:$0xff] %v1035_v50  ;;  %1038 = vst [vmem:[%s7263_s12 + $0xb98] sm:$0xff] %v1037_v51  ;;  %v1039_v52 = vld [vmem:[%s7258_s11 + $0x1740] sm:$0xff]  ;;  %v1041_v53 = vld [vmem:[%s7258_s11 + $0x1748] sm:$0xff] }
  0xcc   : > { %v1043_v54 = vld [vmem:[%s7258_s11 + $0x1760] sm:$0xff]  ;;  %1040 = vst [vmem:[%s7263_s12 + $0xba0] sm:$0xff] %v1039_v52  ;;  %1042 = vst [vmem:[%s7263_s12 + $0xba8] sm:$0xff] %v1041_v53  ;;  %v1045_v55 = vld [vmem:[%s7258_s11 + $0x1768] sm:$0xff] }
  0xcd   : > { %1044 = vst [vmem:[%s7263_s12 + $0xbb0] sm:$0xff] %v1043_v54  ;;  %v1047_v56 = vld [vmem:[%s7258_s11 + $0x1780] sm:$0xff]  ;;  %v1049_v57 = vld [vmem:[%s7258_s11 + $0x1788] sm:$0xff]  ;;  %1046 = vst [vmem:[%s7263_s12 + $0xbb8] sm:$0xff] %v1045_v55 }
  0xce   : > { %1048 = vst [vmem:[%s7263_s12 + $0xbc0] sm:$0xff] %v1047_v56  ;;  %1050 = vst [vmem:[%s7263_s12 + $0xbc8] sm:$0xff] %v1049_v57  ;;  %v1051_v58 = vld [vmem:[%s7258_s11 + $0x17a0] sm:$0xff]  ;;  %v1053_v59 = vld [vmem:[%s7258_s11 + $0x17a8] sm:$0xff] }
  0xcf   : > { %v1055_v60 = vld [vmem:[%s7258_s11 + $0x17c0] sm:$0xff]  ;;  %1052 = vst [vmem:[%s7263_s12 + $0xbd0] sm:$0xff] %v1051_v58  ;;  %1054 = vst [vmem:[%s7263_s12 + $0xbd8] sm:$0xff] %v1053_v59  ;;  %v1057_v61 = vld [vmem:[%s7258_s11 + $0x17c8] sm:$0xff] }
  0xd0   : > { %1056 = vst [vmem:[%s7263_s12 + $0xbe0] sm:$0xff] %v1055_v60  ;;  %v1059_v62 = vld [vmem:[%s7258_s11 + $0x17e0] sm:$0xff]  ;;  %v1061_v63 = vld [vmem:[%s7258_s11 + $0x17e8] sm:$0xff]  ;;  %1058 = vst [vmem:[%s7263_s12 + $0xbe8] sm:$0xff] %v1057_v61 }
  0xd1   : > { %1060 = vst [vmem:[%s7263_s12 + $0xbf0] sm:$0xff] %v1059_v62  ;;  %1062 = vst [vmem:[%s7263_s12 + $0xbf8] sm:$0xff] %v1061_v63  ;;  %v1063_v0 = vld [vmem:[%s7258_s11 + $0x1800] sm:$0xff]  ;;  %v1065_v1 = vld [vmem:[%s7258_s11 + $0x1808] sm:$0xff] }
  0xd2   : > { %v1067_v2 = vld [vmem:[%s7258_s11 + $0x1820] sm:$0xff]  ;;  %1064 = vst [vmem:[%s7263_s12 + $0xc00] sm:$0xff] %v1063_v0  ;;  %1066 = vst [vmem:[%s7263_s12 + $0xc08] sm:$0xff] %v1065_v1  ;;  %v1069_v3 = vld [vmem:[%s7258_s11 + $0x1828] sm:$0xff] }
  0xd3   : > { %1068 = vst [vmem:[%s7263_s12 + $0xc10] sm:$0xff] %v1067_v2  ;;  %v1071_v4 = vld [vmem:[%s7258_s11 + $0x1840] sm:$0xff]  ;;  %v1073_v5 = vld [vmem:[%s7258_s11 + $0x1848] sm:$0xff]  ;;  %1070 = vst [vmem:[%s7263_s12 + $0xc18] sm:$0xff] %v1069_v3 }
  0xd4   : > { %1072 = vst [vmem:[%s7263_s12 + $0xc20] sm:$0xff] %v1071_v4  ;;  %1074 = vst [vmem:[%s7263_s12 + $0xc28] sm:$0xff] %v1073_v5  ;;  %v1075_v6 = vld [vmem:[%s7258_s11 + $0x1860] sm:$0xff]  ;;  %v1077_v7 = vld [vmem:[%s7258_s11 + $0x1868] sm:$0xff] }
  0xd5   : > { %v1079_v8 = vld [vmem:[%s7258_s11 + $0x1880] sm:$0xff]  ;;  %1076 = vst [vmem:[%s7263_s12 + $0xc30] sm:$0xff] %v1075_v6  ;;  %1078 = vst [vmem:[%s7263_s12 + $0xc38] sm:$0xff] %v1077_v7  ;;  %v1081_v9 = vld [vmem:[%s7258_s11 + $0x1888] sm:$0xff] }
  0xd6   : > { %1080 = vst [vmem:[%s7263_s12 + $0xc40] sm:$0xff] %v1079_v8  ;;  %v1083_v10 = vld [vmem:[%s7258_s11 + $0x18a0] sm:$0xff]  ;;  %v1085_v11 = vld [vmem:[%s7258_s11 + $0x18a8] sm:$0xff]  ;;  %1082 = vst [vmem:[%s7263_s12 + $0xc48] sm:$0xff] %v1081_v9 }
  0xd7   : > { %1084 = vst [vmem:[%s7263_s12 + $0xc50] sm:$0xff] %v1083_v10  ;;  %1086 = vst [vmem:[%s7263_s12 + $0xc58] sm:$0xff] %v1085_v11  ;;  %v1087_v12 = vld [vmem:[%s7258_s11 + $0x18c0] sm:$0xff]  ;;  %v1089_v13 = vld [vmem:[%s7258_s11 + $0x18c8] sm:$0xff] }
  0xd8   : > { %v1091_v14 = vld [vmem:[%s7258_s11 + $0x18e0] sm:$0xff]  ;;  %1088 = vst [vmem:[%s7263_s12 + $0xc60] sm:$0xff] %v1087_v12  ;;  %1090 = vst [vmem:[%s7263_s12 + $0xc68] sm:$0xff] %v1089_v13  ;;  %v1093_v15 = vld [vmem:[%s7258_s11 + $0x18e8] sm:$0xff] }
  0xd9   : > { %1092 = vst [vmem:[%s7263_s12 + $0xc70] sm:$0xff] %v1091_v14  ;;  %v1095_v16 = vld [vmem:[%s7258_s11 + $0x1900] sm:$0xff]  ;;  %v1097_v17 = vld [vmem:[%s7258_s11 + $0x1908] sm:$0xff]  ;;  %1094 = vst [vmem:[%s7263_s12 + $0xc78] sm:$0xff] %v1093_v15 }
  0xda   : > { %1096 = vst [vmem:[%s7263_s12 + $0xc80] sm:$0xff] %v1095_v16  ;;  %1098 = vst [vmem:[%s7263_s12 + $0xc88] sm:$0xff] %v1097_v17  ;;  %v1099_v18 = vld [vmem:[%s7258_s11 + $0x1920] sm:$0xff]  ;;  %v1101_v19 = vld [vmem:[%s7258_s11 + $0x1928] sm:$0xff] }
  0xdb   : > { %v1103_v20 = vld [vmem:[%s7258_s11 + $0x1940] sm:$0xff]  ;;  %1100 = vst [vmem:[%s7263_s12 + $0xc90] sm:$0xff] %v1099_v18  ;;  %1102 = vst [vmem:[%s7263_s12 + $0xc98] sm:$0xff] %v1101_v19  ;;  %v1105_v21 = vld [vmem:[%s7258_s11 + $0x1948] sm:$0xff] }
  0xdc   : > { %1104 = vst [vmem:[%s7263_s12 + $0xca0] sm:$0xff] %v1103_v20  ;;  %v1107_v22 = vld [vmem:[%s7258_s11 + $0x1960] sm:$0xff]  ;;  %v1109_v23 = vld [vmem:[%s7258_s11 + $0x1968] sm:$0xff]  ;;  %1106 = vst [vmem:[%s7263_s12 + $0xca8] sm:$0xff] %v1105_v21 }
  0xdd   : > { %1108 = vst [vmem:[%s7263_s12 + $0xcb0] sm:$0xff] %v1107_v22  ;;  %1110 = vst [vmem:[%s7263_s12 + $0xcb8] sm:$0xff] %v1109_v23  ;;  %v1111_v24 = vld [vmem:[%s7258_s11 + $0x1980] sm:$0xff]  ;;  %v1113_v25 = vld [vmem:[%s7258_s11 + $0x1988] sm:$0xff] }
  0xde   : > { %v1115_v26 = vld [vmem:[%s7258_s11 + $0x19a0] sm:$0xff]  ;;  %1112 = vst [vmem:[%s7263_s12 + $0xcc0] sm:$0xff] %v1111_v24  ;;  %1114 = vst [vmem:[%s7263_s12 + $0xcc8] sm:$0xff] %v1113_v25  ;;  %v1117_v27 = vld [vmem:[%s7258_s11 + $0x19a8] sm:$0xff] }
  0xdf   : > { %1116 = vst [vmem:[%s7263_s12 + $0xcd0] sm:$0xff] %v1115_v26  ;;  %v1119_v28 = vld [vmem:[%s7258_s11 + $0x19c0] sm:$0xff]  ;;  %v1121_v29 = vld [vmem:[%s7258_s11 + $0x19c8] sm:$0xff]  ;;  %1118 = vst [vmem:[%s7263_s12 + $0xcd8] sm:$0xff] %v1117_v27 }
  0xe0   : > { %1120 = vst [vmem:[%s7263_s12 + $0xce0] sm:$0xff] %v1119_v28  ;;  %1122 = vst [vmem:[%s7263_s12 + $0xce8] sm:$0xff] %v1121_v29  ;;  %v1123_v30 = vld [vmem:[%s7258_s11 + $0x19e0] sm:$0xff]  ;;  %v1125_v31 = vld [vmem:[%s7258_s11 + $0x19e8] sm:$0xff] }
  0xe1   : > { %v1127_v32 = vld [vmem:[%s7258_s11 + $0x1a00] sm:$0xff]  ;;  %1124 = vst [vmem:[%s7263_s12 + $0xcf0] sm:$0xff] %v1123_v30  ;;  %1126 = vst [vmem:[%s7263_s12 + $0xcf8] sm:$0xff] %v1125_v31  ;;  %v1129_v33 = vld [vmem:[%s7258_s11 + $0x1a08] sm:$0xff] }
  0xe2   : > { %1128 = vst [vmem:[%s7263_s12 + $0xd00] sm:$0xff] %v1127_v32  ;;  %v1131_v34 = vld [vmem:[%s7258_s11 + $0x1a20] sm:$0xff]  ;;  %v1133_v35 = vld [vmem:[%s7258_s11 + $0x1a28] sm:$0xff]  ;;  %1130 = vst [vmem:[%s7263_s12 + $0xd08] sm:$0xff] %v1129_v33 }
  0xe3   : > { %1132 = vst [vmem:[%s7263_s12 + $0xd10] sm:$0xff] %v1131_v34  ;;  %1134 = vst [vmem:[%s7263_s12 + $0xd18] sm:$0xff] %v1133_v35  ;;  %v1135_v36 = vld [vmem:[%s7258_s11 + $0x1a40] sm:$0xff]  ;;  %v1137_v37 = vld [vmem:[%s7258_s11 + $0x1a48] sm:$0xff] }
  0xe4   : > { %v1139_v38 = vld [vmem:[%s7258_s11 + $0x1a60] sm:$0xff]  ;;  %1136 = vst [vmem:[%s7263_s12 + $0xd20] sm:$0xff] %v1135_v36  ;;  %1138 = vst [vmem:[%s7263_s12 + $0xd28] sm:$0xff] %v1137_v37  ;;  %v1141_v39 = vld [vmem:[%s7258_s11 + $0x1a68] sm:$0xff] }
  0xe5   : > { %1140 = vst [vmem:[%s7263_s12 + $0xd30] sm:$0xff] %v1139_v38  ;;  %v1143_v40 = vld [vmem:[%s7258_s11 + $0x1a80] sm:$0xff]  ;;  %v1145_v41 = vld [vmem:[%s7258_s11 + $0x1a88] sm:$0xff]  ;;  %1142 = vst [vmem:[%s7263_s12 + $0xd38] sm:$0xff] %v1141_v39 }
  0xe6   : > { %1144 = vst [vmem:[%s7263_s12 + $0xd40] sm:$0xff] %v1143_v40  ;;  %1146 = vst [vmem:[%s7263_s12 + $0xd48] sm:$0xff] %v1145_v41  ;;  %v1147_v42 = vld [vmem:[%s7258_s11 + $0x1aa0] sm:$0xff]  ;;  %v1149_v43 = vld [vmem:[%s7258_s11 + $0x1aa8] sm:$0xff] }
  0xe7   : > { %v1151_v44 = vld [vmem:[%s7258_s11 + $0x1ac0] sm:$0xff]  ;;  %1148 = vst [vmem:[%s7263_s12 + $0xd50] sm:$0xff] %v1147_v42  ;;  %1150 = vst [vmem:[%s7263_s12 + $0xd58] sm:$0xff] %v1149_v43  ;;  %v1153_v45 = vld [vmem:[%s7258_s11 + $0x1ac8] sm:$0xff] }
  0xe8   : > { %1152 = vst [vmem:[%s7263_s12 + $0xd60] sm:$0xff] %v1151_v44  ;;  %v1155_v46 = vld [vmem:[%s7258_s11 + $0x1ae0] sm:$0xff]  ;;  %v1157_v47 = vld [vmem:[%s7258_s11 + $0x1ae8] sm:$0xff]  ;;  %1154 = vst [vmem:[%s7263_s12 + $0xd68] sm:$0xff] %v1153_v45 }
  0xe9   : > { %1156 = vst [vmem:[%s7263_s12 + $0xd70] sm:$0xff] %v1155_v46  ;;  %1158 = vst [vmem:[%s7263_s12 + $0xd78] sm:$0xff] %v1157_v47  ;;  %v1159_v48 = vld [vmem:[%s7258_s11 + $0x1b00] sm:$0xff]  ;;  %v1161_v49 = vld [vmem:[%s7258_s11 + $0x1b08] sm:$0xff] }
  0xea   : > { %v1163_v50 = vld [vmem:[%s7258_s11 + $0x1b20] sm:$0xff]  ;;  %1160 = vst [vmem:[%s7263_s12 + $0xd80] sm:$0xff] %v1159_v48  ;;  %1162 = vst [vmem:[%s7263_s12 + $0xd88] sm:$0xff] %v1161_v49  ;;  %v1165_v51 = vld [vmem:[%s7258_s11 + $0x1b28] sm:$0xff] }
  0xeb   : > { %1164 = vst [vmem:[%s7263_s12 + $0xd90] sm:$0xff] %v1163_v50  ;;  %v1167_v52 = vld [vmem:[%s7258_s11 + $0x1b40] sm:$0xff]  ;;  %v1169_v53 = vld [vmem:[%s7258_s11 + $0x1b48] sm:$0xff]  ;;  %1166 = vst [vmem:[%s7263_s12 + $0xd98] sm:$0xff] %v1165_v51 }
  0xec   : > { %1168 = vst [vmem:[%s7263_s12 + $0xda0] sm:$0xff] %v1167_v52  ;;  %1170 = vst [vmem:[%s7263_s12 + $0xda8] sm:$0xff] %v1169_v53  ;;  %v1171_v54 = vld [vmem:[%s7258_s11 + $0x1b60] sm:$0xff]  ;;  %v1173_v55 = vld [vmem:[%s7258_s11 + $0x1b68] sm:$0xff] }
  0xed   : > { %v1175_v56 = vld [vmem:[%s7258_s11 + $0x1b80] sm:$0xff]  ;;  %1172 = vst [vmem:[%s7263_s12 + $0xdb0] sm:$0xff] %v1171_v54  ;;  %1174 = vst [vmem:[%s7263_s12 + $0xdb8] sm:$0xff] %v1173_v55  ;;  %v1177_v57 = vld [vmem:[%s7258_s11 + $0x1b88] sm:$0xff] }
  0xee   : > { %1176 = vst [vmem:[%s7263_s12 + $0xdc0] sm:$0xff] %v1175_v56  ;;  %v1179_v58 = vld [vmem:[%s7258_s11 + $0x1ba0] sm:$0xff]  ;;  %v1181_v59 = vld [vmem:[%s7258_s11 + $0x1ba8] sm:$0xff]  ;;  %1178 = vst [vmem:[%s7263_s12 + $0xdc8] sm:$0xff] %v1177_v57 }
  0xef   : > { %1180 = vst [vmem:[%s7263_s12 + $0xdd0] sm:$0xff] %v1179_v58  ;;  %1182 = vst [vmem:[%s7263_s12 + $0xdd8] sm:$0xff] %v1181_v59  ;;  %v1183_v60 = vld [vmem:[%s7258_s11 + $0x1bc0] sm:$0xff]  ;;  %v1185_v61 = vld [vmem:[%s7258_s11 + $0x1bc8] sm:$0xff] }
  0xf0   : > { %v1187_v62 = vld [vmem:[%s7258_s11 + $0x1be0] sm:$0xff]  ;;  %1184 = vst [vmem:[%s7263_s12 + $0xde0] sm:$0xff] %v1183_v60  ;;  %1186 = vst [vmem:[%s7263_s12 + $0xde8] sm:$0xff] %v1185_v61  ;;  %v1189_v63 = vld [vmem:[%s7258_s11 + $0x1be8] sm:$0xff] }
  0xf1   : > { %1188 = vst [vmem:[%s7263_s12 + $0xdf0] sm:$0xff] %v1187_v62  ;;  %v1191_v0 = vld [vmem:[%s7258_s11 + $0x1c00] sm:$0xff]  ;;  %v1193_v1 = vld [vmem:[%s7258_s11 + $0x1c08] sm:$0xff]  ;;  %1190 = vst [vmem:[%s7263_s12 + $0xdf8] sm:$0xff] %v1189_v63 }
  0xf2   : > { %1192 = vst [vmem:[%s7263_s12 + $0xe00] sm:$0xff] %v1191_v0  ;;  %1194 = vst [vmem:[%s7263_s12 + $0xe08] sm:$0xff] %v1193_v1  ;;  %v1195_v2 = vld [vmem:[%s7258_s11 + $0x1c20] sm:$0xff]  ;;  %v1197_v3 = vld [vmem:[%s7258_s11 + $0x1c28] sm:$0xff] }
  0xf3   : > { %v1199_v4 = vld [vmem:[%s7258_s11 + $0x1c40] sm:$0xff]  ;;  %1196 = vst [vmem:[%s7263_s12 + $0xe10] sm:$0xff] %v1195_v2  ;;  %1198 = vst [vmem:[%s7263_s12 + $0xe18] sm:$0xff] %v1197_v3  ;;  %v1201_v5 = vld [vmem:[%s7258_s11 + $0x1c48] sm:$0xff] }
  0xf4   : > { %1200 = vst [vmem:[%s7263_s12 + $0xe20] sm:$0xff] %v1199_v4  ;;  %v1203_v6 = vld [vmem:[%s7258_s11 + $0x1c60] sm:$0xff]  ;;  %v1205_v7 = vld [vmem:[%s7258_s11 + $0x1c68] sm:$0xff]  ;;  %1202 = vst [vmem:[%s7263_s12 + $0xe28] sm:$0xff] %v1201_v5 }
  0xf5   : > { %1204 = vst [vmem:[%s7263_s12 + $0xe30] sm:$0xff] %v1203_v6  ;;  %1206 = vst [vmem:[%s7263_s12 + $0xe38] sm:$0xff] %v1205_v7  ;;  %v1207_v8 = vld [vmem:[%s7258_s11 + $0x1c80] sm:$0xff]  ;;  %v1209_v9 = vld [vmem:[%s7258_s11 + $0x1c88] sm:$0xff] }
  0xf6   : > { %v1211_v10 = vld [vmem:[%s7258_s11 + $0x1ca0] sm:$0xff]  ;;  %1208 = vst [vmem:[%s7263_s12 + $0xe40] sm:$0xff] %v1207_v8  ;;  %1210 = vst [vmem:[%s7263_s12 + $0xe48] sm:$0xff] %v1209_v9  ;;  %v1213_v11 = vld [vmem:[%s7258_s11 + $0x1ca8] sm:$0xff] }
  0xf7   : > { %1212 = vst [vmem:[%s7263_s12 + $0xe50] sm:$0xff] %v1211_v10  ;;  %v1215_v12 = vld [vmem:[%s7258_s11 + $0x1cc0] sm:$0xff]  ;;  %v1217_v13 = vld [vmem:[%s7258_s11 + $0x1cc8] sm:$0xff]  ;;  %1214 = vst [vmem:[%s7263_s12 + $0xe58] sm:$0xff] %v1213_v11 }
  0xf8   : > { %1216 = vst [vmem:[%s7263_s12 + $0xe60] sm:$0xff] %v1215_v12  ;;  %1218 = vst [vmem:[%s7263_s12 + $0xe68] sm:$0xff] %v1217_v13  ;;  %v1219_v14 = vld [vmem:[%s7258_s11 + $0x1ce0] sm:$0xff]  ;;  %v1221_v15 = vld [vmem:[%s7258_s11 + $0x1ce8] sm:$0xff] }
  0xf9   : > { %v1223_v16 = vld [vmem:[%s7258_s11 + $0x1d00] sm:$0xff]  ;;  %1220 = vst [vmem:[%s7263_s12 + $0xe70] sm:$0xff] %v1219_v14  ;;  %1222 = vst [vmem:[%s7263_s12 + $0xe78] sm:$0xff] %v1221_v15  ;;  %v1225_v17 = vld [vmem:[%s7258_s11 + $0x1d08] sm:$0xff] }
  0xfa   : > { %1224 = vst [vmem:[%s7263_s12 + $0xe80] sm:$0xff] %v1223_v16  ;;  %v1227_v18 = vld [vmem:[%s7258_s11 + $0x1d20] sm:$0xff]  ;;  %v1229_v19 = vld [vmem:[%s7258_s11 + $0x1d28] sm:$0xff]  ;;  %1226 = vst [vmem:[%s7263_s12 + $0xe88] sm:$0xff] %v1225_v17 }
  0xfb   : > { %1228 = vst [vmem:[%s7263_s12 + $0xe90] sm:$0xff] %v1227_v18  ;;  %1230 = vst [vmem:[%s7263_s12 + $0xe98] sm:$0xff] %v1229_v19  ;;  %v1231_v20 = vld [vmem:[%s7258_s11 + $0x1d40] sm:$0xff]  ;;  %v1233_v21 = vld [vmem:[%s7258_s11 + $0x1d48] sm:$0xff] }
  0xfc   : > { %v1235_v22 = vld [vmem:[%s7258_s11 + $0x1d60] sm:$0xff]  ;;  %1232 = vst [vmem:[%s7263_s12 + $0xea0] sm:$0xff] %v1231_v20  ;;  %1234 = vst [vmem:[%s7263_s12 + $0xea8] sm:$0xff] %v1233_v21  ;;  %v1237_v23 = vld [vmem:[%s7258_s11 + $0x1d68] sm:$0xff] }
  0xfd   : > { %1236 = vst [vmem:[%s7263_s12 + $0xeb0] sm:$0xff] %v1235_v22  ;;  %v1239_v24 = vld [vmem:[%s7258_s11 + $0x1d80] sm:$0xff]  ;;  %v1241_v25 = vld [vmem:[%s7258_s11 + $0x1d88] sm:$0xff]  ;;  %1238 = vst [vmem:[%s7263_s12 + $0xeb8] sm:$0xff] %v1237_v23 }
  0xfe   : > { %1240 = vst [vmem:[%s7263_s12 + $0xec0] sm:$0xff] %v1239_v24  ;;  %1242 = vst [vmem:[%s7263_s12 + $0xec8] sm:$0xff] %v1241_v25  ;;  %v1243_v26 = vld [vmem:[%s7258_s11 + $0x1da0] sm:$0xff]  ;;  %v1245_v27 = vld [vmem:[%s7258_s11 + $0x1da8] sm:$0xff] }
  0xff   : > { %v1247_v28 = vld [vmem:[%s7258_s11 + $0x1dc0] sm:$0xff]  ;;  %1244 = vst [vmem:[%s7263_s12 + $0xed0] sm:$0xff] %v1243_v26  ;;  %1246 = vst [vmem:[%s7263_s12 + $0xed8] sm:$0xff] %v1245_v27  ;;  %v1249_v29 = vld [vmem:[%s7258_s11 + $0x1dc8] sm:$0xff] }
 0x100   : > { %1248 = vst [vmem:[%s7263_s12 + $0xee0] sm:$0xff] %v1247_v28  ;;  %v1251_v30 = vld [vmem:[%s7258_s11 + $0x1de0] sm:$0xff]  ;;  %v1253_v31 = vld [vmem:[%s7258_s11 + $0x1de8] sm:$0xff]  ;;  %1250 = vst [vmem:[%s7263_s12 + $0xee8] sm:$0xff] %v1249_v29 }
 0x101   : > { %1252 = vst [vmem:[%s7263_s12 + $0xef0] sm:$0xff] %v1251_v30  ;;  %1254 = vst [vmem:[%s7263_s12 + $0xef8] sm:$0xff] %v1253_v31  ;;  %v1255_v32 = vld [vmem:[%s7258_s11 + $0x1e00] sm:$0xff]  ;;  %v1257_v33 = vld [vmem:[%s7258_s11 + $0x1e08] sm:$0xff] }
 0x102   : > { %v1259_v34 = vld [vmem:[%s7258_s11 + $0x1e20] sm:$0xff]  ;;  %1256 = vst [vmem:[%s7263_s12 + $0xf00] sm:$0xff] %v1255_v32  ;;  %1258 = vst [vmem:[%s7263_s12 + $0xf08] sm:$0xff] %v1257_v33  ;;  %v1261_v35 = vld [vmem:[%s7258_s11 + $0x1e28] sm:$0xff] }
 0x103   : > { %1260 = vst [vmem:[%s7263_s12 + $0xf10] sm:$0xff] %v1259_v34  ;;  %v1263_v36 = vld [vmem:[%s7258_s11 + $0x1e40] sm:$0xff]  ;;  %v1265_v37 = vld [vmem:[%s7258_s11 + $0x1e48] sm:$0xff]  ;;  %1262 = vst [vmem:[%s7263_s12 + $0xf18] sm:$0xff] %v1261_v35 }
 0x104   : > { %1264 = vst [vmem:[%s7263_s12 + $0xf20] sm:$0xff] %v1263_v36  ;;  %1266 = vst [vmem:[%s7263_s12 + $0xf28] sm:$0xff] %v1265_v37  ;;  %v1267_v38 = vld [vmem:[%s7258_s11 + $0x1e60] sm:$0xff]  ;;  %v1269_v39 = vld [vmem:[%s7258_s11 + $0x1e68] sm:$0xff] }
 0x105   : > { %v1271_v40 = vld [vmem:[%s7258_s11 + $0x1e80] sm:$0xff]  ;;  %1268 = vst [vmem:[%s7263_s12 + $0xf30] sm:$0xff] %v1267_v38  ;;  %1270 = vst [vmem:[%s7263_s12 + $0xf38] sm:$0xff] %v1269_v39  ;;  %v1273_v41 = vld [vmem:[%s7258_s11 + $0x1e88] sm:$0xff] }
 0x106   : > { %1272 = vst [vmem:[%s7263_s12 + $0xf40] sm:$0xff] %v1271_v40  ;;  %v1275_v42 = vld [vmem:[%s7258_s11 + $0x1ea0] sm:$0xff]  ;;  %v1277_v43 = vld [vmem:[%s7258_s11 + $0x1ea8] sm:$0xff]  ;;  %1274 = vst [vmem:[%s7263_s12 + $0xf48] sm:$0xff] %v1273_v41 }
 0x107   : > { %1276 = vst [vmem:[%s7263_s12 + $0xf50] sm:$0xff] %v1275_v42  ;;  %1278 = vst [vmem:[%s7263_s12 + $0xf58] sm:$0xff] %v1277_v43  ;;  %v1279_v44 = vld [vmem:[%s7258_s11 + $0x1ec0] sm:$0xff]  ;;  %v1281_v45 = vld [vmem:[%s7258_s11 + $0x1ec8] sm:$0xff] }
 0x108   : > { %v1283_v46 = vld [vmem:[%s7258_s11 + $0x1ee0] sm:$0xff]  ;;  %1280 = vst [vmem:[%s7263_s12 + $0xf60] sm:$0xff] %v1279_v44  ;;  %1282 = vst [vmem:[%s7263_s12 + $0xf68] sm:$0xff] %v1281_v45  ;;  %v1285_v47 = vld [vmem:[%s7258_s11 + $0x1ee8] sm:$0xff] }
 0x109   : > { %1284 = vst [vmem:[%s7263_s12 + $0xf70] sm:$0xff] %v1283_v46  ;;  %v1287_v48 = vld [vmem:[%s7258_s11 + $0x1f00] sm:$0xff]  ;;  %v1289_v49 = vld [vmem:[%s7258_s11 + $0x1f08] sm:$0xff]  ;;  %1286 = vst [vmem:[%s7263_s12 + $0xf78] sm:$0xff] %v1285_v47 }
 0x10a   : > { %1288 = vst [vmem:[%s7263_s12 + $0xf80] sm:$0xff] %v1287_v48  ;;  %1290 = vst [vmem:[%s7263_s12 + $0xf88] sm:$0xff] %v1289_v49  ;;  %v1291_v50 = vld [vmem:[%s7258_s11 + $0x1f20] sm:$0xff]  ;;  %v1293_v51 = vld [vmem:[%s7258_s11 + $0x1f28] sm:$0xff] }
 0x10b   : > { %v1295_v52 = vld [vmem:[%s7258_s11 + $0x1f40] sm:$0xff]  ;;  %1292 = vst [vmem:[%s7263_s12 + $0xf90] sm:$0xff] %v1291_v50  ;;  %1294 = vst [vmem:[%s7263_s12 + $0xf98] sm:$0xff] %v1293_v51  ;;  %v1297_v53 = vld [vmem:[%s7258_s11 + $0x1f48] sm:$0xff] }
 0x10c   : > { %1296 = vst [vmem:[%s7263_s12 + $0xfa0] sm:$0xff] %v1295_v52  ;;  %v1299_v54 = vld [vmem:[%s7258_s11 + $0x1f60] sm:$0xff]  ;;  %v1301_v55 = vld [vmem:[%s7258_s11 + $0x1f68] sm:$0xff]  ;;  %1298 = vst [vmem:[%s7263_s12 + $0xfa8] sm:$0xff] %v1297_v53 }
 0x10d   : > { %1300 = vst [vmem:[%s7263_s12 + $0xfb0] sm:$0xff] %v1299_v54  ;;  %1302 = vst [vmem:[%s7263_s12 + $0xfb8] sm:$0xff] %v1301_v55  ;;  %v1303_v56 = vld [vmem:[%s7258_s11 + $0x1f80] sm:$0xff]  ;;  %v1305_v57 = vld [vmem:[%s7258_s11 + $0x1f88] sm:$0xff] }
 0x10e   : > { %v1307_v58 = vld [vmem:[%s7258_s11 + $0x1fa0] sm:$0xff]  ;;  %1304 = vst [vmem:[%s7263_s12 + $0xfc0] sm:$0xff] %v1303_v56  ;;  %1306 = vst [vmem:[%s7263_s12 + $0xfc8] sm:$0xff] %v1305_v57  ;;  %v1309_v59 = vld [vmem:[%s7258_s11 + $0x1fa8] sm:$0xff] }
 0x10f   : > { %1308 = vst [vmem:[%s7263_s12 + $0xfd0] sm:$0xff] %v1307_v58  ;;  %v1311_v60 = vld [vmem:[%s7258_s11 + $0x1fc0] sm:$0xff]  ;;  %v1313_v61 = vld [vmem:[%s7258_s11 + $0x1fc8] sm:$0xff]  ;;  %1310 = vst [vmem:[%s7263_s12 + $0xfd8] sm:$0xff] %v1309_v59 }
 0x110   : > { %1312 = vst [vmem:[%s7263_s12 + $0xfe0] sm:$0xff] %v1311_v60  ;;  %1314 = vst [vmem:[%s7263_s12 + $0xfe8] sm:$0xff] %v1313_v61  ;;  %v1315_v62 = vld [vmem:[%s7258_s11 + $0x1fe0] sm:$0xff]  ;;  %v1317_v63 = vld [vmem:[%s7258_s11 + $0x1fe8] sm:$0xff] }
 0x111   : > { %1316 = vst [vmem:[%s7263_s12 + $0xff0] sm:$0xff] %v1315_v62  ;;  %1318 = vst [vmem:[%s7263_s12 + $0xff8] sm:$0xff] %v1317_v63 }
 0x112 PF: > { %p5808_p6 = scmp.ge.s32.totalorder %s7177_s25, 1  ;;  %p1331_p7 = scmp.lt.s32.totalorder %s7177_s25, 3 }
 0x114   : > { %p1332_p8 = pnand %p5808_p6, %p1331_p7 }
 0x115   : > { %s1338_s13 = sand.u32 (!%p1332_p8), 1, %s7161_s21   ;;  %v1484_v0 = vlaneseq (!%p1332_p8)  ;;  %v8292_v1 = vld [vmem:[%s9124_s0] sm:$0xff] (!%p1332_p8)  ;;  %v8297_v2 = vld [vmem:[%s9124_s0 + $0x8] sm:$0xff] (!%p1332_p8)  ;;  %v8335_v18 = vld [vmem:[%s9124_s0 + $0x10] sm:$0xff] (!%p1332_p8)  ;;  %s5810_s27 = sshll.u32 (!%p1332_p8), %s7169_s23, 2 }
 0x116   : > { %1335 = sbr.rel (%p1332_p8) target bundleno = 1034 (0x40a), region = 59  ;;  %s5809_s14 = sshll.u32 (!%p1332_p8), %s1338_s13, 12  ;;  %v8302_v3 = vld [vmem:[%s9125_s1] sm:$0xff] (!%p1332_p8)  ;;  %v1465_v8 = vunpack.c.h.bf16 (!%p1332_p8), %v8292_v1  ;;  %v1467_v10 = vunpack.c.h.bf16 (!%p1332_p8), %v8297_v2  ;;  %v8344_v22 = vld [vmem:[%s9124_s0 + $0x18] sm:$0xff] (!%p1332_p8)  ;;  %v1468_v34 = vunpack.c.l.bf16 (!%p1332_p8), %v8335_v18 }
 0x117   : > { %v8304_v4 = vshrl.u32 (!%p1332_p8), %v1484_v0, 7  ;;  %v8309_v5 = vld [vmem:[%s9126_s2] sm:$0xff] (!%p1332_p8)  ;;  %s8311_s28 = scalar_lea.vmem (!%p1332_p8), [#allocation3], %s5809_s14  ;;  %v1470_v37 = vunpack.c.l.bf16 (!%p1332_p8), %v8344_v22  ;;  %p1424_p9 = scmp.lt.s32.totalorder (!%p1332_p8), %s5810_s27, 7 }
 0x118   : > { %v6371_v6 = vld [vmem:[%s8311_s28 + $0x4] ss:$16 sps:$4 sm:$0xff] (!%p1332_p8)   ;;  %v6375_v12 = vld [vmem:[%s8311_s28] ss:$16 sps:$4 sm:$0xff] (!%p1332_p8)  }
 0x119   : > { %v6373_v7 = vld [vmem:[%s8311_s28 + $0x204] ss:$16 sps:$4 sm:$0xff] (!%p1332_p8)   ;;  %v8317_v9 = vsub.s32 (!%p1332_p8), 1, %v8304_v4  ;;  %v8321_v11 = vsub.s32 (!%p1332_p8), 3, %v8304_v4  ;;  %4820 = vmatprep.subr.bf16.mxu0 (!%p1332_p8), %v6371_v6  ;;  %v6376_v13 = vld [vmem:[%s8311_s28 + $0x200] ss:$16 sps:$4 sm:$0xff] (!%p1332_p8)  }
 0x11a   : > { %4861 = vmatprep.subr.bf16.mxu1 (!%p1332_p8), %v6373_v7  ;;  %v6377_v14 = vld [vmem:[%s8311_s28 + $0x24] ss:$16 sps:$4 sm:$0xff] (!%p1332_p8)   ;;  %4821 = vmatpush1.bf16.msra.mxu0 (!%p1332_p8), %v6375_v12  ;;  %v6381_v20 = vld [vmem:[%s8311_s28 + $0x20] ss:$16 sps:$4 sm:$0xff] (!%p1332_p8)   ;;  %v8349_v27 = vsub.s32 (!%p1332_p8), 4, %v8304_v4  ;;  %v8357_v35 = vsub.s32 (!%p1332_p8), 6, %v8304_v4 }
 0x11b   : > { %v1491_v15 = vrot.slane (!%p1332_p8), %v8302_v3, %v8317_v9  ;;  %v1591_v16 = vrot.slane (!%p1332_p8), %v8309_v5, %v8317_v9  ;;  %v1499_v17 = vrot.slane (!%p1332_p8), %v8302_v3, %v8321_v11  ;;  %4862 = vmatpush1.bf16.msra.mxu1 (!%p1332_p8), %v6376_v13  ;;  %v6379_v19 = vld [vmem:[%s8311_s28 + $0x224] ss:$16 sps:$4 sm:$0xff] (!%p1332_p8)   ;;  %v1599_v21 = vrot.slane (!%p1332_p8), %v8309_v5, %v8321_v11  ;;  %v6382_v23 = vld [vmem:[%s8311_s28 + $0x220] ss:$16 sps:$4 sm:$0xff] (!%p1332_p8)  }
 0x11c   : > { %4822 = vmatprep.subr.bf16.mxu0 (!%p1332_p8), %v6377_v14  ;;  %4863 = vmatprep.subr.bf16.mxu1 (!%p1332_p8), %v6379_v19  ;;  %v6383_v26 = vld [vmem:[%s8311_s28 + $0x44] ss:$16 sps:$4 sm:$0xff] (!%p1332_p8)   ;;  %v6387_v29 = vld [vmem:[%s8311_s28 + $0x40] ss:$16 sps:$4 sm:$0xff] (!%p1332_p8)   ;;  %v1503_v38 = vrot.slane (!%p1332_p8), %v8302_v3, %v8349_v27  ;;  %v1603_v41 = vrot.slane (!%p1332_p8), %v8309_v5, %v8349_v27  ;;  %v1511_v42 = vrot.slane (!%p1332_p8), %v8302_v3, %v8357_v35 }
 0x11d   : > { %v1565_v24 = vmul.f32 %v1491_v15, %v1465_v8  ;;  %v1567_v25 = vmul.f32 %v1499_v17, %v1467_v10  ;;  %v6385_v28 = vld [vmem:[%s8311_s28 + $0x244] ss:$16 sps:$4 sm:$0xff]   ;;  %v6388_v30 = vld [vmem:[%s8311_s28 + $0x240] ss:$16 sps:$4 sm:$0xff]   ;;  %v1611_v46 = vrot.slane %v8309_v5, %v8357_v35  ;;  %s9138_s27 = smov (!%p1424_p9, %s5810_s27), 7 }
 0x11e   : > { %4823 = vmatpush1.bf16.msra.mxu0 %v6381_v20  ;;  %v6389_v32 = vld [vmem:[%s8311_s28 + $0x64] ss:$16 sps:$4 sm:$0xff]   ;;  %v6393_v39 = vld [vmem:[%s8311_s28 + $0x60] ss:$16 sps:$4 sm:$0xff]   ;;  %v1568_v45 = vmul.f32 %v1503_v38, %v1468_v34  ;;  %v1570_v50 = vmul.f32 %v1511_v42, %v1470_v37  ;;  %v8422_v34 = vsub.s32 5, %v8304_v4  ;;  %v1469_v42 = vunpack.c.h.bf16 %v8335_v18  ;;  %s1426_s7 = scalar_lea.vmem %s9128_s4, %s9138_s27  ;;  %s5812_s8 = sshll.u32 %s9138_s27, 3 }
 0x11f   : > { %v1665_v31 = vadd.f32 %v1591_v16, %v1565_v24  ;;  %4864 = vmatpush1.bf16.msra.mxu1 %v6382_v23  ;;  %v1667_v33 = vadd.f32 %v1599_v21, %v1567_v25  ;;  %4824 = vmatprep.subr.bf16.mxu0 %v6383_v26  ;;  %v6391_v36 = vld [vmem:[%s8311_s28 + $0x264] ss:$16 sps:$4 sm:$0xff]   ;;  %v6394_v43 = vld [vmem:[%s8311_s28 + $0x260] ss:$16 sps:$4 sm:$0xff]   ;;  %v8409_v25 = vsub.s32 0, %v8304_v4  ;;  %s9045_s11 = scalar_lea.vmem %s9129_s5, %s5812_s8 }
 0x120   : > { %4865 = vmatprep.subr.bf16.mxu1 %v6385_v28  ;;  %v6395_v44 = vld [vmem:[%s8311_s28 + $0x84] ss:$16 sps:$4 sm:$0xff]   ;;  %v8376_v52 = vadd.f32 %v1603_v41, %v1568_v45  ;;  %v6399_v53 = vld [vmem:[%s8311_s28 + $0x80] ss:$16 sps:$4 sm:$0xff]   ;;  %v8380_v56 = vadd.f32 %v1611_v46, %v1570_v50  ;;  %v1507_v46 = vrot.slane %v8302_v3, %v8422_v34 }
 0x121   : > { %vm1681_vm0 = vcmp.ge.f32.partialorder %v1665_v31, 0.0  ;;  %v1697_v40 = vmul.f32 0.2, %v1665_v31  ;;  %vm1683_vm1 = vcmp.ge.f32.partialorder %v1667_v33, 0.0  ;;  %v6397_v47 = vld [vmem:[%s8311_s28 + $0x284] ss:$16 sps:$4 sm:$0xff]   ;;  %v1587_v45 = vrot.slane %v8309_v5, %v8409_v25 }
 0x122   : > { %4825 = vmatpush1.bf16.msra.mxu0 %v6387_v29  ;;  %v1699_v49 = vmul.f32 0.2, %v1667_v33  ;;  %v6400_v54 = vld [vmem:[%s8311_s28 + $0x280] ss:$16 sps:$4 sm:$0xff]   ;;  %v6401_v57 = vld [vmem:[%s8311_s28 + $0xa4] ss:$16 sps:$4 sm:$0xff]  }
 0x123   : > { %4866 = vmatpush1.bf16.msra.mxu1 %v6388_v30  ;;  %4826 = vmatprep.subr.bf16.mxu0 %v6389_v32  ;;  %v1713_v48 = vsel %vm1681_vm0, %v1665_v31, %v1697_v40  ;;  %v6403_v59 = vld [vmem:[%s8311_s28 + $0x2a4] ss:$16 sps:$4 sm:$0xff]   ;;  %v6405_v60 = vld [vmem:[%s8311_s28 + $0xa0] ss:$16 sps:$4 sm:$0xff]   ;;  %v8415_v30 = vsub.s32 2, %v8304_v4  ;;  %v1464_v32 = vunpack.c.l.bf16 %v8292_v1  ;;  %v1466_v40 = vunpack.c.l.bf16 %v8297_v2 }
 0x124   : > { %4867 = vmatprep.subr.bf16.mxu1 %v6391_v36  ;;  %v8374_v51 = vpack.c.bf16 %v1713_v48, %v1713_v48  ;;  %v1715_v55 = vsel %vm1683_vm1, %v1667_v33, %v1699_v49  ;;  %v6406_v61 = vld [vmem:[%s8311_s28 + $0x2a0] ss:$16 sps:$4 sm:$0xff]   ;;  %v6407_v62 = vld [vmem:[%s8311_s28 + $0xc4] ss:$16 sps:$4 sm:$0xff]   ;;  %v1487_v33 = vrot.slane %v8302_v3, %v8409_v25  ;;  %v8425_v36 = vsub.s32 7, %v8304_v4 }
 0x125   : > { %v8383_v58 = vpack.c.bf16 %v1715_v55, %v1715_v55  ;;  %v6409_v63 = vld [vmem:[%s8311_s28 + $0x2c4] ss:$16 sps:$4 sm:$0xff]   ;;  %v6411_v0 = vld [vmem:[%s8311_s28 + $0xc0] ss:$16 sps:$4 sm:$0xff]   ;;  %v1495_v1 = vrot.slane %v8302_v3, %v8415_v30  ;;  %vm1684_vm6 = vcmp.ge.f32.partialorder %v8376_v52, 0.0  ;;  %vm1686_vm7 = vcmp.ge.f32.partialorder %v8380_v56, 0.0 }
 0x126   : > { %4827 = vmatpush1.bf16.msra.mxu0 %v6393_v39  ;;  %4852 = vmatprep.mubr.bf16.mxu0 %v8374_v51  ;;  %v6412_v6 = vld [vmem:[%s8311_s28 + $0x2c0] ss:$16 sps:$4 sm:$0xff]   ;;  %v6413_v7 = vld [vmem:[%s8311_s28 + $0xe4] ss:$16 sps:$4 sm:$0xff]   ;;  %v1515_v2 = vrot.slane %v8302_v3, %v8425_v36  ;;  %vm5573_vm0 = vcmask 1040384  }
 0x127   : > { %4868 = vmatpush1.bf16.msra.mxu1 %v6394_v43  ;;  %4828 = vmatprep.subr.bf16.mxu0 %v6395_v44  ;;  %v6415_v8 = vld [vmem:[%s8311_s28 + $0x2e4] ss:$16 sps:$4 sm:$0xff]   ;;  %v6417_v10 = vld [vmem:[%s8311_s28 + $0xe0] ss:$16 sps:$4 sm:$0xff]   ;;  %v1471_v43 = vunpack.c.h.bf16 %v8344_v22  ;;  %v1564_v44 = vmul.f32 %v1487_v33, %v1464_v32  ;;  %v1566_v49 = vmul.f32 %v1495_v1, %v1466_v40  ;;  %v1595_v22 = vrot.slane %v8309_v5, %v8415_v30 }
 0x128   : > { %4869 = vmatprep.subr.bf16.mxu1 %v6397_v47  ;;  %4893 = vmatprep.mubr.bf16.mxu1 %v8383_v58  ;;  %v6418_v12 = vld [vmem:[%s8311_s28 + $0x2e0] ss:$16 sps:$4 sm:$0xff]   ;;  %v6419_v13 = vld [vmem:[%s8311_s28 + $0x104] ss:$16 sps:$4 sm:$0xff]  }
 0x129   : > { %v6421_v14 = vld [vmem:[%s8311_s28 + $0x304] ss:$16 sps:$4 sm:$0xff]   ;;  %v6423_v15 = vld [vmem:[%s8311_s28 + $0x100] ss:$16 sps:$4 sm:$0xff]   ;;  %v1664_v3 = vadd.f32 %v1587_v45, %v1564_v44  ;;  %v1571_v55 = vmul.f32 %v1515_v2, %v1471_v43 }
 0x12a   : > { %4829 = vmatpush1.bf16.msra.mxu0 %v6399_v53  ;;  %v6424_v16 = vld [vmem:[%s8311_s28 + $0x300] ss:$16 sps:$4 sm:$0xff]   ;;  %v6425_v17 = vld [vmem:[%s8311_s28 + $0x124] ss:$16 sps:$4 sm:$0xff]   ;;  %v1607_v53 = vrot.slane %v8309_v5, %v8422_v34 }
 0x12b   : > { %4870 = vmatpush1.bf16.msra.mxu1 %v6400_v54  ;;  %4830 = vmatprep.subr.bf16.mxu0 %v6401_v57  ;;  %v6427_v19 = vld [vmem:[%s8311_s28 + $0x324] ss:$16 sps:$4 sm:$0xff]   ;;  %v6429_v20 = vld [vmem:[%s8311_s28 + $0x120] ss:$16 sps:$4 sm:$0xff]   ;;  %v1569_v54 = vmul.f32 %v1507_v46, %v1469_v42  ;;  %v1615_v57 = vrot.slane %v8309_v5, %v8425_v36  ;;  %vm1680_vm2 = vcmp.ge.f32.partialorder %v1664_v3, 0.0 }
 0x12c   : > { %4871 = vmatprep.subr.bf16.mxu1 %v6403_v59  ;;  %v6430_v21 = vld [vmem:[%s8311_s28 + $0x320] ss:$16 sps:$4 sm:$0xff]   ;;  %v6431_v23 = vld [vmem:[%s8311_s28 + $0x144] ss:$16 sps:$4 sm:$0xff]  }
 0x12d   : > { %v6433_v24 = vld [vmem:[%s8311_s28 + $0x344] ss:$16 sps:$4 sm:$0xff]   ;;  %v6435_v26 = vld [vmem:[%s8311_s28 + $0x140] ss:$16 sps:$4 sm:$0xff]  }
 0x12e   : > { %4831 = vmatpush1.bf16.msra.mxu0 %v6405_v60  ;;  %v6436_v28 = vld [vmem:[%s8311_s28 + $0x340] ss:$16 sps:$4 sm:$0xff]   ;;  %v6437_v29 = vld [vmem:[%s8311_s28 + $0x164] ss:$16 sps:$4 sm:$0xff]  }
 0x12f   : > { %4872 = vmatpush1.bf16.msra.mxu1 %v6406_v61  ;;  %4832 = vmatprep.subr.bf16.mxu0 %v6407_v62  ;;  %v6439_v31 = vld [vmem:[%s8311_s28 + $0x364] ss:$16 sps:$4 sm:$0xff]   ;;  %v6441_v37 = vld [vmem:[%s8311_s28 + $0x160] ss:$16 sps:$4 sm:$0xff]   ;;  %v1666_v62 = vadd.f32 %v1595_v22, %v1566_v49 }
 0x130   : > { %4873 = vmatprep.subr.bf16.mxu1 %v6409_v63  ;;  %v6442_v38 = vld [vmem:[%s8311_s28 + $0x360] ss:$16 sps:$4 sm:$0xff]   ;;  %v6443_v39 = vld [vmem:[%s8311_s28 + $0x184] ss:$16 sps:$4 sm:$0xff]  }
 0x131   : > { %v6445_v41 = vld [vmem:[%s8311_s28 + $0x384] ss:$16 sps:$4 sm:$0xff]   ;;  %v6447_v47 = vld [vmem:[%s8311_s28 + $0x180] ss:$16 sps:$4 sm:$0xff]   ;;  %vm1682_vm3 = vcmp.ge.f32.partialorder %v1666_v62, 0.0 }
 0x132   : > { %4833 = vmatpush1.bf16.msra.mxu0 %v6411_v0  ;;  %v6448_v48 = vld [vmem:[%s8311_s28 + $0x380] ss:$16 sps:$4 sm:$0xff]   ;;  %v6449_v18 = vld [vmem:[%s8311_s28 + $0x1a4] ss:$16 sps:$4 sm:$0xff]   ;;  %v1696_v0 = vmul.f32 0.2, %v1664_v3 }
 0x133   : > { %4874 = vmatpush1.bf16.msra.mxu1 %v6412_v6  ;;  %4834 = vmatprep.subr.bf16.mxu0 %v6413_v7  ;;  %v6451_v50 = vld [vmem:[%s8311_s28 + $0x3a4] ss:$16 sps:$4 sm:$0xff]   ;;  %v6453_v59 = vld [vmem:[%s8311_s28 + $0x1a0] ss:$16 sps:$4 sm:$0xff]   ;;  %v1669_v6 = vadd.f32 %v1607_v53, %v1569_v54  ;;  %v1671_v7 = vadd.f32 %v1615_v57, %v1571_v55 }
 0x134   : > { %4875 = vmatprep.subr.bf16.mxu1 %v6415_v8  ;;  %v6454_v60 = vld [vmem:[%s8311_s28 + $0x3a0] ss:$16 sps:$4 sm:$0xff]   ;;  %v6455_v61 = vld [vmem:[%s8311_s28 + $0x1c4] ss:$16 sps:$4 sm:$0xff]  }
 0x135   : > { %v6457_v63 = vld [vmem:[%s8311_s28 + $0x3c4] ss:$16 sps:$4 sm:$0xff]   ;;  %v6459_v8 = vld [vmem:[%s8311_s28 + $0x1c0] ss:$16 sps:$4 sm:$0xff]   ;;  %vm1685_vm4 = vcmp.ge.f32.partialorder %v1669_v6, 0.0  ;;  %vm1687_vm5 = vcmp.ge.f32.partialorder %v1671_v7, 0.0 }
 0x136   : > { %4835 = vmatpush1.bf16.msra.mxu0 %v6417_v10  ;;  %v6460_v10 = vld [vmem:[%s8311_s28 + $0x3c0] ss:$16 sps:$4 sm:$0xff]   ;;  %v6461_v5 = vld [vmem:[%s8311_s28 + $0x1e4] ss:$16 sps:$4 sm:$0xff]  }
 0x137   : > { %4876 = vmatpush1.bf16.msra.mxu1 %v6418_v12  ;;  %4836 = vmatprep.subr.bf16.mxu0 %v6419_v13  ;;  %v1698_v12 = vmul.f32 0.2, %v1666_v62  ;;  %v6463_v13 = vld [vmem:[%s8311_s28 + $0x3e4] ss:$16 sps:$4 sm:$0xff]   ;;  %v6473_v40 = vld [vmem:[%s8311_s28 + $0x420] ss:$16 sps:$4 sm:$0xff]  }
 0x138   : > { %4877 = vmatprep.subr.bf16.mxu1 %v6421_v14  ;;  %v1701_v14 = vmul.f32 0.2, %v1669_v6  ;;  %v6475_v33 = vld [vmem:[%s8311_s28 + $0x424] ss:$16 sps:$4 sm:$0xff]   ;;  %v6476_v1 = vld [vmem:[%s8311_s28 + $0x620] ss:$16 sps:$4 sm:$0xff]  }
 0x139   : > { %v6484_v42 = vld [vmem:[%s8311_s28 + $0x644] ss:$16 sps:$4 sm:$0xff]   ;;  %v6479_v43 = vld [vmem:[%s8311_s28 + $0x440] ss:$16 sps:$4 sm:$0xff]  }
 0x13a   : > { %4837 = vmatpush1.bf16.msra.mxu0 %v6423_v15  ;;  %v1703_v15 = vmul.f32 0.2, %v1671_v7  ;;  %v6482_v44 = vld [vmem:[%s8311_s28 + $0x640] ss:$16 sps:$4 sm:$0xff]   ;;  %v6487_v45 = vld [vmem:[%s8311_s28 + $0x464] ss:$16 sps:$4 sm:$0xff]  }
 0x13b   : > { %4878 = vmatpush1.bf16.msra.mxu1 %v6424_v16  ;;  %4838 = vmatprep.subr.bf16.mxu0 %v6425_v17  ;;  %v6465_v16 = vld [vmem:[%s8311_s28 + $0x1e0] ss:$16 sps:$4 sm:$0xff]   ;;  %v6490_v46 = vld [vmem:[%s8311_s28 + $0x664] ss:$16 sps:$4 sm:$0xff]  }
 0x13c   : > { %4879 = vmatprep.subr.bf16.mxu1 %v6427_v19  ;;  %v6466_v17 = vld [vmem:[%s8311_s28 + $0x3e0] ss:$16 sps:$4 sm:$0xff]   ;;  %v1712_v19 = vsel %vm1680_vm2, %v1664_v3, %v1696_v0  ;;  %v1719_v32 = vsel %vm1687_vm5, %v1671_v7, %v1703_v15  ;;  %v6502_v53 = vld [vmem:[%s8311_s28 + $0x6a4] ss:$16 sps:$4 sm:$0xff]  }
 0x13d   : > { %v6485_v2 = vld [vmem:[%s8311_s28 + $0x460] ss:$16 sps:$4 sm:$0xff]   ;;  %v6505_v55 = vld [vmem:[%s8311_s28 + $0x4c4] ss:$16 sps:$4 sm:$0xff]  }
 0x13e   : > { %4839 = vmatpush1.bf16.msra.mxu0 %v6429_v20  ;;  %v1714_v20 = vsel %vm1682_vm3, %v1666_v62, %v1698_v12  ;;  %v6491_v49 = vld [vmem:[%s8311_s28 + $0x480] ss:$16 sps:$4 sm:$0xff]   ;;  %v6508_v57 = vld [vmem:[%s8311_s28 + $0x6c4] ss:$16 sps:$4 sm:$0xff]  }
 0x13f   : > { %4880 = vmatpush1.bf16.msra.mxu1 %v6430_v21  ;;  %4840 = vmatprep.subr.bf16.mxu0 %v6431_v23  ;;  %v6469_v21 = vld [vmem:[%s8311_s28 + $0x404] ss:$16 sps:$4 sm:$0xff]   ;;  %v6494_v22 = vld [vmem:[%s8311_s28 + $0x680] ss:$16 sps:$4 sm:$0xff]  }
 0x140   : > { %4881 = vmatprep.subr.bf16.mxu1 %v6433_v24  ;;  %v6472_v23 = vld [vmem:[%s8311_s28 + $0x604] ss:$16 sps:$4 sm:$0xff]   ;;  %v8464_v24 = vpack.c.bf16 %v1712_v19, %v1712_v19  ;;  %v6497_v3 = vld [vmem:[%s8311_s28 + $0x4a0] ss:$16 sps:$4 sm:$0xff]  }
 0x141   : > { %v6500_v54 = vld [vmem:[%s8311_s28 + $0x6a0] ss:$16 sps:$4 sm:$0xff]   ;;  %v6514_v62 = vld [vmem:[%s8311_s28 + $0x6e4] ss:$16 sps:$4 sm:$0xff]  }
 0x142   : > { %4841 = vmatpush1.bf16.msra.mxu0 %v6435_v26  ;;  %v8466_v26 = vpack.c.bf16 %v1714_v20, %v1714_v20  ;;  %v6512_v0 = vld [vmem:[%s8311_s28 + $0x6e0] ss:$16 sps:$4 sm:$0xff]   ;;  %v6520_v7 = vld [vmem:[%s8311_s28 + $0x704] ss:$16 sps:$4 sm:$0xff]  }
 0x143   : > { %4882 = vmatpush1.bf16.msra.mxu1 %v6436_v28  ;;  %4842 = vmatprep.subr.bf16.mxu0 %v6437_v29  ;;  %v6467_v28 = vld [vmem:[%s8311_s28 + $0x400] ss:$16 sps:$4 sm:$0xff]   ;;  %v6526_v12 = vld [vmem:[%s8311_s28 + $0x724] ss:$16 sps:$4 sm:$0xff]  }
 0x144   : > { %4883 = vmatprep.subr.bf16.mxu1 %v6439_v31  ;;  %v6470_v29 = vld [vmem:[%s8311_s28 + $0x600] ss:$16 sps:$4 sm:$0xff]   ;;  %v1717_v31 = vsel %vm1685_vm4, %v1669_v6, %v1701_v14  ;;  %v6517_v6 = vld [vmem:[%s8311_s28 + $0x504] ss:$16 sps:$4 sm:$0xff]  }
 0x145   : > { %v6524_v14 = vld [vmem:[%s8311_s28 + $0x720] ss:$16 sps:$4 sm:$0xff]   ;;  %v6529_v15 = vld [vmem:[%s8311_s28 + $0x544] ss:$16 sps:$4 sm:$0xff]  }
 0x146   : > { %4843 = vmatpush1.bf16.msra.mxu0 %v6441_v37  ;;  %v6478_v37 = vld [vmem:[%s8311_s28 + $0x624] ss:$16 sps:$4 sm:$0xff]   ;;  %v6530_v19 = vld [vmem:[%s8311_s28 + $0x740] ss:$16 sps:$4 sm:$0xff]  }
 0x147   : > { %4884 = vmatpush1.bf16.msra.mxu1 %v6442_v38  ;;  %4844 = vmatprep.subr.bf16.mxu0 %v6443_v39  ;;  %v8472_v38 = vpack.c.bf16 %v1717_v31, %v1717_v31  ;;  %v8474_v39 = vpack.c.bf16 %v1719_v32, %v1719_v32  ;;  %v6535_v20 = vld [vmem:[%s8311_s28 + $0x564] ss:$16 sps:$4 sm:$0xff]   ;;  %v6539_v32 = vld [vmem:[%s8311_s28 + $0x580] ss:$16 sps:$4 sm:$0xff]  }
 0x148   : > { %4885 = vmatprep.subr.bf16.mxu1 %v6445_v41  ;;  %v6481_v41 = vld [vmem:[%s8311_s28 + $0x444] ss:$16 sps:$4 sm:$0xff]  }
 0x149   : > { %v6544_v31 = vld [vmem:[%s8311_s28 + $0x784] ss:$16 sps:$4 sm:$0xff]  }
 0x14a   : > { %4845 = vmatpush1.bf16.msra.mxu0 %v6447_v47  ;;  %v6488_v47 = vld [vmem:[%s8311_s28 + $0x660] ss:$16 sps:$4 sm:$0xff]  }
 0x14b   : > { %4886 = vmatpush1.bf16.msra.mxu1 %v6448_v48  ;;  %4846 = vmatprep.subr.bf16.mxu0 %v6449_v18  ;;  %v6493_v48 = vld [vmem:[%s8311_s28 + $0x484] ss:$16 sps:$4 sm:$0xff]  }
 0x14c   : > { %4887 = vmatprep.subr.bf16.mxu1 %v6451_v50  ;;  %v6496_v18 = vld [vmem:[%s8311_s28 + $0x684] ss:$16 sps:$4 sm:$0xff]  }
 0x14d   : > { %v6499_v50 = vld [vmem:[%s8311_s28 + $0x4a4] ss:$16 sps:$4 sm:$0xff]  }
 0x14e   : > { %4847 = vmatpush1.bf16.msra.mxu0 %v6453_v59  ;;  %v6503_v59 = vld [vmem:[%s8311_s28 + $0x4c0] ss:$16 sps:$4 sm:$0xff]  }
 0x14f   : > { %4888 = vmatpush1.bf16.msra.mxu1 %v6454_v60  ;;  %4848 = vmatprep.subr.bf16.mxu0 %v6455_v61  ;;  %v6506_v60 = vld [vmem:[%s8311_s28 + $0x6c0] ss:$16 sps:$4 sm:$0xff]   ;;  %v6511_v61 = vld [vmem:[%s8311_s28 + $0x4e4] ss:$16 sps:$4 sm:$0xff]  }
 0x150   : > { %4889 = vmatprep.subr.bf16.mxu1 %v6457_v63  ;;  %v6509_v63 = vld [vmem:[%s8311_s28 + $0x4e0] ss:$16 sps:$4 sm:$0xff]  }
 0x152   : > { %4849 = vmatpush1.bf16.msra.mxu0 %v6459_v8  ;;  %v6515_v8 = vld [vmem:[%s8311_s28 + $0x500] ss:$16 sps:$4 sm:$0xff]  }
 0x153   : > { %4890 = vmatpush1.bf16.msra.mxu1 %v6460_v10  ;;  %4850 = vmatprep.subr.bf16.mxu0 %v6461_v5  ;;  %v6518_v10 = vld [vmem:[%s8311_s28 + $0x700] ss:$16 sps:$4 sm:$0xff]   ;;  %v6523_v5 = vld [vmem:[%s8311_s28 + $0x524] ss:$16 sps:$4 sm:$0xff]  }
 0x154   : > { %4891 = vmatprep.subr.bf16.mxu1 %v6463_v13  ;;  %v6521_v13 = vld [vmem:[%s8311_s28 + $0x520] ss:$16 sps:$4 sm:$0xff]  }
 0x156   : > { %4851 = vmatpush1.bf16.msra.mxu0 %v6465_v16  ;;  %v6532_v16 = vld [vmem:[%s8311_s28 + $0x744] ss:$16 sps:$4 sm:$0xff]  }
 0x157   : > { %4892 = vmatpush1.bf16.msra.mxu1 %v6466_v17  ;;  %4902 = vmatprep.subr.bf16.mxu0 %v6469_v21  ;;  %v6527_v17 = vld [vmem:[%s8311_s28 + $0x540] ss:$16 sps:$4 sm:$0xff]   ;;  %v6538_v21 = vld [vmem:[%s8311_s28 + $0x764] ss:$16 sps:$4 sm:$0xff]  }
 0x158   : > { %4943 = vmatprep.subr.bf16.mxu1 %v6472_v23  ;;  %v6533_v23 = vld [vmem:[%s8311_s28 + $0x560] ss:$16 sps:$4 sm:$0xff]  }
 0x159   : > { %4853 = vmatmul.mubr.bf16.vlgmr.msra.gmra.mrb[0].mxu0 %v8464_v24 }
 0x15a   : > { %4894 = vmatmul.mubr.bf16.vlgmr.msra.gmra.mrb[0].mxu1 %v8466_v26  ;;  %4903 = vmatpush1.bf16.msra.mxu0 %v6467_v28  ;;  %v6536_v28 = vld [vmem:[%s8311_s28 + $0x760] ss:$16 sps:$4 sm:$0xff]  }
 0x15b   : > { %4944 = vmatpush1.bf16.msra.mxu1 %v6470_v29  ;;  %4904 = vmatprep.subr.bf16.mxu0 %v6475_v33  ;;  %v6541_v29 = vld [vmem:[%s8311_s28 + $0x584] ss:$16 sps:$4 sm:$0xff]   ;;  %v6542_v33 = vld [vmem:[%s8311_s28 + $0x780] ss:$16 sps:$4 sm:$0xff]  }
 0x15c   : > { %4945 = vmatprep.subr.bf16.mxu1 %v6478_v37  ;;  %4934 = vmatprep.mubr.bf16.mxu0 %v8472_v38  ;;  %v6547_v37 = vld [vmem:[%s8311_s28 + $0x5a4] ss:$16 sps:$4 sm:$0xff]  }
 0x15d   : > { %4975 = vmatprep.mubr.bf16.mxu1 %v8474_v39 }
 0x15e   : > { %4905 = vmatpush1.bf16.msra.mxu0 %v6473_v40  ;;  %v6550_v40 = vld [vmem:[%s8311_s28 + $0x7a4] ss:$16 sps:$4 sm:$0xff]  }
 0x15f   : > { %4946 = vmatpush1.bf16.msra.mxu1 %v6476_v1  ;;  %4906 = vmatprep.subr.bf16.mxu0 %v6481_v41  ;;  %v6545_v1 = vld [vmem:[%s8311_s28 + $0x5a0] ss:$16 sps:$4 sm:$0xff]  }
 0x160   : > { %4947 = vmatprep.subr.bf16.mxu1 %v6484_v42  ;;  %v6548_v41 = vld [vmem:[%s8311_s28 + $0x7a0] ss:$16 sps:$4 sm:$0xff]   ;;  %v6553_v42 = vld [vmem:[%s8311_s28 + $0x5c4] ss:$16 sps:$4 sm:$0xff]  }
 0x162   : > { %4907 = vmatpush1.bf16.msra.mxu0 %v6479_v43  ;;  %v6556_v43 = vld [vmem:[%s8311_s28 + $0x7c4] ss:$16 sps:$4 sm:$0xff]  }
 0x163   : > { %4948 = vmatpush1.bf16.msra.mxu1 %v6482_v44  ;;  %4908 = vmatprep.subr.bf16.mxu0 %v6487_v45  ;;  %v1700_v44 = vmul.f32 0.2, %v8376_v52  ;;  %v6551_v45 = vld [vmem:[%s8311_s28 + $0x5c0] ss:$16 sps:$4 sm:$0xff]  }
 0x164   : > { %4949 = vmatprep.subr.bf16.mxu1 %v6490_v46  ;;  %v6554_v46 = vld [vmem:[%s8311_s28 + $0x7c0] ss:$16 sps:$4 sm:$0xff]  }
 0x166   : > { %4909 = vmatpush1.bf16.msra.mxu0 %v6485_v2  ;;  %v6559_v2 = vld [vmem:[%s8311_s28 + $0x5e4] ss:$16 sps:$4 sm:$0xff]  }
 0x167   : > { %4950 = vmatpush1.bf16.msra.mxu1 %v6488_v47  ;;  %4910 = vmatprep.subr.bf16.mxu0 %v6493_v48  ;;  %v1702_v47 = vmul.f32 0.2, %v8380_v56  ;;  %v6562_v48 = vld [vmem:[%s8311_s28 + $0x7e4] ss:$16 sps:$4 sm:$0xff]  }
 0x168   : > { %4951 = vmatprep.subr.bf16.mxu1 %v6496_v18  ;;  %v6557_v18 = vld [vmem:[%s8311_s28 + $0x5e0] ss:$16 sps:$4 sm:$0xff]  }
 0x16a   : > { %4911 = vmatpush1.bf16.msra.mxu0 %v6491_v49  ;;  %v6560_v49 = vld [vmem:[%s8311_s28 + $0x7e0] ss:$16 sps:$4 sm:$0xff]  }
 0x16b   : > { %4952 = vmatpush1.bf16.msra.mxu1 %v6494_v22  ;;  %4912 = vmatprep.subr.bf16.mxu0 %v6499_v50  ;;  %v1716_v22 = vsel %vm1684_vm6, %v8376_v52, %v1700_v44  ;;  %v1718_v50 = vsel %vm1686_vm7, %v8380_v56, %v1702_v47  ;;  %v8557_v52 = vld [vmem:[%s9124_s0 + $0x20] sm:$0xff]  ;;  %v8562_v56 = vld [vmem:[%s9125_s1 + $0x8] sm:$0xff] }
 0x16c   : > { %4953 = vmatprep.subr.bf16.mxu1 %v6502_v53  ;;  %v6565_v53 = vld [vmem:[%s8311_s28 + $0x804] ss:$16 sps:$4 sm:$0xff]  }
 0x16d   : > { %v6592_v44 = vld [vmem:[%s8311_s28 + $0xa84] ss:$16 sps:$4 sm:$0xff]  }
 0x16e   : > { %4913 = vmatpush1.bf16.msra.mxu0 %v6497_v3  ;;  %v6568_v3 = vld [vmem:[%s8311_s28 + $0xa04] ss:$16 sps:$4 sm:$0xff]  }
 0x16f   : > { %4954 = vmatpush1.bf16.msra.mxu1 %v6500_v54  ;;  %4914 = vmatprep.subr.bf16.mxu0 %v6505_v55  ;;  %v6563_v54 = vld [vmem:[%s8311_s28 + $0x800] ss:$16 sps:$4 sm:$0xff]   ;;  %v6598_v47 = vld [vmem:[%s8311_s28 + $0xaa4] ss:$16 sps:$4 sm:$0xff]  }
 0x170   : > { %4955 = vmatprep.subr.bf16.mxu1 %v6508_v57  ;;  %v6566_v55 = vld [vmem:[%s8311_s28 + $0xa00] ss:$16 sps:$4 sm:$0xff]   ;;  %v8548_v57 = vpack.c.bf16 %v1716_v22, %v1716_v22  ;;  %v6604_v22 = vld [vmem:[%s8311_s28 + $0xac4] ss:$16 sps:$4 sm:$0xff]  }
 0x172   : > { %4915 = vmatpush1.bf16.msra.mxu0 %v6503_v59  ;;  %v8550_v59 = vpack.c.bf16 %v1718_v50, %v1718_v50  ;;  %v6599_v50 = vld [vmem:[%s8311_s28 + $0x8c0] ss:$16 sps:$4 sm:$0xff]  }
 0x173   : > { %4956 = vmatpush1.bf16.msra.mxu1 %v6506_v60  ;;  %4916 = vmatprep.subr.bf16.mxu0 %v6511_v61  ;;  %v6571_v60 = vld [vmem:[%s8311_s28 + $0x824] ss:$16 sps:$4 sm:$0xff]  }
 0x174   : > { %4957 = vmatprep.subr.bf16.mxu1 %v6514_v62  ;;  %v6574_v61 = vld [vmem:[%s8311_s28 + $0xa24] ss:$16 sps:$4 sm:$0xff]   ;;  %v8567_v62 = vld [vmem:[%s9126_s2 + $0x8] sm:$0xff] }
 0x176   : > { %4917 = vmatpush1.bf16.msra.mxu0 %v6509_v63  ;;  %v1473_v63 = vunpack.c.h.bf16 %v8557_v52 }
 0x177   : > { %4958 = vmatpush1.bf16.msra.mxu1 %v6512_v0  ;;  %4918 = vmatprep.subr.bf16.mxu0 %v6517_v6  ;;  %v1523_v0 = vrot.slane %v8562_v56, %v8317_v9  ;;  %v1623_v6 = vrot.slane %v8567_v62, %v8317_v9 }
 0x178   : > { %4959 = vmatprep.subr.bf16.mxu1 %v6520_v7  ;;  %v8577_v7 = vld [vmem:[%s9124_s0 + $0x28] sm:$0xff] }
 0x17a   : > { %4919 = vmatpush1.bf16.msra.mxu0 %v6515_v8  ;;  %v1475_v8 = vunpack.c.h.bf16 %v8577_v7 }
 0x17b   : > { %4960 = vmatpush1.bf16.msra.mxu1 %v6518_v10  ;;  %4920 = vmatprep.subr.bf16.mxu0 %v6523_v5  ;;  %v1531_v10 = vrot.slane %v8562_v56, %v8321_v11  ;;  %v1631_v5 = vrot.slane %v8567_v62, %v8321_v11 }
 0x17c   : > { %4961 = vmatprep.subr.bf16.mxu1 %v6526_v12  ;;  %v6569_v12 = vld [vmem:[%s8311_s28 + $0x820] ss:$16 sps:$4 sm:$0xff]  }
 0x17e   : > { %4921 = vmatpush1.bf16.msra.mxu0 %v6521_v13  ;;  %v6572_v13 = vld [vmem:[%s8311_s28 + $0xa20] ss:$16 sps:$4 sm:$0xff]  }
 0x17f   : > { %4962 = vmatpush1.bf16.msra.mxu1 %v6524_v14  ;;  %4922 = vmatprep.subr.bf16.mxu0 %v6529_v15  ;;  %v1573_v14 = vmul.f32 %v1523_v0, %v1473_v63  ;;  %v6577_v15 = vld [vmem:[%s8311_s28 + $0x844] ss:$16 sps:$4 sm:$0xff]   ;;  %v6611_v0 = vld [vmem:[%s8311_s28 + $0x900] ss:$16 sps:$4 sm:$0xff]  }
 0x180   : > { %4963 = vmatprep.subr.bf16.mxu1 %v6532_v16  ;;  %v1575_v16 = vmul.f32 %v1531_v10, %v1475_v8  ;;  %v6616_v63 = vld [vmem:[%s8311_s28 + $0xb04] ss:$16 sps:$4 sm:$0xff]  }
 0x181   : > { %v6619_v8 = vld [vmem:[%s8311_s28 + $0x924] ss:$16 sps:$4 sm:$0xff]  }
 0x182   : > { %4923 = vmatpush1.bf16.msra.mxu0 %v6527_v17  ;;  %v6580_v17 = vld [vmem:[%s8311_s28 + $0xa44] ss:$16 sps:$4 sm:$0xff]  }
 0x183   : > { %4964 = vmatpush1.bf16.msra.mxu1 %v6530_v19  ;;  %4924 = vmatprep.subr.bf16.mxu0 %v6535_v20  ;;  %v1673_v19 = vadd.f32 %v1623_v6, %v1573_v14  ;;  %v1675_v20 = vadd.f32 %v1631_v5, %v1575_v16  ;;  %v6614_v6 = vld [vmem:[%s8311_s28 + $0xb00] ss:$16 sps:$4 sm:$0xff]   ;;  %v6622_v10 = vld [vmem:[%s8311_s28 + $0xb24] ss:$16 sps:$4 sm:$0xff]  }
 0x184   : > { %4965 = vmatprep.subr.bf16.mxu1 %v6538_v21  ;;  %v6575_v21 = vld [vmem:[%s8311_s28 + $0x840] ss:$16 sps:$4 sm:$0xff]   ;;  %v6628_v14 = vld [vmem:[%s8311_s28 + $0xb44] ss:$16 sps:$4 sm:$0xff]  }
 0x185   : > { %vm1689_vm8 = vcmp.ge.f32.partialorder %v1673_v19, 0.0  ;;  %vm1691_vm9 = vcmp.ge.f32.partialorder %v1675_v20, 0.0  ;;  %v6617_v5 = vld [vmem:[%s8311_s28 + $0x920] ss:$16 sps:$4 sm:$0xff]  }
 0x186   : > { %4925 = vmatpush1.bf16.msra.mxu0 %v6533_v23  ;;  %v1705_v23 = vmul.f32 0.2, %v1673_v19  ;;  %v6626_v16 = vld [vmem:[%s8311_s28 + $0xb40] ss:$16 sps:$4 sm:$0xff]  }
 0x187   : > { %4966 = vmatpush1.bf16.msra.mxu1 %v6536_v28  ;;  %4926 = vmatprep.subr.bf16.mxu0 %v6541_v29  ;;  %v6578_v28 = vld [vmem:[%s8311_s28 + $0xa40] ss:$16 sps:$4 sm:$0xff]   ;;  %v1707_v29 = vmul.f32 0.2, %v1675_v20 }
 0x188   : > { %4967 = vmatprep.subr.bf16.mxu1 %v6544_v31  ;;  %v6583_v31 = vld [vmem:[%s8311_s28 + $0x864] ss:$16 sps:$4 sm:$0xff]  }
 0x18a   : > { %4927 = vmatpush1.bf16.msra.mxu0 %v6539_v32  ;;  %v6586_v32 = vld [vmem:[%s8311_s28 + $0xa64] ss:$16 sps:$4 sm:$0xff]  }
 0x18b   : > { %4968 = vmatpush1.bf16.msra.mxu1 %v6542_v33  ;;  %4928 = vmatprep.subr.bf16.mxu0 %v6547_v37  ;;  %v1721_v33 = vsel %vm1689_vm8, %v1673_v19, %v1705_v23  ;;  %v6634_v19 = vld [vmem:[%s8311_s28 + $0xb64] ss:$16 sps:$4 sm:$0xff]   ;;  %v1472_v23 = vunpack.c.l.bf16 %v8557_v52  ;;  %v1619_v52 = vrot.slane %v8567_v62, %v8409_v25 }
 0x18c   : > { %4969 = vmatprep.subr.bf16.mxu1 %v6550_v40  ;;  %v8594_v37 = vpack.c.bf16 %v1721_v33, %v1721_v33  ;;  %v1723_v40 = vsel %vm1691_vm9, %v1675_v20, %v1707_v29  ;;  %v6629_v20 = vld [vmem:[%s8311_s28 + $0x960] ss:$16 sps:$4 sm:$0xff]   ;;  %v1474_v29 = vunpack.c.l.bf16 %v8577_v7  ;;  %v1535_v33 = vrot.slane %v8562_v56, %v8349_v27 }
 0x18d   : > { %v1627_v7 = vrot.slane %v8567_v62, %v8415_v30 }
 0x18e   : > { %4929 = vmatpush1.bf16.msra.mxu0 %v6545_v1  ;;  %v6581_v1 = vld [vmem:[%s8311_s28 + $0x860] ss:$16 sps:$4 sm:$0xff]  }
 0x18f   : > { %4970 = vmatpush1.bf16.msra.mxu1 %v6548_v41  ;;  %4930 = vmatprep.subr.bf16.mxu0 %v6553_v42  ;;  %v6584_v41 = vld [vmem:[%s8311_s28 + $0xa60] ss:$16 sps:$4 sm:$0xff]   ;;  %v8598_v42 = vpack.c.bf16 %v1723_v40, %v1723_v40  ;;  %v6640_v40 = vld [vmem:[%s8311_s28 + $0xb84] ss:$16 sps:$4 sm:$0xff]  }
 0x190   : > { %4971 = vmatprep.subr.bf16.mxu1 %v6556_v43  ;;  %v6589_v43 = vld [vmem:[%s8311_s28 + $0x884] ss:$16 sps:$4 sm:$0xff]  }
 0x192   : > { %4931 = vmatpush1.bf16.msra.mxu0 %v6551_v45  ;;  %v6587_v45 = vld [vmem:[%s8311_s28 + $0x880] ss:$16 sps:$4 sm:$0xff]  }
 0x193   : > { %4972 = vmatpush1.bf16.msra.mxu1 %v6554_v46  ;;  %4932 = vmatprep.subr.bf16.mxu0 %v6559_v2  ;;  %v6590_v46 = vld [vmem:[%s8311_s28 + $0xa80] ss:$16 sps:$4 sm:$0xff]   ;;  %v6595_v2 = vld [vmem:[%s8311_s28 + $0x8a4] ss:$16 sps:$4 sm:$0xff]  }
 0x194   : > { %4973 = vmatprep.subr.bf16.mxu1 %v6562_v48  ;;  %v6593_v48 = vld [vmem:[%s8311_s28 + $0x8a0] ss:$16 sps:$4 sm:$0xff]  }
 0x196   : > { %4933 = vmatpush1.bf16.msra.mxu0 %v6557_v18  ;;  %v6596_v18 = vld [vmem:[%s8311_s28 + $0xaa0] ss:$16 sps:$4 sm:$0xff]  }
 0x197   : > { %4974 = vmatpush1.bf16.msra.mxu1 %v6560_v49  ;;  %4984 = vmatprep.subr.bf16.mxu0 %v6565_v53  ;;  %v6601_v49 = vld [vmem:[%s8311_s28 + $0x8c4] ss:$16 sps:$4 sm:$0xff]   ;;  %v6602_v53 = vld [vmem:[%s8311_s28 + $0xac0] ss:$16 sps:$4 sm:$0xff]  }
 0x198   : > { %5025 = vmatprep.subr.bf16.mxu1 %v6568_v3  ;;  %v6607_v3 = vld [vmem:[%s8311_s28 + $0x8e4] ss:$16 sps:$4 sm:$0xff]  }
 0x199   : > { %4935 = vmatmul.mubr.bf16.vlgmr.msra.gmra.mrb[4].mxu0 %v8548_v57 }
 0x19a   : > { %4976 = vmatmul.mubr.bf16.vlgmr.msra.gmra.mrb[4].mxu1 %v8550_v59  ;;  %4985 = vmatpush1.bf16.msra.mxu0 %v6563_v54  ;;  %v6610_v54 = vld [vmem:[%s8311_s28 + $0xae4] ss:$16 sps:$4 sm:$0xff]  }
 0x19b   : > { %5026 = vmatpush1.bf16.msra.mxu1 %v6566_v55  ;;  %4986 = vmatprep.subr.bf16.mxu0 %v6571_v60  ;;  %v6605_v55 = vld [vmem:[%s8311_s28 + $0x8e0] ss:$16 sps:$4 sm:$0xff]  }
 0x19c   : > { %5027 = vmatprep.subr.bf16.mxu1 %v6574_v61  ;;  %5016 = vmatprep.mubr.bf16.mxu0 %v8594_v37  ;;  %v6608_v60 = vld [vmem:[%s8311_s28 + $0xae0] ss:$16 sps:$4 sm:$0xff]   ;;  %v6613_v61 = vld [vmem:[%s8311_s28 + $0x904] ss:$16 sps:$4 sm:$0xff]  }
 0x19d   : > { %5057 = vmatprep.mubr.bf16.mxu1 %v8598_v42 }
 0x19e   : > { %4987 = vmatpush1.bf16.msra.mxu0 %v6569_v12  ;;  %v6620_v12 = vld [vmem:[%s8311_s28 + $0xb20] ss:$16 sps:$4 sm:$0xff]  }
 0x19f   : > { %5028 = vmatpush1.bf16.msra.mxu1 %v6572_v13  ;;  %4988 = vmatprep.subr.bf16.mxu0 %v6577_v15  ;;  %v6625_v13 = vld [vmem:[%s8311_s28 + $0x944] ss:$16 sps:$4 sm:$0xff]   ;;  %v6623_v15 = vld [vmem:[%s8311_s28 + $0x940] ss:$16 sps:$4 sm:$0xff]  }
 0x1a0   : > { %5029 = vmatprep.subr.bf16.mxu1 %v6580_v17  ;;  %v6631_v17 = vld [vmem:[%s8311_s28 + $0x964] ss:$16 sps:$4 sm:$0xff]  }
 0x1a2   : > { %4989 = vmatpush1.bf16.msra.mxu0 %v6575_v21  ;;  %v6632_v21 = vld [vmem:[%s8311_s28 + $0xb60] ss:$16 sps:$4 sm:$0xff]  }
 0x1a3   : > { %5030 = vmatpush1.bf16.msra.mxu1 %v6578_v28  ;;  %4990 = vmatprep.subr.bf16.mxu0 %v6583_v31  ;;  %v6637_v28 = vld [vmem:[%s8311_s28 + $0x984] ss:$16 sps:$4 sm:$0xff]   ;;  %v1519_v31 = vrot.slane %v8562_v56, %v8409_v25 }
 0x1a4   : > { %5031 = vmatprep.subr.bf16.mxu1 %v6586_v32  ;;  %v1527_v32 = vrot.slane %v8562_v56, %v8415_v30 }
 0x1a6   : > { %4991 = vmatpush1.bf16.msra.mxu0 %v6581_v1  ;;  %v1462_v1 = vld [vmem:[%s9124_s0 + $0x30] sm:$0xff] }
 0x1a7   : > { %5032 = vmatpush1.bf16.msra.mxu1 %v6584_v41  ;;  %4992 = vmatprep.subr.bf16.mxu0 %v6589_v43  ;;  %v1463_v41 = vld [vmem:[%s9124_s0 + $0x38] sm:$0xff]  ;;  %v1543_v43 = vrot.slane %v8562_v56, %v8357_v35 }
 0x1a8   : > { %5033 = vmatprep.subr.bf16.mxu1 %v6592_v44  ;;  %v1476_v44 = vunpack.c.l.bf16 %v1462_v1 }
 0x1aa   : > { %4993 = vmatpush1.bf16.msra.mxu0 %v6587_v45  ;;  %v1539_v45 = vrot.slane %v8562_v56, %v8422_v34 }
 0x1ab   : > { %5034 = vmatpush1.bf16.msra.mxu1 %v6590_v46  ;;  %4994 = vmatprep.subr.bf16.mxu0 %v6595_v2  ;;  %v1478_v46 = vunpack.c.l.bf16 %v1463_v41  ;;  %v1635_v2 = vrot.slane %v8567_v62, %v8349_v27  ;;  %v6643_v27 = vld [vmem:[%s8311_s28 + $0x9a4] ss:$16 sps:$4 sm:$0xff]  }
 0x1ac   : > { %5035 = vmatprep.subr.bf16.mxu1 %v6598_v47  ;;  %v1477_v47 = vunpack.c.h.bf16 %v1462_v1  ;;  %v6659_v1 = vld [vmem:[%s8311_s28 + $0xc00] ss:$16 sps:$4 sm:$0xff]  }
 0x1ae   : > { %4995 = vmatpush1.bf16.msra.mxu0 %v6593_v48  ;;  %v1479_v48 = vunpack.c.h.bf16 %v1463_v41  ;;  %v6662_v41 = vld [vmem:[%s8311_s28 + $0xe00] ss:$16 sps:$4 sm:$0xff]  }
 0x1af   : > { %5036 = vmatpush1.bf16.msra.mxu1 %v6596_v18  ;;  %4996 = vmatprep.subr.bf16.mxu0 %v6601_v49  ;;  %v1547_v18 = vrot.slane %v8562_v56, %v8425_v36  ;;  %v1643_v49 = vrot.slane %v8567_v62, %v8357_v35  ;;  %v1639_v56 = vrot.slane %v8567_v62, %v8422_v34  ;;  %v6649_v34 = vld [vmem:[%s8311_s28 + $0x9c4] ss:$16 sps:$4 sm:$0xff]  }
 0x1b0   : > { %5037 = vmatprep.subr.bf16.mxu1 %v6604_v22  ;;  %v6635_v22 = vld [vmem:[%s8311_s28 + $0x980] ss:$16 sps:$4 sm:$0xff]  }
 0x1b2   : > { %4997 = vmatpush1.bf16.msra.mxu0 %v6599_v50  ;;  %v6638_v50 = vld [vmem:[%s8311_s28 + $0xb80] ss:$16 sps:$4 sm:$0xff]  }
 0x1b3   : > { %5038 = vmatpush1.bf16.msra.mxu1 %v6602_v53  ;;  %4998 = vmatprep.subr.bf16.mxu0 %v6607_v3  ;;  %v1572_v53 = vmul.f32 %v1519_v31, %v1472_v23  ;;  %v1574_v3 = vmul.f32 %v1527_v32, %v1474_v29  ;;  %v6656_v23 = vld [vmem:[%s8311_s28 + $0xbe0] ss:$16 sps:$4 sm:$0xff]  }
 0x1b4   : > { %5039 = vmatprep.subr.bf16.mxu1 %v6610_v54  ;;  %v1576_v54 = vmul.f32 %v1535_v33, %v1476_v44  ;;  %v6661_v33 = vld [vmem:[%s8311_s28 + $0xc04] ss:$16 sps:$4 sm:$0xff]  }
 0x1b6   : > { %4999 = vmatpush1.bf16.msra.mxu0 %v6605_v55  ;;  %v6646_v55 = vld [vmem:[%s8311_s28 + $0xba4] ss:$16 sps:$4 sm:$0xff]   ;;  %v8670_v35 = vadd.f32 %v1635_v2, %v1576_v54 }
 0x1b7   : > { %5040 = vmatpush1.bf16.msra.mxu1 %v6608_v60  ;;  %5000 = vmatprep.subr.bf16.mxu0 %v6613_v61  ;;  %v1578_v60 = vmul.f32 %v1543_v43, %v1478_v46  ;;  %v1577_v61 = vmul.f32 %v1539_v45, %v1477_v47  ;;  %v6667_v45 = vld [vmem:[%s8311_s28 + $0xc24] ss:$16 sps:$4 sm:$0xff]  }
 0x1b8   : > { %5041 = vmatprep.subr.bf16.mxu1 %v6616_v63  ;;  %v1579_v63 = vmul.f32 %v1547_v18, %v1479_v48  ;;  %v6670_v46 = vld [vmem:[%s8311_s28 + $0xe24] ss:$16 sps:$4 sm:$0xff]   ;;  %v6665_v48 = vld [vmem:[%s8311_s28 + $0xc20] ss:$16 sps:$4 sm:$0xff]   ;;  %vm1692_vm14 = vcmp.ge.f32.partialorder %v8670_v35, 0.0 }
 0x1b9   : > { %v6668_v18 = vld [vmem:[%s8311_s28 + $0xe20] ss:$16 sps:$4 sm:$0xff]   ;;  %v6682_v54 = vld [vmem:[%s8311_s28 + $0xe64] ss:$16 sps:$4 sm:$0xff]  }
 0x1ba   : > { %5001 = vmatpush1.bf16.msra.mxu0 %v6611_v0  ;;  %v1647_v0 = vrot.slane %v8567_v62, %v8425_v36 }
 0x1bb   : > { %5042 = vmatpush1.bf16.msra.mxu1 %v6614_v6  ;;  %5002 = vmatprep.subr.bf16.mxu0 %v6619_v8  ;;  %v8674_v6 = vadd.f32 %v1643_v49, %v1578_v60  ;;  %v6641_v8 = vld [vmem:[%s8311_s28 + $0x9a0] ss:$16 sps:$4 sm:$0xff]   ;;  %v6673_v49 = vld [vmem:[%s8311_s28 + $0xc44] ss:$16 sps:$4 sm:$0xff]  }
 0x1bc   : > { %5043 = vmatprep.subr.bf16.mxu1 %v6622_v10  ;;  %v6644_v10 = vld [vmem:[%s8311_s28 + $0xba0] ss:$16 sps:$4 sm:$0xff]   ;;  %v1679_v36 = vadd.f32 %v1647_v0, %v1579_v63  ;;  %v6685_v60 = vld [vmem:[%s8311_s28 + $0xc84] ss:$16 sps:$4 sm:$0xff]  }
 0x1bd   : > { %v6686_v63 = vld [vmem:[%s8311_s28 + $0xe80] ss:$16 sps:$4 sm:$0xff]   ;;  %v6691_v0 = vld [vmem:[%s8311_s28 + $0xca4] ss:$16 sps:$4 sm:$0xff]   ;;  %vm1694_vm15 = vcmp.ge.f32.partialorder %v8674_v6, 0.0 }
 0x1be   : > { %5003 = vmatpush1.bf16.msra.mxu0 %v6617_v5  ;;  %v1672_v5 = vadd.f32 %v1619_v52, %v1572_v53  ;;  %v1711_v29 = vmul.f32 0.2, %v1679_v36  ;;  %vm1695_vm13 = vcmp.ge.f32.partialorder %v1679_v36, 0.0  ;;  %v6674_v53 = vld [vmem:[%s8311_s28 + $0xe40] ss:$16 sps:$4 sm:$0xff]  }
 0x1bf   : > { %5044 = vmatpush1.bf16.msra.mxu1 %v6620_v12  ;;  %5004 = vmatprep.subr.bf16.mxu0 %v6625_v13  ;;  %v1674_v12 = vadd.f32 %v1627_v7, %v1574_v3  ;;  %v6652_v13 = vld [vmem:[%s8311_s28 + $0xbc4] ss:$16 sps:$4 sm:$0xff]  }
 0x1c0   : > { %5045 = vmatprep.subr.bf16.mxu1 %v6628_v14  ;;  %v6647_v14 = vld [vmem:[%s8311_s28 + $0x9c0] ss:$16 sps:$4 sm:$0xff]   ;;  %v1704_v62 = vmul.f32 0.2, %v1672_v5  ;;  %vm1688_vm10 = vcmp.ge.f32.partialorder %v1672_v5, 0.0  ;;  %v1727_v44 = vsel %vm1695_vm13, %v1679_v36, %v1711_v29 }
 0x1c1   : > { %vm1690_vm11 = vcmp.ge.f32.partialorder %v1674_v12, 0.0  ;;  %v8698_v47 = vpack.c.bf16 %v1727_v44, %v1727_v44  ;;  %v6679_v3 = vld [vmem:[%s8311_s28 + $0xc64] ss:$16 sps:$4 sm:$0xff]   ;;  %v6704_v36 = vld [vmem:[%s8311_s28 + $0xee0] ss:$16 sps:$4 sm:$0xff]  }
 0x1c2   : > { %5005 = vmatpush1.bf16.msra.mxu0 %v6623_v15  ;;  %v6650_v15 = vld [vmem:[%s8311_s28 + $0xbc0] ss:$16 sps:$4 sm:$0xff]   ;;  %v1720_v31 = vsel %vm1688_vm10, %v1672_v5, %v1704_v62  ;;  %v6709_v62 = vld [vmem:[%s8311_s28 + $0xd04] ss:$16 sps:$4 sm:$0xff]  }
 0x1c3   : > { %5046 = vmatpush1.bf16.msra.mxu1 %v6626_v16  ;;  %5006 = vmatprep.subr.bf16.mxu0 %v6631_v17  ;;  %v6655_v16 = vld [vmem:[%s8311_s28 + $0x9e4] ss:$16 sps:$4 sm:$0xff]   ;;  %v1677_v17 = vadd.f32 %v1639_v56, %v1577_v61  ;;  %v8688_v52 = vpack.c.bf16 %v1720_v31, %v1720_v31  ;;  %v6683_v61 = vld [vmem:[%s8311_s28 + $0xc80] ss:$16 sps:$4 sm:$0xff]  }
 0x1c4   : > { %5047 = vmatprep.subr.bf16.mxu1 %v6634_v19  ;;  %v1706_v19 = vmul.f32 0.2, %v1674_v12  ;;  %v6688_v56 = vld [vmem:[%s8311_s28 + $0xe84] ss:$16 sps:$4 sm:$0xff]   ;;  %v6692_v5 = vld [vmem:[%s8311_s28 + $0xea0] ss:$16 sps:$4 sm:$0xff]  }
 0x1c5   : > { %vm1693_vm12 = vcmp.ge.f32.partialorder %v1677_v17, 0.0  ;;  %v6713_v29 = vld [vmem:[%s8311_s28 + $0xd20] ss:$16 sps:$4 sm:$0xff]  }
 0x1c6   : > { %5007 = vmatpush1.bf16.msra.mxu0 %v6629_v20  ;;  %v6658_v20 = vld [vmem:[%s8311_s28 + $0xbe4] ss:$16 sps:$4 sm:$0xff]   ;;  %v1722_v32 = vsel %vm1690_vm11, %v1674_v12, %v1706_v19  ;;  %v6716_v31 = vld [vmem:[%s8311_s28 + $0xf20] ss:$16 sps:$4 sm:$0xff]  }
 0x1c7   : > { %5048 = vmatpush1.bf16.msra.mxu1 %v6632_v21  ;;  %5008 = vmatprep.subr.bf16.mxu0 %v6637_v28  ;;  %v6653_v21 = vld [vmem:[%s8311_s28 + $0x9e0] ss:$16 sps:$4 sm:$0xff]   ;;  %v1709_v28 = vmul.f32 0.2, %v1677_v17  ;;  %v8690_v7 = vpack.c.bf16 %v1722_v32, %v1722_v32  ;;  %v6697_v12 = vld [vmem:[%s8311_s28 + $0xcc4] ss:$16 sps:$4 sm:$0xff]  }
 0x1c8   : > { %5049 = vmatprep.subr.bf16.mxu1 %v6640_v40  ;;  %v6664_v40 = vld [vmem:[%s8311_s28 + $0xe04] ss:$16 sps:$4 sm:$0xff]   ;;  %v6725_v44 = vld [vmem:[%s8311_s28 + $0xd60] ss:$16 sps:$4 sm:$0xff]  }
 0x1c9   : > { %v1725_v43 = vsel %vm1693_vm12, %v1677_v17, %v1709_v28  ;;  %v6701_v17 = vld [vmem:[%s8311_s28 + $0xce0] ss:$16 sps:$4 sm:$0xff]   ;;  %v6712_v19 = vld [vmem:[%s8311_s28 + $0xf04] ss:$16 sps:$4 sm:$0xff]  }
 0x1ca   : > { %5009 = vmatpush1.bf16.msra.mxu0 %v6635_v22  ;;  %v8696_v2 = vpack.c.bf16 %v1725_v43, %v1725_v43  ;;  %v6676_v22 = vld [vmem:[%s8311_s28 + $0xe44] ss:$16 sps:$4 sm:$0xff]  }
 0x1cb   : > { %5050 = vmatpush1.bf16.msra.mxu1 %v6638_v50  ;;  %5010 = vmatprep.subr.bf16.mxu0 %v6643_v27  ;;  %v6671_v50 = vld [vmem:[%s8311_s28 + $0xc40] ss:$16 sps:$4 sm:$0xff]   ;;  %v6718_v28 = vld [vmem:[%s8311_s28 + $0xf24] ss:$16 sps:$4 sm:$0xff]  }
 0x1cc   : > { %5051 = vmatprep.subr.bf16.mxu1 %v6646_v55  ;;  %v6677_v27 = vld [vmem:[%s8311_s28 + $0xc60] ss:$16 sps:$4 sm:$0xff]   ;;  %v6721_v32 = vld [vmem:[%s8311_s28 + $0xd44] ss:$16 sps:$4 sm:$0xff]  }
 0x1cd   : > { %v6680_v55 = vld [vmem:[%s8311_s28 + $0xe60] ss:$16 sps:$4 sm:$0xff]   ;;  %v6730_v43 = vld [vmem:[%s8311_s28 + $0xf64] ss:$16 sps:$4 sm:$0xff]  }
 0x1ce   : > { %5011 = vmatpush1.bf16.msra.mxu0 %v6641_v8  ;;  %v6694_v8 = vld [vmem:[%s8311_s28 + $0xea4] ss:$16 sps:$4 sm:$0xff]  }
 0x1cf   : > { %5052 = vmatpush1.bf16.msra.mxu1 %v6644_v10  ;;  %5012 = vmatprep.subr.bf16.mxu0 %v6649_v34  ;;  %v6689_v10 = vld [vmem:[%s8311_s28 + $0xca0] ss:$16 sps:$4 sm:$0xff]   ;;  %v6700_v34 = vld [vmem:[%s8311_s28 + $0xec4] ss:$16 sps:$4 sm:$0xff]  }
 0x1d0   : > { %5053 = vmatprep.subr.bf16.mxu1 %v6652_v13  ;;  %v6695_v13 = vld [vmem:[%s8311_s28 + $0xcc0] ss:$16 sps:$4 sm:$0xff]  }
 0x1d2   : > { %5013 = vmatpush1.bf16.msra.mxu0 %v6647_v14  ;;  %v6698_v14 = vld [vmem:[%s8311_s28 + $0xec0] ss:$16 sps:$4 sm:$0xff]  }
 0x1d3   : > { %5054 = vmatpush1.bf16.msra.mxu1 %v6650_v15  ;;  %5014 = vmatprep.subr.bf16.mxu0 %v6655_v16  ;;  %v6703_v15 = vld [vmem:[%s8311_s28 + $0xce4] ss:$16 sps:$4 sm:$0xff]  }
 0x1d4   : > { %5055 = vmatprep.subr.bf16.mxu1 %v6658_v20  ;;  %v6706_v16 = vld [vmem:[%s8311_s28 + $0xee4] ss:$16 sps:$4 sm:$0xff]   ;;  %v6707_v20 = vld [vmem:[%s8311_s28 + $0xd00] ss:$16 sps:$4 sm:$0xff]  }
 0x1d6   : > { %5015 = vmatpush1.bf16.msra.mxu0 %v6653_v21  ;;  %v6710_v21 = vld [vmem:[%s8311_s28 + $0xf00] ss:$16 sps:$4 sm:$0xff]  }
 0x1d7   : > { %5056 = vmatpush1.bf16.msra.mxu1 %v6656_v23  ;;  %5066 = vmatprep.subr.bf16.mxu0 %v6661_v33  ;;  %v6715_v23 = vld [vmem:[%s8311_s28 + $0xd24] ss:$16 sps:$4 sm:$0xff]  }
 0x1d8   : > { %5107 = vmatprep.subr.bf16.mxu1 %v6664_v40  ;;  %v6724_v33 = vld [vmem:[%s8311_s28 + $0xf44] ss:$16 sps:$4 sm:$0xff]   ;;  %v6719_v40 = vld [vmem:[%s8311_s28 + $0xd40] ss:$16 sps:$4 sm:$0xff]  }
 0x1d9   : > { %5017 = vmatmul.mubr.bf16.vlgmr.msra.gmra.mrb[8].mxu0 %v8688_v52 }
 0x1da   : > { %5058 = vmatmul.mubr.bf16.vlgmr.msra.gmra.mrb[8].mxu1 %v8690_v7  ;;  %5067 = vmatpush1.bf16.msra.mxu0 %v6659_v1  ;;  %v6722_v1 = vld [vmem:[%s8311_s28 + $0xf40] ss:$16 sps:$4 sm:$0xff]  }
 0x1db   : > { %5108 = vmatpush1.bf16.msra.mxu1 %v6662_v41  ;;  %5068 = vmatprep.subr.bf16.mxu0 %v6667_v45  ;;  %v6727_v41 = vld [vmem:[%s8311_s28 + $0xd64] ss:$16 sps:$4 sm:$0xff]   ;;  %v6728_v45 = vld [vmem:[%s8311_s28 + $0xf60] ss:$16 sps:$4 sm:$0xff]  }
 0x1dc   : > { %5109 = vmatprep.subr.bf16.mxu1 %v6670_v46  ;;  %5098 = vmatprep.mubr.bf16.mxu0 %v8696_v2  ;;  %v6733_v46 = vld [vmem:[%s8311_s28 + $0xd84] ss:$16 sps:$4 sm:$0xff]  }
 0x1dd   : > { %5139 = vmatprep.mubr.bf16.mxu1 %v8698_v47 }
 0x1de   : > { %5069 = vmatpush1.bf16.msra.mxu0 %v6665_v48  ;;  %v6736_v48 = vld [vmem:[%s8311_s28 + $0xf84] ss:$16 sps:$4 sm:$0xff]  }
 0x1df   : > { %5110 = vmatpush1.bf16.msra.mxu1 %v6668_v18  ;;  %5070 = vmatprep.subr.bf16.mxu0 %v6673_v49  ;;  %v6731_v18 = vld [vmem:[%s8311_s28 + $0xd80] ss:$16 sps:$4 sm:$0xff]  }
 0x1e0   : > { %5111 = vmatprep.subr.bf16.mxu1 %v6676_v22  ;;  %v6734_v49 = vld [vmem:[%s8311_s28 + $0xf80] ss:$16 sps:$4 sm:$0xff]   ;;  %v6739_v22 = vld [vmem:[%s8311_s28 + $0xda4] ss:$16 sps:$4 sm:$0xff]  }
 0x1e2   : > { %5071 = vmatpush1.bf16.msra.mxu0 %v6671_v50  ;;  %v6742_v50 = vld [vmem:[%s8311_s28 + $0xfa4] ss:$16 sps:$4 sm:$0xff]  }
 0x1e3   : > { %5112 = vmatpush1.bf16.msra.mxu1 %v6674_v53  ;;  %5072 = vmatprep.subr.bf16.mxu0 %v6679_v3  ;;  %v6737_v53 = vld [vmem:[%s8311_s28 + $0xda0] ss:$16 sps:$4 sm:$0xff]  }
 0x1e4   : > { %5113 = vmatprep.subr.bf16.mxu1 %v6682_v54  ;;  %v6740_v3 = vld [vmem:[%s8311_s28 + $0xfa0] ss:$16 sps:$4 sm:$0xff]   ;;  %v6745_v54 = vld [vmem:[%s8311_s28 + $0xdc4] ss:$16 sps:$4 sm:$0xff]  }
 0x1e6   : > { %5073 = vmatpush1.bf16.msra.mxu0 %v6677_v27  ;;  %v6748_v27 = vld [vmem:[%s8311_s28 + $0xfc4] ss:$16 sps:$4 sm:$0xff]  }
 0x1e7   : > { %5114 = vmatpush1.bf16.msra.mxu1 %v6680_v55  ;;  %5074 = vmatprep.subr.bf16.mxu0 %v6685_v60  ;;  %v6743_v55 = vld [vmem:[%s8311_s28 + $0xdc0] ss:$16 sps:$4 sm:$0xff]  }
 0x1e8   : > { %5115 = vmatprep.subr.bf16.mxu1 %v6688_v56  ;;  %v6746_v60 = vld [vmem:[%s8311_s28 + $0xfc0] ss:$16 sps:$4 sm:$0xff]   ;;  %v6751_v56 = vld [vmem:[%s8311_s28 + $0xde4] ss:$16 sps:$4 sm:$0xff]  }
 0x1ea   : > { %5075 = vmatpush1.bf16.msra.mxu0 %v6683_v61  ;;  %v1708_v61 = vmul.f32 0.2, %v8670_v35 }
 0x1eb   : > { %5116 = vmatpush1.bf16.msra.mxu1 %v6686_v63  ;;  %5076 = vmatprep.subr.bf16.mxu0 %v6691_v0  ;;  %v1710_v63 = vmul.f32 0.2, %v8674_v6  ;;  %v6754_v0 = vld [vmem:[%s8311_s28 + $0xfe4] ss:$16 sps:$4 sm:$0xff]  }
 0x1ec   : > { %5117 = vmatprep.subr.bf16.mxu1 %v6694_v8  ;;  %v6749_v8 = vld [vmem:[%s8311_s28 + $0xde0] ss:$16 sps:$4 sm:$0xff]  }
 0x1ee   : > { %5077 = vmatpush1.bf16.msra.mxu0 %v6689_v10  ;;  %v6752_v10 = vld [vmem:[%s8311_s28 + $0xfe0] ss:$16 sps:$4 sm:$0xff]  }
 0x1ef   : > { %5118 = vmatpush1.bf16.msra.mxu1 %v6692_v5  ;;  %5078 = vmatprep.subr.bf16.mxu0 %v6697_v12  ;;  %v1724_v5 = vsel %vm1692_vm14, %v8670_v35, %v1708_v61  ;;  %v1726_v12 = vsel %vm1694_vm15, %v8674_v6, %v1710_v63  ;;  %v6766_v35 = vld [vmem:[%s8311_s28 + $0x22c] ss:$16 sps:$4 sm:$0xff]   ;;  %v6761_v6 = vld [vmem:[%s8311_s28 + $0x28] ss:$16 sps:$4 sm:$0xff]  }
 0x1f0   : > { %5119 = vmatprep.subr.bf16.mxu1 %v6700_v34  ;;  %v6757_v34 = vld [vmem:[%s8311_s28 + $0xc] ss:$16 sps:$4 sm:$0xff]  }
 0x1f1   : > { %v6799_v61 = vld [vmem:[%s8311_s28 + $0xec] ss:$16 sps:$4 sm:$0xff]  }
 0x1f2   : > { %5079 = vmatpush1.bf16.msra.mxu0 %v6695_v13  ;;  %v6760_v13 = vld [vmem:[%s8311_s28 + $0x20c] ss:$16 sps:$4 sm:$0xff]  }
 0x1f3   : > { %5120 = vmatpush1.bf16.msra.mxu1 %v6698_v14  ;;  %5080 = vmatprep.subr.bf16.mxu0 %v6703_v15  ;;  %v8770_v14 = vpack.c.bf16 %v1724_v5, %v1724_v5  ;;  %v8772_v15 = vpack.c.bf16 %v1726_v12, %v1726_v12  ;;  %v6802_v63 = vld [vmem:[%s8311_s28 + $0x2ec] ss:$16 sps:$4 sm:$0xff]   ;;  %v6803_v12 = vld [vmem:[%s8311_s28 + $0x108] ss:$16 sps:$4 sm:$0xff]  }
 0x1f4   : > { %5121 = vmatprep.subr.bf16.mxu1 %v6706_v16  ;;  %v6755_v16 = vld [vmem:[%s8311_s28 + $0x8] ss:$16 sps:$4 sm:$0xff]   ;;  %v6808_v5 = vld [vmem:[%s8311_s28 + $0x30c] ss:$16 sps:$4 sm:$0xff]  }
 0x1f6   : > { %5081 = vmatpush1.bf16.msra.mxu0 %v6701_v17  ;;  %v6758_v17 = vld [vmem:[%s8311_s28 + $0x208] ss:$16 sps:$4 sm:$0xff]  }
 0x1f7   : > { %5122 = vmatpush1.bf16.msra.mxu1 %v6704_v36  ;;  %5082 = vmatprep.subr.bf16.mxu0 %v6709_v62  ;;  %v6763_v36 = vld [vmem:[%s8311_s28 + $0x2c] ss:$16 sps:$4 sm:$0xff]   ;;  %v6764_v62 = vld [vmem:[%s8311_s28 + $0x228] ss:$16 sps:$4 sm:$0xff]  }
 0x1f8   : > { %5123 = vmatprep.subr.bf16.mxu1 %v6712_v19  ;;  %v6769_v19 = vld [vmem:[%s8311_s28 + $0x4c] ss:$16 sps:$4 sm:$0xff]  }
 0x1fa   : > { %5083 = vmatpush1.bf16.msra.mxu0 %v6707_v20  ;;  %v6772_v20 = vld [vmem:[%s8311_s28 + $0x24c] ss:$16 sps:$4 sm:$0xff]  }
 0x1fb   : > { %5124 = vmatpush1.bf16.msra.mxu1 %v6710_v21  ;;  %5084 = vmatprep.subr.bf16.mxu0 %v6715_v23  ;;  %v6767_v21 = vld [vmem:[%s8311_s28 + $0x48] ss:$16 sps:$4 sm:$0xff]  }
 0x1fc   : > { %5125 = vmatprep.subr.bf16.mxu1 %v6718_v28  ;;  %v6770_v23 = vld [vmem:[%s8311_s28 + $0x248] ss:$16 sps:$4 sm:$0xff]   ;;  %v6775_v28 = vld [vmem:[%s8311_s28 + $0x6c] ss:$16 sps:$4 sm:$0xff]  }
 0x1fe   : > { %5085 = vmatpush1.bf16.msra.mxu0 %v6713_v29  ;;  %v6778_v29 = vld [vmem:[%s8311_s28 + $0x26c] ss:$16 sps:$4 sm:$0xff]  }
 0x1ff   : > { %5126 = vmatpush1.bf16.msra.mxu1 %v6716_v31  ;;  %5086 = vmatprep.subr.bf16.mxu0 %v6721_v32  ;;  %v6773_v31 = vld [vmem:[%s8311_s28 + $0x68] ss:$16 sps:$4 sm:$0xff]  }
 0x200   : > { %5127 = vmatprep.subr.bf16.mxu1 %v6724_v33  ;;  %v6776_v32 = vld [vmem:[%s8311_s28 + $0x268] ss:$16 sps:$4 sm:$0xff]  }
 0x201   : > { %v6779_v33 = vld [vmem:[%s8311_s28 + $0x88] ss:$16 sps:$4 sm:$0xff]  }
 0x202   : > { %5087 = vmatpush1.bf16.msra.mxu0 %v6719_v40  ;;  %v6782_v40 = vld [vmem:[%s8311_s28 + $0x288] ss:$16 sps:$4 sm:$0xff]  }
 0x203   : > { %5128 = vmatpush1.bf16.msra.mxu1 %v6722_v1  ;;  %5088 = vmatprep.subr.bf16.mxu0 %v6727_v41  ;;  %v6787_v1 = vld [vmem:[%s8311_s28 + $0xac] ss:$16 sps:$4 sm:$0xff]  }
 0x204   : > { %5129 = vmatprep.subr.bf16.mxu1 %v6730_v43  ;;  %v6790_v41 = vld [vmem:[%s8311_s28 + $0x2ac] ss:$16 sps:$4 sm:$0xff]   ;;  %v6785_v43 = vld [vmem:[%s8311_s28 + $0xa8] ss:$16 sps:$4 sm:$0xff]  }
 0x206   : > { %5089 = vmatpush1.bf16.msra.mxu0 %v6725_v44  ;;  %v6788_v44 = vld [vmem:[%s8311_s28 + $0x2a8] ss:$16 sps:$4 sm:$0xff]  }
 0x207   : > { %5130 = vmatpush1.bf16.msra.mxu1 %v6728_v45  ;;  %5090 = vmatprep.subr.bf16.mxu0 %v6733_v46  ;;  %v6793_v45 = vld [vmem:[%s8311_s28 + $0xcc] ss:$16 sps:$4 sm:$0xff]  }
 0x208   : > { %5131 = vmatprep.subr.bf16.mxu1 %v6736_v48  ;;  %v6796_v46 = vld [vmem:[%s8311_s28 + $0x2cc] ss:$16 sps:$4 sm:$0xff]  }
 0x20a   : > { %5091 = vmatpush1.bf16.msra.mxu0 %v6731_v18 }
 0x20b   : > { %5132 = vmatpush1.bf16.msra.mxu1 %v6734_v49  ;;  %5092 = vmatprep.subr.bf16.mxu0 %v6739_v22  ;;  %v6791_v49 = vld [vmem:[%s8311_s28 + $0xc8] ss:$16 sps:$4 sm:$0xff]  }
 0x20c   : > { %5133 = vmatprep.subr.bf16.mxu1 %v6742_v50  ;;  %v6794_v22 = vld [vmem:[%s8311_s28 + $0x2c8] ss:$16 sps:$4 sm:$0xff]  }
 0x20e   : > { %5093 = vmatpush1.bf16.msra.mxu0 %v6737_v53 }
 0x20f   : > { %5134 = vmatpush1.bf16.msra.mxu1 %v6740_v3  ;;  %5094 = vmatprep.subr.bf16.mxu0 %v6745_v54 }
 0x210   : > { %5135 = vmatprep.subr.bf16.mxu1 %v6748_v27 }
 0x212   : > { %5095 = vmatpush1.bf16.msra.mxu0 %v6743_v55 }
 0x213   : > { %5136 = vmatpush1.bf16.msra.mxu1 %v6746_v60  ;;  %5096 = vmatprep.subr.bf16.mxu0 %v6751_v56 }
 0x214   : > { %5137 = vmatprep.subr.bf16.mxu1 %v6754_v0  ;;  %v6797_v0 = vld [vmem:[%s8311_s28 + $0xe8] ss:$16 sps:$4 sm:$0xff]  }
 0x216   : > { %5097 = vmatpush1.bf16.msra.mxu0 %v6749_v8  ;;  %v6800_v8 = vld [vmem:[%s8311_s28 + $0x2e8] ss:$16 sps:$4 sm:$0xff]  }
 0x217   : > { %5138 = vmatpush1.bf16.msra.mxu1 %v6752_v10  ;;  %5148 = vmatprep.subr.bf16.mxu0 %v6757_v34  ;;  %v6805_v10 = vld [vmem:[%s8311_s28 + $0x10c] ss:$16 sps:$4 sm:$0xff]   ;;  %v6806_v34 = vld [vmem:[%s8311_s28 + $0x308] ss:$16 sps:$4 sm:$0xff]  }
 0x218   : > { %5189 = vmatprep.subr.bf16.mxu1 %v6760_v13  ;;  %v6811_v13 = vld [vmem:[%s8311_s28 + $0x12c] ss:$16 sps:$4 sm:$0xff]  }
 0x219   : > { %5099 = vmatmul.mubr.bf16.vlgmr.msra.gmra.mrb[12].mxu0 %v8770_v14 }
 0x21a   : > { %5140 = vmatmul.mubr.bf16.vlgmr.msra.gmra.mrb[12].mxu1 %v8772_v15  ;;  %5149 = vmatpush1.bf16.msra.mxu0 %v6755_v16  ;;  %v6814_v16 = vld [vmem:[%s8311_s28 + $0x32c] ss:$16 sps:$4 sm:$0xff]  }
 0x21b   : > { %5190 = vmatpush1.bf16.msra.mxu1 %v6758_v17  ;;  %5150 = vmatprep.subr.bf16.mxu0 %v6763_v36  ;;  %v6809_v17 = vld [vmem:[%s8311_s28 + $0x128] ss:$16 sps:$4 sm:$0xff]  }
 0x21c   : > { %5191 = vmatprep.subr.bf16.mxu1 %v6766_v35  ;;  %5180 = vmatprep.mubr.bf16.mxu0 %v8374_v51  ;;  %v6781_v51 = vld [vmem:[%s8311_s28 + $0x8c] ss:$16 sps:$4 sm:$0xff]   ;;  %v6812_v36 = vld [vmem:[%s8311_s28 + $0x328] ss:$16 sps:$4 sm:$0xff]  }
 0x21d   : > { %5221 = vmatprep.mubr.bf16.mxu1 %v8383_v58  ;;  %v6784_v58 = vld [vmem:[%s8311_s28 + $0x28c] ss:$16 sps:$4 sm:$0xff]  }
 0x21e   : > { %5151 = vmatpush1.bf16.msra.mxu0 %v6761_v6  ;;  %v6817_v35 = vld [vmem:[%s8311_s28 + $0x14c] ss:$16 sps:$4 sm:$0xff]  }
 0x21f   : > { %5192 = vmatpush1.bf16.msra.mxu1 %v6764_v62  ;;  %5152 = vmatprep.subr.bf16.mxu0 %v6769_v19  ;;  %v6820_v6 = vld [vmem:[%s8311_s28 + $0x34c] ss:$16 sps:$4 sm:$0xff]   ;;  %v6815_v62 = vld [vmem:[%s8311_s28 + $0x148] ss:$16 sps:$4 sm:$0xff]  }
 0x220   : > { %5193 = vmatprep.subr.bf16.mxu1 %v6772_v20  ;;  %v6818_v19 = vld [vmem:[%s8311_s28 + $0x348] ss:$16 sps:$4 sm:$0xff]   ;;  %v6823_v20 = vld [vmem:[%s8311_s28 + $0x16c] ss:$16 sps:$4 sm:$0xff]  }
 0x222   : > { %5153 = vmatpush1.bf16.msra.mxu0 %v6767_v21  ;;  %v6826_v21 = vld [vmem:[%s8311_s28 + $0x36c] ss:$16 sps:$4 sm:$0xff]  }
 0x223   : > { %5194 = vmatpush1.bf16.msra.mxu1 %v6770_v23  ;;  %5154 = vmatprep.subr.bf16.mxu0 %v6775_v28  ;;  %v6821_v23 = vld [vmem:[%s8311_s28 + $0x168] ss:$16 sps:$4 sm:$0xff]  }
 0x224   : > { %5195 = vmatprep.subr.bf16.mxu1 %v6778_v29  ;;  %v6824_v28 = vld [vmem:[%s8311_s28 + $0x368] ss:$16 sps:$4 sm:$0xff]   ;;  %v6829_v29 = vld [vmem:[%s8311_s28 + $0x18c] ss:$16 sps:$4 sm:$0xff]  }
 0x226   : > { %5155 = vmatpush1.bf16.msra.mxu0 %v6773_v31  ;;  %v6832_v31 = vld [vmem:[%s8311_s28 + $0x38c] ss:$16 sps:$4 sm:$0xff]  }
 0x227   : > { %5196 = vmatpush1.bf16.msra.mxu1 %v6776_v32  ;;  %5156 = vmatprep.subr.bf16.mxu0 %v6781_v51  ;;  %v6827_v32 = vld [vmem:[%s8311_s28 + $0x188] ss:$16 sps:$4 sm:$0xff]  }
 0x228   : > { %5197 = vmatprep.subr.bf16.mxu1 %v6784_v58  ;;  %v6830_v51 = vld [vmem:[%s8311_s28 + $0x388] ss:$16 sps:$4 sm:$0xff]   ;;  %v6835_v58 = vld [vmem:[%s8311_s28 + $0x1ac] ss:$16 sps:$4 sm:$0xff]  }
 0x22a   : > { %5157 = vmatpush1.bf16.msra.mxu0 %v6779_v33  ;;  %v6838_v33 = vld [vmem:[%s8311_s28 + $0x3ac] ss:$16 sps:$4 sm:$0xff]  }
 0x22b   : > { %5198 = vmatpush1.bf16.msra.mxu1 %v6782_v40  ;;  %5158 = vmatprep.subr.bf16.mxu0 %v6787_v1  ;;  %v6833_v40 = vld [vmem:[%s8311_s28 + $0x1a8] ss:$16 sps:$4 sm:$0xff]  }
 0x22c   : > { %5199 = vmatprep.subr.bf16.mxu1 %v6790_v41  ;;  %v4854_v48 = vpop.f32.mrb[0].mxu0  ;;  %v6836_v1 = vld [vmem:[%s8311_s28 + $0x3a8] ss:$16 sps:$4 sm:$0xff]   ;;  %v6841_v41 = vld [vmem:[%s8311_s28 + $0x1cc] ss:$16 sps:$4 sm:$0xff]  }
 0x22d   : > { %v4895_v18 = vpop.f32.mrb[0].mxu1  ;;  %v4856_v53 = vpop.f32.mrb[1].mxu0 }
 0x22e   : > { %v8804_v50 = vadd.f32 %v4895_v18, %v4854_v48  ;;  %v4897_v3 = vpop.f32.mrb[1].mxu1  ;;  %v4858_v27 = vpop.f32.mrb[2].mxu0  ;;  %5159 = vmatpush1.bf16.msra.mxu0 %v6785_v43  ;;  %v6844_v43 = vld [vmem:[%s8311_s28 + $0x3cc] ss:$16 sps:$4 sm:$0xff]   ;;  %v6845_v18 = vld [vmem:[%s8311_s28 + $0x1e8] ss:$16 sps:$4 sm:$0xff]  }
 0x22f   : > { %v8806_v54 = vadd.f32 %v4897_v3, %v4856_v53  ;;  %v4899_v55 = vpop.f32.mrb[2].mxu1  ;;  %5200 = vmatpush1.bf16.msra.mxu1 %v6788_v44  ;;  %v4859_v60 = vpop.f32.mrb[3].mxu0  ;;  %5160 = vmatprep.subr.bf16.mxu0 %v6793_v45  ;;  %v6839_v44 = vld [vmem:[%s8311_s28 + $0x1c8] ss:$16 sps:$4 sm:$0xff]   ;;  %v6850_v48 = vld [vmem:[%s8311_s28 + $0x3ec] ss:$16 sps:$4 sm:$0xff]  }
 0x230   : > { %v4900_v56 = vpop.f32.mrb[3].mxu1  ;;  %5201 = vmatprep.subr.bf16.mxu1 %v6796_v46  ;;  %v6842_v45 = vld [vmem:[%s8311_s28 + $0x3c8] ss:$16 sps:$4 sm:$0xff]   ;;  %v6847_v46 = vld [vmem:[%s8311_s28 + $0x1ec] ss:$16 sps:$4 sm:$0xff]  }
 0x231   : > { %v6856_v53 = vld [vmem:[%s8311_s28 + $0x60c] ss:$16 sps:$4 sm:$0xff]   ;;  %v6851_v3 = vld [vmem:[%s8311_s28 + $0x408] ss:$16 sps:$4 sm:$0xff]  }
 0x232   : > { %5161 = vmatpush1.bf16.msra.mxu0 %v6791_v49  ;;  %v6848_v49 = vld [vmem:[%s8311_s28 + $0x3e8] ss:$16 sps:$4 sm:$0xff]   ;;  %v6859_v55 = vld [vmem:[%s8311_s28 + $0x42c] ss:$16 sps:$4 sm:$0xff]  }
 0x233   : > { %5202 = vmatpush1.bf16.msra.mxu1 %v6794_v22  ;;  %5162 = vmatprep.subr.bf16.mxu0 %v6799_v61  ;;  %v6853_v22 = vld [vmem:[%s8311_s28 + $0x40c] ss:$16 sps:$4 sm:$0xff]   ;;  %v6854_v27 = vld [vmem:[%s8311_s28 + $0x608] ss:$16 sps:$4 sm:$0xff]  }
 0x234   : > { %5203 = vmatprep.subr.bf16.mxu1 %v6802_v63  ;;  %v6862_v60 = vld [vmem:[%s8311_s28 + $0x62c] ss:$16 sps:$4 sm:$0xff]   ;;  %v6857_v56 = vld [vmem:[%s8311_s28 + $0x428] ss:$16 sps:$4 sm:$0xff]  }
 0x235   : > { %v6860_v61 = vld [vmem:[%s8311_s28 + $0x628] ss:$16 sps:$4 sm:$0xff]   ;;  %v6865_v63 = vld [vmem:[%s8311_s28 + $0x44c] ss:$16 sps:$4 sm:$0xff]  }
 0x236   : > { %5163 = vmatpush1.bf16.msra.mxu0 %v6797_v0  ;;  %v6868_v0 = vld [vmem:[%s8311_s28 + $0x64c] ss:$16 sps:$4 sm:$0xff]  }
 0x237   : > { %5204 = vmatpush1.bf16.msra.mxu1 %v6800_v8  ;;  %5164 = vmatprep.subr.bf16.mxu0 %v6805_v10  ;;  %v6871_v8 = vld [vmem:[%s8311_s28 + $0x46c] ss:$16 sps:$4 sm:$0xff]  }
 0x238   : > { %5205 = vmatprep.subr.bf16.mxu1 %v6808_v5  ;;  %v6874_v10 = vld [vmem:[%s8311_s28 + $0x66c] ss:$16 sps:$4 sm:$0xff]   ;;  %v6869_v5 = vld [vmem:[%s8311_s28 + $0x468] ss:$16 sps:$4 sm:$0xff]  }
 0x23a   : > { %5165 = vmatpush1.bf16.msra.mxu0 %v6803_v12  ;;  %v6880_v12 = vld [vmem:[%s8311_s28 + $0x68c] ss:$16 sps:$4 sm:$0xff]  }
 0x23b   : > { %5206 = vmatpush1.bf16.msra.mxu1 %v6806_v34  ;;  %5166 = vmatprep.subr.bf16.mxu0 %v6811_v13  ;;  %v6875_v34 = vld [vmem:[%s8311_s28 + $0x488] ss:$16 sps:$4 sm:$0xff]  }
 0x23c   : > { %5207 = vmatprep.subr.bf16.mxu1 %v6814_v16  ;;  %v6878_v13 = vld [vmem:[%s8311_s28 + $0x688] ss:$16 sps:$4 sm:$0xff]   ;;  %v6883_v16 = vld [vmem:[%s8311_s28 + $0x4ac] ss:$16 sps:$4 sm:$0xff]  }
 0x23e   : > { %5167 = vmatpush1.bf16.msra.mxu0 %v6809_v17  ;;  %v6886_v17 = vld [vmem:[%s8311_s28 + $0x6ac] ss:$16 sps:$4 sm:$0xff]  }
 0x23f   : > { %5208 = vmatpush1.bf16.msra.mxu1 %v6812_v36  ;;  %5168 = vmatprep.subr.bf16.mxu0 %v6817_v35  ;;  %v6881_v36 = vld [vmem:[%s8311_s28 + $0x4a8] ss:$16 sps:$4 sm:$0xff]  }
 0x240   : > { %5209 = vmatprep.subr.bf16.mxu1 %v6820_v6  ;;  %v6884_v35 = vld [vmem:[%s8311_s28 + $0x6a8] ss:$16 sps:$4 sm:$0xff]   ;;  %v6889_v6 = vld [vmem:[%s8311_s28 + $0x4cc] ss:$16 sps:$4 sm:$0xff]  }
 0x242   : > { %5169 = vmatpush1.bf16.msra.mxu0 %v6815_v62  ;;  %v6892_v62 = vld [vmem:[%s8311_s28 + $0x6cc] ss:$16 sps:$4 sm:$0xff]  }
 0x243   : > { %5210 = vmatpush1.bf16.msra.mxu1 %v6818_v19  ;;  %5170 = vmatprep.subr.bf16.mxu0 %v6823_v20 }
 0x244   : > { %5211 = vmatprep.subr.bf16.mxu1 %v6826_v21 }
 0x246   : > { %5171 = vmatpush1.bf16.msra.mxu0 %v6821_v23 }
 0x247   : > { %5212 = vmatpush1.bf16.msra.mxu1 %v6824_v28  ;;  %5172 = vmatprep.subr.bf16.mxu0 %v6829_v29 }
 0x248   : > { %5213 = vmatprep.subr.bf16.mxu1 %v6832_v31 }
 0x24a   : > { %5173 = vmatpush1.bf16.msra.mxu0 %v6827_v32 }
 0x24b   : > { %5214 = vmatpush1.bf16.msra.mxu1 %v6830_v51  ;;  %5174 = vmatprep.subr.bf16.mxu0 %v6835_v58  ;;  %v6887_v51 = vld [vmem:[%s8311_s28 + $0x4c8] ss:$16 sps:$4 sm:$0xff]  }
 0x24c   : > { %5215 = vmatprep.subr.bf16.mxu1 %v6838_v33  ;;  %v6890_v58 = vld [vmem:[%s8311_s28 + $0x6c8] ss:$16 sps:$4 sm:$0xff]  }
 0x24e   : > { %5175 = vmatpush1.bf16.msra.mxu0 %v6833_v40 }
 0x24f   : > { %5216 = vmatpush1.bf16.msra.mxu1 %v6836_v1  ;;  %5176 = vmatprep.subr.bf16.mxu0 %v6841_v41 }
 0x250   : > { %5217 = vmatprep.subr.bf16.mxu1 %v6844_v43  ;;  %v6893_v43 = vld [vmem:[%s8311_s28 + $0x4e8] ss:$16 sps:$4 sm:$0xff]  }
 0x252   : > { %5177 = vmatpush1.bf16.msra.mxu0 %v6839_v44  ;;  %v6896_v44 = vld [vmem:[%s8311_s28 + $0x6e8] ss:$16 sps:$4 sm:$0xff]  }
 0x253   : > { %5218 = vmatpush1.bf16.msra.mxu1 %v6842_v45  ;;  %5178 = vmatprep.subr.bf16.mxu0 %v6847_v46  ;;  %v6901_v45 = vld [vmem:[%s8311_s28 + $0x50c] ss:$16 sps:$4 sm:$0xff]  }
 0x254   : > { %5219 = vmatprep.subr.bf16.mxu1 %v6850_v48  ;;  %v6904_v46 = vld [vmem:[%s8311_s28 + $0x70c] ss:$16 sps:$4 sm:$0xff]   ;;  %v6899_v48 = vld [vmem:[%s8311_s28 + $0x508] ss:$16 sps:$4 sm:$0xff]  }
 0x256   : > { %5179 = vmatpush1.bf16.msra.mxu0 %v6845_v18  ;;  %v6902_v18 = vld [vmem:[%s8311_s28 + $0x708] ss:$16 sps:$4 sm:$0xff]  }
 0x257   : > { %5220 = vmatpush1.bf16.msra.mxu1 %v6848_v49  ;;  %5230 = vmatprep.subr.bf16.mxu0 %v6853_v22  ;;  %v6907_v49 = vld [vmem:[%s8311_s28 + $0x52c] ss:$16 sps:$4 sm:$0xff]  }
 0x258   : > { %5271 = vmatprep.subr.bf16.mxu1 %v6856_v53  ;;  %v6910_v22 = vld [vmem:[%s8311_s28 + $0x72c] ss:$16 sps:$4 sm:$0xff]   ;;  %v6905_v53 = vld [vmem:[%s8311_s28 + $0x528] ss:$16 sps:$4 sm:$0xff]  }
 0x259   : > { %5181 = vmatmul.mubr.bf16.vlgmr.msra.gmra.mrb[16].mxu0 %v8464_v24  ;;  %v6863_v24 = vld [vmem:[%s8311_s28 + $0x448] ss:$16 sps:$4 sm:$0xff]  }
 0x25a   : > { %5222 = vmatmul.mubr.bf16.vlgmr.msra.gmra.mrb[16].mxu1 %v8466_v26  ;;  %5231 = vmatpush1.bf16.msra.mxu0 %v6851_v3  ;;  %v6866_v26 = vld [vmem:[%s8311_s28 + $0x648] ss:$16 sps:$4 sm:$0xff]  }
 0x25b   : > { %5272 = vmatpush1.bf16.msra.mxu1 %v6854_v27  ;;  %5232 = vmatprep.subr.bf16.mxu0 %v6859_v55  ;;  %v6908_v3 = vld [vmem:[%s8311_s28 + $0x728] ss:$16 sps:$4 sm:$0xff]   ;;  %v6913_v27 = vld [vmem:[%s8311_s28 + $0x54c] ss:$16 sps:$4 sm:$0xff]  }
 0x25c   : > { %5273 = vmatprep.subr.bf16.mxu1 %v6862_v60  ;;  %5262 = vmatprep.mubr.bf16.mxu0 %v8472_v38  ;;  %v6872_v38 = vld [vmem:[%s8311_s28 + $0x668] ss:$16 sps:$4 sm:$0xff]   ;;  %v6916_v55 = vld [vmem:[%s8311_s28 + $0x74c] ss:$16 sps:$4 sm:$0xff]  }
 0x25d   : > { %5303 = vmatprep.mubr.bf16.mxu1 %v8474_v39  ;;  %v6877_v39 = vld [vmem:[%s8311_s28 + $0x48c] ss:$16 sps:$4 sm:$0xff]   ;;  %v6911_v60 = vld [vmem:[%s8311_s28 + $0x548] ss:$16 sps:$4 sm:$0xff]  }
 0x25e   : > { %5233 = vmatpush1.bf16.msra.mxu0 %v6857_v56  ;;  %v6914_v56 = vld [vmem:[%s8311_s28 + $0x748] ss:$16 sps:$4 sm:$0xff]  }
 0x25f   : > { %5274 = vmatpush1.bf16.msra.mxu1 %v6860_v61  ;;  %5234 = vmatprep.subr.bf16.mxu0 %v6865_v63  ;;  %v6919_v61 = vld [vmem:[%s8311_s28 + $0x56c] ss:$16 sps:$4 sm:$0xff]  }
 0x260   : > { %5275 = vmatprep.subr.bf16.mxu1 %v6868_v0  ;;  %v6922_v63 = vld [vmem:[%s8311_s28 + $0x76c] ss:$16 sps:$4 sm:$0xff]   ;;  %v6917_v0 = vld [vmem:[%s8311_s28 + $0x568] ss:$16 sps:$4 sm:$0xff]  }
 0x262   : > { %5235 = vmatpush1.bf16.msra.mxu0 %v6863_v24  ;;  %v6920_v24 = vld [vmem:[%s8311_s28 + $0x768] ss:$16 sps:$4 sm:$0xff]  }
 0x263   : > { %5276 = vmatpush1.bf16.msra.mxu1 %v6866_v26  ;;  %5236 = vmatprep.subr.bf16.mxu0 %v6871_v8  ;;  %v6925_v26 = vld [vmem:[%s8311_s28 + $0x58c] ss:$16 sps:$4 sm:$0xff]  }
 0x264   : > { %5277 = vmatprep.subr.bf16.mxu1 %v6874_v10  ;;  %v6928_v8 = vld [vmem:[%s8311_s28 + $0x78c] ss:$16 sps:$4 sm:$0xff]   ;;  %v6923_v10 = vld [vmem:[%s8311_s28 + $0x588] ss:$16 sps:$4 sm:$0xff]  }
 0x266   : > { %5237 = vmatpush1.bf16.msra.mxu0 %v6869_v5  ;;  %v6926_v5 = vld [vmem:[%s8311_s28 + $0x788] ss:$16 sps:$4 sm:$0xff]  }
 0x267   : > { %5278 = vmatpush1.bf16.msra.mxu1 %v6872_v38  ;;  %5238 = vmatprep.subr.bf16.mxu0 %v6877_v39  ;;  %v6931_v38 = vld [vmem:[%s8311_s28 + $0x5ac] ss:$16 sps:$4 sm:$0xff]  }
 0x268   : > { %5279 = vmatprep.subr.bf16.mxu1 %v6880_v12  ;;  %v6934_v39 = vld [vmem:[%s8311_s28 + $0x7ac] ss:$16 sps:$4 sm:$0xff]   ;;  %v6929_v12 = vld [vmem:[%s8311_s28 + $0x5a8] ss:$16 sps:$4 sm:$0xff]  }
 0x26a   : > { %5239 = vmatpush1.bf16.msra.mxu0 %v6875_v34  ;;  %v6932_v34 = vld [vmem:[%s8311_s28 + $0x7a8] ss:$16 sps:$4 sm:$0xff]  }
 0x26b   : > { %5280 = vmatpush1.bf16.msra.mxu1 %v6878_v13  ;;  %5240 = vmatprep.subr.bf16.mxu0 %v6883_v16  ;;  %v6937_v13 = vld [vmem:[%s8311_s28 + $0x5cc] ss:$16 sps:$4 sm:$0xff]  }
 0x26c   : > { %5281 = vmatprep.subr.bf16.mxu1 %v6886_v17  ;;  %v4936_v19 = vpop.f32.mrb[4].mxu0  ;;  %v6940_v16 = vld [vmem:[%s8311_s28 + $0x7cc] ss:$16 sps:$4 sm:$0xff]   ;;  %v6935_v17 = vld [vmem:[%s8311_s28 + $0x5c8] ss:$16 sps:$4 sm:$0xff]  }
 0x26d   : > { %v4977_v20 = vpop.f32.mrb[4].mxu1  ;;  %v4937_v21 = vadd.f32 %v4936_v19, %v8804_v50  ;;  %v4938_v23 = vpop.f32.mrb[5].mxu0  ;;  %v6895_v50 = vld [vmem:[%s8311_s28 + $0x4ec] ss:$16 sps:$4 sm:$0xff]   ;;  %v6944_v19 = vld [vmem:[%s8311_s28 + $0x7e8] ss:$16 sps:$4 sm:$0xff]  }
 0x26e   : > { %v4979_v28 = vpop.f32.mrb[5].mxu1  ;;  %v4939_v29 = vadd.f32 %v4938_v23, %v8806_v54  ;;  %v4940_v31 = vpop.f32.mrb[6].mxu0  ;;  %5241 = vmatpush1.bf16.msra.mxu0 %v6881_v36  ;;  %v6898_v54 = vld [vmem:[%s8311_s28 + $0x6ec] ss:$16 sps:$4 sm:$0xff]   ;;  %v6938_v36 = vld [vmem:[%s8311_s28 + $0x7c8] ss:$16 sps:$4 sm:$0xff]  }
 0x26f   : > { %v4981_v32 = vpop.f32.mrb[6].mxu1  ;;  %5282 = vmatpush1.bf16.msra.mxu1 %v6884_v35  ;;  %v8878_v33 = vadd.f32 %v4977_v20, %v4937_v21  ;;  %v4941_v40 = vpop.f32.mrb[7].mxu0  ;;  %5242 = vmatprep.subr.bf16.mxu0 %v6889_v6  ;;  %v6943_v35 = vld [vmem:[%s8311_s28 + $0x5ec] ss:$16 sps:$4 sm:$0xff]   ;;  %v6947_v23 = vld [vmem:[%s8311_s28 + $0x808] ss:$16 sps:$4 sm:$0xff]  }
 0x270   : > { %v4982_v1 = vpop.f32.mrb[7].mxu1  ;;  %5283 = vmatprep.subr.bf16.mxu1 %v6892_v62  ;;  %v8882_v41 = vadd.f32 %v4979_v28, %v4939_v29  ;;  %v6946_v6 = vld [vmem:[%s8311_s28 + $0x7ec] ss:$16 sps:$4 sm:$0xff]   ;;  %v6941_v62 = vld [vmem:[%s8311_s28 + $0x5e8] ss:$16 sps:$4 sm:$0xff]  }
 0x271   : > { %v6949_v20 = vld [vmem:[%s8311_s28 + $0x80c] ss:$16 sps:$4 sm:$0xff]   ;;  %v6950_v28 = vld [vmem:[%s8311_s28 + $0xa08] ss:$16 sps:$4 sm:$0xff]  }
 0x272   : > { %5243 = vmatpush1.bf16.msra.mxu0 %v6887_v51  ;;  %v6952_v21 = vld [vmem:[%s8311_s28 + $0xa0c] ss:$16 sps:$4 sm:$0xff]   ;;  %v6953_v32 = vld [vmem:[%s8311_s28 + $0x828] ss:$16 sps:$4 sm:$0xff]  }
 0x273   : > { %5284 = vmatpush1.bf16.msra.mxu1 %v6890_v58  ;;  %5244 = vmatprep.subr.bf16.mxu0 %v6895_v50  ;;  %v6955_v29 = vld [vmem:[%s8311_s28 + $0x82c] ss:$16 sps:$4 sm:$0xff]   ;;  %v6956_v51 = vld [vmem:[%s8311_s28 + $0xa28] ss:$16 sps:$4 sm:$0xff]  }
 0x274   : > { %5285 = vmatprep.subr.bf16.mxu1 %v6898_v54  ;;  %v6958_v31 = vld [vmem:[%s8311_s28 + $0xa2c] ss:$16 sps:$4 sm:$0xff]   ;;  %v6965_v54 = vld [vmem:[%s8311_s28 + $0x868] ss:$16 sps:$4 sm:$0xff]  }
 0x275   : > { %v6961_v58 = vld [vmem:[%s8311_s28 + $0x84c] ss:$16 sps:$4 sm:$0xff]  }
 0x276   : > { %5245 = vmatpush1.bf16.msra.mxu0 %v6893_v43  ;;  %v6964_v40 = vld [vmem:[%s8311_s28 + $0xa4c] ss:$16 sps:$4 sm:$0xff]  }
 0x277   : > { %5286 = vmatpush1.bf16.msra.mxu1 %v6896_v44  ;;  %5246 = vmatprep.subr.bf16.mxu0 %v6901_v45  ;;  %v6967_v1 = vld [vmem:[%s8311_s28 + $0x86c] ss:$16 sps:$4 sm:$0xff]   ;;  %v6971_v44 = vld [vmem:[%s8311_s28 + $0x888] ss:$16 sps:$4 sm:$0xff]  }
 0x278   : > { %5287 = vmatprep.subr.bf16.mxu1 %v6904_v46  ;;  %v6970_v50 = vld [vmem:[%s8311_s28 + $0xa6c] ss:$16 sps:$4 sm:$0xff]   ;;  %v6974_v45 = vld [vmem:[%s8311_s28 + $0xa88] ss:$16 sps:$4 sm:$0xff]  }
 0x279   : > { %v6976_v43 = vld [vmem:[%s8311_s28 + $0xa8c] ss:$16 sps:$4 sm:$0xff]  }
 0x27a   : > { %5247 = vmatpush1.bf16.msra.mxu0 %v6899_v48  ;;  %v6979_v46 = vld [vmem:[%s8311_s28 + $0x8ac] ss:$16 sps:$4 sm:$0xff]  }
 0x27b   : > { %5288 = vmatpush1.bf16.msra.mxu1 %v6902_v18  ;;  %5248 = vmatprep.subr.bf16.mxu0 %v6907_v49  ;;  %v6982_v48 = vld [vmem:[%s8311_s28 + $0xaac] ss:$16 sps:$4 sm:$0xff]   ;;  %v6977_v18 = vld [vmem:[%s8311_s28 + $0x8a8] ss:$16 sps:$4 sm:$0xff]  }
 0x27c   : > { %5289 = vmatprep.subr.bf16.mxu1 %v6910_v22  ;;  %v6980_v49 = vld [vmem:[%s8311_s28 + $0xaa8] ss:$16 sps:$4 sm:$0xff]   ;;  %v6985_v22 = vld [vmem:[%s8311_s28 + $0x8cc] ss:$16 sps:$4 sm:$0xff]  }
 0x27e   : > { %5249 = vmatpush1.bf16.msra.mxu0 %v6905_v53  ;;  %v6988_v53 = vld [vmem:[%s8311_s28 + $0xacc] ss:$16 sps:$4 sm:$0xff]  }
 0x27f   : > { %5290 = vmatpush1.bf16.msra.mxu1 %v6908_v3  ;;  %5250 = vmatprep.subr.bf16.mxu0 %v6913_v27 }
 0x280   : > { %5291 = vmatprep.subr.bf16.mxu1 %v6916_v55 }
 0x282   : > { %5251 = vmatpush1.bf16.msra.mxu0 %v6911_v60 }
 0x283   : > { %5292 = vmatpush1.bf16.msra.mxu1 %v6914_v56  ;;  %5252 = vmatprep.subr.bf16.mxu0 %v6919_v61 }
 0x284   : > { %5293 = vmatprep.subr.bf16.mxu1 %v6922_v63 }
 0x286   : > { %5253 = vmatpush1.bf16.msra.mxu0 %v6917_v0 }
 0x287   : > { %5294 = vmatpush1.bf16.msra.mxu1 %v6920_v24  ;;  %5254 = vmatprep.subr.bf16.mxu0 %v6925_v26  ;;  %v6983_v24 = vld [vmem:[%s8311_s28 + $0x8c8] ss:$16 sps:$4 sm:$0xff]  }
 0x288   : > { %5295 = vmatprep.subr.bf16.mxu1 %v6928_v8  ;;  %v6986_v26 = vld [vmem:[%s8311_s28 + $0xac8] ss:$16 sps:$4 sm:$0xff]  }
 0x28a   : > { %5255 = vmatpush1.bf16.msra.mxu0 %v6923_v10 }
 0x28b   : > { %5296 = vmatpush1.bf16.msra.mxu1 %v6926_v5  ;;  %5256 = vmatprep.subr.bf16.mxu0 %v6931_v38 }
 0x28c   : > { %5297 = vmatprep.subr.bf16.mxu1 %v6934_v39  ;;  %v6989_v39 = vld [vmem:[%s8311_s28 + $0x8e8] ss:$16 sps:$4 sm:$0xff]  }
 0x28e   : > { %5257 = vmatpush1.bf16.msra.mxu0 %v6929_v12  ;;  %v6992_v12 = vld [vmem:[%s8311_s28 + $0xae8] ss:$16 sps:$4 sm:$0xff]  }
 0x28f   : > { %5298 = vmatpush1.bf16.msra.mxu1 %v6932_v34  ;;  %5258 = vmatprep.subr.bf16.mxu0 %v6937_v13  ;;  %v6997_v34 = vld [vmem:[%s8311_s28 + $0x90c] ss:$16 sps:$4 sm:$0xff]  }
 0x290   : > { %5299 = vmatprep.subr.bf16.mxu1 %v6940_v16  ;;  %v7000_v13 = vld [vmem:[%s8311_s28 + $0xb0c] ss:$16 sps:$4 sm:$0xff]   ;;  %v6995_v16 = vld [vmem:[%s8311_s28 + $0x908] ss:$16 sps:$4 sm:$0xff]  }
 0x292   : > { %5259 = vmatpush1.bf16.msra.mxu0 %v6935_v17  ;;  %v6998_v17 = vld [vmem:[%s8311_s28 + $0xb08] ss:$16 sps:$4 sm:$0xff]  }
 0x293   : > { %5300 = vmatpush1.bf16.msra.mxu1 %v6938_v36  ;;  %5260 = vmatprep.subr.bf16.mxu0 %v6943_v35  ;;  %v7003_v36 = vld [vmem:[%s8311_s28 + $0x92c] ss:$16 sps:$4 sm:$0xff]  }
 0x294   : > { %5301 = vmatprep.subr.bf16.mxu1 %v6946_v6  ;;  %v7006_v35 = vld [vmem:[%s8311_s28 + $0xb2c] ss:$16 sps:$4 sm:$0xff]   ;;  %v7001_v6 = vld [vmem:[%s8311_s28 + $0x928] ss:$16 sps:$4 sm:$0xff]  }
 0x296   : > { %5261 = vmatpush1.bf16.msra.mxu0 %v6941_v62  ;;  %v7004_v62 = vld [vmem:[%s8311_s28 + $0xb28] ss:$16 sps:$4 sm:$0xff]  }
 0x297   : > { %5302 = vmatpush1.bf16.msra.mxu1 %v6944_v19  ;;  %5312 = vmatprep.subr.bf16.mxu0 %v6949_v20  ;;  %v7009_v19 = vld [vmem:[%s8311_s28 + $0x94c] ss:$16 sps:$4 sm:$0xff]  }
 0x298   : > { %5353 = vmatprep.subr.bf16.mxu1 %v6952_v21  ;;  %v7012_v20 = vld [vmem:[%s8311_s28 + $0xb4c] ss:$16 sps:$4 sm:$0xff]   ;;  %v7007_v21 = vld [vmem:[%s8311_s28 + $0x948] ss:$16 sps:$4 sm:$0xff]  }
 0x299   : > { %5263 = vmatmul.mubr.bf16.vlgmr.msra.gmra.mrb[20].mxu0 %v8548_v57  ;;  %v6959_v57 = vld [vmem:[%s8311_s28 + $0x848] ss:$16 sps:$4 sm:$0xff]  }
 0x29a   : > { %5304 = vmatmul.mubr.bf16.vlgmr.msra.gmra.mrb[20].mxu1 %v8550_v59  ;;  %5313 = vmatpush1.bf16.msra.mxu0 %v6947_v23  ;;  %v6962_v59 = vld [vmem:[%s8311_s28 + $0xa48] ss:$16 sps:$4 sm:$0xff]  }
 0x29b   : > { %5354 = vmatpush1.bf16.msra.mxu1 %v6950_v28  ;;  %5314 = vmatprep.subr.bf16.mxu0 %v6955_v29  ;;  %v7010_v23 = vld [vmem:[%s8311_s28 + $0xb48] ss:$16 sps:$4 sm:$0xff]   ;;  %v7015_v28 = vld [vmem:[%s8311_s28 + $0x96c] ss:$16 sps:$4 sm:$0xff]  }
 0x29c   : > { %5355 = vmatprep.subr.bf16.mxu1 %v6958_v31  ;;  %5344 = vmatprep.mubr.bf16.mxu0 %v8594_v37  ;;  %v6968_v37 = vld [vmem:[%s8311_s28 + $0xa68] ss:$16 sps:$4 sm:$0xff]   ;;  %v7018_v29 = vld [vmem:[%s8311_s28 + $0xb6c] ss:$16 sps:$4 sm:$0xff]  }
 0x29d   : > { %5385 = vmatprep.mubr.bf16.mxu1 %v8598_v42  ;;  %v6973_v42 = vld [vmem:[%s8311_s28 + $0x88c] ss:$16 sps:$4 sm:$0xff]   ;;  %v7013_v31 = vld [vmem:[%s8311_s28 + $0x968] ss:$16 sps:$4 sm:$0xff]  }
 0x29e   : > { %5315 = vmatpush1.bf16.msra.mxu0 %v6953_v32  ;;  %v7016_v32 = vld [vmem:[%s8311_s28 + $0xb68] ss:$16 sps:$4 sm:$0xff]  }
 0x29f   : > { %5356 = vmatpush1.bf16.msra.mxu1 %v6956_v51  ;;  %5316 = vmatprep.subr.bf16.mxu0 %v6961_v58  ;;  %v7021_v51 = vld [vmem:[%s8311_s28 + $0x98c] ss:$16 sps:$4 sm:$0xff]  }
 0x2a0   : > { %5357 = vmatprep.subr.bf16.mxu1 %v6964_v40  ;;  %v7024_v58 = vld [vmem:[%s8311_s28 + $0xb8c] ss:$16 sps:$4 sm:$0xff]   ;;  %v7019_v40 = vld [vmem:[%s8311_s28 + $0x988] ss:$16 sps:$4 sm:$0xff]  }
 0x2a2   : > { %5317 = vmatpush1.bf16.msra.mxu0 %v6959_v57  ;;  %v7022_v57 = vld [vmem:[%s8311_s28 + $0xb88] ss:$16 sps:$4 sm:$0xff]  }
 0x2a3   : > { %5358 = vmatpush1.bf16.msra.mxu1 %v6962_v59  ;;  %5318 = vmatprep.subr.bf16.mxu0 %v6967_v1  ;;  %v7027_v59 = vld [vmem:[%s8311_s28 + $0x9ac] ss:$16 sps:$4 sm:$0xff]  }
 0x2a4   : > { %5359 = vmatprep.subr.bf16.mxu1 %v6970_v50  ;;  %v7030_v1 = vld [vmem:[%s8311_s28 + $0xbac] ss:$16 sps:$4 sm:$0xff]   ;;  %v7025_v50 = vld [vmem:[%s8311_s28 + $0x9a8] ss:$16 sps:$4 sm:$0xff]  }
 0x2a6   : > { %5319 = vmatpush1.bf16.msra.mxu0 %v6965_v54  ;;  %v7028_v54 = vld [vmem:[%s8311_s28 + $0xba8] ss:$16 sps:$4 sm:$0xff]  }
 0x2a7   : > { %5360 = vmatpush1.bf16.msra.mxu1 %v6968_v37  ;;  %5320 = vmatprep.subr.bf16.mxu0 %v6973_v42  ;;  %v7033_v37 = vld [vmem:[%s8311_s28 + $0x9cc] ss:$16 sps:$4 sm:$0xff]  }
 0x2a8   : > { %5361 = vmatprep.subr.bf16.mxu1 %v6976_v43  ;;  %v7036_v42 = vld [vmem:[%s8311_s28 + $0xbcc] ss:$16 sps:$4 sm:$0xff]   ;;  %v7031_v43 = vld [vmem:[%s8311_s28 + $0x9c8] ss:$16 sps:$4 sm:$0xff]  }
 0x2aa   : > { %5321 = vmatpush1.bf16.msra.mxu0 %v6971_v44  ;;  %v7034_v44 = vld [vmem:[%s8311_s28 + $0xbc8] ss:$16 sps:$4 sm:$0xff]  }
 0x2ab   : > { %5362 = vmatpush1.bf16.msra.mxu1 %v6974_v45  ;;  %5322 = vmatprep.subr.bf16.mxu0 %v6979_v46  ;;  %v7039_v45 = vld [vmem:[%s8311_s28 + $0x9ec] ss:$16 sps:$4 sm:$0xff]  }
 0x2ac   : > { %5363 = vmatprep.subr.bf16.mxu1 %v6982_v48  ;;  %v5018_v3 = vpop.f32.mrb[8].mxu0  ;;  %v7042_v46 = vld [vmem:[%s8311_s28 + $0xbec] ss:$16 sps:$4 sm:$0xff]   ;;  %v7037_v48 = vld [vmem:[%s8311_s28 + $0x9e8] ss:$16 sps:$4 sm:$0xff]  }
 0x2ad   : > { %v5059_v27 = vpop.f32.mrb[8].mxu1  ;;  %v5019_v55 = vadd.f32 %v5018_v3, %v8878_v33  ;;  %v5020_v60 = vpop.f32.mrb[9].mxu0  ;;  %v6991_v33 = vld [vmem:[%s8311_s28 + $0x8ec] ss:$16 sps:$4 sm:$0xff]   ;;  %v7046_v3 = vld [vmem:[%s8311_s28 + $0xe08] ss:$16 sps:$4 sm:$0xff]  }
 0x2ae   : > { %v5061_v56 = vpop.f32.mrb[9].mxu1  ;;  %v5021_v61 = vadd.f32 %v5020_v60, %v8882_v41  ;;  %v5022_v63 = vpop.f32.mrb[10].mxu0  ;;  %5323 = vmatpush1.bf16.msra.mxu0 %v6977_v18  ;;  %v6994_v41 = vld [vmem:[%s8311_s28 + $0xaec] ss:$16 sps:$4 sm:$0xff]   ;;  %v7040_v18 = vld [vmem:[%s8311_s28 + $0xbe8] ss:$16 sps:$4 sm:$0xff]  }
 0x2af   : > { %v5063_v0 = vpop.f32.mrb[10].mxu1  ;;  %5364 = vmatpush1.bf16.msra.mxu1 %v6980_v49  ;;  %v8952_v8 = vadd.f32 %v5059_v27, %v5019_v55  ;;  %v5023_v10 = vpop.f32.mrb[11].mxu0  ;;  %5324 = vmatprep.subr.bf16.mxu0 %v6985_v22  ;;  %v7045_v49 = vld [vmem:[%s8311_s28 + $0xc0c] ss:$16 sps:$4 sm:$0xff]   ;;  %v7049_v60 = vld [vmem:[%s8311_s28 + $0xc28] ss:$16 sps:$4 sm:$0xff]  }
 0x2b0   : > { %v5064_v5 = vpop.f32.mrb[11].mxu1  ;;  %5365 = vmatprep.subr.bf16.mxu1 %v6988_v53  ;;  %v8956_v38 = vadd.f32 %v5061_v56, %v5021_v61  ;;  %v7048_v22 = vld [vmem:[%s8311_s28 + $0xe0c] ss:$16 sps:$4 sm:$0xff]   ;;  %v7043_v53 = vld [vmem:[%s8311_s28 + $0xc08] ss:$16 sps:$4 sm:$0xff]  }
 0x2b1   : > { %v7051_v27 = vld [vmem:[%s8311_s28 + $0xc2c] ss:$16 sps:$4 sm:$0xff]   ;;  %v7052_v56 = vld [vmem:[%s8311_s28 + $0xe28] ss:$16 sps:$4 sm:$0xff]  }
 0x2b2   : > { %5325 = vmatpush1.bf16.msra.mxu0 %v6983_v24  ;;  %v7054_v55 = vld [vmem:[%s8311_s28 + $0xe2c] ss:$16 sps:$4 sm:$0xff]   ;;  %v7067_v5 = vld [vmem:[%s8311_s28 + $0xc88] ss:$16 sps:$4 sm:$0xff]  }
 0x2b3   : > { %5366 = vmatpush1.bf16.msra.mxu1 %v6986_v26  ;;  %5326 = vmatprep.subr.bf16.mxu0 %v6991_v33  ;;  %v7057_v61 = vld [vmem:[%s8311_s28 + $0xc4c] ss:$16 sps:$4 sm:$0xff]   ;;  %v7064_v26 = vld [vmem:[%s8311_s28 + $0xe68] ss:$16 sps:$4 sm:$0xff]  }
 0x2b4   : > { %5367 = vmatprep.subr.bf16.mxu1 %v6994_v41  ;;  %v7060_v63 = vld [vmem:[%s8311_s28 + $0xe4c] ss:$16 sps:$4 sm:$0xff]   ;;  %v7070_v33 = vld [vmem:[%s8311_s28 + $0xe88] ss:$16 sps:$4 sm:$0xff]  }
 0x2b5   : > { %v7063_v0 = vld [vmem:[%s8311_s28 + $0xc6c] ss:$16 sps:$4 sm:$0xff]  }
 0x2b6   : > { %5327 = vmatpush1.bf16.msra.mxu0 %v6989_v39  ;;  %v7066_v24 = vld [vmem:[%s8311_s28 + $0xe6c] ss:$16 sps:$4 sm:$0xff]  }
 0x2b7   : > { %5368 = vmatpush1.bf16.msra.mxu1 %v6992_v12  ;;  %5328 = vmatprep.subr.bf16.mxu0 %v6997_v34  ;;  %v7072_v10 = vld [vmem:[%s8311_s28 + $0xe8c] ss:$16 sps:$4 sm:$0xff]   ;;  %v9025_v12 = vld [vmem:[%s1426_s7] sm:$0xf]  ;;  %v7073_v34 = vld [vmem:[%s8311_s28 + $0xca8] ss:$16 sps:$4 sm:$0xff]  }
 0x2b8   : > { %5369 = vmatprep.subr.bf16.mxu1 %v7000_v13  ;;  %v7075_v41 = vld [vmem:[%s8311_s28 + $0xcac] ss:$16 sps:$4 sm:$0xff]   ;;  %v7076_v13 = vld [vmem:[%s8311_s28 + $0xea8] ss:$16 sps:$4 sm:$0xff]  }
 0x2b9   : > { %v7078_v39 = vld [vmem:[%s8311_s28 + $0xeac] ss:$16 sps:$4 sm:$0xff]  }
 0x2ba   : > { %5329 = vmatpush1.bf16.msra.mxu0 %v6995_v16  ;;  %v7081_v16 = vld [vmem:[%s8311_s28 + $0xccc] ss:$16 sps:$4 sm:$0xff]  }
 0x2bb   : > { %5370 = vmatpush1.bf16.msra.mxu1 %v6998_v17  ;;  %5330 = vmatprep.subr.bf16.mxu0 %v7003_v36  ;;  %v7084_v17 = vld [vmem:[%s8311_s28 + $0xecc] ss:$16 sps:$4 sm:$0xff]  }
 0x2bc   : > { %5371 = vmatprep.subr.bf16.mxu1 %v7006_v35 }
 0x2be   : > { %5331 = vmatpush1.bf16.msra.mxu0 %v7001_v6 }
 0x2bf   : > { %5372 = vmatpush1.bf16.msra.mxu1 %v7004_v62  ;;  %5332 = vmatprep.subr.bf16.mxu0 %v7009_v19  ;;  %v5496_v62 = vrot.slane %v9025_v12, %v8409_v25 }
 0x2c0   : > { %5373 = vmatprep.subr.bf16.mxu1 %v7012_v20 }
 0x2c2   : > { %5333 = vmatpush1.bf16.msra.mxu0 %v7007_v21 }
 0x2c3   : > { %5374 = vmatpush1.bf16.msra.mxu1 %v7010_v23  ;;  %5334 = vmatprep.subr.bf16.mxu0 %v7015_v28  ;;  %v5500_v23 = vrot.slane %v9025_v12, %v8317_v9 }
 0x2c4   : > { %5375 = vmatprep.subr.bf16.mxu1 %v7018_v29 }
 0x2c6   : > { %5335 = vmatpush1.bf16.msra.mxu0 %v7013_v31  ;;  %v7079_v31 = vld [vmem:[%s8311_s28 + $0xcc8] ss:$16 sps:$4 sm:$0xff]  }
 0x2c7   : > { %5376 = vmatpush1.bf16.msra.mxu1 %v7016_v32  ;;  %5336 = vmatprep.subr.bf16.mxu0 %v7021_v51 }
 0x2c8   : > { %5377 = vmatprep.subr.bf16.mxu1 %v7024_v58  ;;  %v7087_v58 = vld [vmem:[%s8311_s28 + $0xcec] ss:$16 sps:$4 sm:$0xff]  }
 0x2ca   : > { %5337 = vmatpush1.bf16.msra.mxu0 %v7019_v40 }
 0x2cb   : > { %5378 = vmatpush1.bf16.msra.mxu1 %v7022_v57  ;;  %5338 = vmatprep.subr.bf16.mxu0 %v7027_v59  ;;  %v7085_v59 = vld [vmem:[%s8311_s28 + $0xce8] ss:$16 sps:$4 sm:$0xff]  }
 0x2cc   : > { %5379 = vmatprep.subr.bf16.mxu1 %v7030_v1  ;;  %v7088_v1 = vld [vmem:[%s8311_s28 + $0xee8] ss:$16 sps:$4 sm:$0xff]  }
 0x2ce   : > { %5339 = vmatpush1.bf16.msra.mxu0 %v7025_v50 }
 0x2cf   : > { %5380 = vmatpush1.bf16.msra.mxu1 %v7028_v54  ;;  %5340 = vmatprep.subr.bf16.mxu0 %v7033_v37  ;;  %v7093_v37 = vld [vmem:[%s8311_s28 + $0xd0c] ss:$16 sps:$4 sm:$0xff]  }
 0x2d0   : > { %5381 = vmatprep.subr.bf16.mxu1 %v7036_v42  ;;  %v7096_v42 = vld [vmem:[%s8311_s28 + $0xf0c] ss:$16 sps:$4 sm:$0xff]  }
 0x2d2   : > { %5341 = vmatpush1.bf16.msra.mxu0 %v7031_v43 }
 0x2d3   : > { %5382 = vmatpush1.bf16.msra.mxu1 %v7034_v44  ;;  %5342 = vmatprep.subr.bf16.mxu0 %v7039_v45 }
 0x2d4   : > { %5383 = vmatprep.subr.bf16.mxu1 %v7042_v46 }
 0x2d6   : > { %5343 = vmatpush1.bf16.msra.mxu0 %v7037_v48 }
 0x2d7   : > { %5384 = vmatpush1.bf16.msra.mxu1 %v7040_v18  ;;  %5394 = vmatprep.subr.bf16.mxu0 %v7045_v49  ;;  %v7091_v49 = vld [vmem:[%s8311_s28 + $0xd08] ss:$16 sps:$4 sm:$0xff]  }
 0x2d8   : > { %5435 = vmatprep.subr.bf16.mxu1 %v7048_v22  ;;  %v7094_v22 = vld [vmem:[%s8311_s28 + $0xf08] ss:$16 sps:$4 sm:$0xff]  }
 0x2d9   : > { %5345 = vmatmul.mubr.bf16.vlgmr.msra.gmra.mrb[24].mxu0 %v8688_v52  ;;  %v7055_v52 = vld [vmem:[%s8311_s28 + $0xc48] ss:$16 sps:$4 sm:$0xff]  }
 0x2da   : > { %5386 = vmatmul.mubr.bf16.vlgmr.msra.gmra.mrb[24].mxu1 %v8690_v7  ;;  %5395 = vmatpush1.bf16.msra.mxu0 %v7043_v53  ;;  %v7058_v7 = vld [vmem:[%s8311_s28 + $0xe48] ss:$16 sps:$4 sm:$0xff]  }
 0x2db   : > { %5436 = vmatpush1.bf16.msra.mxu1 %v7046_v3  ;;  %5396 = vmatprep.subr.bf16.mxu0 %v7051_v27  ;;  %v7099_v27 = vld [vmem:[%s8311_s28 + $0xd2c] ss:$16 sps:$4 sm:$0xff]  }
 0x2dc   : > { %5437 = vmatprep.subr.bf16.mxu1 %v7054_v55  ;;  %5426 = vmatprep.mubr.bf16.mxu0 %v8696_v2  ;;  %v7061_v2 = vld [vmem:[%s8311_s28 + $0xc68] ss:$16 sps:$4 sm:$0xff]   ;;  %v7102_v55 = vld [vmem:[%s8311_s28 + $0xf2c] ss:$16 sps:$4 sm:$0xff]  }
 0x2dd   : > { %5467 = vmatprep.mubr.bf16.mxu1 %v8698_v47  ;;  %v7069_v47 = vld [vmem:[%s8311_s28 + $0xc8c] ss:$16 sps:$4 sm:$0xff]  }
 0x2de   : > { %5397 = vmatpush1.bf16.msra.mxu0 %v7049_v60 }
 0x2df   : > { %5438 = vmatpush1.bf16.msra.mxu1 %v7052_v56  ;;  %5398 = vmatprep.subr.bf16.mxu0 %v7057_v61 }
 0x2e0   : > { %5439 = vmatprep.subr.bf16.mxu1 %v7060_v63 }
 0x2e2   : > { %5399 = vmatpush1.bf16.msra.mxu0 %v7055_v52 }
 0x2e3   : > { %5440 = vmatpush1.bf16.msra.mxu1 %v7058_v7  ;;  %5400 = vmatprep.subr.bf16.mxu0 %v7063_v0  ;;  %v7097_v0 = vld [vmem:[%s8311_s28 + $0xd28] ss:$16 sps:$4 sm:$0xff]  }
 0x2e4   : > { %5441 = vmatprep.subr.bf16.mxu1 %v7066_v24  ;;  %v7100_v24 = vld [vmem:[%s8311_s28 + $0xf28] ss:$16 sps:$4 sm:$0xff]  }
 0x2e6   : > { %5401 = vmatpush1.bf16.msra.mxu0 %v7061_v2 }
 0x2e7   : > { %5442 = vmatpush1.bf16.msra.mxu1 %v7064_v26  ;;  %5402 = vmatprep.subr.bf16.mxu0 %v7069_v47  ;;  %v7105_v47 = vld [vmem:[%s8311_s28 + $0xd4c] ss:$16 sps:$4 sm:$0xff]  }
 0x2e8   : > { %5443 = vmatprep.subr.bf16.mxu1 %v7072_v10  ;;  %v7108_v10 = vld [vmem:[%s8311_s28 + $0xf4c] ss:$16 sps:$4 sm:$0xff]  }
 0x2ea   : > { %5403 = vmatpush1.bf16.msra.mxu0 %v7067_v5 }
 0x2eb   : > { %5444 = vmatpush1.bf16.msra.mxu1 %v7070_v33  ;;  %5404 = vmatprep.subr.bf16.mxu0 %v7075_v41 }
 0x2ec   : > { %5445 = vmatprep.subr.bf16.mxu1 %v7078_v39  ;;  %v5100_v36 = vpop.f32.mrb[12].mxu0 }
 0x2ed   : > { %v5141_v35 = vpop.f32.mrb[12].mxu1  ;;  %v5101_v6 = vadd.f32 %v5100_v36, %v8952_v8  ;;  %v5102_v19 = vpop.f32.mrb[13].mxu0  ;;  %v7082_v8 = vld [vmem:[%s8311_s28 + $0xec8] ss:$16 sps:$4 sm:$0xff]   ;;  %v7111_v36 = vld [vmem:[%s8311_s28 + $0xd6c] ss:$16 sps:$4 sm:$0xff]  }
 0x2ee   : > { %v5143_v20 = vpop.f32.mrb[13].mxu1  ;;  %v5103_v21 = vadd.f32 %v5102_v19, %v8956_v38  ;;  %v5104_v28 = vpop.f32.mrb[14].mxu0  ;;  %5405 = vmatpush1.bf16.msra.mxu0 %v7073_v34  ;;  %v7090_v38 = vld [vmem:[%s8311_s28 + $0xeec] ss:$16 sps:$4 sm:$0xff]   ;;  %v7103_v34 = vld [vmem:[%s8311_s28 + $0xd48] ss:$16 sps:$4 sm:$0xff]  }
 0x2ef   : > { %v5145_v29 = vpop.f32.mrb[14].mxu1  ;;  %5446 = vmatpush1.bf16.msra.mxu1 %v7076_v13  ;;  %v5142_v32 = vadd.f32 %v5141_v35, %v5101_v6  ;;  %v5105_v51 = vpop.f32.mrb[15].mxu0  ;;  %5406 = vmatprep.subr.bf16.mxu0 %v7081_v16  ;;  %v7106_v13 = vld [vmem:[%s8311_s28 + $0xf48] ss:$16 sps:$4 sm:$0xff]   ;;  %v7114_v35 = vld [vmem:[%s8311_s28 + $0xf6c] ss:$16 sps:$4 sm:$0xff]  }
 0x2f0   : > { %v5146_v25 = vpop.f32.mrb[15].mxu1  ;;  %5447 = vmatprep.subr.bf16.mxu1 %v7084_v17  ;;  %v5144_v9 = vadd.f32 %v5143_v20, %v5103_v21  ;;  %v7109_v21 = vld [vmem:[%s8311_s28 + $0xd68] ss:$16 sps:$4 sm:$0xff]   ;;  %v7117_v29 = vld [vmem:[%s8311_s28 + $0xd8c] ss:$16 sps:$4 sm:$0xff]  }
 0x2f1   : > { %v5513_v40 = vadd.f32 %v5496_v62, %v5142_v32  ;;  %v7118_v32 = vld [vmem:[%s8311_s28 + $0xf88] ss:$16 sps:$4 sm:$0xff]   ;;  %v7123_v51 = vld [vmem:[%s8311_s28 + $0xdac] ss:$16 sps:$4 sm:$0xff]  }
 0x2f2   : > { %v5514_v57 = vadd.f32 %v5500_v23, %v5144_v9  ;;  %5407 = vmatpush1.bf16.msra.mxu0 %v7079_v31  ;;  %v7112_v23 = vld [vmem:[%s8311_s28 + $0xf68] ss:$16 sps:$4 sm:$0xff]   ;;  %v7120_v31 = vld [vmem:[%s8311_s28 + $0xf8c] ss:$16 sps:$4 sm:$0xff]  }
 0x2f3   : > { %5448 = vmatpush1.bf16.msra.mxu1 %v7082_v8  ;;  %5517 = vst [vmem:[%s9045_s11] sm:$0xff] %v5513_v40  ;;  %v5521_v50 = vrot.slane %v5513_v40, 4  ;;  %v5545_v54 = vmul.f32 %v5513_v40, %v5513_v40  ;;  %5408 = vmatprep.subr.bf16.mxu0 %v7087_v58  ;;  %v7115_v8 = vld [vmem:[%s8311_s28 + $0xd88] ss:$16 sps:$4 sm:$0xff]   ;;  %v7126_v25 = vld [vmem:[%s8311_s28 + $0xfac] ss:$16 sps:$4 sm:$0xff]  }
 0x2f4   : > { %5449 = vmatprep.subr.bf16.mxu1 %v7090_v38  ;;  %5518 = vst [vmem:[%s9045_s11 + $0x8] sm:$0xff] %v5514_v57  ;;  %v5527_v43 = vrot.slane %v5514_v57, 4  ;;  %v5546_v44 = vmul.f32 %v5514_v57, %v5514_v57  ;;  %v7121_v58 = vld [vmem:[%s8311_s28 + $0xda8] ss:$16 sps:$4 sm:$0xff]   ;;  %v7129_v9 = vld [vmem:[%s8311_s28 + $0xdcc] ss:$16 sps:$4 sm:$0xff]  }
 0x2f5   : > { %v5522_v45 = vadd.f32 %v5521_v50, %v5513_v40  ;;  %v5549_v46 = vrot.slane %v5545_v54, 4  ;;  %v7124_v38 = vld [vmem:[%s8311_s28 + $0xfa8] ss:$16 sps:$4 sm:$0xff]   ;;  %v7132_v40 = vld [vmem:[%s8311_s28 + $0xfcc] ss:$16 sps:$4 sm:$0xff]  }
 0x2f6   : > { %v5528_v48 = vadd.f32 %v5527_v43, %v5514_v57  ;;  %v5555_v18 = vrot.slane %v5546_v44, 4  ;;  %5409 = vmatpush1.bf16.msra.mxu0 %v7085_v59  ;;  %v7127_v57 = vld [vmem:[%s8311_s28 + $0xdc8] ss:$16 sps:$4 sm:$0xff]   ;;  %v7138_v50 = vld [vmem:[%s8311_s28 + $0xfec] ss:$16 sps:$4 sm:$0xff]  }
 0x2f7   : > { %5450 = vmatpush1.bf16.msra.mxu1 %v7088_v1  ;;  %v5523_v53 = vrot.slane %v5522_v45, 2  ;;  %v5550_v3 = vadd.f32 %v5549_v46, %v5545_v54  ;;  %5410 = vmatprep.subr.bf16.mxu0 %v7093_v37  ;;  %v7130_v59 = vld [vmem:[%s8311_s28 + $0xfc8] ss:$16 sps:$4 sm:$0xff]   ;;  %v7135_v1 = vld [vmem:[%s8311_s28 + $0xdec] ss:$16 sps:$4 sm:$0xff]  }
 0x2f8   : > { %5451 = vmatprep.subr.bf16.mxu1 %v7096_v42  ;;  %v5529_v60 = vrot.slane %v5528_v48, 2  ;;  %v5556_v56 = vadd.f32 %v5555_v18, %v5546_v44  ;;  %v7133_v54 = vld [vmem:[%s8311_s28 + $0xde8] ss:$16 sps:$4 sm:$0xff]  }
 0x2f9   : > { %v5524_v61 = vadd.f32 %v5523_v53, %v5522_v45  ;;  %v5551_v63 = vrot.slane %v5550_v3, 2  ;;  %v7136_v37 = vld [vmem:[%s8311_s28 + $0xfe8] ss:$16 sps:$4 sm:$0xff]   ;;  %s5814_s28 = sshll.u32 %s9138_s27, 1 }
 0x2fa   : > { %v5530_v52 = vadd.f32 %v5529_v60, %v5528_v48  ;;  %v5557_v7 = vrot.slane %v5556_v56, 2  ;;  %5411 = vmatpush1.bf16.msra.mxu0 %v7091_v49  ;;  %s1446_s14 = scalar_lea.vmem %s9130_s6, %s5814_s28 }
 0x2fb   : > { %5452 = vmatpush1.bf16.msra.mxu1 %v7094_v22  ;;  %v5525_v2 = vrot.slane %v5524_v61, 1  ;;  %v5552_v26 = vadd.f32 %v5551_v63, %v5550_v3  ;;  %5412 = vmatprep.subr.bf16.mxu0 %v7099_v27 }
 0x2fc   : > { %5453 = vmatprep.subr.bf16.mxu1 %v7102_v55  ;;  %v5531_v5 = vrot.slane %v5530_v52, 1  ;;  %v5558_v33 = vadd.f32 %v5557_v7, %v5556_v56 }
 0x2fd   : > { %v5553_v41 = vrot.slane %v5552_v26, 1  ;;  %v5526_v16 = vadd.f32 %v5525_v2, %v5524_v61 }
 0x2fe   : > { %v5559_v39 = vrot.slane %v5558_v33, 1  ;;  %5413 = vmatpush1.bf16.msra.mxu0 %v7097_v0  ;;  %v5532_v6 = vadd.f32 %v5531_v5, %v5530_v52 }
 0x2ff   : > { %5454 = vmatpush1.bf16.msra.mxu1 %v7100_v24  ;;  %v5554_v17 = vadd.f32 %v5553_v41, %v5552_v26  ;;  %5414 = vmatprep.subr.bf16.mxu0 %v7105_v47 }
 0x300   : > { %5455 = vmatprep.subr.bf16.mxu1 %v7108_v10  ;;  %v5560_v62 = vadd.f32 %v5559_v39, %v5558_v33 }
 0x301   : > { %v9066_v19 = vsel %vm5573_vm0, %v5526_v16, %v5554_v17 }
 0x302   : > { %v9069_v20 = vsel %vm5573_vm0, %v5532_v6, %v5560_v62  ;;  %5415 = vmatpush1.bf16.msra.mxu0 %v7103_v34  ;;  %v5504_v6 = vrot.slane %v9025_v12, %v8415_v30 }
 0x303   : > { %5456 = vmatpush1.bf16.msra.mxu1 %v7106_v13  ;;  %v5582_v28 = vcombine.low %v9066_v19, %v9069_v20  ;;  %5416 = vmatprep.subr.bf16.mxu0 %v7111_v36 }
 0x304   : > { %5457 = vmatprep.subr.bf16.mxu1 %v7114_v35 }
 0x306   : > { %5417 = vmatpush1.bf16.msra.mxu0 %v7109_v21 }
 0x307   : > { %5458 = vmatpush1.bf16.msra.mxu1 %v7112_v23  ;;  %5418 = vmatprep.subr.bf16.mxu0 %v7117_v29  ;;  %v5508_v29 = vrot.slane %v9025_v12, %v8321_v11 }
 0x308   : > { %5459 = vmatprep.subr.bf16.mxu1 %v7120_v31 }
 0x30a   : > { %5419 = vmatpush1.bf16.msra.mxu0 %v7115_v8 }
 0x30b   : > { %5460 = vmatpush1.bf16.msra.mxu1 %v7118_v32  ;;  %5420 = vmatprep.subr.bf16.mxu0 %v7123_v51 }
 0x30c   : > { %5461 = vmatprep.subr.bf16.mxu1 %v7126_v25 }
 0x30e   : > { %5421 = vmatpush1.bf16.msra.mxu0 %v7121_v58 }
 0x30f   : > { %5462 = vmatpush1.bf16.msra.mxu1 %v7124_v38  ;;  %5422 = vmatprep.subr.bf16.mxu0 %v7129_v9 }
 0x310   : > { %5463 = vmatprep.subr.bf16.mxu1 %v7132_v40 }
 0x312   : > { %5423 = vmatpush1.bf16.msra.mxu0 %v7127_v57 }
 0x313   : > { %5464 = vmatpush1.bf16.msra.mxu1 %v7130_v59  ;;  %5424 = vmatprep.subr.bf16.mxu0 %v7135_v1 }
 0x314   : > { %5465 = vmatprep.subr.bf16.mxu1 %v7138_v50 }
 0x316   : > { %5425 = vmatpush1.bf16.msra.mxu0 %v7133_v54 }
 0x317   : > { %5466 = vmatpush1.bf16.msra.mxu1 %v7136_v37 }
 0x319   : > { %5427 = vmatmul.mubr.bf16.vlgmr.msra.gmra.mrb[28].mxu0 %v8770_v14 }
 0x31a   : > { %5468 = vmatmul.mubr.bf16.vlgmr.msra.gmra.mrb[28].mxu1 %v8772_v15 }
 0x32c   : > { %v5182_v42 = vpop.f32.mrb[16].mxu0 }
 0x32d   : > { %v5223_v43 = vpop.f32.mrb[16].mxu1  ;;  %v5184_v45 = vpop.f32.mrb[17].mxu0 }
 0x32e   : > { %v5224_v44 = vadd.f32 %v5223_v43, %v5182_v42  ;;  %v5225_v46 = vpop.f32.mrb[17].mxu1  ;;  %v5186_v18 = vpop.f32.mrb[18].mxu0 }
 0x32f   : > { %v5226_v48 = vadd.f32 %v5225_v46, %v5184_v45  ;;  %v5227_v49 = vpop.f32.mrb[18].mxu1  ;;  %v5187_v22 = vpop.f32.mrb[19].mxu0 }
 0x330   : > { %v5228_v53 = vpop.f32.mrb[19].mxu1 }
 0x36c   : > { %v5264_v3 = vpop.f32.mrb[20].mxu0 }
 0x36d   : > { %v5305_v27 = vpop.f32.mrb[20].mxu1  ;;  %v5265_v55 = vadd.f32 %v5264_v3, %v5224_v44  ;;  %v5266_v60 = vpop.f32.mrb[21].mxu0  ;;  %v7179_v44 = vmov 1983009808  }
 0x36e   : > { %v5307_v56 = vpop.f32.mrb[21].mxu1  ;;  %v5267_v61 = vadd.f32 %v5266_v60, %v5226_v48  ;;  %v5268_v63 = vpop.f32.mrb[22].mxu0  ;;  %v5585_v45 = vunpack.c.l.s4 %v7179_v44 }
 0x36f   : > { %v5309_v14 = vpop.f32.mrb[22].mxu1  ;;  %v5306_v52 = vadd.f32 %v5305_v27, %v5265_v55  ;;  %v5269_v15 = vpop.f32.mrb[23].mxu0 }
 0x370   : > { %v5310_v7 = vpop.f32.mrb[23].mxu1  ;;  %v5308_v0 = vadd.f32 %v5307_v56, %v5267_v61  ;;  %v5586_v55 = vunpack.c.0.s8 %v5585_v45 }
 0x372   : > { %v5589_v15 = vsub.s32 %v5586_v55, %v8304_v4 }
 0x3ac   : > { %v5346_v24 = vpop.f32.mrb[24].mxu0 }
 0x3ad   : > { %v5387_v2 = vpop.f32.mrb[24].mxu1  ;;  %v5347_v26 = vadd.f32 %v5346_v24, %v5306_v52  ;;  %v5348_v47 = vpop.f32.mrb[25].mxu0 }
 0x3ae   : > { %v5389_v10 = vpop.f32.mrb[25].mxu1  ;;  %v5349_v5 = vadd.f32 %v5348_v47, %v5308_v0  ;;  %v5350_v33 = vpop.f32.mrb[26].mxu0 }
 0x3af   : > { %v5391_v41 = vpop.f32.mrb[26].mxu1  ;;  %v5388_v39 = vadd.f32 %v5387_v2, %v5347_v26  ;;  %v5351_v34 = vpop.f32.mrb[27].mxu0  ;;  %v5590_v2 = vrot.slane %v5582_v28, %v5589_v15 }
 0x3b0   : > { %v5392_v13 = vpop.f32.mrb[27].mxu1  ;;  %v5390_v16 = vadd.f32 %v5389_v10, %v5349_v5 }
 0x3ec   : > { %v5428_v17 = vpop.f32.mrb[28].mxu0 }
 0x3ed   : > { %v5469_v36 = vpop.f32.mrb[28].mxu1  ;;  %v5429_v35 = vadd.f32 %v5428_v17, %v5388_v39  ;;  %v5430_v62 = vpop.f32.mrb[29].mxu0 }
 0x3ee   : > { %v5471_v21 = vpop.f32.mrb[29].mxu1  ;;  %v5431_v23 = vadd.f32 %v5430_v62, %v5390_v16  ;;  %v5432_v31 = vpop.f32.mrb[30].mxu0 }
 0x3ef   : > { %v5473_v8 = vpop.f32.mrb[30].mxu1  ;;  %v5470_v32 = vadd.f32 %v5469_v36, %v5429_v35  ;;  %v5433_v51 = vpop.f32.mrb[31].mxu0 }
 0x3f0   : > { %v5474_v25 = vpop.f32.mrb[31].mxu1  ;;  %v5472_v58 = vadd.f32 %v5471_v21, %v5431_v23 }
 0x3f1   : > { %v5515_v38 = vadd.f32 %v5504_v6, %v5470_v32 }
 0x3f2   : > { %v5516_v9 = vadd.f32 %v5508_v29, %v5472_v58 }
 0x3f3   : > { %5519 = vst [vmem:[%s9045_s11 + $0x10] sm:$0xff] %v5515_v38  ;;  %v5533_v40 = vrot.slane %v5515_v38, 4  ;;  %v5547_v57 = vmul.f32 %v5515_v38, %v5515_v38 }
 0x3f4   : > { %5520 = vst [vmem:[%s9045_s11 + $0x18] sm:$0xff] %v5516_v9  ;;  %v5539_v30 = vrot.slane %v5516_v9, 4  ;;  %v5548_v59 = vmul.f32 %v5516_v9, %v5516_v9 }
 0x3f5   : > { %v5534_v1 = vadd.f32 %v5533_v40, %v5515_v38  ;;  %v5561_v50 = vrot.slane %v5547_v57, 4 }
 0x3f6   : > { %v5540_v54 = vadd.f32 %v5539_v30, %v5516_v9  ;;  %v5567_v37 = vrot.slane %v5548_v59, 4 }
 0x3f7   : > { %v5535_v42 = vrot.slane %v5534_v1, 2  ;;  %v5562_v11 = vadd.f32 %v5561_v50, %v5547_v57 }
 0x3f8   : > { %v5541_v12 = vrot.slane %v5540_v54, 2  ;;  %v5568_v43 = vadd.f32 %v5567_v37, %v5548_v59 }
 0x3f9   : > { %v5536_v46 = vadd.f32 %v5535_v42, %v5534_v1  ;;  %v5563_v48 = vrot.slane %v5562_v11, 2 }
 0x3fa   : > { %v5542_v18 = vadd.f32 %v5541_v12, %v5540_v54  ;;  %v5569_v49 = vrot.slane %v5568_v43, 2 }
 0x3fb   : > { %v5537_v22 = vrot.slane %v5536_v46, 1  ;;  %v5564_v53 = vadd.f32 %v5563_v48, %v5562_v11 }
 0x3fc   : > { %v5543_v3 = vrot.slane %v5542_v18, 1  ;;  %v5570_v27 = vadd.f32 %v5569_v49, %v5568_v43 }
 0x3fd   : > { %v5565_v60 = vrot.slane %v5564_v53, 1  ;;  %v5538_v61 = vadd.f32 %v5537_v22, %v5536_v46 }
 0x3fe   : > { %v5571_v56 = vrot.slane %v5570_v27, 1  ;;  %v5544_v14 = vadd.f32 %v5543_v3, %v5542_v18 }
 0x3ff   : > { %v5566_v63 = vadd.f32 %v5565_v60, %v5564_v53 }
 0x400   : > { %v5572_v52 = vadd.f32 %v5571_v56, %v5570_v27 }
 0x401   : > { %v5576_v7 = vsel %vm5573_vm0, %v5538_v61, %v5566_v63 }
 0x402   : > { %v5577_v0 = vsel %vm5573_vm0, %v5544_v14, %v5572_v52 }
 0x403   : > { %v5583_v24 = vcombine.low %v5576_v7, %v5577_v0 }
 0x405   : > { %v5597_v26 = vrot.slane %v5583_v24, %v5589_v15 }
 0x407   : > { %v5598_v47 = vcombine.low %v5590_v2, %v5597_v26 }
 0x409   : > { %5600 = vst [vmem:[%s1446_s14] sm:$0xff] %v5598_v47 }
 0x40a PF: > { %s17_s25 = sadd.s32 1, %s7177_s25   ;;  %s9131_s21 = smov %s7165_s22 }
 0x40b   : > { %p14_p10 = scmp.ge.s32.totalorder %s17_s25, 4   ;;  %s9132_s22 = smov %s7250_s29 }
 0x40c   : > { %s9133_s23 = smov %s7173_s24  ;;  %s9134_s24 = smov %s9136_s26 }
 0x40d   :  { %16 = sbr.rel (!%p14_p10) target bundleno = 3 (0x3), region = 130 }

</bundles_post_ra>
